<compile_context>
chip_gen: v7x
topology: tpu7x:2x2x1
jax: 0.10.0
libtpu: 0.0.40
codegen_flags: <defaults>
</compile_context>

<pallas_src>
import functools

import jax
import jax.numpy as jnp
from jax import lax
from jax.experimental import pallas as pl
from jax.experimental.pallas import tpu as pltpu


# ----------------------------- Pallas kernel ------------------------------- #

def _shift_lanes(a, s):
    """b[:, p] = a[:, p + s] where p+s is in range, 0 elsewhere (s static)."""
    c, p = a.shape
    if s == 0:
        return a
    if s > 0:
        return jnp.concatenate([a[:, s:], jnp.zeros((c, s), a.dtype)], axis=1)
    return jnp.concatenate([jnp.zeros((c, -s), a.dtype), a[:, :p + s]], axis=1)


def _gdconv_kernel(x_ref, feat_ref, woff_ref, boff_ref, wd_ref, bd_ref,
                   out_ref, offabs_ref, *, H, W, K, PAD, DIL):
    # x_ref    : (1, Cin, P)        input features   (P = H*W, pixels on lanes)
    # feat_ref : (1, Cf,  P)        guiding features
    # woff_ref : (3*K*K, K*K*Cf)    offset-conv weight, col = (tap*Cf + c)
    # boff_ref : (3*K*K, 1)
    # wd_ref   : (Cout, K*K*Cin)    deform-conv weight, col = (tap*Cin + c)
    # bd_ref   : (Cout, 1)
    # out_ref  : (1, Cout, P)       lane-dense NC(HW) output
    # offabs_ref: (1, 1, 128)       per-batch sum(|offset|)
    P = H * W
    nk = K * K

    x = x_ref[0]          # (Cin, P)
    feat = feat_ref[0]    # (Cf,  P)

    # output pixel coordinates, float32, shape (1, P): p = py*W + px
    pf = lax.broadcasted_iota(jnp.int32, (1, P), 1).astype(jnp.float32)
    py = jnp.floor(pf / W + 1e-3)       # epsilon guards exact-integer rounding
    px = pf - py * W

    # -------- offset conv (KxK, stride 1) as one im2col matmul --------------
    cols = []
    for kh in range(K):
        for kw in range(K):
            dy = kh * DIL - PAD
            dx = kw * DIL - PAD
            shifted = _shift_lanes(feat, dy * W + dx)
            valid = ((py + dy >= 0) & (py + dy <= H - 1) &
                     (px + dx >= 0) & (px + dx <= W - 1))
            cols.append(shifted * valid.astype(feat.dtype))
    col_f = jnp.concatenate(cols, axis=0)                         # (nk*Cf, P)
    offs = jnp.dot(woff_ref[...], col_f,
                   preferred_element_type=jnp.float32) + boff_ref[...]  # (3nk, P)

    # offset == first 2*nk channels (cat(o1, o2) of the 3-way chunk)
    s = jnp.sum(jnp.abs(offs[:2 * nk, :]), axis=1, keepdims=True)  # (2nk, 1)
    s = jnp.sum(s, axis=0, keepdims=True)                          # (1, 1)
    offabs_ref[...] = jnp.broadcast_to(s.reshape(1, 1, 1), (1, 1, 128))

    # mask == last nk channels, sigmoid
    mz = offs[2 * nk:, :]                                          # (nk, P)
    mask = 1.0 / (1.0 + jnp.exp(-mz))

    # -------- modulated deformable sampling ----------------------------------
    # source-pixel coordinate planes, (P, P): row q = qy*W + qx
    qf = lax.broadcasted_iota(jnp.int32, (P, P), 0).astype(jnp.float32)
    qy = jnp.floor(qf / W + 1e-3)
    qx = qf - qy * W

    dcols = []
    for t in range(nk):
        kh, kw = t // K, t % K
        sy = py - PAD + kh * DIL + offs[2 * t, :][None, :]          # (1, P)
        sx = px - PAD + kw * DIL + offs[2 * t + 1, :][None, :]      # (1, P)
        # triangular-kernel bilinear interpolation matrix (zero padding):
        #   A[q, p] = relu(1-|sy[p]-qy|) * relu(1-|sx[p]-qx|)
        wy = jnp.maximum(0.0, 1.0 - jnp.abs(sy - qy))               # (P, P)
        wx = jnp.maximum(0.0, 1.0 - jnp.abs(sx - qx))               # (P, P)
        a = wy * wx
        samp = jnp.dot(x, a, preferred_element_type=jnp.float32)    # (Cin, P)
        dcols.append(samp * mask[t, :][None, :])
    col_d = jnp.concatenate(dcols, axis=0)                          # (nk*Cin, P)
    acc = jnp.dot(wd_ref[...], col_d,
                  preferred_element_type=jnp.float32) + bd_ref[...]  # (Cout, P)
    out_ref[0] = acc.astype(out_ref.dtype)


# -------------------------------- wrapper ----------------------------------- #

def gdconv2d_forward(x, feat, params, *, kernel_size=3, stride=1, padding=1,
                     dilation=1):
    """x, feat: NCHW.  Returns (y_nchw, offset_mean)."""
    assert stride == 1, "only stride=1 supported"
    N, Cin, H, W = x.shape
    _, Cf, _, _ = feat.shape
    K = kernel_size
    nk = K * K
    P = H * W

    w_off, b_off = params["w_off"], params["b_off"]     # (3nk, Cf, K, K), (3nk,)
    w_d, b_d = params["w_d"], params["b_d"]              # (Cout, Cin, K, K), (Cout,)
    Koff = w_off.shape[0]
    Cout = w_d.shape[0]

    # weight layout: row = out channel, col = (tap*Cin + c), tap = kh*K + kw
    woff2d = jnp.transpose(w_off, (0, 2, 3, 1)).reshape(Koff, nk * Cf)
    wd2d = jnp.transpose(w_d, (0, 2, 3, 1)).reshape(Cout, nk * Cin)

    x2 = x.reshape(N, Cin, P)       # channels on sublanes, pixels on lanes
    f2 = feat.reshape(N, Cf, P)

    out, offabs = pl.pallas_call(
        functools.partial(_gdconv_kernel, H=H, W=W, K=K, PAD=padding,
                          DIL=dilation),
        out_shape=(jax.ShapeDtypeStruct((N, Cout, P), x.dtype),
                   jax.ShapeDtypeStruct((N, 1, 128), jnp.float32)),
        grid=(N,),
        in_specs=[pl.BlockSpec((1, Cin, P), lambda n: (n, 0, 0)),
                  pl.BlockSpec((1, Cf, P), lambda n: (n, 0, 0)),
                  pl.BlockSpec((Koff, nk * Cf), lambda n: (0, 0)),
                  pl.BlockSpec((Koff, 1), lambda n: (0, 0)),
                  pl.BlockSpec((Cout, nk * Cin), lambda n: (0, 0)),
                  pl.BlockSpec((Cout, 1), lambda n: (0, 0))],
        out_specs=(pl.BlockSpec((1, Cout, P), lambda n: (n, 0, 0)),
                   pl.BlockSpec((1, 1, 128), lambda n: (n, 0, 0))),
        compiler_params=pltpu.CompilerParams(
            dimension_semantics=("parallel",)),
    )(x2, f2, woff2d, b_off.reshape(Koff, 1), wd2d, b_d.reshape(Cout, 1))

    offset_mean = jnp.sum(offabs[:, 0, 0]) / (N * 2 * nk * H * W)
    return out.reshape(N, Cout, H, W), offset_mean


# --------------------------- parameter construction -------------------------- #

def make_params(key, in_channels, out_channels, kernel_size=3,
                deformable_groups=1):
    K = kernel_size
    koff = deformable_groups * 3 * K * K
    k1, k2, k3, k4 = jax.random.split(key, 4)
    fan_in = in_channels * K * K
    s = float(1.0 / (fan_in ** 0.5))

    def uinit(k, shape):
        return jax.random.uniform(k, shape, jnp.float32, minval=-s, maxval=s)

    return {
        "w_off": uinit(k1, (koff, in_channels, K, K)),
        "b_off": uinit(k2, (koff,)),
        "w_d": uinit(k3, (out_channels, in_channels, K, K)),
        "b_d": uinit(k4, (out_channels,)),
    }


# ------------------------------ pure-JAX reference --------------------------- #

def _bilinear_sample(x, sy, sx):
    """Zero-padded bilinear sampling.  x: (N,C,H,W); sy, sx: (N,H,W)."""
    N, C, H, W = x.shape
    x_flat = x.reshape(N, C, H * W)
    y0 = jnp.floor(sy)
    x0 = jnp.floor(sx)
    out = jnp.zeros((N, C, H, W), jnp.float32)
    for oy in (0, 1):
        for ox in (0, 1):
            yc = y0 + oy
            xc = x0 + ox
            w = (1.0 - jnp.abs(sy - yc)) * (1.0 - jnp.abs(sx - xc))
            valid = ((yc >= 0) & (yc <= H - 1) & (xc >= 0) & (xc <= W - 1))
            w = jnp.where(valid, w, 0.0)
            yi = jnp.clip(yc, 0, H - 1).astype(jnp.int32)
            xi = jnp.clip(xc, 0, W - 1).astype(jnp.int32)
            idx = (yi * W + xi).reshape(N, 1, H * W)
            v = jnp.take_along_axis(x_flat, idx, axis=2).reshape(N, C, H, W)
            out = out + w[:, None] * v
    return out


def gdconv2d_reference(x, feat, params, *, kernel_size=3, stride=1, padding=1,
                       dilation=1):
    w_off, b_off = params["w_off"], params["b_off"]
    w_d, b_d = params["w_d"], params["b_d"]
    K = kernel_size
    nk = K * K
    N, Cin, H, W = x.shape
    Cout = w_d.shape[0]
    hi = lax.Precision.HIGHEST

    out = lax.conv_general_dilated(
        feat, w_off, window_strides=(stride, stride),
        padding=[(padding, padding), (padding, padding)],
        rhs_dilation=(dilation, dilation),
        dimension_numbers=("NCHW", "OIHW", "NCHW"),
        precision=hi) + b_off[None, :, None, None]

    offset = out[:, :2 * nk]                       # == cat(chunk0, chunk1)
    mask = jax.nn.sigmoid(out[:, 2 * nk:])
    offset_mean = jnp.mean(jnp.abs(offset))

    ys = jnp.arange(H, dtype=jnp.float32)[:, None]     # (H,1)
    xs = jnp.arange(W, dtype=jnp.float32)[None, :]     # (1,W)

    acc = jnp.zeros((N, Cout, H, W), jnp.float32)
    for t in range(nk):
        kh, kw = t // K, t % K
        dy = offset[:, 2 * t]
        dx = offset[:, 2 * t + 1]
        m = mask[:, t]
        sy = ys[None] - padding + kh * dilation + dy
        sx = xs[None] - padding + kw * dilation + dx
        val = _bilinear_sample(x, sy, sx) * m[:, None]
        acc = acc + jnp.einsum("oc,nchw->nohw", w_d[:, :, kh, kw], val,
                               precision=hi)
    acc = acc + b_d[None, :, None, None]
    return acc, offset_mean


# ----------------------------------- main ----------------------------------- #

if __name__ == "__main__":
    key = jax.random.PRNGKey(0)
    kx, kf, kp = jax.random.split(key, 3)

    # GDConv2d(in_channels=8, out_channels=8, kernel_size=3, padding=1)
    N, C, H, W = 2, 8, 16, 16
    Cout = 8

    x = jax.random.normal(kx, (N, C, H, W), jnp.float32)      # deformable input
    feat = jax.random.normal(kf, (N, C, H, W), jnp.float32)   # guiding features
    params = make_params(kp, C, Cout)

    fwd = jax.jit(gdconv2d_forward)
    out, offset_mean = fwd(x, feat, params)
    out = jax.block_until_ready(out)
    offset_mean = float(jax.block_until_ready(offset_mean))
    if offset_mean > 100:   # mirrors the module's host-side warning print
        print("Offset mean is {}, larger than 100.".format(offset_mean))

    ref_out, ref_mean = gdconv2d_reference(x, feat, params)
    ref_out = jax.block_until_ready(ref_out)

    assert out.shape == (N, Cout, H, W)
    max_err = float(jnp.max(jnp.abs(out - ref_out)))
    mean_err = abs(offset_mean - float(ref_mean))
    assert max_err < 1e-2, max_err
    assert mean_err < 1e-2, mean_err
    print("KERNEL_OK")
</pallas_src>

<mosaic_0001>
module attributes {stable_mosaic.version = 11 : i64} {
  func.func @_gdconv_kernel(%arg0: i32, %arg1: memref<1x8x256xf32, #tpu.memory_space<vmem>>, %arg2: memref<1x8x256xf32, #tpu.memory_space<vmem>>, %arg3: memref<27x72xf32, #tpu.memory_space<vmem>>, %arg4: memref<27x1xf32, #tpu.memory_space<vmem>>, %arg5: memref<8x72xf32, #tpu.memory_space<vmem>>, %arg6: memref<8x1xf32, #tpu.memory_space<vmem>>, %arg7: memref<1x8x256xf32, #tpu.memory_space<vmem>>, %arg8: memref<1x1x128xf32, #tpu.memory_space<vmem>>) attributes {dimension_semantics = [#tpu.dimension_semantics<parallel>], iteration_bounds = array<i64: 2>, scalar_prefetch = 0 : i64, scratch_operands = 0 : i64, tpu.core_type = #tpu.core_type<tc>, window_params = [{transform_indices = @transform_0, window_bounds = array<i64: 1, 8, 256>}, {transform_indices = @transform_1, window_bounds = array<i64: 1, 8, 256>}, {pipeline_mode = #tpu.pipeline_mode<synchronous>, transform_indices = @transform_2, window_bounds = array<i64: 27, 72>}, {pipeline_mode = #tpu.pipeline_mode<synchronous>, transform_indices = @transform_3, window_bounds = array<i64: 27, 1>}, {pipeline_mode = #tpu.pipeline_mode<synchronous>, transform_indices = @transform_4, window_bounds = array<i64: 8, 72>}, {pipeline_mode = #tpu.pipeline_mode<synchronous>, transform_indices = @transform_5, window_bounds = array<i64: 8, 1>}, {transform_indices = @transform_6, window_bounds = array<i64: 1, 8, 256>}, {transform_indices = @transform_7, window_bounds = array<i64: 1, 1, 128>}]} {
    %c0 = arith.constant 0 : index
    %c0_0 = arith.constant 0 : index
    %c0_1 = arith.constant 0 : index
    %0 = vector.load %arg1[%c0, %c0_0, %c0_1] : memref<1x8x256xf32, #tpu.memory_space<vmem>>, vector<1x8x256xf32>
    %1 = vector.shape_cast %0 : vector<1x8x256xf32> to vector<8x256xf32>
    %c0_2 = arith.constant 0 : index
    %c0_3 = arith.constant 0 : index
    %c0_4 = arith.constant 0 : index
    %2 = vector.load %arg2[%c0_2, %c0_3, %c0_4] : memref<1x8x256xf32, #tpu.memory_space<vmem>>, vector<1x8x256xf32>
    %3 = vector.shape_cast %2 : vector<1x8x256xf32> to vector<8x256xf32>
    %4 = tpu.iota {dimensions = array<i32: 1>} : vector<1x256xi32>
    %5 = arith.sitofp %4 : vector<1x256xi32> to vector<1x256xf32>
    %cst = arith.constant 1.600000e+01 : f32
    %6 = vector.broadcast %cst : f32 to vector<1x256xf32>
    %7 = arith.divf %5, %6 : vector<1x256xf32>
    %cst_5 = arith.constant 1.000000e-03 : f32
    %8 = vector.broadcast %cst_5 : f32 to vector<1x256xf32>
    %9 = arith.addf %7, %8 : vector<1x256xf32>
    %10 = math.floor %9 : vector<1x256xf32>
    %cst_6 = arith.constant 1.600000e+01 : f32
    %11 = vector.broadcast %cst_6 : f32 to vector<1x256xf32>
    %12 = arith.mulf %10, %11 : vector<1x256xf32>
    %13 = arith.subf %5, %12 : vector<1x256xf32>
    %cst_7 = arith.constant 0.000000e+00 : f32
    %14 = vector.broadcast %cst_7 : f32 to vector<8x17xf32>
    %15 = vector.extract_strided_slice %3 {offsets = [0, 0], sizes = [8, 239], strides = [1, 1]} : vector<8x256xf32> to vector<8x239xf32>
    %16 = tpu.concatenate %14, %15 in 1 : vector<8x17xf32>, vector<8x239xf32> -> vector<8x256xf32>
    %cst_8 = arith.constant -1.000000e+00 : f32
    %17 = vector.broadcast %cst_8 : f32 to vector<1x256xf32>
    %18 = arith.addf %10, %17 : vector<1x256xf32>
    %cst_9 = arith.constant 0.000000e+00 : f32
    %19 = vector.broadcast %cst_9 : f32 to vector<1x256xf32>
    %20 = arith.cmpf oge, %18, %19 : vector<1x256xf32>
    %cst_10 = arith.constant -1.000000e+00 : f32
    %21 = vector.broadcast %cst_10 : f32 to vector<1x256xf32>
    %22 = arith.addf %10, %21 : vector<1x256xf32>
    %cst_11 = arith.constant 1.500000e+01 : f32
    %23 = vector.broadcast %cst_11 : f32 to vector<1x256xf32>
    %24 = arith.cmpf ole, %22, %23 : vector<1x256xf32>
    %25 = arith.andi %20, %24 : vector<1x256xi1>
    %cst_12 = arith.constant -1.000000e+00 : f32
    %26 = vector.broadcast %cst_12 : f32 to vector<1x256xf32>
    %27 = arith.addf %13, %26 : vector<1x256xf32>
    %cst_13 = arith.constant 0.000000e+00 : f32
    %28 = vector.broadcast %cst_13 : f32 to vector<1x256xf32>
    %29 = arith.cmpf oge, %27, %28 : vector<1x256xf32>
    %30 = arith.andi %25, %29 : vector<1x256xi1>
    %cst_14 = arith.constant -1.000000e+00 : f32
    %31 = vector.broadcast %cst_14 : f32 to vector<1x256xf32>
    %32 = arith.addf %13, %31 : vector<1x256xf32>
    %cst_15 = arith.constant 1.500000e+01 : f32
    %33 = vector.broadcast %cst_15 : f32 to vector<1x256xf32>
    %34 = arith.cmpf ole, %32, %33 : vector<1x256xf32>
    %35 = arith.andi %30, %34 : vector<1x256xi1>
    %36 = arith.extui %35 : vector<1x256xi1> to vector<1x256xi32>
    %37 = arith.sitofp %36 : vector<1x256xi32> to vector<1x256xf32>
    %38 = vector.broadcast %37 : vector<1x256xf32> to vector<8x256xf32>
    %39 = arith.mulf %16, %38 : vector<8x256xf32>
    %cst_16 = arith.constant 0.000000e+00 : f32
    %40 = vector.broadcast %cst_16 : f32 to vector<8x16xf32>
    %41 = vector.extract_strided_slice %3 {offsets = [0, 0], sizes = [8, 240], strides = [1, 1]} : vector<8x256xf32> to vector<8x240xf32>
    %42 = tpu.concatenate %40, %41 in 1 : vector<8x16xf32>, vector<8x240xf32> -> vector<8x256xf32>
    %cst_17 = arith.constant -1.000000e+00 : f32
    %43 = vector.broadcast %cst_17 : f32 to vector<1x256xf32>
    %44 = arith.addf %10, %43 : vector<1x256xf32>
    %cst_18 = arith.constant 0.000000e+00 : f32
    %45 = vector.broadcast %cst_18 : f32 to vector<1x256xf32>
    %46 = arith.cmpf oge, %44, %45 : vector<1x256xf32>
    %cst_19 = arith.constant -1.000000e+00 : f32
    %47 = vector.broadcast %cst_19 : f32 to vector<1x256xf32>
    %48 = arith.addf %10, %47 : vector<1x256xf32>
    %cst_20 = arith.constant 1.500000e+01 : f32
    %49 = vector.broadcast %cst_20 : f32 to vector<1x256xf32>
    %50 = arith.cmpf ole, %48, %49 : vector<1x256xf32>
    %51 = arith.andi %46, %50 : vector<1x256xi1>
    %cst_21 = arith.constant 0.000000e+00 : f32
    %52 = vector.broadcast %cst_21 : f32 to vector<1x256xf32>
    %53 = arith.addf %13, %52 : vector<1x256xf32>
    %cst_22 = arith.constant 0.000000e+00 : f32
    %54 = vector.broadcast %cst_22 : f32 to vector<1x256xf32>
    %55 = arith.cmpf oge, %53, %54 : vector<1x256xf32>
    %56 = arith.andi %51, %55 : vector<1x256xi1>
    %cst_23 = arith.constant 0.000000e+00 : f32
    %57 = vector.broadcast %cst_23 : f32 to vector<1x256xf32>
    %58 = arith.addf %13, %57 : vector<1x256xf32>
    %cst_24 = arith.constant 1.500000e+01 : f32
    %59 = vector.broadcast %cst_24 : f32 to vector<1x256xf32>
    %60 = arith.cmpf ole, %58, %59 : vector<1x256xf32>
    %61 = arith.andi %56, %60 : vector<1x256xi1>
    %62 = arith.extui %61 : vector<1x256xi1> to vector<1x256xi32>
    %63 = arith.sitofp %62 : vector<1x256xi32> to vector<1x256xf32>
    %64 = vector.broadcast %63 : vector<1x256xf32> to vector<8x256xf32>
    %65 = arith.mulf %42, %64 : vector<8x256xf32>
    %cst_25 = arith.constant 0.000000e+00 : f32
    %66 = vector.broadcast %cst_25 : f32 to vector<8x15xf32>
    %67 = vector.extract_strided_slice %3 {offsets = [0, 0], sizes = [8, 241], strides = [1, 1]} : vector<8x256xf32> to vector<8x241xf32>
    %68 = tpu.concatenate %66, %67 in 1 : vector<8x15xf32>, vector<8x241xf32> -> vector<8x256xf32>
    %cst_26 = arith.constant -1.000000e+00 : f32
    %69 = vector.broadcast %cst_26 : f32 to vector<1x256xf32>
    %70 = arith.addf %10, %69 : vector<1x256xf32>
    %cst_27 = arith.constant 0.000000e+00 : f32
    %71 = vector.broadcast %cst_27 : f32 to vector<1x256xf32>
    %72 = arith.cmpf oge, %70, %71 : vector<1x256xf32>
    %cst_28 = arith.constant -1.000000e+00 : f32
    %73 = vector.broadcast %cst_28 : f32 to vector<1x256xf32>
    %74 = arith.addf %10, %73 : vector<1x256xf32>
    %cst_29 = arith.constant 1.500000e+01 : f32
    %75 = vector.broadcast %cst_29 : f32 to vector<1x256xf32>
    %76 = arith.cmpf ole, %74, %75 : vector<1x256xf32>
    %77 = arith.andi %72, %76 : vector<1x256xi1>
    %cst_30 = arith.constant 1.000000e+00 : f32
    %78 = vector.broadcast %cst_30 : f32 to vector<1x256xf32>
    %79 = arith.addf %13, %78 : vector<1x256xf32>
    %cst_31 = arith.constant 0.000000e+00 : f32
    %80 = vector.broadcast %cst_31 : f32 to vector<1x256xf32>
    %81 = arith.cmpf oge, %79, %80 : vector<1x256xf32>
    %82 = arith.andi %77, %81 : vector<1x256xi1>
    %cst_32 = arith.constant 1.000000e+00 : f32
    %83 = vector.broadcast %cst_32 : f32 to vector<1x256xf32>
    %84 = arith.addf %13, %83 : vector<1x256xf32>
    %cst_33 = arith.constant 1.500000e+01 : f32
    %85 = vector.broadcast %cst_33 : f32 to vector<1x256xf32>
    %86 = arith.cmpf ole, %84, %85 : vector<1x256xf32>
    %87 = arith.andi %82, %86 : vector<1x256xi1>
    %88 = arith.extui %87 : vector<1x256xi1> to vector<1x256xi32>
    %89 = arith.sitofp %88 : vector<1x256xi32> to vector<1x256xf32>
    %90 = vector.broadcast %89 : vector<1x256xf32> to vector<8x256xf32>
    %91 = arith.mulf %68, %90 : vector<8x256xf32>
    %cst_34 = arith.constant 0.000000e+00 : f32
    %92 = vector.broadcast %cst_34 : f32 to vector<8x1xf32>
    %93 = vector.extract_strided_slice %3 {offsets = [0, 0], sizes = [8, 255], strides = [1, 1]} : vector<8x256xf32> to vector<8x255xf32>
    %94 = tpu.concatenate %92, %93 in 1 : vector<8x1xf32>, vector<8x255xf32> -> vector<8x256xf32>
    %cst_35 = arith.constant 0.000000e+00 : f32
    %95 = vector.broadcast %cst_35 : f32 to vector<1x256xf32>
    %96 = arith.addf %10, %95 : vector<1x256xf32>
    %cst_36 = arith.constant 0.000000e+00 : f32
    %97 = vector.broadcast %cst_36 : f32 to vector<1x256xf32>
    %98 = arith.cmpf oge, %96, %97 : vector<1x256xf32>
    %cst_37 = arith.constant 0.000000e+00 : f32
    %99 = vector.broadcast %cst_37 : f32 to vector<1x256xf32>
    %100 = arith.addf %10, %99 : vector<1x256xf32>
    %cst_38 = arith.constant 1.500000e+01 : f32
    %101 = vector.broadcast %cst_38 : f32 to vector<1x256xf32>
    %102 = arith.cmpf ole, %100, %101 : vector<1x256xf32>
    %103 = arith.andi %98, %102 : vector<1x256xi1>
    %cst_39 = arith.constant -1.000000e+00 : f32
    %104 = vector.broadcast %cst_39 : f32 to vector<1x256xf32>
    %105 = arith.addf %13, %104 : vector<1x256xf32>
    %cst_40 = arith.constant 0.000000e+00 : f32
    %106 = vector.broadcast %cst_40 : f32 to vector<1x256xf32>
    %107 = arith.cmpf oge, %105, %106 : vector<1x256xf32>
    %108 = arith.andi %103, %107 : vector<1x256xi1>
    %cst_41 = arith.constant -1.000000e+00 : f32
    %109 = vector.broadcast %cst_41 : f32 to vector<1x256xf32>
    %110 = arith.addf %13, %109 : vector<1x256xf32>
    %cst_42 = arith.constant 1.500000e+01 : f32
    %111 = vector.broadcast %cst_42 : f32 to vector<1x256xf32>
    %112 = arith.cmpf ole, %110, %111 : vector<1x256xf32>
    %113 = arith.andi %108, %112 : vector<1x256xi1>
    %114 = arith.extui %113 : vector<1x256xi1> to vector<1x256xi32>
    %115 = arith.sitofp %114 : vector<1x256xi32> to vector<1x256xf32>
    %116 = vector.broadcast %115 : vector<1x256xf32> to vector<8x256xf32>
    %117 = arith.mulf %94, %116 : vector<8x256xf32>
    %cst_43 = arith.constant 0.000000e+00 : f32
    %118 = vector.broadcast %cst_43 : f32 to vector<1x256xf32>
    %119 = arith.addf %10, %118 : vector<1x256xf32>
    %cst_44 = arith.constant 0.000000e+00 : f32
    %120 = vector.broadcast %cst_44 : f32 to vector<1x256xf32>
    %121 = arith.cmpf oge, %119, %120 : vector<1x256xf32>
    %cst_45 = arith.constant 0.000000e+00 : f32
    %122 = vector.broadcast %cst_45 : f32 to vector<1x256xf32>
    %123 = arith.addf %10, %122 : vector<1x256xf32>
    %cst_46 = arith.constant 1.500000e+01 : f32
    %124 = vector.broadcast %cst_46 : f32 to vector<1x256xf32>
    %125 = arith.cmpf ole, %123, %124 : vector<1x256xf32>
    %126 = arith.andi %121, %125 : vector<1x256xi1>
    %cst_47 = arith.constant 0.000000e+00 : f32
    %127 = vector.broadcast %cst_47 : f32 to vector<1x256xf32>
    %128 = arith.addf %13, %127 : vector<1x256xf32>
    %cst_48 = arith.constant 0.000000e+00 : f32
    %129 = vector.broadcast %cst_48 : f32 to vector<1x256xf32>
    %130 = arith.cmpf oge, %128, %129 : vector<1x256xf32>
    %131 = arith.andi %126, %130 : vector<1x256xi1>
    %cst_49 = arith.constant 0.000000e+00 : f32
    %132 = vector.broadcast %cst_49 : f32 to vector<1x256xf32>
    %133 = arith.addf %13, %132 : vector<1x256xf32>
    %cst_50 = arith.constant 1.500000e+01 : f32
    %134 = vector.broadcast %cst_50 : f32 to vector<1x256xf32>
    %135 = arith.cmpf ole, %133, %134 : vector<1x256xf32>
    %136 = arith.andi %131, %135 : vector<1x256xi1>
    %137 = arith.extui %136 : vector<1x256xi1> to vector<1x256xi32>
    %138 = arith.sitofp %137 : vector<1x256xi32> to vector<1x256xf32>
    %139 = vector.broadcast %138 : vector<1x256xf32> to vector<8x256xf32>
    %140 = arith.mulf %3, %139 : vector<8x256xf32>
    %141 = vector.extract_strided_slice %3 {offsets = [0, 1], sizes = [8, 255], strides = [1, 1]} : vector<8x256xf32> to vector<8x255xf32>
    %cst_51 = arith.constant 0.000000e+00 : f32
    %142 = vector.broadcast %cst_51 : f32 to vector<8x1xf32>
    %143 = tpu.concatenate %141, %142 in 1 : vector<8x255xf32>, vector<8x1xf32> -> vector<8x256xf32>
    %cst_52 = arith.constant 0.000000e+00 : f32
    %144 = vector.broadcast %cst_52 : f32 to vector<1x256xf32>
    %145 = arith.addf %10, %144 : vector<1x256xf32>
    %cst_53 = arith.constant 0.000000e+00 : f32
    %146 = vector.broadcast %cst_53 : f32 to vector<1x256xf32>
    %147 = arith.cmpf oge, %145, %146 : vector<1x256xf32>
    %cst_54 = arith.constant 0.000000e+00 : f32
    %148 = vector.broadcast %cst_54 : f32 to vector<1x256xf32>
    %149 = arith.addf %10, %148 : vector<1x256xf32>
    %cst_55 = arith.constant 1.500000e+01 : f32
    %150 = vector.broadcast %cst_55 : f32 to vector<1x256xf32>
    %151 = arith.cmpf ole, %149, %150 : vector<1x256xf32>
    %152 = arith.andi %147, %151 : vector<1x256xi1>
    %cst_56 = arith.constant 1.000000e+00 : f32
    %153 = vector.broadcast %cst_56 : f32 to vector<1x256xf32>
    %154 = arith.addf %13, %153 : vector<1x256xf32>
    %cst_57 = arith.constant 0.000000e+00 : f32
    %155 = vector.broadcast %cst_57 : f32 to vector<1x256xf32>
    %156 = arith.cmpf oge, %154, %155 : vector<1x256xf32>
    %157 = arith.andi %152, %156 : vector<1x256xi1>
    %cst_58 = arith.constant 1.000000e+00 : f32
    %158 = vector.broadcast %cst_58 : f32 to vector<1x256xf32>
    %159 = arith.addf %13, %158 : vector<1x256xf32>
    %cst_59 = arith.constant 1.500000e+01 : f32
    %160 = vector.broadcast %cst_59 : f32 to vector<1x256xf32>
    %161 = arith.cmpf ole, %159, %160 : vector<1x256xf32>
    %162 = arith.andi %157, %161 : vector<1x256xi1>
    %163 = arith.extui %162 : vector<1x256xi1> to vector<1x256xi32>
    %164 = arith.sitofp %163 : vector<1x256xi32> to vector<1x256xf32>
    %165 = vector.broadcast %164 : vector<1x256xf32> to vector<8x256xf32>
    %166 = arith.mulf %143, %165 : vector<8x256xf32>
    %167 = vector.extract_strided_slice %3 {offsets = [0, 15], sizes = [8, 241], strides = [1, 1]} : vector<8x256xf32> to vector<8x241xf32>
    %cst_60 = arith.constant 0.000000e+00 : f32
    %168 = vector.broadcast %cst_60 : f32 to vector<8x15xf32>
    %169 = tpu.concatenate %167, %168 in 1 : vector<8x241xf32>, vector<8x15xf32> -> vector<8x256xf32>
    %cst_61 = arith.constant 1.000000e+00 : f32
    %170 = vector.broadcast %cst_61 : f32 to vector<1x256xf32>
    %171 = arith.addf %10, %170 : vector<1x256xf32>
    %cst_62 = arith.constant 0.000000e+00 : f32
    %172 = vector.broadcast %cst_62 : f32 to vector<1x256xf32>
    %173 = arith.cmpf oge, %171, %172 : vector<1x256xf32>
    %cst_63 = arith.constant 1.000000e+00 : f32
    %174 = vector.broadcast %cst_63 : f32 to vector<1x256xf32>
    %175 = arith.addf %10, %174 : vector<1x256xf32>
    %cst_64 = arith.constant 1.500000e+01 : f32
    %176 = vector.broadcast %cst_64 : f32 to vector<1x256xf32>
    %177 = arith.cmpf ole, %175, %176 : vector<1x256xf32>
    %178 = arith.andi %173, %177 : vector<1x256xi1>
    %cst_65 = arith.constant -1.000000e+00 : f32
    %179 = vector.broadcast %cst_65 : f32 to vector<1x256xf32>
    %180 = arith.addf %13, %179 : vector<1x256xf32>
    %cst_66 = arith.constant 0.000000e+00 : f32
    %181 = vector.broadcast %cst_66 : f32 to vector<1x256xf32>
    %182 = arith.cmpf oge, %180, %181 : vector<1x256xf32>
    %183 = arith.andi %178, %182 : vector<1x256xi1>
    %cst_67 = arith.constant -1.000000e+00 : f32
    %184 = vector.broadcast %cst_67 : f32 to vector<1x256xf32>
    %185 = arith.addf %13, %184 : vector<1x256xf32>
    %cst_68 = arith.constant 1.500000e+01 : f32
    %186 = vector.broadcast %cst_68 : f32 to vector<1x256xf32>
    %187 = arith.cmpf ole, %185, %186 : vector<1x256xf32>
    %188 = arith.andi %183, %187 : vector<1x256xi1>
    %189 = arith.extui %188 : vector<1x256xi1> to vector<1x256xi32>
    %190 = arith.sitofp %189 : vector<1x256xi32> to vector<1x256xf32>
    %191 = vector.broadcast %190 : vector<1x256xf32> to vector<8x256xf32>
    %192 = arith.mulf %169, %191 : vector<8x256xf32>
    %193 = vector.extract_strided_slice %3 {offsets = [0, 16], sizes = [8, 240], strides = [1, 1]} : vector<8x256xf32> to vector<8x240xf32>
    %cst_69 = arith.constant 0.000000e+00 : f32
    %194 = vector.broadcast %cst_69 : f32 to vector<8x16xf32>
    %195 = tpu.concatenate %193, %194 in 1 : vector<8x240xf32>, vector<8x16xf32> -> vector<8x256xf32>
    %cst_70 = arith.constant 1.000000e+00 : f32
    %196 = vector.broadcast %cst_70 : f32 to vector<1x256xf32>
    %197 = arith.addf %10, %196 : vector<1x256xf32>
    %cst_71 = arith.constant 0.000000e+00 : f32
    %198 = vector.broadcast %cst_71 : f32 to vector<1x256xf32>
    %199 = arith.cmpf oge, %197, %198 : vector<1x256xf32>
    %cst_72 = arith.constant 1.000000e+00 : f32
    %200 = vector.broadcast %cst_72 : f32 to vector<1x256xf32>
    %201 = arith.addf %10, %200 : vector<1x256xf32>
    %cst_73 = arith.constant 1.500000e+01 : f32
    %202 = vector.broadcast %cst_73 : f32 to vector<1x256xf32>
    %203 = arith.cmpf ole, %201, %202 : vector<1x256xf32>
    %204 = arith.andi %199, %203 : vector<1x256xi1>
    %cst_74 = arith.constant 0.000000e+00 : f32
    %205 = vector.broadcast %cst_74 : f32 to vector<1x256xf32>
    %206 = arith.addf %13, %205 : vector<1x256xf32>
    %cst_75 = arith.constant 0.000000e+00 : f32
    %207 = vector.broadcast %cst_75 : f32 to vector<1x256xf32>
    %208 = arith.cmpf oge, %206, %207 : vector<1x256xf32>
    %209 = arith.andi %204, %208 : vector<1x256xi1>
    %cst_76 = arith.constant 0.000000e+00 : f32
    %210 = vector.broadcast %cst_76 : f32 to vector<1x256xf32>
    %211 = arith.addf %13, %210 : vector<1x256xf32>
    %cst_77 = arith.constant 1.500000e+01 : f32
    %212 = vector.broadcast %cst_77 : f32 to vector<1x256xf32>
    %213 = arith.cmpf ole, %211, %212 : vector<1x256xf32>
    %214 = arith.andi %209, %213 : vector<1x256xi1>
    %215 = arith.extui %214 : vector<1x256xi1> to vector<1x256xi32>
    %216 = arith.sitofp %215 : vector<1x256xi32> to vector<1x256xf32>
    %217 = vector.broadcast %216 : vector<1x256xf32> to vector<8x256xf32>
    %218 = arith.mulf %195, %217 : vector<8x256xf32>
    %219 = vector.extract_strided_slice %3 {offsets = [0, 17], sizes = [8, 239], strides = [1, 1]} : vector<8x256xf32> to vector<8x239xf32>
    %cst_78 = arith.constant 0.000000e+00 : f32
    %220 = vector.broadcast %cst_78 : f32 to vector<8x17xf32>
    %221 = tpu.concatenate %219, %220 in 1 : vector<8x239xf32>, vector<8x17xf32> -> vector<8x256xf32>
    %cst_79 = arith.constant 1.000000e+00 : f32
    %222 = vector.broadcast %cst_79 : f32 to vector<1x256xf32>
    %223 = arith.addf %10, %222 : vector<1x256xf32>
    %cst_80 = arith.constant 0.000000e+00 : f32
    %224 = vector.broadcast %cst_80 : f32 to vector<1x256xf32>
    %225 = arith.cmpf oge, %223, %224 : vector<1x256xf32>
    %cst_81 = arith.constant 1.000000e+00 : f32
    %226 = vector.broadcast %cst_81 : f32 to vector<1x256xf32>
    %227 = arith.addf %10, %226 : vector<1x256xf32>
    %cst_82 = arith.constant 1.500000e+01 : f32
    %228 = vector.broadcast %cst_82 : f32 to vector<1x256xf32>
    %229 = arith.cmpf ole, %227, %228 : vector<1x256xf32>
    %230 = arith.andi %225, %229 : vector<1x256xi1>
    %cst_83 = arith.constant 1.000000e+00 : f32
    %231 = vector.broadcast %cst_83 : f32 to vector<1x256xf32>
    %232 = arith.addf %13, %231 : vector<1x256xf32>
    %cst_84 = arith.constant 0.000000e+00 : f32
    %233 = vector.broadcast %cst_84 : f32 to vector<1x256xf32>
    %234 = arith.cmpf oge, %232, %233 : vector<1x256xf32>
    %235 = arith.andi %230, %234 : vector<1x256xi1>
    %cst_85 = arith.constant 1.000000e+00 : f32
    %236 = vector.broadcast %cst_85 : f32 to vector<1x256xf32>
    %237 = arith.addf %13, %236 : vector<1x256xf32>
    %cst_86 = arith.constant 1.500000e+01 : f32
    %238 = vector.broadcast %cst_86 : f32 to vector<1x256xf32>
    %239 = arith.cmpf ole, %237, %238 : vector<1x256xf32>
    %240 = arith.andi %235, %239 : vector<1x256xi1>
    %241 = arith.extui %240 : vector<1x256xi1> to vector<1x256xi32>
    %242 = arith.sitofp %241 : vector<1x256xi32> to vector<1x256xf32>
    %243 = vector.broadcast %242 : vector<1x256xf32> to vector<8x256xf32>
    %244 = arith.mulf %221, %243 : vector<8x256xf32>
    %245 = tpu.concatenate %39, %65, %91, %117, %140, %166, %192, %218, %244 in 0 : vector<8x256xf32>, vector<8x256xf32>, vector<8x256xf32>, vector<8x256xf32>, vector<8x256xf32>, vector<8x256xf32>, vector<8x256xf32>, vector<8x256xf32>, vector<8x256xf32> -> vector<72x256xf32>
    %c0_87 = arith.constant 0 : index
    %c0_88 = arith.constant 0 : index
    %246 = vector.load %arg3[%c0_87, %c0_88] : memref<27x72xf32, #tpu.memory_space<vmem>>, vector<27x72xf32>
    %cst_89 = arith.constant dense<0.000000e+00> : vector<27x256xf32>
    %247 = tpu.matmul %246, %245, %cst_89 {dimension_numbers = #tpu.dot_dimension_numbers<[1], [0], [0], [1], [0, 0, 1, 1], [], []>} : vector<27x72xf32>, vector<72x256xf32>, vector<27x256xf32> -> vector<27x256xf32>
    %c0_90 = arith.constant 0 : index
    %c0_91 = arith.constant 0 : index
    %248 = vector.load %arg4[%c0_90, %c0_91] : memref<27x1xf32, #tpu.memory_space<vmem>>, vector<27x1xf32>
    %249 = vector.broadcast %248 : vector<27x1xf32> to vector<27x256xf32>
    %250 = arith.addf %247, %249 : vector<27x256xf32>
    %251 = vector.extract_strided_slice %250 {offsets = [0, 0], sizes = [18, 256], strides = [1, 1]} : vector<27x256xf32> to vector<18x256xf32>
    %252 = math.absf %251 : vector<18x256xf32>
    %cst_92 = arith.constant dense<0.000000e+00> : vector<18xf32>
    %253 = vector.multi_reduction <add>, %252, %cst_92 [1] : vector<18x256xf32> to vector<18xf32>
    %254 = vector.shape_cast %253 : vector<18xf32> to vector<18x1xf32>
    %cst_93 = arith.constant dense<0.000000e+00> : vector<1xf32>
    %255 = vector.multi_reduction <add>, %254, %cst_93 [0] : vector<18x1xf32> to vector<1xf32>
    %256 = vector.shape_cast %255 : vector<1xf32> to vector<1x1xf32>
    %257 = vector.shape_cast %256 : vector<1x1xf32> to vector<1x1x1xf32>
    %258 = vector.shape_cast %257 : vector<1x1x1xf32> to vector<1x1x1xf32>
    %259 = vector.broadcast %258 : vector<1x1x1xf32> to vector<1x1x128xf32>
    %c0_94 = arith.constant 0 : index
    %c0_95 = arith.constant 0 : index
    %c0_96 = arith.constant 0 : index
    %260 = vector.load %arg8[%c0_94, %c0_95, %c0_96] : memref<1x1x128xf32, #tpu.memory_space<vmem>>, vector<1x1x128xf32>
    tpu.vector_store %arg8[%c0_94, %c0_95, %c0_96], %259 {strides = array<i32>} : memref<1x1x128xf32, #tpu.memory_space<vmem>>, vector<1x1x128xf32>,
    %261 = vector.extract_strided_slice %250 {offsets = [18, 0], sizes = [9, 256], strides = [1, 1]} : vector<27x256xf32> to vector<9x256xf32>
    %cst_97 = arith.constant 0.000000e+00 : f32
    %262 = vector.broadcast %cst_97 : f32 to vector<9x256xf32>
    %263 = arith.subf %262, %261 : vector<9x256xf32>
    %264 = math.exp %263 : vector<9x256xf32>
    %cst_98 = arith.constant 1.000000e+00 : f32
    %265 = vector.broadcast %cst_98 : f32 to vector<9x256xf32>
    %266 = arith.addf %265, %264 : vector<9x256xf32>
    %cst_99 = arith.constant 1.000000e+00 : f32
    %267 = vector.broadcast %cst_99 : f32 to vector<9x256xf32>
    %268 = arith.divf %267, %266 : vector<9x256xf32>
    %269 = tpu.iota {dimensions = array<i32: 0>} : vector<256x256xi32>
    %270 = arith.sitofp %269 : vector<256x256xi32> to vector<256x256xf32>
    %cst_100 = arith.constant 1.600000e+01 : f32
    %271 = vector.broadcast %cst_100 : f32 to vector<256x256xf32>
    %272 = arith.divf %270, %271 : vector<256x256xf32>
    %cst_101 = arith.constant 1.000000e-03 : f32
    %273 = vector.broadcast %cst_101 : f32 to vector<256x256xf32>
    %274 = arith.addf %272, %273 : vector<256x256xf32>
    %275 = math.floor %274 : vector<256x256xf32>
    %cst_102 = arith.constant 1.600000e+01 : f32
    %276 = vector.broadcast %cst_102 : f32 to vector<256x256xf32>
    %277 = arith.mulf %275, %276 : vector<256x256xf32>
    %278 = arith.subf %270, %277 : vector<256x256xf32>
    %cst_103 = arith.constant 1.000000e+00 : f32
    %279 = vector.broadcast %cst_103 : f32 to vector<1x256xf32>
    %280 = arith.subf %10, %279 : vector<1x256xf32>
    %cst_104 = arith.constant 0.000000e+00 : f32
    %281 = vector.broadcast %cst_104 : f32 to vector<1x256xf32>
    %282 = arith.addf %280, %281 : vector<1x256xf32>
    %283 = vector.extract_strided_slice %250 {offsets = [0, 0], sizes = [1, 256], strides = [1, 1]} : vector<27x256xf32> to vector<1x256xf32>
    %284 = vector.shape_cast %283 : vector<1x256xf32> to vector<256xf32>
    %285 = vector.shape_cast %284 : vector<256xf32> to vector<1x256xf32>
    %286 = arith.addf %282, %285 : vector<1x256xf32>
    %cst_105 = arith.constant 1.000000e+00 : f32
    %287 = vector.broadcast %cst_105 : f32 to vector<1x256xf32>
    %288 = arith.subf %13, %287 : vector<1x256xf32>
    %cst_106 = arith.constant 0.000000e+00 : f32
    %289 = vector.broadcast %cst_106 : f32 to vector<1x256xf32>
    %290 = arith.addf %288, %289 : vector<1x256xf32>
    %291 = vector.extract_strided_slice %250 {offsets = [1, 0], sizes = [1, 256], strides = [1, 1]} : vector<27x256xf32> to vector<1x256xf32>
    %292 = vector.shape_cast %291 : vector<1x256xf32> to vector<256xf32>
    %293 = vector.shape_cast %292 : vector<256xf32> to vector<1x256xf32>
    %294 = arith.addf %290, %293 : vector<1x256xf32>
    %295 = vector.broadcast %286 : vector<1x256xf32> to vector<256x256xf32>
    %296 = arith.subf %295, %275 : vector<256x256xf32>
    %297 = math.absf %296 : vector<256x256xf32>
    %cst_107 = arith.constant 1.000000e+00 : f32
    %298 = vector.broadcast %cst_107 : f32 to vector<256x256xf32>
    %299 = arith.subf %298, %297 : vector<256x256xf32>
    %cst_108 = arith.constant 0.000000e+00 : f32
    %300 = vector.broadcast %cst_108 : f32 to vector<256x256xf32>
    %301 = arith.maximumf %300, %299 : vector<256x256xf32>
    %302 = vector.broadcast %294 : vector<1x256xf32> to vector<256x256xf32>
    %303 = arith.subf %302, %278 : vector<256x256xf32>
    %304 = math.absf %303 : vector<256x256xf32>
    %cst_109 = arith.constant 1.000000e+00 : f32
    %305 = vector.broadcast %cst_109 : f32 to vector<256x256xf32>
    %306 = arith.subf %305, %304 : vector<256x256xf32>
    %cst_110 = arith.constant 0.000000e+00 : f32
    %307 = vector.broadcast %cst_110 : f32 to vector<256x256xf32>
    %308 = arith.maximumf %307, %306 : vector<256x256xf32>
    %309 = arith.mulf %301, %308 : vector<256x256xf32>
    %cst_111 = arith.constant dense<0.000000e+00> : vector<8x256xf32>
    %310 = tpu.matmul %1, %309, %cst_111 {dimension_numbers = #tpu.dot_dimension_numbers<[1], [0], [0], [1], [0, 0, 1, 1], [], []>} : vector<8x256xf32>, vector<256x256xf32>, vector<8x256xf32> -> vector<8x256xf32>
    %311 = vector.extract_strided_slice %268 {offsets = [0, 0], sizes = [1, 256], strides = [1, 1]} : vector<9x256xf32> to vector<1x256xf32>
    %312 = vector.shape_cast %311 : vector<1x256xf32> to vector<256xf32>
    %313 = vector.shape_cast %312 : vector<256xf32> to vector<1x256xf32>
    %314 = vector.broadcast %313 : vector<1x256xf32> to vector<8x256xf32>
    %315 = arith.mulf %310, %314 : vector<8x256xf32>
    %cst_112 = arith.constant 1.000000e+00 : f32
    %316 = vector.broadcast %cst_112 : f32 to vector<1x256xf32>
    %317 = arith.subf %10, %316 : vector<1x256xf32>
    %cst_113 = arith.constant 0.000000e+00 : f32
    %318 = vector.broadcast %cst_113 : f32 to vector<1x256xf32>
    %319 = arith.addf %317, %318 : vector<1x256xf32>
    %320 = vector.extract_strided_slice %250 {offsets = [2, 0], sizes = [1, 256], strides = [1, 1]} : vector<27x256xf32> to vector<1x256xf32>
    %321 = vector.shape_cast %320 : vector<1x256xf32> to vector<256xf32>
    %322 = vector.shape_cast %321 : vector<256xf32> to vector<1x256xf32>
    %323 = arith.addf %319, %322 : vector<1x256xf32>
    %cst_114 = arith.constant 1.000000e+00 : f32
    %324 = vector.broadcast %cst_114 : f32 to vector<1x256xf32>
    %325 = arith.subf %13, %324 : vector<1x256xf32>
    %cst_115 = arith.constant 1.000000e+00 : f32
    %326 = vector.broadcast %cst_115 : f32 to vector<1x256xf32>
    %327 = arith.addf %325, %326 : vector<1x256xf32>
    %328 = vector.extract_strided_slice %250 {offsets = [3, 0], sizes = [1, 256], strides = [1, 1]} : vector<27x256xf32> to vector<1x256xf32>
    %329 = vector.shape_cast %328 : vector<1x256xf32> to vector<256xf32>
    %330 = vector.shape_cast %329 : vector<256xf32> to vector<1x256xf32>
    %331 = arith.addf %327, %330 : vector<1x256xf32>
    %332 = vector.broadcast %323 : vector<1x256xf32> to vector<256x256xf32>
    %333 = arith.subf %332, %275 : vector<256x256xf32>
    %334 = math.absf %333 : vector<256x256xf32>
    %cst_116 = arith.constant 1.000000e+00 : f32
    %335 = vector.broadcast %cst_116 : f32 to vector<256x256xf32>
    %336 = arith.subf %335, %334 : vector<256x256xf32>
    %cst_117 = arith.constant 0.000000e+00 : f32
    %337 = vector.broadcast %cst_117 : f32 to vector<256x256xf32>
    %338 = arith.maximumf %337, %336 : vector<256x256xf32>
    %339 = vector.broadcast %331 : vector<1x256xf32> to vector<256x256xf32>
    %340 = arith.subf %339, %278 : vector<256x256xf32>
    %341 = math.absf %340 : vector<256x256xf32>
    %cst_118 = arith.constant 1.000000e+00 : f32
    %342 = vector.broadcast %cst_118 : f32 to vector<256x256xf32>
    %343 = arith.subf %342, %341 : vector<256x256xf32>
    %cst_119 = arith.constant 0.000000e+00 : f32
    %344 = vector.broadcast %cst_119 : f32 to vector<256x256xf32>
    %345 = arith.maximumf %344, %343 : vector<256x256xf32>
    %346 = arith.mulf %338, %345 : vector<256x256xf32>
    %cst_120 = arith.constant dense<0.000000e+00> : vector<8x256xf32>
    %347 = tpu.matmul %1, %346, %cst_120 {dimension_numbers = #tpu.dot_dimension_numbers<[1], [0], [0], [1], [0, 0, 1, 1], [], []>} : vector<8x256xf32>, vector<256x256xf32>, vector<8x256xf32> -> vector<8x256xf32>
    %348 = vector.extract_strided_slice %268 {offsets = [1, 0], sizes = [1, 256], strides = [1, 1]} : vector<9x256xf32> to vector<1x256xf32>
    %349 = vector.shape_cast %348 : vector<1x256xf32> to vector<256xf32>
    %350 = vector.shape_cast %349 : vector<256xf32> to vector<1x256xf32>
    %351 = vector.broadcast %350 : vector<1x256xf32> to vector<8x256xf32>
    %352 = arith.mulf %347, %351 : vector<8x256xf32>
    %cst_121 = arith.constant 1.000000e+00 : f32
    %353 = vector.broadcast %cst_121 : f32 to vector<1x256xf32>
    %354 = arith.subf %10, %353 : vector<1x256xf32>
    %cst_122 = arith.constant 0.000000e+00 : f32
    %355 = vector.broadcast %cst_122 : f32 to vector<1x256xf32>
    %356 = arith.addf %354, %355 : vector<1x256xf32>
    %357 = vector.extract_strided_slice %250 {offsets = [4, 0], sizes = [1, 256], strides = [1, 1]} : vector<27x256xf32> to vector<1x256xf32>
    %358 = vector.shape_cast %357 : vector<1x256xf32> to vector<256xf32>
    %359 = vector.shape_cast %358 : vector<256xf32> to vector<1x256xf32>
    %360 = arith.addf %356, %359 : vector<1x256xf32>
    %cst_123 = arith.constant 1.000000e+00 : f32
    %361 = vector.broadcast %cst_123 : f32 to vector<1x256xf32>
    %362 = arith.subf %13, %361 : vector<1x256xf32>
    %cst_124 = arith.constant 2.000000e+00 : f32
    %363 = vector.broadcast %cst_124 : f32 to vector<1x256xf32>
    %364 = arith.addf %362, %363 : vector<1x256xf32>
    %365 = vector.extract_strided_slice %250 {offsets = [5, 0], sizes = [1, 256], strides = [1, 1]} : vector<27x256xf32> to vector<1x256xf32>
    %366 = vector.shape_cast %365 : vector<1x256xf32> to vector<256xf32>
    %367 = vector.shape_cast %366 : vector<256xf32> to vector<1x256xf32>
    %368 = arith.addf %364, %367 : vector<1x256xf32>
    %369 = vector.broadcast %360 : vector<1x256xf32> to vector<256x256xf32>
    %370 = arith.subf %369, %275 : vector<256x256xf32>
    %371 = math.absf %370 : vector<256x256xf32>
    %cst_125 = arith.constant 1.000000e+00 : f32
    %372 = vector.broadcast %cst_125 : f32 to vector<256x256xf32>
    %373 = arith.subf %372, %371 : vector<256x256xf32>
    %cst_126 = arith.constant 0.000000e+00 : f32
    %374 = vector.broadcast %cst_126 : f32 to vector<256x256xf32>
    %375 = arith.maximumf %374, %373 : vector<256x256xf32>
    %376 = vector.broadcast %368 : vector<1x256xf32> to vector<256x256xf32>
    %377 = arith.subf %376, %278 : vector<256x256xf32>
    %378 = math.absf %377 : vector<256x256xf32>
    %cst_127 = arith.constant 1.000000e+00 : f32
    %379 = vector.broadcast %cst_127 : f32 to vector<256x256xf32>
    %380 = arith.subf %379, %378 : vector<256x256xf32>
    %cst_128 = arith.constant 0.000000e+00 : f32
    %381 = vector.broadcast %cst_128 : f32 to vector<256x256xf32>
    %382 = arith.maximumf %381, %380 : vector<256x256xf32>
    %383 = arith.mulf %375, %382 : vector<256x256xf32>
    %cst_129 = arith.constant dense<0.000000e+00> : vector<8x256xf32>
    %384 = tpu.matmul %1, %383, %cst_129 {dimension_numbers = #tpu.dot_dimension_numbers<[1], [0], [0], [1], [0, 0, 1, 1], [], []>} : vector<8x256xf32>, vector<256x256xf32>, vector<8x256xf32> -> vector<8x256xf32>
    %385 = vector.extract_strided_slice %268 {offsets = [2, 0], sizes = [1, 256], strides = [1, 1]} : vector<9x256xf32> to vector<1x256xf32>
    %386 = vector.shape_cast %385 : vector<1x256xf32> to vector<256xf32>
    %387 = vector.shape_cast %386 : vector<256xf32> to vector<1x256xf32>
    %388 = vector.broadcast %387 : vector<1x256xf32> to vector<8x256xf32>
    %389 = arith.mulf %384, %388 : vector<8x256xf32>
    %cst_130 = arith.constant 1.000000e+00 : f32
    %390 = vector.broadcast %cst_130 : f32 to vector<1x256xf32>
    %391 = arith.subf %10, %390 : vector<1x256xf32>
    %cst_131 = arith.constant 1.000000e+00 : f32
    %392 = vector.broadcast %cst_131 : f32 to vector<1x256xf32>
    %393 = arith.addf %391, %392 : vector<1x256xf32>
    %394 = vector.extract_strided_slice %250 {offsets = [6, 0], sizes = [1, 256], strides = [1, 1]} : vector<27x256xf32> to vector<1x256xf32>
    %395 = vector.shape_cast %394 : vector<1x256xf32> to vector<256xf32>
    %396 = vector.shape_cast %395 : vector<256xf32> to vector<1x256xf32>
    %397 = arith.addf %393, %396 : vector<1x256xf32>
    %cst_132 = arith.constant 1.000000e+00 : f32
    %398 = vector.broadcast %cst_132 : f32 to vector<1x256xf32>
    %399 = arith.subf %13, %398 : vector<1x256xf32>
    %cst_133 = arith.constant 0.000000e+00 : f32
    %400 = vector.broadcast %cst_133 : f32 to vector<1x256xf32>
    %401 = arith.addf %399, %400 : vector<1x256xf32>
    %402 = vector.extract_strided_slice %250 {offsets = [7, 0], sizes = [1, 256], strides = [1, 1]} : vector<27x256xf32> to vector<1x256xf32>
    %403 = vector.shape_cast %402 : vector<1x256xf32> to vector<256xf32>
    %404 = vector.shape_cast %403 : vector<256xf32> to vector<1x256xf32>
    %405 = arith.addf %401, %404 : vector<1x256xf32>
    %406 = vector.broadcast %397 : vector<1x256xf32> to vector<256x256xf32>
    %407 = arith.subf %406, %275 : vector<256x256xf32>
    %408 = math.absf %407 : vector<256x256xf32>
    %cst_134 = arith.constant 1.000000e+00 : f32
    %409 = vector.broadcast %cst_134 : f32 to vector<256x256xf32>
    %410 = arith.subf %409, %408 : vector<256x256xf32>
    %cst_135 = arith.constant 0.000000e+00 : f32
    %411 = vector.broadcast %cst_135 : f32 to vector<256x256xf32>
    %412 = arith.maximumf %411, %410 : vector<256x256xf32>
    %413 = vector.broadcast %405 : vector<1x256xf32> to vector<256x256xf32>
    %414 = arith.subf %413, %278 : vector<256x256xf32>
    %415 = math.absf %414 : vector<256x256xf32>
    %cst_136 = arith.constant 1.000000e+00 : f32
    %416 = vector.broadcast %cst_136 : f32 to vector<256x256xf32>
    %417 = arith.subf %416, %415 : vector<256x256xf32>
    %cst_137 = arith.constant 0.000000e+00 : f32
    %418 = vector.broadcast %cst_137 : f32 to vector<256x256xf32>
    %419 = arith.maximumf %418, %417 : vector<256x256xf32>
    %420 = arith.mulf %412, %419 : vector<256x256xf32>
    %cst_138 = arith.constant dense<0.000000e+00> : vector<8x256xf32>
    %421 = tpu.matmul %1, %420, %cst_138 {dimension_numbers = #tpu.dot_dimension_numbers<[1], [0], [0], [1], [0, 0, 1, 1], [], []>} : vector<8x256xf32>, vector<256x256xf32>, vector<8x256xf32> -> vector<8x256xf32>
    %422 = vector.extract_strided_slice %268 {offsets = [3, 0], sizes = [1, 256], strides = [1, 1]} : vector<9x256xf32> to vector<1x256xf32>
    %423 = vector.shape_cast %422 : vector<1x256xf32> to vector<256xf32>
    %424 = vector.shape_cast %423 : vector<256xf32> to vector<1x256xf32>
    %425 = vector.broadcast %424 : vector<1x256xf32> to vector<8x256xf32>
    %426 = arith.mulf %421, %425 : vector<8x256xf32>
    %cst_139 = arith.constant 1.000000e+00 : f32
    %427 = vector.broadcast %cst_139 : f32 to vector<1x256xf32>
    %428 = arith.subf %10, %427 : vector<1x256xf32>
    %cst_140 = arith.constant 1.000000e+00 : f32
    %429 = vector.broadcast %cst_140 : f32 to vector<1x256xf32>
    %430 = arith.addf %428, %429 : vector<1x256xf32>
    %431 = vector.extract_strided_slice %250 {offsets = [8, 0], sizes = [1, 256], strides = [1, 1]} : vector<27x256xf32> to vector<1x256xf32>
    %432 = vector.shape_cast %431 : vector<1x256xf32> to vector<256xf32>
    %433 = vector.shape_cast %432 : vector<256xf32> to vector<1x256xf32>
    %434 = arith.addf %430, %433 : vector<1x256xf32>
    %cst_141 = arith.constant 1.000000e+00 : f32
    %435 = vector.broadcast %cst_141 : f32 to vector<1x256xf32>
    %436 = arith.subf %13, %435 : vector<1x256xf32>
    %cst_142 = arith.constant 1.000000e+00 : f32
    %437 = vector.broadcast %cst_142 : f32 to vector<1x256xf32>
    %438 = arith.addf %436, %437 : vector<1x256xf32>
    %439 = vector.extract_strided_slice %250 {offsets = [9, 0], sizes = [1, 256], strides = [1, 1]} : vector<27x256xf32> to vector<1x256xf32>
    %440 = vector.shape_cast %439 : vector<1x256xf32> to vector<256xf32>
    %441 = vector.shape_cast %440 : vector<256xf32> to vector<1x256xf32>
    %442 = arith.addf %438, %441 : vector<1x256xf32>
    %443 = vector.broadcast %434 : vector<1x256xf32> to vector<256x256xf32>
    %444 = arith.subf %443, %275 : vector<256x256xf32>
    %445 = math.absf %444 : vector<256x256xf32>
    %cst_143 = arith.constant 1.000000e+00 : f32
    %446 = vector.broadcast %cst_143 : f32 to vector<256x256xf32>
    %447 = arith.subf %446, %445 : vector<256x256xf32>
    %cst_144 = arith.constant 0.000000e+00 : f32
    %448 = vector.broadcast %cst_144 : f32 to vector<256x256xf32>
    %449 = arith.maximumf %448, %447 : vector<256x256xf32>
    %450 = vector.broadcast %442 : vector<1x256xf32> to vector<256x256xf32>
    %451 = arith.subf %450, %278 : vector<256x256xf32>
    %452 = math.absf %451 : vector<256x256xf32>
    %cst_145 = arith.constant 1.000000e+00 : f32
    %453 = vector.broadcast %cst_145 : f32 to vector<256x256xf32>
    %454 = arith.subf %453, %452 : vector<256x256xf32>
    %cst_146 = arith.constant 0.000000e+00 : f32
    %455 = vector.broadcast %cst_146 : f32 to vector<256x256xf32>
    %456 = arith.maximumf %455, %454 : vector<256x256xf32>
    %457 = arith.mulf %449, %456 : vector<256x256xf32>
    %cst_147 = arith.constant dense<0.000000e+00> : vector<8x256xf32>
    %458 = tpu.matmul %1, %457, %cst_147 {dimension_numbers = #tpu.dot_dimension_numbers<[1], [0], [0], [1], [0, 0, 1, 1], [], []>} : vector<8x256xf32>, vector<256x256xf32>, vector<8x256xf32> -> vector<8x256xf32>
    %459 = vector.extract_strided_slice %268 {offsets = [4, 0], sizes = [1, 256], strides = [1, 1]} : vector<9x256xf32> to vector<1x256xf32>
    %460 = vector.shape_cast %459 : vector<1x256xf32> to vector<256xf32>
    %461 = vector.shape_cast %460 : vector<256xf32> to vector<1x256xf32>
    %462 = vector.broadcast %461 : vector<1x256xf32> to vector<8x256xf32>
    %463 = arith.mulf %458, %462 : vector<8x256xf32>
    %cst_148 = arith.constant 1.000000e+00 : f32
    %464 = vector.broadcast %cst_148 : f32 to vector<1x256xf32>
    %465 = arith.subf %10, %464 : vector<1x256xf32>
    %cst_149 = arith.constant 1.000000e+00 : f32
    %466 = vector.broadcast %cst_149 : f32 to vector<1x256xf32>
    %467 = arith.addf %465, %466 : vector<1x256xf32>
    %468 = vector.extract_strided_slice %250 {offsets = [10, 0], sizes = [1, 256], strides = [1, 1]} : vector<27x256xf32> to vector<1x256xf32>
    %469 = vector.shape_cast %468 : vector<1x256xf32> to vector<256xf32>
    %470 = vector.shape_cast %469 : vector<256xf32> to vector<1x256xf32>
    %471 = arith.addf %467, %470 : vector<1x256xf32>
    %cst_150 = arith.constant 1.000000e+00 : f32
    %472 = vector.broadcast %cst_150 : f32 to vector<1x256xf32>
    %473 = arith.subf %13, %472 : vector<1x256xf32>
    %cst_151 = arith.constant 2.000000e+00 : f32
    %474 = vector.broadcast %cst_151 : f32 to vector<1x256xf32>
    %475 = arith.addf %473, %474 : vector<1x256xf32>
    %476 = vector.extract_strided_slice %250 {offsets = [11, 0], sizes = [1, 256], strides = [1, 1]} : vector<27x256xf32> to vector<1x256xf32>
    %477 = vector.shape_cast %476 : vector<1x256xf32> to vector<256xf32>
    %478 = vector.shape_cast %477 : vector<256xf32> to vector<1x256xf32>
    %479 = arith.addf %475, %478 : vector<1x256xf32>
    %480 = vector.broadcast %471 : vector<1x256xf32> to vector<256x256xf32>
    %481 = arith.subf %480, %275 : vector<256x256xf32>
    %482 = math.absf %481 : vector<256x256xf32>
    %cst_152 = arith.constant 1.000000e+00 : f32
    %483 = vector.broadcast %cst_152 : f32 to vector<256x256xf32>
    %484 = arith.subf %483, %482 : vector<256x256xf32>
    %cst_153 = arith.constant 0.000000e+00 : f32
    %485 = vector.broadcast %cst_153 : f32 to vector<256x256xf32>
    %486 = arith.maximumf %485, %484 : vector<256x256xf32>
    %487 = vector.broadcast %479 : vector<1x256xf32> to vector<256x256xf32>
    %488 = arith.subf %487, %278 : vector<256x256xf32>
    %489 = math.absf %488 : vector<256x256xf32>
    %cst_154 = arith.constant 1.000000e+00 : f32
    %490 = vector.broadcast %cst_154 : f32 to vector<256x256xf32>
    %491 = arith.subf %490, %489 : vector<256x256xf32>
    %cst_155 = arith.constant 0.000000e+00 : f32
    %492 = vector.broadcast %cst_155 : f32 to vector<256x256xf32>
    %493 = arith.maximumf %492, %491 : vector<256x256xf32>
    %494 = arith.mulf %486, %493 : vector<256x256xf32>
    %cst_156 = arith.constant dense<0.000000e+00> : vector<8x256xf32>
    %495 = tpu.matmul %1, %494, %cst_156 {dimension_numbers = #tpu.dot_dimension_numbers<[1], [0], [0], [1], [0, 0, 1, 1], [], []>} : vector<8x256xf32>, vector<256x256xf32>, vector<8x256xf32> -> vector<8x256xf32>
    %496 = vector.extract_strided_slice %268 {offsets = [5, 0], sizes = [1, 256], strides = [1, 1]} : vector<9x256xf32> to vector<1x256xf32>
    %497 = vector.shape_cast %496 : vector<1x256xf32> to vector<256xf32>
    %498 = vector.shape_cast %497 : vector<256xf32> to vector<1x256xf32>
    %499 = vector.broadcast %498 : vector<1x256xf32> to vector<8x256xf32>
    %500 = arith.mulf %495, %499 : vector<8x256xf32>
    %cst_157 = arith.constant 1.000000e+00 : f32
    %501 = vector.broadcast %cst_157 : f32 to vector<1x256xf32>
    %502 = arith.subf %10, %501 : vector<1x256xf32>
    %cst_158 = arith.constant 2.000000e+00 : f32
    %503 = vector.broadcast %cst_158 : f32 to vector<1x256xf32>
    %504 = arith.addf %502, %503 : vector<1x256xf32>
    %505 = vector.extract_strided_slice %250 {offsets = [12, 0], sizes = [1, 256], strides = [1, 1]} : vector<27x256xf32> to vector<1x256xf32>
    %506 = vector.shape_cast %505 : vector<1x256xf32> to vector<256xf32>
    %507 = vector.shape_cast %506 : vector<256xf32> to vector<1x256xf32>
    %508 = arith.addf %504, %507 : vector<1x256xf32>
    %cst_159 = arith.constant 1.000000e+00 : f32
    %509 = vector.broadcast %cst_159 : f32 to vector<1x256xf32>
    %510 = arith.subf %13, %509 : vector<1x256xf32>
    %cst_160 = arith.constant 0.000000e+00 : f32
    %511 = vector.broadcast %cst_160 : f32 to vector<1x256xf32>
    %512 = arith.addf %510, %511 : vector<1x256xf32>
    %513 = vector.extract_strided_slice %250 {offsets = [13, 0], sizes = [1, 256], strides = [1, 1]} : vector<27x256xf32> to vector<1x256xf32>
    %514 = vector.shape_cast %513 : vector<1x256xf32> to vector<256xf32>
    %515 = vector.shape_cast %514 : vector<256xf32> to vector<1x256xf32>
    %516 = arith.addf %512, %515 : vector<1x256xf32>
    %517 = vector.broadcast %508 : vector<1x256xf32> to vector<256x256xf32>
    %518 = arith.subf %517, %275 : vector<256x256xf32>
    %519 = math.absf %518 : vector<256x256xf32>
    %cst_161 = arith.constant 1.000000e+00 : f32
    %520 = vector.broadcast %cst_161 : f32 to vector<256x256xf32>
    %521 = arith.subf %520, %519 : vector<256x256xf32>
    %cst_162 = arith.constant 0.000000e+00 : f32
    %522 = vector.broadcast %cst_162 : f32 to vector<256x256xf32>
    %523 = arith.maximumf %522, %521 : vector<256x256xf32>
    %524 = vector.broadcast %516 : vector<1x256xf32> to vector<256x256xf32>
    %525 = arith.subf %524, %278 : vector<256x256xf32>
    %526 = math.absf %525 : vector<256x256xf32>
    %cst_163 = arith.constant 1.000000e+00 : f32
    %527 = vector.broadcast %cst_163 : f32 to vector<256x256xf32>
    %528 = arith.subf %527, %526 : vector<256x256xf32>
    %cst_164 = arith.constant 0.000000e+00 : f32
    %529 = vector.broadcast %cst_164 : f32 to vector<256x256xf32>
    %530 = arith.maximumf %529, %528 : vector<256x256xf32>
    %531 = arith.mulf %523, %530 : vector<256x256xf32>
    %cst_165 = arith.constant dense<0.000000e+00> : vector<8x256xf32>
    %532 = tpu.matmul %1, %531, %cst_165 {dimension_numbers = #tpu.dot_dimension_numbers<[1], [0], [0], [1], [0, 0, 1, 1], [], []>} : vector<8x256xf32>, vector<256x256xf32>, vector<8x256xf32> -> vector<8x256xf32>
    %533 = vector.extract_strided_slice %268 {offsets = [6, 0], sizes = [1, 256], strides = [1, 1]} : vector<9x256xf32> to vector<1x256xf32>
    %534 = vector.shape_cast %533 : vector<1x256xf32> to vector<256xf32>
    %535 = vector.shape_cast %534 : vector<256xf32> to vector<1x256xf32>
    %536 = vector.broadcast %535 : vector<1x256xf32> to vector<8x256xf32>
    %537 = arith.mulf %532, %536 : vector<8x256xf32>
    %cst_166 = arith.constant 1.000000e+00 : f32
    %538 = vector.broadcast %cst_166 : f32 to vector<1x256xf32>
    %539 = arith.subf %10, %538 : vector<1x256xf32>
    %cst_167 = arith.constant 2.000000e+00 : f32
    %540 = vector.broadcast %cst_167 : f32 to vector<1x256xf32>
    %541 = arith.addf %539, %540 : vector<1x256xf32>
    %542 = vector.extract_strided_slice %250 {offsets = [14, 0], sizes = [1, 256], strides = [1, 1]} : vector<27x256xf32> to vector<1x256xf32>
    %543 = vector.shape_cast %542 : vector<1x256xf32> to vector<256xf32>
    %544 = vector.shape_cast %543 : vector<256xf32> to vector<1x256xf32>
    %545 = arith.addf %541, %544 : vector<1x256xf32>
    %cst_168 = arith.constant 1.000000e+00 : f32
    %546 = vector.broadcast %cst_168 : f32 to vector<1x256xf32>
    %547 = arith.subf %13, %546 : vector<1x256xf32>
    %cst_169 = arith.constant 1.000000e+00 : f32
    %548 = vector.broadcast %cst_169 : f32 to vector<1x256xf32>
    %549 = arith.addf %547, %548 : vector<1x256xf32>
    %550 = vector.extract_strided_slice %250 {offsets = [15, 0], sizes = [1, 256], strides = [1, 1]} : vector<27x256xf32> to vector<1x256xf32>
    %551 = vector.shape_cast %550 : vector<1x256xf32> to vector<256xf32>
    %552 = vector.shape_cast %551 : vector<256xf32> to vector<1x256xf32>
    %553 = arith.addf %549, %552 : vector<1x256xf32>
    %554 = vector.broadcast %545 : vector<1x256xf32> to vector<256x256xf32>
    %555 = arith.subf %554, %275 : vector<256x256xf32>
    %556 = math.absf %555 : vector<256x256xf32>
    %cst_170 = arith.constant 1.000000e+00 : f32
    %557 = vector.broadcast %cst_170 : f32 to vector<256x256xf32>
    %558 = arith.subf %557, %556 : vector<256x256xf32>
    %cst_171 = arith.constant 0.000000e+00 : f32
    %559 = vector.broadcast %cst_171 : f32 to vector<256x256xf32>
    %560 = arith.maximumf %559, %558 : vector<256x256xf32>
    %561 = vector.broadcast %553 : vector<1x256xf32> to vector<256x256xf32>
    %562 = arith.subf %561, %278 : vector<256x256xf32>
    %563 = math.absf %562 : vector<256x256xf32>
    %cst_172 = arith.constant 1.000000e+00 : f32
    %564 = vector.broadcast %cst_172 : f32 to vector<256x256xf32>
    %565 = arith.subf %564, %563 : vector<256x256xf32>
    %cst_173 = arith.constant 0.000000e+00 : f32
    %566 = vector.broadcast %cst_173 : f32 to vector<256x256xf32>
    %567 = arith.maximumf %566, %565 : vector<256x256xf32>
    %568 = arith.mulf %560, %567 : vector<256x256xf32>
    %cst_174 = arith.constant dense<0.000000e+00> : vector<8x256xf32>
    %569 = tpu.matmul %1, %568, %cst_174 {dimension_numbers = #tpu.dot_dimension_numbers<[1], [0], [0], [1], [0, 0, 1, 1], [], []>} : vector<8x256xf32>, vector<256x256xf32>, vector<8x256xf32> -> vector<8x256xf32>
    %570 = vector.extract_strided_slice %268 {offsets = [7, 0], sizes = [1, 256], strides = [1, 1]} : vector<9x256xf32> to vector<1x256xf32>
    %571 = vector.shape_cast %570 : vector<1x256xf32> to vector<256xf32>
    %572 = vector.shape_cast %571 : vector<256xf32> to vector<1x256xf32>
    %573 = vector.broadcast %572 : vector<1x256xf32> to vector<8x256xf32>
    %574 = arith.mulf %569, %573 : vector<8x256xf32>
    %cst_175 = arith.constant 1.000000e+00 : f32
    %575 = vector.broadcast %cst_175 : f32 to vector<1x256xf32>
    %576 = arith.subf %10, %575 : vector<1x256xf32>
    %cst_176 = arith.constant 2.000000e+00 : f32
    %577 = vector.broadcast %cst_176 : f32 to vector<1x256xf32>
    %578 = arith.addf %576, %577 : vector<1x256xf32>
    %579 = vector.extract_strided_slice %250 {offsets = [16, 0], sizes = [1, 256], strides = [1, 1]} : vector<27x256xf32> to vector<1x256xf32>
    %580 = vector.shape_cast %579 : vector<1x256xf32> to vector<256xf32>
    %581 = vector.shape_cast %580 : vector<256xf32> to vector<1x256xf32>
    %582 = arith.addf %578, %581 : vector<1x256xf32>
    %cst_177 = arith.constant 1.000000e+00 : f32
    %583 = vector.broadcast %cst_177 : f32 to vector<1x256xf32>
    %584 = arith.subf %13, %583 : vector<1x256xf32>
    %cst_178 = arith.constant 2.000000e+00 : f32
    %585 = vector.broadcast %cst_178 : f32 to vector<1x256xf32>
    %586 = arith.addf %584, %585 : vector<1x256xf32>
    %587 = vector.extract_strided_slice %250 {offsets = [17, 0], sizes = [1, 256], strides = [1, 1]} : vector<27x256xf32> to vector<1x256xf32>
    %588 = vector.shape_cast %587 : vector<1x256xf32> to vector<256xf32>
    %589 = vector.shape_cast %588 : vector<256xf32> to vector<1x256xf32>
    %590 = arith.addf %586, %589 : vector<1x256xf32>
    %591 = vector.broadcast %582 : vector<1x256xf32> to vector<256x256xf32>
    %592 = arith.subf %591, %275 : vector<256x256xf32>
    %593 = math.absf %592 : vector<256x256xf32>
    %cst_179 = arith.constant 1.000000e+00 : f32
    %594 = vector.broadcast %cst_179 : f32 to vector<256x256xf32>
    %595 = arith.subf %594, %593 : vector<256x256xf32>
    %cst_180 = arith.constant 0.000000e+00 : f32
    %596 = vector.broadcast %cst_180 : f32 to vector<256x256xf32>
    %597 = arith.maximumf %596, %595 : vector<256x256xf32>
    %598 = vector.broadcast %590 : vector<1x256xf32> to vector<256x256xf32>
    %599 = arith.subf %598, %278 : vector<256x256xf32>
    %600 = math.absf %599 : vector<256x256xf32>
    %cst_181 = arith.constant 1.000000e+00 : f32
    %601 = vector.broadcast %cst_181 : f32 to vector<256x256xf32>
    %602 = arith.subf %601, %600 : vector<256x256xf32>
    %cst_182 = arith.constant 0.000000e+00 : f32
    %603 = vector.broadcast %cst_182 : f32 to vector<256x256xf32>
    %604 = arith.maximumf %603, %602 : vector<256x256xf32>
    %605 = arith.mulf %597, %604 : vector<256x256xf32>
    %cst_183 = arith.constant dense<0.000000e+00> : vector<8x256xf32>
    %606 = tpu.matmul %1, %605, %cst_183 {dimension_numbers = #tpu.dot_dimension_numbers<[1], [0], [0], [1], [0, 0, 1, 1], [], []>} : vector<8x256xf32>, vector<256x256xf32>, vector<8x256xf32> -> vector<8x256xf32>
    %607 = vector.extract_strided_slice %268 {offsets = [8, 0], sizes = [1, 256], strides = [1, 1]} : vector<9x256xf32> to vector<1x256xf32>
    %608 = vector.shape_cast %607 : vector<1x256xf32> to vector<256xf32>
    %609 = vector.shape_cast %608 : vector<256xf32> to vector<1x256xf32>
    %610 = vector.broadcast %609 : vector<1x256xf32> to vector<8x256xf32>
    %611 = arith.mulf %606, %610 : vector<8x256xf32>
    %612 = tpu.concatenate %315, %352, %389, %426, %463, %500, %537, %574, %611 in 0 : vector<8x256xf32>, vector<8x256xf32>, vector<8x256xf32>, vector<8x256xf32>, vector<8x256xf32>, vector<8x256xf32>, vector<8x256xf32>, vector<8x256xf32>, vector<8x256xf32> -> vector<72x256xf32>
    %c0_184 = arith.constant 0 : index
    %c0_185 = arith.constant 0 : index
    %613 = vector.load %arg5[%c0_184, %c0_185] : memref<8x72xf32, #tpu.memory_space<vmem>>, vector<8x72xf32>
    %cst_186 = arith.constant dense<0.000000e+00> : vector<8x256xf32>
    %614 = tpu.matmul %613, %612, %cst_186 {dimension_numbers = #tpu.dot_dimension_numbers<[1], [0], [0], [1], [0, 0, 1, 1], [], []>} : vector<8x72xf32>, vector<72x256xf32>, vector<8x256xf32> -> vector<8x256xf32>
    %c0_187 = arith.constant 0 : index
    %c0_188 = arith.constant 0 : index
    %615 = vector.load %arg6[%c0_187, %c0_188] : memref<8x1xf32, #tpu.memory_space<vmem>>, vector<8x1xf32>
    %616 = vector.broadcast %615 : vector<8x1xf32> to vector<8x256xf32>
    %617 = arith.addf %614, %616 : vector<8x256xf32>
    %c0_189 = arith.constant 0 : index
    %c0_190 = arith.constant 0 : index
    %c0_191 = arith.constant 0 : index
    %618 = vector.load %arg7[%c0_189, %c0_190, %c0_191] : memref<1x8x256xf32, #tpu.memory_space<vmem>>, vector<1x8x256xf32>
    %619 = vector.shape_cast %618 : vector<1x8x256xf32> to vector<8x256xf32>
    %620 = vector.shape_cast %617 : vector<8x256xf32> to vector<1x8x256xf32>
    tpu.vector_store %arg7[%c0_189, %c0_190, %c0_191], %620 {strides = array<i32>} : memref<1x8x256xf32, #tpu.memory_space<vmem>>, vector<1x8x256xf32>,
    return
  }
  func.func @transform_0(%arg0: i32) -> (i32, i32, i32) {
    %c0_i32 = arith.constant 0 : i32
    %c0_i32_0 = arith.constant 0 : i32
    %c0_i32_1 = arith.constant 0 : i32
    return %arg0, %c0_i32, %c0_i32_0 : i32, i32, i32
  }
  func.func @transform_1(%arg0: i32) -> (i32, i32, i32) {
    %c0_i32 = arith.constant 0 : i32
    %c0_i32_0 = arith.constant 0 : i32
    %c0_i32_1 = arith.constant 0 : i32
    return %arg0, %c0_i32, %c0_i32_0 : i32, i32, i32
  }
  func.func @transform_2(%arg0: i32) -> (i32, i32) {
    %c0_i32 = arith.constant 0 : i32
    %c0_i32_0 = arith.constant 0 : i32
    %c0_i32_1 = arith.constant 0 : i32
    return %c0_i32, %c0_i32_0 : i32, i32
  }
  func.func @transform_3(%arg0: i32) -> (i32, i32) {
    %c0_i32 = arith.constant 0 : i32
    %c0_i32_0 = arith.constant 0 : i32
    %c0_i32_1 = arith.constant 0 : i32
    return %c0_i32, %c0_i32_0 : i32, i32
  }
  func.func @transform_4(%arg0: i32) -> (i32, i32) {
    %c0_i32 = arith.constant 0 : i32
    %c0_i32_0 = arith.constant 0 : i32
    %c0_i32_1 = arith.constant 0 : i32
    return %c0_i32, %c0_i32_0 : i32, i32
  }
  func.func @transform_5(%arg0: i32) -> (i32, i32) {
    %c0_i32 = arith.constant 0 : i32
    %c0_i32_0 = arith.constant 0 : i32
    %c0_i32_1 = arith.constant 0 : i32
    return %c0_i32, %c0_i32_0 : i32, i32
  }
  func.func @transform_6(%arg0: i32) -> (i32, i32, i32) {
    %c0_i32 = arith.constant 0 : i32
    %c0_i32_0 = arith.constant 0 : i32
    %c0_i32_1 = arith.constant 0 : i32
    return %arg0, %c0_i32, %c0_i32_0 : i32, i32, i32
  }
  func.func @transform_7(%arg0: i32) -> (i32, i32, i32) {
    %c0_i32 = arith.constant 0 : i32
    %c0_i32_0 = arith.constant 0 : i32
    %c0_i32_1 = arith.constant 0 : i32
    return %arg0, %c0_i32, %c0_i32_0 : i32, i32, i32
  }
}

</mosaic_0001>

<bundles_post_ra>
// kernel: gdconv2d_forward.1
= control target key start
LH: loop header
LB: loop body
LE: loop exit
PB: predicated region body
PF: predicated region fallthrough
CT: control target
= control target key end

     0   :  { %s7966_s24 = smov 0   ;;  %s11404_s0 = inlined_call_operand.vmem [shape: f32[2,8,256], index: 0, kind: input, shape index: {}]   ;;  %s11405_s1 = inlined_call_operand.vmem [shape: f32[2,8,256], index: 1, kind: input, shape index: {}]   ;;  %s11406_s2 = inlined_call_operand.vmem [shape: f32[27,72], index: 2, kind: input, shape index: {}]   ;;  %s11407_s3 = inlined_call_operand.vmem [shape: f32[27,1], index: 3, kind: input, shape index: {}]   ;;  %s11408_s4 = inlined_call_operand.vmem [shape: f32[8,72], index: 4, kind: input, shape index: {}]   ;;  %s11409_s5 = inlined_call_operand.vmem [shape: f32[8,1], index: 5, kind: input, shape index: {}]   ;;  %s11410_s6 = inlined_call_operand.vmem [shape: f32[2,8,256], index: 6, kind: output, shape index: {0}]   ;;  %s11411_s7 = inlined_call_operand.vmem [shape: f32[2,1,128], index: 7, kind: output, shape index: {1}]  }
   0x1 LB: > { %s7213_s25 = sadd.s32 4294967295, %s7914_s24   ;;  %p7217_p0 = scmp.ge.s32.totalorder %s7914_s24, 1  ;;  %s7914_s24 = sphi %s7966_s24, %s18_s24  }
   0x2   : > { %p250_p1 = scmp.lt.s32.totalorder %s7914_s24, 3 }
   0x4   : > { %p251_p2 = pnand %p7217_p0, %p250_p1 }
   0x6   : > { %254 = sbr.rel (%p251_p2) target bundleno = 2260 (0x8d4), region = 44 }
   0xd   : > { %p290_p3 = scmp.lt.s32.totalorder %s7213_s25, 1  ;;  %v11424_v0 = vmov 0.0   ;;  %s7917_s30 = smov 16   ;;  %v538_v3 = vld [vmem:[%s11407_s3] sm:$0xff]  ;;  %v7925_v4 = vmov 0   ;;  %v539_v5 = vld [vmem:[%s11407_s3 + $0x8] sm:$0xff]  ;;  %v312_v8 = vlaneseq }
   0xe   : > { %639 = vmatprep.mubr.f32.mxu0 %v11424_v0  ;;  %s7918_s8 = smov 17   ;;  %s7919_s9 = smov 15   ;;  %7882 = vset.pattern.permute.xlu0 %v7925_v4  ;;  %v541_v6 = vld [vmem:[%s11407_s3 + $0x18] sm:$0x7]  ;;  %v540_v7 = vld [vmem:[%s11407_s3 + $0x10] sm:$0xff]  ;;  %v11707_v32 = vmov 0 }
   0xf   : > { %s12100_s25 = smov (!%p290_p3, %s7213_s25), 1  ;;  %s7920_s10 = smov 1   ;;  %7883 = vset.pattern.permute.xlu1 %v7925_v4  ;;  %v313_v9 = vand.u32 127, %v312_v8  ;;  %v11709_v33 = vmov 0  ;;  %v11718_v38 = vmov 0  ;;  %v11720_v39 = vmov 0 }
  0x10   : > { %s7978_s26 = sshll.u32 %s12100_s25, 4  ;;  %s7921_s11 = smov 127   ;;  %v11734_v52 = vmov 0  ;;  %v11737_v53 = vmov 0 }
  0x11   : > { %s299_s29 = scalar_lea.vmem %s11405_s1, %s7978_s26  ;;  %s7922_s12 = smov 112   ;;  %v315_v10 = vcvt.s32.f32 %v313_v9  ;;  %v314_v11 = vadd.s32 128, %v313_v9 }
  0x12   : > { %v7984_v1 = vld [vmem:[%s299_s29] sm:$0xff]  ;;  %v7988_v2 = vld [vmem:[%s299_s29 + $0x8] sm:$0xff]  ;;  %s7923_s13 = smov 113   ;;  %s7924_s14 = smov 111  }
  0x13   : > { %363 = vrot.lane.b32.xlu1 %v7984_v1, %s7917_s30  ;;  %330 = vrot.lane.b32.xlu0 %v7984_v1, %s7918_s8  ;;  %v318_v12 = vmul.f32 0.0625, %v315_v10  ;;  %v316_v13 = vcvt.s32.f32 %v314_v11  ;;  %s9217_s15 = scalar_lea.vmem %s11404_s0, %s7978_s26  ;;  %s307_s18 = scalar_lea.vmem %s11411_s7, %s12100_s25 }
  0x14   : > { %s304_s22 = scalar_lea.vmem %s11410_s6, %s7978_s26 }
  0x15   : > { %v320_v14 = vadd.f32 0.001, %v318_v12  ;;  %v319_v15 = vmul.f32 0.0625, %v316_v13 }
  0x17   : > { %365 = vrot.lane.b32.xlu1 %v7988_v2, %s7917_s30  ;;  %332 = vrot.lane.b32.xlu0 %v7988_v2, %s7918_s8  ;;  %v8017_v16 = vfloor.f32 %v320_v14  ;;  %v321_v17 = vadd.f32 0.001, %v319_v15 }
  0x19   : > { %v324_v18 = vmul.f32 16.0, %v8017_v16  ;;  %v323_v19 = vfloor.f32 %v321_v17  ;;  %v8023_v21 = vadd.f32 -1.0, %v8017_v16  ;;  %vm424_vm4 = vcmp.ge.f32.partialorder %v8017_v16, 0.0 }
  0x1a   : > { %vm426_vm5 = vcmp.le.f32.partialorder %v8017_v16, 15.0  ;;  %v478_v54 = vadd.f32 1.0, %v8017_v16 }
  0x1b   : > { %390 = vrot.lane.b32.xlu1 %v7988_v2, %s7919_s9  ;;  %388 = vrot.lane.b32.xlu0 %v7984_v1, %s7919_s9  ;;  %v8020_v20 = vsub.f32 %v315_v10, %v324_v18  ;;  %v325_v22 = vmul.f32 16.0, %v323_v19  ;;  %vm341_vm0 = vcmp.ge.f32.partialorder %v8023_v21, 0.0  ;;  %vm343_vm1 = vcmp.le.f32.partialorder %v8023_v21, 15.0  ;;  %vm8055_vm13 = vmand %vm424_vm4, %vm426_vm5 }
  0x1c   : > { %v8032_v25 = vadd.f32 -1.0, %v323_v19  ;;  %vm8034_vm2 = vmand %vm341_vm0, %vm343_vm1  ;;  %vm425_vm7 = vcmp.ge.f32.partialorder %v323_v19, 0.0  ;;  %vm427_vm8 = vcmp.le.f32.partialorder %v323_v19, 15.0  ;;  %v479_v36 = vadd.f32 1.0, %v323_v19 }
  0x1d   : > { %v8028_v23 = vadd.f32 -1.0, %v8020_v20  ;;  %v8030_v24 = vsub.f32 %v316_v13, %v325_v22  ;;  %vm11412_vm3 = vcmp.ge.f32.partialorder %v8020_v20, 0.0  ;;  %v8043_v27 = vadd.f32 1.0, %v8020_v20  ;;  %vm8068_vm1 = vmand %vm425_vm7, %vm427_vm8 }
  0x1e   : > { %vm376_vm9 = vmand %vm8034_vm2, %vm11412_vm3  ;;  %vm11414_vm10 = vcmp.le.f32.partialorder %v8020_v20, 15.0  ;;  %vm342_vm11 = vcmp.ge.f32.partialorder %v8032_v25, 0.0  ;;  %vm344_vm12 = vcmp.le.f32.partialorder %v8032_v25, 15.0 }
  0x1f   : > { %415 = vrot.lane.b32.xlu1 %v7988_v2, %s7920_s10  ;;  %413 = vrot.lane.b32.xlu0 %v7984_v1, %s7920_s10  ;;  %vm11413_vm6 = vcmp.ge.f32.partialorder %v8028_v23, 0.0  ;;  %v8046_v28 = vadd.f32 -1.0, %v8030_v24  ;;  %vm11415_vm15 = vcmp.le.f32.partialorder %v8028_v23, 15.0  ;;  %v8065_v30 = vadd.f32 1.0, %v8030_v24  ;;  %vm8074_vm4 = vmand %vm376_vm9, %vm11414_vm10 }
  0x20   : > { %vm351_vm14 = vmand %vm8034_vm2, %vm11413_vm6  ;;  %vm11416_vm0 = vcmp.ge.f32.partialorder %v8043_v27, 0.0  ;;  %v11708_v32 = vsel %vm8074_vm4, 4294967295, %v11707_v32  ;;  %vm11417_vm7 = vcmp.ge.f32.partialorder %v8030_v24, 0.0  ;;  %vm11420_vm10 = vcmp.le.f32.partialorder %v8030_v24, 15.0 }
  0x21   : > { %vm346_vm5 = vmand %vm342_vm11, %vm344_vm12  ;;  %vm11423_vm3 = vcmp.ge.f32.partialorder %v8046_v28, 0.0  ;;  %vm11418_vm8 = vcmp.ge.f32.partialorder %v8065_v30, 0.0  ;;  %vm11419_vm12 = vcmp.le.f32.partialorder %v8046_v28, 15.0  ;;  %vm11422_vm4 = vcmp.le.f32.partialorder %v8065_v30, 15.0 }
  0x22   : > { %vm8081_vm6 = vmand %vm351_vm14, %vm11415_vm15 }
  0x23   : > { %450 = vrot.lane.b32.xlu1 %v7984_v1, %s7921_s11  ;;  %452 = vrot.lane.b32.xlu0 %v7988_v2, %s7921_s11  ;;  %v11710_v33 = vsel %vm8081_vm6, 4294967295, %v11709_v33  ;;  %vm401_vm9 = vmand %vm8034_vm2, %vm11416_vm0  ;;  %vm11421_vm6 = vcmp.le.f32.partialorder %v8043_v27, 15.0 }
  0x24   : > { %vm352_vm11 = vmand %vm346_vm5, %vm11423_vm3 }
  0x25   : > { %vm377_vm14 = vmand %vm346_vm5, %vm11417_vm7  ;;  %vm11715_vm7 = vcmp.ge.f32.partialorder %v8028_v23, 0.0 }
  0x26   : > { %vm402_vm15 = vmand %vm346_vm5, %vm11418_vm8  ;;  %vm367_vm8 = vcmask 130048  }
  0x27   : > { %498 = vrot.lane.b32.xlu1 %v7988_v2, %s7922_s12  ;;  %471 = vrot.lane.b32.xlu0 %v7988_v2, %s7923_s13  ;;  %vm8103_vm2 = vmand %vm352_vm11, %vm11419_vm12  ;;  %vm481_vm11 = vcmp.ge.f32.partialorder %v479_v36, 0.0 }
  0x28   : > { %vm8109_vm0 = vmand %vm377_vm14, %vm11420_vm10  ;;  %vm11722_vm10 = vcmp.ge.f32.partialorder %v8043_v27, 0.0  ;;  %v7225_v47 = vsel %vm8103_vm2, 1.0, %v11424_v0  ;;  %vm11736_vm2 = vcmp.le.f32.partialorder %v8065_v30, 15.0 }
  0x29   : > { %vm8117_vm5 = vmand %vm8055_vm13, %vm11715_vm7  ;;  %v7227_v48 = vsel %vm8109_vm0, 1.0, %v11424_v0  ;;  %vm11739_vm0 = vcmask 138240  }
  0x2a   : > { %vm8123_vm12 = vmand %vm401_vm9, %vm11421_vm6  ;;  %vm11723_vm6 = vnez %v11708_v32 }
  0x2b   : > { %496 = vrot.lane.b32.xlu1 %v7984_v1, %s7922_s12  ;;  %469 = vrot.lane.b32.xlu0 %v7984_v1, %s7923_s13  ;;  %v11719_v38 = vsel %vm8123_vm12, 4294967295, %v11718_v38  ;;  %vm8129_vm14 = vmand %vm402_vm15, %vm11422_vm4  ;;  %v7226_v42 = vsel %vm11723_vm6, 1.0, %v11424_v0  ;;  %vm11724_vm15 = vcmp.ge.f32.partialorder %v8065_v30, 0.0  ;;  %vm483_vm6 = vcmp.le.f32.partialorder %v479_v36, 15.0 }
  0x2c   : > { %v11721_v39 = vsel %vm8129_vm14, 4294967295, %v11720_v39  ;;  %vm431_vm7 = vmand %vm8068_vm1, %vm11423_vm3  ;;  %vm11725_vm3 = vnez %v11710_v33  ;;  %vm11726_vm14 = vcmask 138240  }
  0x2d   : > { %vm459_vm9 = vmand %vm8055_vm13, %vm11722_vm10  ;;  %v7224_v44 = vsel %vm11725_vm3, 1.0, %v11424_v0  ;;  %vm11727_vm10 = vcmp.le.f32.partialorder %v8028_v23, 15.0  ;;  %vm11730_vm3 = vcmp.le.f32.partialorder %v8046_v28, 15.0 }
  0x2e   : > { %vm460_vm4 = vmand %vm8068_vm1, %vm11724_vm15 }
  0x2f   : > { %515 = vrot.lane.b32.xlu1 %v7984_v1, %s7924_s14  ;;  %517 = vrot.lane.b32.xlu0 %v7988_v2, %s7924_s14  ;;  %vm8157_vm12 = vmand %vm8117_vm5, %vm11727_vm10  ;;  %vm11733_vm5 = vcmp.le.f32.partialorder %v8043_v27, 15.0 }
  0x30   : > { %vm8175_vm15 = vmand %vm459_vm9, %vm11733_vm5  ;;  %v7230_v12 = vsel %vm8157_vm12, 1.0, %v11424_v0  ;;  %vm11756_vm12 = vcmp.le.f32.partialorder %v8030_v24, 15.0 }
  0x31   : > { %v11735_v52 = vsel %vm8175_vm15, 4294967295, %v11734_v52  ;;  %vm8181_vm10 = vmand %vm460_vm4, %vm11736_vm2  ;;  %vm11742_vm4 = vcmp.ge.f32.partialorder %v8030_v24, 0.0 }
  0x32   : > { %v11738_v53 = vsel %vm8181_vm10, 4294967295, %v11737_v53  ;;  %vm441_vm9 = vmand %vm8068_vm1, %vm11742_vm4  ;;  %vm11747_vm1 = vcmp.le.f32.partialorder %v8030_v24, 15.0  ;;  %vm11752_vm10 = vcmp.le.f32.partialorder %v8020_v20, 15.0 }
  0x33   : > { %544 = vperm.xlu0 %7882, %v538_v3   ;;  %549 = vperm.xlu1 %7883, %v539_v5   ;;  %vm8211_vm2 = vmand %vm441_vm9, %vm11747_vm1  ;;  %vm11753_vm9 = vcmp.ge.f32.partialorder %v8046_v28, 0.0 }
  0x34   : > { %v7233_v22 = vsel %vm8211_vm2, 1.0, %v11424_v0 }
  0x37   : > { %559 = vperm.xlu0 %7882, %v541_v6   ;;  %554 = vperm.xlu1 %7883, %v540_v7  }
  0x85   : > { %v364_v40 = vpop.permute.xlu1 %363  ;;  %v331_v41 = vpop.permute.xlu0 %330 }
  0x86   : > { %v371_v43 = vsel %vm367_vm8, 0.0, %v364_v40  ;;  %v338_v45 = vsel %vm11726_vm14, 0.0, %v331_v41  ;;  %vm8169_vm14 = vmand %vm431_vm7, %vm11730_vm3  ;;  %vm11743_vm3 = vcmp.ge.f32.partialorder %v8020_v20, 0.0 }
  0x87   : > { %v386_v55 = vmul.f32 %v7226_v42, %v371_v43  ;;  %v361_v56 = vmul.f32 %v7224_v44, %v338_v45  ;;  %vm8189_vm7 = vmand %vm481_vm11, %vm483_vm6  ;;  %v7231_v13 = vsel %vm8169_vm14, 1.0, %v11424_v0 }
  0x88   : > { %vm440_vm5 = vmand %vm8055_vm13, %vm11743_vm3  ;;  %vm480_vm13 = vcmp.ge.f32.partialorder %v478_v54, 0.0  ;;  %vm11751_vm3 = vnez %v11721_v39 }
  0x89   : > { %v366_v50 = vpop.permute.xlu1 %365  ;;  %v333_v51 = vpop.permute.xlu0 %332  ;;  %vm11744_vm11 = vmmov %vm11742_vm4  ;;  %v7258_v5 = vpack.c.bf16 %v386_v55, %v361_v56  ;;  %vm11750_vm4 = vnez %v11719_v38  ;;  %v7229_v9 = vsel %vm11751_vm3, 1.0, %v11424_v0 }
  0x8a   : > { %v368_v57 = vsel %vm367_vm8, %v364_v40, %v366_v50  ;;  %v335_v58 = vsel %vm11739_vm0, %v331_v41, %v333_v51  ;;  %vm392_vm8 = vcmask 121856   ;;  %vm8205_vm6 = vmand %vm8189_vm7, %vm11744_vm11  ;;  %vm482_vm0 = vcmp.le.f32.partialorder %v478_v54, 15.0 }
  0x8b   : > { %v362_v60 = vmul.f32 %v7225_v47, %v335_v58  ;;  %v387_v61 = vmul.f32 %v7227_v48, %v368_v57  ;;  %v7228_v7 = vsel %vm11750_vm4, 1.0, %v11424_v0  ;;  %vm417_vm11 = vcmask 7168   ;;  %vm442_vm15 = vmand %vm440_vm5, %vm11752_vm10 }
  0x8c   : > { %vm487_vm1 = vmand %vm8189_vm7, %vm11753_vm9  ;;  %vm454_vm4 = vcmask 1039360   ;;  %v7232_v26 = vsel %vm442_vm15, 1.0, %v11424_v0  ;;  %vm11759_vm5 = vcmp.le.f32.partialorder %v8046_v28, 15.0  ;;  %vm11764_vm15 = vcmp.ge.f32.partialorder %v8020_v20, 0.0 }
  0x8d   : > { %v391_v62 = vpop.permute.xlu1 %390  ;;  %v389_v63 = vpop.permute.xlu0 %388  ;;  %v7256_v3 = vpack.c.bf16 %v387_v61, %v362_v60  ;;  %vm8235_vm10 = vmand %vm480_vm13, %vm482_vm0  ;;  %vm11763_vm13 = vnez %v11738_v53  ;;  %v449_v41 = vmul.f32 %v7233_v22, %v7988_v2  ;;  %v448_v42 = vmul.f32 %v7232_v26, %v7984_v1 }
  0x8e   : > { %v393_v10 = vsel %vm392_vm8, %v389_v63, %v391_v62  ;;  %v396_v11 = vsel %vm392_vm8, 0.0, %v389_v63  ;;  %vm8243_vm14 = vmand %vm8205_vm6, %vm11756_vm12  ;;  %vm11762_vm6 = vnez %v11735_v52  ;;  %v7235_v35 = vsel %vm11763_vm13, 1.0, %v11424_v0 }
  0x8f   : > { %7257 = vmatprep.subr.bf16.mxu0 %v7256_v3  ;;  %v411_v29 = vmul.f32 %v7228_v7, %v396_v11  ;;  %v412_v31 = vmul.f32 %v7229_v9, %v393_v10  ;;  %vm8253_vm8 = vmand %vm487_vm1, %vm11759_vm5  ;;  %v7234_v34 = vsel %vm11762_vm6, 1.0, %v11424_v0  ;;  %vm11767_vm0 = vcmp.ge.f32.partialorder %v8028_v23, 0.0  ;;  %v534_v11 = vld [vmem:[%s11406_s2] sm:$0xff] }
  0x90   : > { %7259 = vmatpush1.bf16.msra.mxu0 %v7258_v5  ;;  %vm8267_vm2 = vmand %vm8235_vm10, %vm11764_vm15  ;;  %vm473_vm9 = vcmask 924672   ;;  %vm11768_vm1 = vcmp.le.f32.partialorder %v8020_v20, 15.0  ;;  %v7239_v2 = vsel %vm8243_vm14, 1.0, %v11424_v0  ;;  %v7237_v47 = vsel %vm8253_vm8, 1.0, %v11424_v0 }
  0x91   : > { %v416_v14 = vpop.permute.xlu1 %415  ;;  %v414_v15 = vpop.permute.xlu0 %413  ;;  %vm486_vm3 = vmand %vm8235_vm10, %vm11767_vm0  ;;  %vm11772_vm6 = vcmp.ge.f32.partialorder %v8043_v27, 0.0  ;;  %vm11773_vm14 = vcmp.ge.f32.partialorder %v8065_v30, 0.0 }
  0x92   : > { %v418_v17 = vsel %vm417_vm11, %v414_v15, %v416_v14  ;;  %v421_v18 = vsel %vm417_vm11, 0.0, %v414_v15  ;;  %vm500_vm11 = vcmask 916480   ;;  %vm8283_vm12 = vmand %vm8267_vm2, %vm11768_vm1  ;;  %vm11775_vm2 = vcmp.le.f32.partialorder %v8065_v30, 15.0  ;;  %v537_v14 = vld [vmem:[%s11406_s2 + $0x18] sm:$0x7] }
  0x93   : > { %v438_v32 = vmul.f32 %v7230_v12, %v421_v18  ;;  %v439_v33 = vmul.f32 %v7231_v13, %v418_v17  ;;  %vm524_vm13 = vmand %vm8235_vm10, %vm11772_vm6  ;;  %v7238_v55 = vsel %vm8283_vm12, 1.0, %v11424_v0  ;;  %vm11774_vm10 = vcmp.le.f32.partialorder %v8043_v27, 15.0  ;;  %v535_v12 = vld [vmem:[%s11406_s2 + $0x8] sm:$0xff]  ;;  %v536_v13 = vld [vmem:[%s11406_s2 + $0x10] sm:$0xff] }
  0x94   : > { %vm525_vm8 = vmand %vm8189_vm7, %vm11773_vm14  ;;  %vm519_vm7 = vcmask 908288   ;;  %v8337_v15 = vshrl.u32 %v312_v8, 7  ;;  %v8344_v18 = vadd.f32 1.0, %v8028_v23 }
  0x95   : > { %v451_v37 = vpop.permute.xlu1 %450  ;;  %v453_v38 = vpop.permute.xlu0 %452  ;;  %v7260_v39 = vpack.c.bf16 %v439_v33, %v412_v31  ;;  %v7262_v40 = vpack.c.bf16 %v438_v32, %v411_v29  ;;  %vm526_vm15 = vmand %vm524_vm13, %vm11774_vm10  ;;  %v8360_v31 = vadd.f32 1.0, %v8023_v21 }
  0x96   : > { %v455_v43 = vsel %vm454_vm4, %v451_v37, %v453_v38  ;;  %v458_v44 = vsel %vm454_vm4, %v453_v38, 0.0  ;;  %vm11771_vm4 = vcmp.le.f32.partialorder %v8028_v23, 15.0  ;;  %vm527_vm0 = vmand %vm525_vm8, %vm11775_vm2  ;;  %v7240_v3 = vsel %vm526_vm15, 1.0, %v11424_v0  ;;  %11776 = vst [vmem:[#allocation2_spill] sm:$0xff] %v8337_v15 }
  0x97   : > { %v467_v45 = vmul.f32 %v7234_v34, %v455_v43  ;;  %v468_v46 = vmul.f32 %v7235_v35, %v458_v44  ;;  %7261 = vmatprep.subr.bf16.mxu0 %v7260_v39  ;;  %vm488_vm5 = vmand %vm486_vm3, %vm11771_vm4  ;;  %v7241_v4 = vsel %vm527_vm0, 1.0, %v11424_v0  ;;  %vm562_vm3 = vcmask 588800  }
  0x98   : > { %7263 = vmatpush1.bf16.msra.mxu0 %v7262_v40  ;;  %v7236_v56 = vsel %vm488_vm5, 1.0, %v11424_v0  ;;  %v8340_v16 = vadd.s32 8, %v8337_v15  ;;  %v749_v17 = vcvt.s32.f32 %v8337_v15  ;;  %v8347_v19 = vadd.s32 16, %v8337_v15 }
  0x99   : > { %v499_v48 = vpop.permute.xlu1 %498  ;;  %v472_v20 = vpop.permute.xlu0 %471  ;;  %v7264_v49 = vpack.c.bf16 %v468_v46, %v449_v41  ;;  %v7266_v50 = vpack.c.bf16 %v467_v45, %v448_v42  ;;  %v8351_v26 = vadd.s32 24, %v8337_v15  ;;  %v8354_v29 = vadd.s32 32, %v8337_v15 }
  0x9a   : > { %v504_v51 = vsel %vm500_vm11, %v499_v48, 0.0  ;;  %v477_v52 = vsel %vm473_vm9, %v472_v20, 0.0  ;;  %v750_v22 = vcvt.s32.f32 %v8340_v16  ;;  %v8357_v8 = vadd.s32 40, %v8337_v15 }
  0x9b   : > { %v514_v53 = vmul.f32 %v7239_v2, %v504_v51  ;;  %v495_v54 = vmul.f32 %v7237_v47, %v477_v52  ;;  %7265 = vmatprep.subr.bf16.mxu0 %v7264_v49  ;;  %v781_v32 = vmul.f32 0.0625, %v749_v17  ;;  %v8365_v33 = vadd.s32 48, %v8337_v15 }
  0x9c   : > { %7267 = vmatpush1.bf16.msra.mxu0 %v7266_v50  ;;  %v8368_v24 = vadd.s32 56, %v8337_v15  ;;  %v8371_v34 = vsub.s32 0, %v8337_v15  ;;  %v8374_v35 = vadd.s32 64, %v8337_v15  ;;  %v8377_v36 = vadd.s32 72, %v8337_v15 }
  0x9d   : > { %v497_v57 = vpop.permute.xlu1 %496  ;;  %v470_v58 = vpop.permute.xlu0 %469  ;;  %v7268_v60 = vpack.c.bf16 %v514_v53, %v495_v54  ;;  %v8380_v37 = vadd.s32 80, %v8337_v15  ;;  %v8383_v38 = vsub.s32 1, %v8337_v15  ;;  %v8386_v39 = vsub.s32 2, %v8337_v15 }
  0x9e   : > { %v501_v59 = vsel %vm500_vm11, %v497_v57, %v499_v48  ;;  %v474_v61 = vsel %vm473_vm9, %v470_v58, %v472_v20  ;;  %11777 = vst [vmem:[#allocation3_spill] sm:$0xff] %v8371_v34  ;;  %v11436_v40 = vcvt.s32.f32 %v8347_v19  ;;  %v8390_v41 = vadd.s32 88, %v8337_v15 }
  0x9f   : > { %v513_v62 = vmul.f32 %v7238_v55, %v501_v59  ;;  %v494_v63 = vmul.f32 %v7236_v56, %v474_v61  ;;  %7269 = vmatprep.subr.bf16.mxu0 %v7268_v60  ;;  %11778 = vst [vmem:[#allocation4_spill] sm:$0xff] %v8383_v38  ;;  %11779 = vst [vmem:[#allocation5_spill] sm:$0xff] %v8386_v39  ;;  %v782_v42 = vmul.f32 0.0625, %v750_v22  ;;  %v11435_v43 = vcvt.s32.f32 %v8351_v26 }
  0xa0   : > { %v11434_v44 = vcvt.s32.f32 %v8354_v29  ;;  %v11431_v45 = vcvt.s32.f32 %v8357_v8  ;;  %v8398_v46 = vsub.s32 3, %v8337_v15  ;;  %v813_v1 = vadd.f32 0.001, %v781_v32 }
  0xa1   : > { %v516_v27 = vpop.permute.xlu1 %515  ;;  %v518_v5 = vpop.permute.xlu0 %517  ;;  %v7270_v6 = vpack.c.bf16 %v513_v62, %v494_v63  ;;  %v11430_v2 = vcvt.s32.f32 %v8365_v33  ;;  %v11429_v47 = vcvt.s32.f32 %v8368_v24  ;;  %v8403_v48 = vsub.s32 4, %v8337_v15 }
  0xa2   : > { %v520_v7 = vsel %vm519_vm7, %v516_v27, %v518_v5  ;;  %v523_v9 = vsel %vm519_vm7, %v518_v5, 0.0  ;;  %11780 = vst [vmem:[#allocation6_spill] sm:$0xff] %v8398_v46  ;;  %v11428_v20 = vcvt.s32.f32 %v8374_v35  ;;  %v11426_v49 = vcvt.s32.f32 %v8377_v36 }
  0xa3   : > { %v532_v10 = vmul.f32 %v7240_v3, %v520_v7  ;;  %v533_v30 = vmul.f32 %v7241_v4, %v523_v9  ;;  %7271 = vmatpush1.bf16.msra.mxu0 %v7270_v6  ;;  %11781 = vst [vmem:[#allocation7_spill] sm:$0xff] %v8403_v48  ;;  %v11425_v50 = vcvt.s32.f32 %v8380_v37  ;;  %v8409_v51 = vsub.s32 6, %v8337_v15 }
  0xa4   : > { %v8412_v52 = vsub.s32 7, %v8337_v15  ;;  %v783_v53 = vmul.f32 0.0625, %v11436_v40  ;;  %v11427_v54 = vcvt.s32.f32 %v8390_v41  ;;  %v814_v55 = vadd.f32 0.001, %v782_v42 }
  0xa5   : > { %591 = vmatprep.subr.mxu0 %v533_v30  ;;  %11782 = vst [vmem:[#allocation8_spill] sm:$0xff] %v8409_v51  ;;  %v784_v56 = vmul.f32 0.0625, %v11435_v43  ;;  %v785_v57 = vmul.f32 0.0625, %v11434_v44  ;;  %v786_v58 = vmul.f32 0.0625, %v11431_v45  ;;  %v8424_v60 = vadd.f32 1.0, %v8046_v28 }
  0xa6   : > { %11783 = vst [vmem:[#allocation9_spill] sm:$0xff] %v8412_v52  ;;  %v8426_v59 = vfloor.f32 %v813_v1  ;;  %v787_v61 = vmul.f32 0.0625, %v11430_v2  ;;  %v788_v62 = vmul.f32 0.0625, %v11429_v47  ;;  %v8433_v63 = vadd.f32 1.0, %v8032_v25 }
  0xa7   : > { %592 = vmatpush1.msra.mxu0 %v532_v10  ;;  %v789_v3 = vmul.f32 0.0625, %v11428_v20  ;;  %v790_v4 = vmul.f32 0.0625, %v11426_v49  ;;  %v791_v27 = vmul.f32 0.0625, %v11425_v50  ;;  %v8442_v5 = vsub.s32 5, %v8337_v15 }
  0xa8   : > { %7242 = vmatmul.mubr.msk.f32.vlgmr.msra.gmra.mrb[0].mxu0 %vm562_vm3, %v534_v11  ;;  %v8445_v6 = vadd.f32 2.0, %v8028_v23  ;;  %v815_v7 = vadd.f32 0.001, %v783_v53  ;;  %v792_v9 = vmul.f32 0.0625, %v11427_v54  ;;  %v8449_v10 = vfloor.f32 %v814_v55 }
  0xa9   : > { %645 = vmatprep.mubr.f32.mxu0 %v11424_v0  ;;  %11784 = vst [vmem:[#allocation10_spill] sm:$0xff] %v8442_v5  ;;  %v816_v30 = vadd.f32 0.001, %v784_v56  ;;  %v817_v11 = vadd.f32 0.001, %v785_v57  ;;  %v8458_v54 = vadd.s32 96, %v8337_v15 }
  0xaa   : > { %v819_v32 = vadd.f32 0.001, %v787_v61  ;;  %v820_v42 = vadd.f32 0.001, %v788_v62  ;;  %v821_v1 = vadd.f32 0.001, %v789_v3  ;;  %v8455_v49 = vfloor.f32 %v815_v7 }
  0xab   : > { %v823_v50 = vadd.f32 0.001, %v791_v27  ;;  %v824_v53 = vadd.f32 0.001, %v792_v9  ;;  %11785 = vst [vmem:[#allocation11_spill] sm:$0xff] %v8458_v54  ;;  %v8461_v55 = vadd.s32 104, %v8337_v15  ;;  %v8464_v57 = vfloor.f32 %v816_v30 }
  0xac   : > { %7243 = vmatmul.mubr.msk.f32.gmra.mrb[2].mxu0 %vm562_vm3, %v535_v12  ;;  %v818_v12 = vadd.f32 0.001, %v786_v58  ;;  %v878_v56 = vmul.f32 16.0, %v8449_v10  ;;  %v8466_v58 = vfloor.f32 %v817_v11  ;;  %v8470_v62 = vfloor.f32 %v819_v32 }
  0xad   : > { %651 = vmatprep.mubr.f32.mxu0 %v11424_v0  ;;  %11786 = vst [vmem:[#allocation12_spill] sm:$0xff] %v8461_v55  ;;  %v8472_v3 = vfloor.f32 %v820_v42  ;;  %v11433_v27 = vcvt.s32.f32 %v8461_v55  ;;  %v8477_v7 = vadd.f32 2.0, %v8023_v21  ;;  %v8479_v9 = vfloor.f32 %v821_v1 }
  0xae   : > { %11787 = vst [vmem:[#allocation13_spill] sm:$0xff] %v8466_v58  ;;  %v8468_v61 = vfloor.f32 %v818_v12  ;;  %11789 = vst [vmem:[#allocation15_spill] sm:$0xff] %v8470_v62  ;;  %v8483_v30 = vfloor.f32 %v823_v50  ;;  %v879_v11 = vmul.f32 16.0, %v8455_v49  ;;  %v8486_v12 = vfloor.f32 %v824_v53 }
  0xaf   : > { %11790 = vst [vmem:[#allocation16_spill] sm:$0xff] %v8472_v3  ;;  %11791 = vst [vmem:[#allocation17_spill] sm:$0xff] %v8479_v9  ;;  %v794_v42 = vmul.f32 0.0625, %v11433_v27  ;;  %v880_v1 = vmul.f32 16.0, %v8464_v57  ;;  %v8500_v53 = vadd.f32 2.0, %v8032_v25  ;;  %v883_v27 = vmul.f32 16.0, %v8470_v62 }
  0xb0   : > { %7244 = vmatmul.mubr.msk.f32.gmra.mrb[4].mxu0 %vm562_vm3, %v536_v13  ;;  %v8452_v13 = vadd.f32 2.0, %v8046_v28  ;;  %11788 = vst [vmem:[#allocation14_spill] sm:$0xff] %v8468_v61  ;;  %11793 = vst [vmem:[#allocation19_spill] sm:$0xff] %v8483_v30  ;;  %v882_v50 = vmul.f32 16.0, %v8468_v61  ;;  %v885_v40 = vmul.f32 16.0, %v8479_v9  ;;  %v887_v55 = vmul.f32 16.0, %v8483_v30 }
  0xb1   : > { %657 = vmatprep.mubr.f32.mxu0 %v11424_v0  ;;  %v822_v0 = vadd.f32 0.001, %v790_v4  ;;  %v11432_v4 = vcvt.s32.f32 %v8458_v54  ;;  %11794 = vst [vmem:[#allocation20_spill] sm:$0xff] %v8486_v12  ;;  %v11795_v54 = vcvt.s32.f32 %v8347_v19  ;;  %v888_v16 = vmul.f32 16.0, %v8486_v12 }
  0xb2   : > { %v545_v2 = vpop.permute.xlu0 %544  ;;  %v550_v43 = vpop.permute.xlu1 %549  ;;  %v11799_v9 = vcvt.s32.f32 %v8354_v29  ;;  %v11800_v30 = vcvt.s32.f32 %v8357_v8  ;;  %vm676_vm11 = vcmask 1041408  }
  0xb3   : > { %v8481_v20 = vfloor.f32 %v822_v0  ;;  %v793_v32 = vmul.f32 0.0625, %v11432_v4  ;;  %v881_v0 = vmul.f32 16.0, %v8466_v58  ;;  %v8504_v4 = vsub.f32 %v750_v22, %v878_v56 }
  0xb4   : > { %7245 = vmatmul.mubr.msk.f32.gmra.mrb[6].mxu0 %vm562_vm3, %v537_v14  ;;  %v877_v14 = vmul.f32 16.0, %v8426_v59  ;;  %v8515_v61 = vsub.f32 %v11795_v54, %v879_v11  ;;  %v826_v56 = vadd.f32 0.001, %v794_v42  ;;  %v11804_v11 = vcvt.s32.f32 %v8368_v24 }
  0xb5   : > { %11792 = vst [vmem:[#allocation18_spill] sm:$0xff] %v8481_v20  ;;  %v886_v15 = vmul.f32 16.0, %v8481_v20  ;;  %v825_v22 = vadd.f32 0.001, %v793_v32  ;;  %v8526_v58 = vsub.f32 %v11799_v9, %v881_v0  ;;  %v8530_v20 = vsub.f32 %v11800_v30, %v882_v50 }
  0xb6   : > { %v8494_v47 = vsub.f32 %v749_v17, %v877_v14  ;;  %v884_v17 = vmul.f32 16.0, %v8472_v3  ;;  %11796 = vst [vmem:[#allocation21_spill] sm:$0xff] %v8515_v61  ;;  %v11806_v30 = vcvt.s32.f32 %v8374_v35  ;;  %v8566_v35 = vfloor.f32 %v826_v56 }
  0xb7   : > { %11801 = vst [vmem:[#allocation23_spill] sm:$0xff] %v8530_v20  ;;  %v8564_v50 = vfloor.f32 %v825_v22 }
  0xb8   : > { %v8542_v29 = vsub.f32 %v11804_v11, %v884_v17  ;;  %v8548_v32 = vsub.f32 %v11806_v30, %v885_v40  ;;  %11815 = vst [vmem:[#allocation31_spill] sm:$0xff] %v8566_v35 }
  0xb9   : > { %11814 = vst [vmem:[#allocation30_spill] sm:$0xff] %v8564_v50 }
  0xba   : > { %11805 = vst [vmem:[#allocation25_spill] sm:$0xff] %v8542_v29  ;;  %11807 = vst [vmem:[#allocation26_spill] sm:$0xff] %v8548_v32 }
 0x17b   : > { %v641_v45 = vpop.f32.mrb[0].mxu0 }
 0x17c   : > { %v8508_v14 = vadd.f32 %v641_v45, %v545_v2  ;;  %v643_v44 = vpop.f32.mrb[1].mxu0  ;;  %v11797_v45 = vcvt.s32.f32 %v8351_v26 }
 0x17d   : > { %v8518_v62 = vadd.f32 %v643_v44, %v545_v2  ;;  %v11802_v2 = vcvt.s32.f32 %v8365_v33  ;;  %v11810_v33 = vcvt.s32.f32 %v8380_v37 }
 0x17e   : > { %v8522_v3 = vsub.f32 %v11797_v45, %v880_v1  ;;  %v945_v19 = vadd.f32 %v8508_v14, %v8023_v21  ;;  %v951_v54 = vadd.f32 %v8508_v14, %v8028_v23  ;;  %v1628_v8 = vadd.f32 %v8344_v18, %v8508_v14 }
 0x17f   : > { %v647_v44 = vpop.f32.mrb[2].mxu0  ;;  %v8538_v26 = vsub.f32 %v11802_v2, %v883_v27  ;;  %v11808_v21 = vcvt.s32.f32 %v8377_v36  ;;  %v8556_v27 = vsub.f32 %v11810_v33, %v887_v55  ;;  %v2982_v24 = vadd.f32 %v8360_v31, %v8508_v14  ;;  %v555_v55 = vpop.permute.xlu1 %554 }
 0x180   : > { %11798 = vst [vmem:[#allocation22_spill] sm:$0xff] %v8522_v3  ;;  %v649_v9 = vpop.f32.mrb[3].mxu0  ;;  %v11812_v1 = vcvt.s32.f32 %v8390_v41  ;;  %v946_v36 = vadd.f32 %v8518_v62, %v8032_v25  ;;  %v1629_v37 = vadd.f32 %v8424_v60, %v8518_v62  ;;  %v2983_v40 = vadd.f32 %v8433_v63, %v8518_v62 }
 0x181   : > { %11803 = vst [vmem:[#allocation24_spill] sm:$0xff] %v8538_v26  ;;  %v8552_v42 = vsub.f32 %v11808_v21, %v886_v15  ;;  %11811 = vst [vmem:[#allocation28_spill] sm:$0xff] %v8556_v27  ;;  %v952_v15 = vadd.f32 %v8518_v62, %v8046_v28  ;;  %v8577_v41 = vrot.slane %v945_v19, %v8371_v34  ;;  %v664_v2 = vand.u32 2147483647, %v8508_v14 }
 0x182   : > { %v8562_v0 = vsub.f32 %v11812_v1, %v888_v16  ;;  %v8580_v17 = vrot.slane %v951_v54, %v8383_v38  ;;  %v8582_v16 = vadd.f32 %v647_v44, %v550_v43  ;;  %v8584_v22 = vadd.f32 %v649_v9, %v550_v43 }
 0x183   : > { %11809 = vst [vmem:[#allocation27_spill] sm:$0xff] %v8552_v42  ;;  %v653_v25 = vpop.f32.mrb[4].mxu0  ;;  %v8587_v56 = vrot.slane %v945_v19, %v8386_v39  ;;  %v8590_v45 = vrot.slane %v1628_v8, %v8398_v46  ;;  %v665_v11 = vand.u32 2147483647, %v8518_v62  ;;  %v8603_v33 = vrot.slane %v945_v19, %v8403_v48 }
 0x184   : > { %11813 = vst [vmem:[#allocation29_spill] sm:$0xff] %v8562_v0  ;;  %v655_v30 = vpop.f32.mrb[5].mxu0  ;;  %v3657_v21 = vadd.f32 %v8360_v31, %v8582_v16  ;;  %v3659_v44 = vadd.f32 %v8344_v18, %v8582_v16  ;;  %v3658_v43 = vadd.f32 %v8433_v63, %v8584_v22  ;;  %v8600_v9 = vadd.f32 %v653_v25, %v555_v55 }
 0x185   : > { %11816 = vst [vmem:[#allocation32_spill] sm:$0xff] %v8603_v33  ;;  %v8606_v8 = vrot.slane %v2982_v24, %v8409_v51  ;;  %v3660_v1 = vadd.f32 %v8424_v60, %v8584_v22  ;;  %v670_v35 = vadd.f32 %v665_v11, %v664_v2  ;;  %v8611_v31 = vrot.slane %v951_v54, %v8412_v52 }
 0x186   : > { %v8614_v18 = vrot.slane %v946_v36, %v8371_v34  ;;  %v8617_v63 = vrot.slane %v952_v15, %v8383_v38  ;;  %v692_v25 = vsub.f32 0.0, %v8600_v9  ;;  %v8623_v24 = vrot.slane %v946_v36, %v8386_v39 }
 0x187   : > { %11817 = vst [vmem:[#allocation33_spill] sm:$0xff] %v8606_v8  ;;  %11818 = vst [vmem:[#allocation34_spill] sm:$0xff] %v8611_v31  ;;  %v8620_v19 = vpop.f32.mrb[6].mxu0  ;;  %v8626_v8 = vrot.slane %v1629_v37, %v8398_v46  ;;  %v8629_v60 = vrot.slane %v946_v36, %v8403_v48  ;;  %v5013_v54 = vadd.f32 %v8582_v16, %v8028_v23  ;;  %671 = vadd.xlane.f32.xlu1 %v670_v35 }
 0x188   : > { %11819 = vst [vmem:[#allocation35_spill] sm:$0xff] %v8620_v19  ;;  %v8633_v2 = vpop.f32.mrb[7].mxu0  ;;  %v8636_v11 = vrot.slane %v2983_v40, %v8409_v51  ;;  %v8639_v19 = vrot.slane %v952_v15, %v8412_v52  ;;  %v5014_v31 = vadd.f32 %v8584_v22, %v8046_v28  ;;  %v2305_v37 = vadd.f32 %v8445_v6, %v8508_v14 }
 0x189   : > { %11820 = vst [vmem:[#allocation36_spill] sm:$0xff] %v8633_v2  ;;  %v8646_v36 = vrot.slane %v3657_v21, %v8371_v34  ;;  %v4334_v23 = vadd.f32 %v8445_v6, %v8582_v16  ;;  %v6361_v35 = vadd.f32 %v8477_v7, %v8600_v9  ;;  %v6363_v15 = vadd.f32 %v8445_v6, %v8600_v9 }
 0x18a   : > { %11821 = vst [vmem:[#allocation37_spill] sm:$0xff] %v8636_v11  ;;  %11822 = vst [vmem:[#allocation38_spill] sm:$0xff] %v8639_v19  ;;  %v8655_v40 = vrot.slane %v3659_v44, %v8383_v38  ;;  %v696_v28 = vmul.f32 1.442695, %v692_v25  ;;  %v656_v2 = vadd.f32 %v655_v30, %v555_v55  ;;  %v4335_v14 = vadd.f32 %v8452_v13, %v8584_v22 }
 0x18b   : > { %11823 = vst [vmem:[#allocation39_spill] sm:$0xff] %v8646_v36  ;;  %v8660_v33 = vrot.slane %v3657_v21, %v8386_v39  ;;  %v8663_v36 = vrot.slane %v5013_v54, %v8442_v5  ;;  %v8666_v19 = vrot.slane %v3659_v44, %v8412_v52  ;;  %v5011_v6 = vadd.f32 %v8477_v7, %v8582_v16 }
 0x18c   : > { %11824 = vst [vmem:[#allocation40_spill] sm:$0xff] %v8655_v40  ;;  %v8671_v11 = vrot.slane %v3658_v43, %v8371_v34  ;;  %v8674_v55 = vrot.slane %v3660_v1, %v8383_v38  ;;  %v8677_v30 = vrot.slane %v3658_v43, %v8386_v39  ;;  %v693_v21 = vsub.f32 0.0, %v656_v2 }
 0x18d   : > { %11825 = vst [vmem:[#allocation41_spill] sm:$0xff] %v8660_v33  ;;  %11826 = vst [vmem:[#allocation42_spill] sm:$0xff] %v8663_v36  ;;  %v8680_v25 = vrot.slane %v5014_v31, %v8442_v5  ;;  %v8683_v54 = vrot.slane %v3660_v1, %v8412_v52  ;;  %v8686_v44 = vadd.f32 %v8500_v53, %v656_v2  ;;  %7884 = vpow2.f32 %v696_v28 }
 0x18e   : > { %11827 = vst [vmem:[#allocation43_spill] sm:$0xff] %v8666_v19  ;;  %11828 = vst [vmem:[#allocation44_spill] sm:$0xff] %v8671_v11  ;;  %v8689_v7 = vadd.f32 %v8452_v13, %v656_v2  ;;  %v698_v19 = vmul.f32 1.442695, %v693_v21  ;;  %v666_v36 = vand.u32 2147483647, %v8582_v16  ;;  %v8694_v39 = vrot.slane %v2305_v37, %v8442_v5 }
 0x18f   : > { %11829 = vst [vmem:[#allocation45_spill] sm:$0xff] %v8674_v55  ;;  %11830 = vst [vmem:[#allocation46_spill] sm:$0xff] %v8677_v30  ;;  %v667_v43 = vand.u32 2147483647, %v8584_v22  ;;  %v8697_v31 = vrot.slane %v4334_v23, %v8398_v46  ;;  %v8700_v1 = vrot.slane %v5011_v6, %v8403_v48  ;;  %v2306_v52 = vadd.f32 %v8452_v13, %v8518_v62 }
 0x190   : > { %11831 = vst [vmem:[#allocation47_spill] sm:$0xff] %v8680_v25  ;;  %11832 = vst [vmem:[#allocation48_spill] sm:$0xff] %v8683_v54  ;;  %v8705_v54 = vrot.slane %v5011_v6, %v8409_v51  ;;  %7886 = vpow2.f32 %v698_v19  ;;  %v5012_v16 = vadd.f32 %v8500_v53, %v8584_v22  ;;  %v668_v37 = vand.u32 2147483647, %v8600_v9 }
 0x191   : > { %11833 = vst [vmem:[#allocation49_spill] sm:$0xff] %v8697_v31  ;;  %11834 = vst [vmem:[#allocation50_spill] sm:$0xff] %v8700_v1  ;;  %v673_v28 = vadd.f32 %v667_v43, %v666_v36  ;;  %v669_v21 = vand.u32 2147483647, %v656_v2  ;;  %v962_v23 = vsub.f32 %v8614_v18, %v8426_v59  ;;  %v964_v1 = vsub.f32 %v8614_v18, %v8449_v10 }
 0x192   : > { %11835 = vst [vmem:[#allocation51_spill] sm:$0xff] %v8705_v54  ;;  %v8715_v25 = vrot.slane %v6361_v35, %v8371_v34  ;;  %v8718_v13 = vrot.slane %v6363_v15, %v8383_v38  ;;  %v1226_v62 = vsub.f32 %v8617_v63, %v8494_v47  ;;  %v1228_v53 = vsub.f32 %v8617_v63, %v8504_v4 }
 0x193   : > { %674 = vadd.xlane.f32.xlu0 %v673_v28  ;;  %v677_v22 = vsel %vm676_vm11, %v668_v37, 0.0  ;;  %v678_v9 = vsel %vm676_vm11, %v669_v21, 0.0  ;;  %v1026_v19 = vand.u32 2147483647, %v962_v23  ;;  %v1028_v2 = vand.u32 2147483647, %v964_v1 }
 0x194   : > { %11836 = vst [vmem:[#allocation52_spill] sm:$0xff] %v8715_v25  ;;  %11837 = vst [vmem:[#allocation53_spill] sm:$0xff] %v8718_v13  ;;  %v8727_v36 = vrot.slane %v2306_v52, %v8442_v5  ;;  %v679_v35 = vadd.f32 %v678_v9, %v677_v22  ;;  %v1290_v6 = vand.u32 2147483647, %v1226_v62  ;;  %v1292_v15 = vand.u32 2147483647, %v1228_v53 }
 0x195   : > { %v8730_v43 = vrot.slane %v4335_v14, %v8398_v46  ;;  %v8733_v28 = vrot.slane %v5012_v16, %v8403_v48  ;;  %v1090_v13 = vsub.f32 1.0, %v1026_v19  ;;  %v1092_v25 = vsub.f32 1.0, %v1028_v2  ;;  %v7039_v37 = vld [vmem:[%s11409_s5] sm:$0xff] }
 0x196   : > { %v1354_v1 = vsub.f32 1.0, %v1290_v6  ;;  %v1356_v21 = vsub.f32 1.0, %v1292_v15  ;;  %v1639_v52 = vsub.f32 %v8623_v24, %v8426_v59  ;;  %v1641_v23 = vsub.f32 %v8623_v24, %v8449_v10 }
 0x197   : > { %11838 = vst [vmem:[#allocation54_spill] sm:$0xff] %v8730_v43  ;;  %11839 = vst [vmem:[#allocation55_spill] sm:$0xff] %v8733_v28  ;;  %680 = vadd.xlane.f32.xlu0 %v679_v35  ;;  %v8743_v14 = vrot.slane %v5012_v16, %v8409_v51  ;;  %v1154_v62 = vmax.f32 %v1090_v13, 0.0  ;;  %v1156_v53 = vmax.f32 %v1092_v25, 0.0  ;;  %v1903_v22 = vsub.f32 %v8626_v8, %v8494_v47  ;;  %v7885_v9 = vpop.eup %7884 }
 0x198   : > { %v1418_v19 = vmax.f32 %v1354_v1, 0.0  ;;  %v1420_v2 = vmax.f32 %v1356_v21, 0.0  ;;  %v1703_v35 = vand.u32 2147483647, %v1639_v52  ;;  %v1705_v6 = vand.u32 2147483647, %v1641_v23  ;;  %7042 = vperm.xlu1 %7883, %v7039_v37  }
 0x199   : > { %11840 = vst [vmem:[#allocation56_spill] sm:$0xff] %v8743_v14  ;;  %v1905_v15 = vsub.f32 %v8626_v8, %v8504_v4  ;;  %v1967_v5 = vand.u32 2147483647, %v1903_v22  ;;  %v961_v48 = vsub.f32 %v8577_v41, %v8426_v59  ;;  %v963_v16 = vsub.f32 %v8577_v41, %v8449_v10 }
 0x19a   : > { %v7887_v25 = vpop.eup %7886  ;;  %v1482_v13 = vmul.f32 %v1418_v19, %v1154_v62  ;;  %v1484_v51 = vmul.f32 %v1420_v2, %v1156_v53  ;;  %v1767_v46 = vsub.f32 1.0, %v1703_v35  ;;  %v1769_v54 = vsub.f32 1.0, %v1705_v6 }
 0x19b   : > { %v704_v1 = vadd.f32 1.0, %v7885_v9  ;;  %v1969_v21 = vand.u32 2147483647, %v1905_v15  ;;  %v2031_v52 = vsub.f32 1.0, %v1967_v5  ;;  %v1025_v23 = vand.u32 2147483647, %v961_v48 }
 0x19c   : > { %v705_v37 = vadd.f32 1.0, %v7887_v25  ;;  %v7272_v14 = vpack.c.bf16 %v1484_v51, %v1482_v13  ;;  %v1831_v28 = vmax.f32 %v1767_v46, 0.0  ;;  %v1027_v31 = vand.u32 2147483647, %v963_v16 }
 0x19d   : > { %v1833_v22 = vmax.f32 %v1769_v54, 0.0  ;;  %v2033_v33 = vsub.f32 1.0, %v1969_v21  ;;  %v2095_v40 = vmax.f32 %v2031_v52, 0.0  ;;  %v1089_v43 = vsub.f32 1.0, %v1025_v23 }
 0x19e   : > { %7273 = vmatprep.subr.bf16.mxu1 %v7272_v14  ;;  %v1091_v30 = vsub.f32 1.0, %v1027_v31  ;;  %v1225_v62 = vsub.f32 %v8580_v17, %v8494_v47  ;;  %v1227_v53 = vsub.f32 %v8580_v17, %v8504_v4  ;;  %v1638_v5 = vsub.f32 %v8587_v56, %v8426_v59 }
 0x19f   : > { %7888 = vrcp.f32 %v704_v1  ;;  %v8761_v46 = vrot.slane %v8686_v44, %v8371_v34  ;;  %v2097_v48 = vmax.f32 %v2033_v33, 0.0  ;;  %v2159_v51 = vmul.f32 %v2095_v40, %v1831_v28 }
 0x1a0   : > { %7890 = vrcp.f32 %v705_v37  ;;  %v8765_v54 = vrot.slane %v8689_v7, %v8383_v38  ;;  %v1289_v31 = vand.u32 2147483647, %v1225_v62  ;;  %v1291_v14 = vand.u32 2147483647, %v1227_v53 }
 0x1a1   : > { %11841 = vst [vmem:[#allocation57_spill] sm:$0xff] %v8761_v46  ;;  %v2161_v9 = vmul.f32 %v2097_v48, %v1833_v22  ;;  %v1153_v19 = vmax.f32 %v1089_v43, 0.0  ;;  %v1640_v2 = vsub.f32 %v8587_v56, %v8449_v10  ;;  %v1702_v35 = vand.u32 2147483647, %v1638_v5 }
 0x1a2   : > { %11842 = vst [vmem:[#allocation58_spill] sm:$0xff] %v8765_v54  ;;  %v1155_v6 = vmax.f32 %v1091_v30, 0.0  ;;  %v1353_v15 = vsub.f32 1.0, %v1289_v31  ;;  %v1355_v16 = vsub.f32 1.0, %v1291_v14  ;;  %v1902_v33 = vsub.f32 %v8590_v45, %v8494_v47 }
 0x1a3   : > { %v7336_v40 = vpack.c.bf16 %v2161_v9, %v2159_v51  ;;  %v1704_v44 = vand.u32 2147483647, %v1640_v2  ;;  %v1766_v28 = vsub.f32 1.0, %v1702_v35  ;;  %v1904_v7 = vsub.f32 %v8590_v45, %v8504_v4 }
 0x1a4   : > { %v1417_v25 = vmax.f32 %v1353_v15, 0.0  ;;  %v1419_v13 = vmax.f32 %v1355_v16, 0.0  ;;  %v1966_v1 = vand.u32 2147483647, %v1902_v33  ;;  %v966_v43 = vsub.f32 %v8614_v18, %v8455_v49 }
 0x1a5   : > { %7337 = vmatprep.subr.bf16.mxu0 %v7336_v40  ;;  %v1768_v21 = vsub.f32 1.0, %v1704_v44  ;;  %v1830_v30 = vmax.f32 %v1766_v28, 0.0  ;;  %v1968_v52 = vand.u32 2147483647, %v1904_v7  ;;  %v968_v23 = vsub.f32 %v8614_v18, %v8464_v57 }
 0x1a6   : > { %v1481_v37 = vmul.f32 %v1417_v25, %v1153_v19  ;;  %v1483_v22 = vmul.f32 %v1419_v13, %v1155_v6  ;;  %v2030_v62 = vsub.f32 1.0, %v1966_v1  ;;  %v1030_v53 = vand.u32 2147483647, %v966_v43 }
 0x1a7   : > { %v1832_v5 = vmax.f32 %v1768_v21, 0.0  ;;  %v2032_v48 = vsub.f32 1.0, %v1968_v52  ;;  %v1032_v51 = vand.u32 2147483647, %v968_v23  ;;  %v1230_v31 = vsub.f32 %v8617_v63, %v8515_v61 }
 0x1a8   : > { %v7274_v14 = vpack.c.bf16 %v1483_v22, %v1481_v37  ;;  %v2094_v9 = vmax.f32 %v2030_v62, 0.0  ;;  %v1094_v2 = vsub.f32 1.0, %v1030_v53  ;;  %v1232_v35 = vsub.f32 %v8617_v63, %v8522_v3 }
 0x1a9   : > { %v8781_v15 = vpop.eup %7888  ;;  %v2096_v16 = vmax.f32 %v2032_v48, 0.0  ;;  %v1096_v33 = vsub.f32 1.0, %v1032_v51  ;;  %v1294_v19 = vand.u32 2147483647, %v1230_v31  ;;  %v1643_v6 = vsub.f32 %v8623_v24, %v8455_v49 }
 0x1aa   : > { %11843 = vst [vmem:[#allocation59_spill] sm:$0xff] %v8781_v15  ;;  %v8785_v40 = vpop.eup %7890  ;;  %7275 = vmatpush1.bf16.msra.mxu1 %v7274_v14  ;;  %v2158_v44 = vmul.f32 %v2094_v9, %v1830_v30  ;;  %v1158_v28 = vmax.f32 %v1094_v2, 0.0  ;;  %v1296_v7 = vand.u32 2147483647, %v1232_v35  ;;  %v1645_v25 = vsub.f32 %v8623_v24, %v8464_v57 }
 0x1ab   : > { %11844 = vst [vmem:[#allocation60_spill] sm:$0xff] %v8785_v40  ;;  %v2160_v13 = vmul.f32 %v2096_v16, %v1832_v5  ;;  %v1160_v1 = vmax.f32 %v1096_v33, 0.0  ;;  %v1358_v43 = vsub.f32 1.0, %v1294_v19  ;;  %v1707_v21 = vand.u32 2147483647, %v1643_v6 }
 0x1ac   : > { %v1360_v52 = vsub.f32 1.0, %v1296_v7  ;;  %v1709_v23 = vand.u32 2147483647, %v1645_v25  ;;  %v1907_v37 = vsub.f32 %v8626_v8, %v8515_v61  ;;  %v1909_v22 = vsub.f32 %v8626_v8, %v8522_v3 }
 0x1ad   : > { %v7338_v62 = vpack.c.bf16 %v2160_v13, %v2158_v44  ;;  %v1422_v53 = vmax.f32 %v1358_v43, 0.0  ;;  %v1771_v30 = vsub.f32 1.0, %v1707_v21  ;;  %v965_v48 = vsub.f32 %v8577_v41, %v8455_v49 }
 0x1ae   : > { %v1424_v51 = vmax.f32 %v1360_v52, 0.0  ;;  %v1773_v31 = vsub.f32 1.0, %v1709_v23  ;;  %v1971_v5 = vand.u32 2147483647, %v1907_v37  ;;  %v1973_v14 = vand.u32 2147483647, %v1909_v22 }
 0x1af   : > { %7339 = vmatpush1.bf16.msra.mxu0 %v7338_v62  ;;  %v1486_v9 = vmul.f32 %v1422_v53, %v1158_v28  ;;  %v1835_v2 = vmax.f32 %v1771_v30, 0.0  ;;  %v967_v35 = vsub.f32 %v8577_v41, %v8464_v57  ;;  %v1029_v16 = vand.u32 2147483647, %v965_v48 }
 0x1b0   : > { %v1488_v33 = vmul.f32 %v1424_v51, %v1160_v1  ;;  %v1837_v19 = vmax.f32 %v1773_v31, 0.0  ;;  %v2035_v6 = vsub.f32 1.0, %v1971_v5  ;;  %v2037_v44 = vsub.f32 1.0, %v1973_v14 }
 0x1b1   : > { %v1031_v7 = vand.u32 2147483647, %v967_v35  ;;  %v1093_v25 = vsub.f32 1.0, %v1029_v16  ;;  %v1229_v13 = vsub.f32 %v8580_v17, %v8515_v61  ;;  %v1231_v43 = vsub.f32 %v8580_v17, %v8522_v3 }
 0x1b2   : > { %v7276_v21 = vpack.c.bf16 %v1488_v33, %v1486_v9  ;;  %v2099_v52 = vmax.f32 %v2035_v6, 0.0  ;;  %v2101_v28 = vmax.f32 %v2037_v44, 0.0  ;;  %v1642_v23 = vsub.f32 %v8587_v56, %v8455_v49 }
 0x1b3   : > { %v1095_v37 = vsub.f32 1.0, %v1031_v7  ;;  %v1157_v22 = vmax.f32 %v1093_v25, 0.0  ;;  %v1293_v1 = vand.u32 2147483647, %v1229_v13  ;;  %v1295_v62 = vand.u32 2147483647, %v1231_v43 }
 0x1b4   : > { %7277 = vmatprep.subr.bf16.mxu1 %v7276_v21  ;;  %v2163_v53 = vmul.f32 %v2099_v52, %v1835_v2  ;;  %v2165_v30 = vmul.f32 %v2101_v28, %v1837_v19  ;;  %v1644_v48 = vsub.f32 %v8587_v56, %v8464_v57  ;;  %v1706_v51 = vand.u32 2147483647, %v1642_v23  ;;  %v11845_v19 = vld [vmem:[#allocation13_spill] sm:$0xff]  ;;  %v11846_v52 = vld [vmem:[#allocation14_spill] sm:$0xff] }
 0x1b5   : > { %v1159_v31 = vmax.f32 %v1095_v37, 0.0  ;;  %v1357_v5 = vsub.f32 1.0, %v1293_v1  ;;  %v1359_v14 = vsub.f32 1.0, %v1295_v62  ;;  %v1906_v9 = vsub.f32 %v8590_v45, %v8515_v61 }
 0x1b6   : > { %v7340_v35 = vpack.c.bf16 %v2165_v30, %v2163_v53  ;;  %v1708_v16 = vand.u32 2147483647, %v1644_v48  ;;  %v1770_v33 = vsub.f32 1.0, %v1706_v51  ;;  %v1908_v6 = vsub.f32 %v8590_v45, %v8522_v3 }
 0x1b7   : > { %v1421_v44 = vmax.f32 %v1357_v5, 0.0  ;;  %v1423_v7 = vmax.f32 %v1359_v14, 0.0  ;;  %v1970_v2 = vand.u32 2147483647, %v1906_v9  ;;  %v970_v25 = vsub.f32 %v8614_v18, %v11845_v19 }
 0x1b8   : > { %7341 = vmatprep.subr.bf16.mxu0 %v7340_v35  ;;  %v1772_v13 = vsub.f32 1.0, %v1708_v16  ;;  %v1834_v43 = vmax.f32 %v1770_v33, 0.0  ;;  %v1972_v21 = vand.u32 2147483647, %v1908_v6  ;;  %v972_v28 = vsub.f32 %v8614_v18, %v11846_v52 }
 0x1b9   : > { %v1485_v23 = vmul.f32 %v1421_v44, %v1157_v22  ;;  %v1487_v37 = vmul.f32 %v1423_v7, %v1159_v31  ;;  %v2034_v1 = vsub.f32 1.0, %v1970_v2  ;;  %v1034_v62 = vand.u32 2147483647, %v970_v25 }
 0x1ba   : > { %v1836_v53 = vmax.f32 %v1772_v13, 0.0  ;;  %v2036_v30 = vsub.f32 1.0, %v1972_v21  ;;  %v1036_v48 = vand.u32 2147483647, %v972_v28  ;;  %v1234_v51 = vsub.f32 %v8617_v63, %v8526_v58 }
 0x1bb   : > { %v7278_v5 = vpack.c.bf16 %v1487_v37, %v1485_v23  ;;  %v2098_v14 = vmax.f32 %v2034_v1, 0.0  ;;  %v1098_v9 = vsub.f32 1.0, %v1034_v62  ;;  %v1236_v35 = vsub.f32 %v8617_v63, %v8530_v20 }
 0x1bc   : > { %v2100_v16 = vmax.f32 %v2036_v30, 0.0  ;;  %v1100_v33 = vsub.f32 1.0, %v1036_v48  ;;  %v1298_v6 = vand.u32 2147483647, %v1234_v51  ;;  %v1647_v22 = vsub.f32 %v8623_v24, %v11845_v19 }
 0x1bd   : > { %7279 = vmatpush1.bf16.msra.mxu1 %v7278_v5  ;;  %v2162_v31 = vmul.f32 %v2098_v14, %v1834_v43  ;;  %v1162_v44 = vmax.f32 %v1098_v9, 0.0  ;;  %v1300_v7 = vand.u32 2147483647, %v1236_v35  ;;  %v1649_v2 = vsub.f32 %v8623_v24, %v11846_v52 }
 0x1be   : > { %v2164_v25 = vmul.f32 %v2100_v16, %v1836_v53  ;;  %v1164_v13 = vmax.f32 %v1100_v33, 0.0  ;;  %v1362_v21 = vsub.f32 1.0, %v1298_v6  ;;  %v1711_v28 = vand.u32 2147483647, %v1647_v22 }
 0x1bf   : > { %v1364_v23 = vsub.f32 1.0, %v1300_v7  ;;  %v1713_v37 = vand.u32 2147483647, %v1649_v2  ;;  %v1911_v1 = vsub.f32 %v8626_v8, %v8526_v58  ;;  %v1913_v62 = vsub.f32 %v8626_v8, %v8530_v20 }
 0x1c0   : > { %v7342_v30 = vpack.c.bf16 %v2164_v25, %v2162_v31  ;;  %v1426_v48 = vmax.f32 %v1362_v21, 0.0  ;;  %v1775_v43 = vsub.f32 1.0, %v1711_v28  ;;  %v969_v51 = vsub.f32 %v8577_v41, %v11845_v19 }
 0x1c1   : > { %v1428_v5 = vmax.f32 %v1364_v23, 0.0  ;;  %v1777_v14 = vsub.f32 1.0, %v1713_v37  ;;  %v1975_v53 = vand.u32 2147483647, %v1911_v1  ;;  %v1977_v9 = vand.u32 2147483647, %v1913_v62 }
 0x1c2   : > { %7343 = vmatpush1.bf16.msra.mxu0 %v7342_v30  ;;  %v1490_v35 = vmul.f32 %v1426_v48, %v1162_v44  ;;  %v1839_v16 = vmax.f32 %v1775_v43, 0.0  ;;  %v971_v33 = vsub.f32 %v8577_v41, %v11846_v52  ;;  %v1033_v6 = vand.u32 2147483647, %v969_v51 }
 0x1c3   : > { %v1492_v22 = vmul.f32 %v1428_v5, %v1164_v13  ;;  %v1841_v7 = vmax.f32 %v1777_v14, 0.0  ;;  %v2039_v2 = vsub.f32 1.0, %v1975_v53  ;;  %v2041_v31 = vsub.f32 1.0, %v1977_v9 }
 0x1c4   : > { %v1035_v25 = vand.u32 2147483647, %v971_v33  ;;  %v1097_v21 = vsub.f32 1.0, %v1033_v6  ;;  %v1233_v28 = vsub.f32 %v8580_v17, %v8526_v58  ;;  %v1235_v23 = vsub.f32 %v8580_v17, %v8530_v20 }
 0x1c5   : > { %v7280_v37 = vpack.c.bf16 %v1492_v22, %v1490_v35  ;;  %v2103_v1 = vmax.f32 %v2039_v2, 0.0  ;;  %v2105_v44 = vmax.f32 %v2041_v31, 0.0  ;;  %v1646_v62 = vsub.f32 %v8587_v56, %v11845_v19 }
 0x1c6   : > { %v1099_v30 = vsub.f32 1.0, %v1035_v25  ;;  %v1161_v48 = vmax.f32 %v1097_v21, 0.0  ;;  %v1297_v13 = vand.u32 2147483647, %v1233_v28  ;;  %v1299_v43 = vand.u32 2147483647, %v1235_v23 }
 0x1c7   : > { %7281 = vmatprep.subr.bf16.mxu1 %v7280_v37  ;;  %v2167_v51 = vmul.f32 %v2103_v1, %v1839_v16  ;;  %v2169_v5 = vmul.f32 %v2105_v44, %v1841_v7  ;;  %v1648_v14 = vsub.f32 %v8587_v56, %v11846_v52  ;;  %v1710_v53 = vand.u32 2147483647, %v1646_v62  ;;  %v11847_v7 = vld [vmem:[#allocation15_spill] sm:$0xff]  ;;  %v11848_v62 = vld [vmem:[#allocation16_spill] sm:$0xff] }
 0x1c8   : > { %v1163_v9 = vmax.f32 %v1099_v30, 0.0  ;;  %v1361_v33 = vsub.f32 1.0, %v1297_v13  ;;  %v1363_v6 = vsub.f32 1.0, %v1299_v43  ;;  %v1910_v35 = vsub.f32 %v8590_v45, %v8526_v58 }
 0x1c9   : > { %v7344_v22 = vpack.c.bf16 %v2169_v5, %v2167_v51  ;;  %v1712_v2 = vand.u32 2147483647, %v1648_v14  ;;  %v1774_v31 = vsub.f32 1.0, %v1710_v53  ;;  %v1912_v25 = vsub.f32 %v8590_v45, %v8530_v20 }
 0x1ca   : > { %v1425_v21 = vmax.f32 %v1361_v33, 0.0  ;;  %v1427_v28 = vmax.f32 %v1363_v6, 0.0  ;;  %v1974_v16 = vand.u32 2147483647, %v1910_v35  ;;  %v974_v23 = vsub.f32 %v8614_v18, %v11847_v7 }
 0x1cb   : > { %7345 = vmatprep.subr.bf16.mxu0 %v7344_v22  ;;  %v1776_v37 = vsub.f32 1.0, %v1712_v2  ;;  %v1838_v1 = vmax.f32 %v1774_v31, 0.0  ;;  %v1976_v44 = vand.u32 2147483647, %v1912_v25  ;;  %v976_v30 = vsub.f32 %v8614_v18, %v11848_v62 }
 0x1cc   : > { %v1489_v13 = vmul.f32 %v1425_v21, %v1161_v48  ;;  %v1491_v43 = vmul.f32 %v1427_v28, %v1163_v9  ;;  %v2038_v51 = vsub.f32 1.0, %v1974_v16  ;;  %v1038_v5 = vand.u32 2147483647, %v974_v23 }
 0x1cd   : > { %v1840_v14 = vmax.f32 %v1776_v37, 0.0  ;;  %v2040_v53 = vsub.f32 1.0, %v1976_v44  ;;  %v1040_v38 = vand.u32 2147483647, %v976_v30  ;;  %v1238_v33 = vsub.f32 %v8617_v63, %v8538_v26 }
 0x1ce   : > { %v7282_v6 = vpack.c.bf16 %v1491_v43, %v1489_v13  ;;  %v2102_v35 = vmax.f32 %v2038_v51, 0.0  ;;  %v1102_v34 = vsub.f32 1.0, %v1038_v5  ;;  %v1240_v22 = vsub.f32 %v8617_v63, %v8542_v29 }
 0x1cf   : > { %v2104_v2 = vmax.f32 %v2040_v53, 0.0  ;;  %v1104_v31 = vsub.f32 1.0, %v1040_v38  ;;  %v1302_v25 = vand.u32 2147483647, %v1238_v33  ;;  %v1651_v48 = vsub.f32 %v8623_v24, %v11847_v7 }
 0x1d0   : > { %7283 = vmatpush1.bf16.msra.mxu1 %v7282_v6  ;;  %v2166_v9 = vmul.f32 %v2102_v35, %v1838_v1  ;;  %v1166_v21 = vmax.f32 %v1102_v34, 0.0  ;;  %v1304_v28 = vand.u32 2147483647, %v1240_v22  ;;  %v1653_v16 = vsub.f32 %v8623_v24, %v11848_v62 }
 0x1d1   : > { %v2168_v23 = vmul.f32 %v2104_v2, %v1840_v14  ;;  %v1168_v37 = vmax.f32 %v1104_v31, 0.0  ;;  %v1366_v44 = vsub.f32 1.0, %v1302_v25  ;;  %v1715_v30 = vand.u32 2147483647, %v1651_v48 }
 0x1d2   : > { %v1368_v13 = vsub.f32 1.0, %v1304_v28  ;;  %v1717_v43 = vand.u32 2147483647, %v1653_v16  ;;  %v1915_v38 = vsub.f32 %v8626_v8, %v8538_v26  ;;  %v1917_v51 = vsub.f32 %v8626_v8, %v8542_v29 }
 0x1d3   : > { %v7346_v5 = vpack.c.bf16 %v2168_v23, %v2166_v9  ;;  %v1430_v53 = vmax.f32 %v1366_v44, 0.0  ;;  %v1779_v1 = vsub.f32 1.0, %v1715_v30  ;;  %v973_v34 = vsub.f32 %v8577_v41, %v11847_v7 }
 0x1d4   : > { %v1432_v33 = vmax.f32 %v1368_v13, 0.0  ;;  %v1781_v6 = vsub.f32 1.0, %v1717_v43  ;;  %v1979_v14 = vand.u32 2147483647, %v1915_v38  ;;  %v1981_v35 = vand.u32 2147483647, %v1917_v51 }
 0x1d5   : > { %7347 = vmatpush1.bf16.msra.mxu0 %v7346_v5  ;;  %v1494_v22 = vmul.f32 %v1430_v53, %v1166_v21  ;;  %v1843_v2 = vmax.f32 %v1779_v1, 0.0  ;;  %v975_v31 = vsub.f32 %v8577_v41, %v11848_v62  ;;  %v1037_v25 = vand.u32 2147483647, %v973_v34 }
 0x1d6   : > { %v1496_v48 = vmul.f32 %v1432_v33, %v1168_v37  ;;  %v1845_v28 = vmax.f32 %v1781_v6, 0.0  ;;  %v2043_v16 = vsub.f32 1.0, %v1979_v14  ;;  %v2045_v9 = vsub.f32 1.0, %v1981_v35 }
 0x1d7   : > { %v1039_v23 = vand.u32 2147483647, %v975_v31  ;;  %v1101_v44 = vsub.f32 1.0, %v1037_v25  ;;  %v1237_v30 = vsub.f32 %v8580_v17, %v8538_v26  ;;  %v1239_v13 = vsub.f32 %v8580_v17, %v8542_v29 }
 0x1d8   : > { %v7284_v43 = vpack.c.bf16 %v1496_v48, %v1494_v22  ;;  %v2107_v38 = vmax.f32 %v2043_v16, 0.0  ;;  %v2109_v21 = vmax.f32 %v2045_v9, 0.0  ;;  %v1650_v51 = vsub.f32 %v8587_v56, %v11847_v7 }
 0x1d9   : > { %v1103_v5 = vsub.f32 1.0, %v1039_v23  ;;  %v1165_v53 = vmax.f32 %v1101_v44, 0.0  ;;  %v1301_v37 = vand.u32 2147483647, %v1237_v30  ;;  %v1303_v1 = vand.u32 2147483647, %v1239_v13 }
 0x1da   : > { %7285 = vmatprep.subr.bf16.mxu1 %v7284_v43  ;;  %v2171_v34 = vmul.f32 %v2107_v38, %v1843_v2  ;;  %v2173_v33 = vmul.f32 %v2109_v21, %v1845_v28  ;;  %v1652_v6 = vsub.f32 %v8587_v56, %v11848_v62  ;;  %v1714_v14 = vand.u32 2147483647, %v1650_v51  ;;  %v11849_v28 = vld [vmem:[#allocation17_spill] sm:$0xff]  ;;  %v11850_v51 = vld [vmem:[#allocation18_spill] sm:$0xff] }
 0x1db   : > { %v1167_v35 = vmax.f32 %v1103_v5, 0.0  ;;  %v1365_v31 = vsub.f32 1.0, %v1301_v37  ;;  %v1367_v25 = vsub.f32 1.0, %v1303_v1  ;;  %v1914_v22 = vsub.f32 %v8590_v45, %v8538_v26 }
 0x1dc   : > { %v7348_v48 = vpack.c.bf16 %v2173_v33, %v2171_v34  ;;  %v1716_v16 = vand.u32 2147483647, %v1652_v6  ;;  %v1778_v9 = vsub.f32 1.0, %v1714_v14  ;;  %v1916_v23 = vsub.f32 %v8590_v45, %v8542_v29 }
 0x1dd   : > { %v1429_v44 = vmax.f32 %v1365_v31, 0.0  ;;  %v1431_v30 = vmax.f32 %v1367_v25, 0.0  ;;  %v1978_v2 = vand.u32 2147483647, %v1914_v22  ;;  %v978_v13 = vsub.f32 %v8614_v18, %v11849_v28 }
 0x1de   : > { %7349 = vmatprep.subr.bf16.mxu0 %v7348_v48  ;;  %v1780_v43 = vsub.f32 1.0, %v1716_v16  ;;  %v1842_v38 = vmax.f32 %v1778_v9, 0.0  ;;  %v1980_v21 = vand.u32 2147483647, %v1916_v23  ;;  %v980_v5 = vsub.f32 %v8614_v18, %v11850_v51 }
 0x1df   : > { %v1493_v37 = vmul.f32 %v1429_v44, %v1165_v53  ;;  %v1495_v1 = vmul.f32 %v1431_v30, %v1167_v35  ;;  %v2042_v34 = vsub.f32 1.0, %v1978_v2  ;;  %v1042_v33 = vand.u32 2147483647, %v978_v13 }
 0x1e0   : > { %v1844_v6 = vmax.f32 %v1780_v43, 0.0  ;;  %v2044_v14 = vsub.f32 1.0, %v1980_v21  ;;  %v1044_v40 = vand.u32 2147483647, %v980_v5  ;;  %v1242_v31 = vsub.f32 %v8617_v63, %v8548_v32 }
 0x1e1   : > { %v7286_v25 = vpack.c.bf16 %v1495_v1, %v1493_v37  ;;  %v2106_v22 = vmax.f32 %v2042_v34, 0.0  ;;  %v1106_v15 = vsub.f32 1.0, %v1042_v33  ;;  %v1244_v48 = vsub.f32 %v8617_v63, %v8552_v42 }
 0x1e2   : > { %v2108_v16 = vmax.f32 %v2044_v14, 0.0  ;;  %v1108_v9 = vsub.f32 1.0, %v1044_v40  ;;  %v1306_v23 = vand.u32 2147483647, %v1242_v31  ;;  %v1655_v53 = vsub.f32 %v8623_v24, %v11849_v28 }
 0x1e3   : > { %7287 = vmatpush1.bf16.msra.mxu1 %v7286_v25  ;;  %v2170_v35 = vmul.f32 %v2106_v22, %v1842_v38  ;;  %v1170_v44 = vmax.f32 %v1106_v15, 0.0  ;;  %v1308_v30 = vand.u32 2147483647, %v1244_v48  ;;  %v1657_v2 = vsub.f32 %v8623_v24, %v11850_v51 }
 0x1e4   : > { %v2172_v13 = vmul.f32 %v2108_v16, %v1844_v6  ;;  %v1172_v43 = vmax.f32 %v1108_v9, 0.0  ;;  %v1370_v21 = vsub.f32 1.0, %v1306_v23  ;;  %v1719_v5 = vand.u32 2147483647, %v1655_v53 }
 0x1e5   : > { %v1372_v37 = vsub.f32 1.0, %v1308_v30  ;;  %v1721_v1 = vand.u32 2147483647, %v1657_v2  ;;  %v1919_v40 = vsub.f32 %v8626_v8, %v8548_v32  ;;  %v1921_v34 = vsub.f32 %v8626_v8, %v8552_v42 }
 0x1e6   : > { %v7350_v33 = vpack.c.bf16 %v2172_v13, %v2170_v35  ;;  %v1434_v14 = vmax.f32 %v1370_v21, 0.0  ;;  %v1783_v38 = vsub.f32 1.0, %v1719_v5  ;;  %v977_v15 = vsub.f32 %v8577_v41, %v11849_v28 }
 0x1e7   : > { %v1436_v31 = vmax.f32 %v1372_v37, 0.0  ;;  %v1785_v25 = vsub.f32 1.0, %v1721_v1  ;;  %v1983_v6 = vand.u32 2147483647, %v1919_v40  ;;  %v1985_v22 = vand.u32 2147483647, %v1921_v34 }
 0x1e8   : > { %7351 = vmatpush1.bf16.msra.mxu0 %v7350_v33  ;;  %v1498_v48 = vmul.f32 %v1434_v14, %v1170_v44  ;;  %v1847_v16 = vmax.f32 %v1783_v38, 0.0  ;;  %v979_v9 = vsub.f32 %v8577_v41, %v11850_v51  ;;  %v1041_v23 = vand.u32 2147483647, %v977_v15 }
 0x1e9   : > { %v1500_v53 = vmul.f32 %v1436_v31, %v1172_v43  ;;  %v1849_v30 = vmax.f32 %v1785_v25, 0.0  ;;  %v2047_v2 = vsub.f32 1.0, %v1983_v6  ;;  %v2049_v35 = vsub.f32 1.0, %v1985_v22 }
 0x1ea   : > { %v1043_v13 = vand.u32 2147483647, %v979_v9  ;;  %v1105_v21 = vsub.f32 1.0, %v1041_v23  ;;  %v1241_v5 = vsub.f32 %v8580_v17, %v8548_v32  ;;  %v1243_v37 = vsub.f32 %v8580_v17, %v8552_v42 }
 0x1eb   : > { %v7288_v1 = vpack.c.bf16 %v1500_v53, %v1498_v48  ;;  %v2111_v40 = vmax.f32 %v2047_v2, 0.0  ;;  %v2113_v44 = vmax.f32 %v2049_v35, 0.0  ;;  %v1654_v34 = vsub.f32 %v8587_v56, %v11849_v28 }
 0x1ec   : > { %v1107_v33 = vsub.f32 1.0, %v1043_v13  ;;  %v1169_v14 = vmax.f32 %v1105_v21, 0.0  ;;  %v1305_v43 = vand.u32 2147483647, %v1241_v5  ;;  %v1307_v38 = vand.u32 2147483647, %v1243_v37 }
 0x1ed   : > { %7289 = vmatprep.subr.bf16.mxu1 %v7288_v1  ;;  %v2175_v15 = vmul.f32 %v2111_v40, %v1847_v16  ;;  %v2177_v31 = vmul.f32 %v2113_v44, %v1849_v30  ;;  %v1656_v25 = vsub.f32 %v8587_v56, %v11850_v51  ;;  %v1718_v6 = vand.u32 2147483647, %v1654_v34  ;;  %v11851_v30 = vld [vmem:[#allocation19_spill] sm:$0xff] }
 0x1ee   : > { %v1171_v22 = vmax.f32 %v1107_v33, 0.0  ;;  %v1369_v9 = vsub.f32 1.0, %v1305_v43  ;;  %v1371_v23 = vsub.f32 1.0, %v1307_v38  ;;  %v1918_v48 = vsub.f32 %v8590_v45, %v8548_v32 }
 0x1ef   : > { %v7352_v53 = vpack.c.bf16 %v2177_v31, %v2175_v15  ;;  %v1720_v2 = vand.u32 2147483647, %v1656_v25  ;;  %v1782_v35 = vsub.f32 1.0, %v1718_v6  ;;  %v1920_v13 = vsub.f32 %v8590_v45, %v8552_v42 }
 0x1f0   : > { %v1433_v21 = vmax.f32 %v1369_v9, 0.0  ;;  %v1435_v5 = vmax.f32 %v1371_v23, 0.0  ;;  %v1982_v16 = vand.u32 2147483647, %v1918_v48  ;;  %v982_v37 = vsub.f32 %v8614_v18, %v11851_v30 }
 0x1f1   : > { %7353 = vmatprep.subr.bf16.mxu0 %v7352_v53  ;;  %v1784_v1 = vsub.f32 1.0, %v1720_v2  ;;  %v1846_v40 = vmax.f32 %v1782_v35, 0.0  ;;  %v1984_v44 = vand.u32 2147483647, %v1920_v13  ;;  %v984_v34 = vsub.f32 %v8614_v18, %v8486_v12 }
 0x1f2   : > { %v1497_v33 = vmul.f32 %v1433_v21, %v1169_v14  ;;  %v1499_v43 = vmul.f32 %v1435_v5, %v1171_v22  ;;  %v2046_v38 = vsub.f32 1.0, %v1982_v16  ;;  %v1046_v15 = vand.u32 2147483647, %v982_v37 }
 0x1f3   : > { %v1848_v31 = vmax.f32 %v1784_v1, 0.0  ;;  %v2048_v25 = vsub.f32 1.0, %v1984_v44  ;;  %v1048_v6 = vand.u32 2147483647, %v984_v34  ;;  %v1246_v9 = vsub.f32 %v8617_v63, %v8556_v27 }
 0x1f4   : > { %v7290_v23 = vpack.c.bf16 %v1499_v43, %v1497_v33  ;;  %v2110_v48 = vmax.f32 %v2046_v38, 0.0  ;;  %v1110_v54 = vsub.f32 1.0, %v1046_v15  ;;  %v1248_v53 = vsub.f32 %v8617_v63, %v8562_v0 }
 0x1f5   : > { %v2112_v2 = vmax.f32 %v2048_v25, 0.0  ;;  %v1112_v35 = vsub.f32 1.0, %v1048_v6  ;;  %v1310_v13 = vand.u32 2147483647, %v1246_v9  ;;  %v1659_v14 = vsub.f32 %v8623_v24, %v11851_v30 }
 0x1f6   : > { %7291 = vmatpush1.bf16.msra.mxu1 %v7290_v23  ;;  %v2174_v22 = vmul.f32 %v2110_v48, %v1846_v40  ;;  %v1174_v21 = vmax.f32 %v1110_v54, 0.0  ;;  %v1312_v5 = vand.u32 2147483647, %v1248_v53  ;;  %v1661_v16 = vsub.f32 %v8623_v24, %v8486_v12 }
 0x1f7   : > { %v2176_v37 = vmul.f32 %v2112_v2, %v1848_v31  ;;  %v1176_v1 = vmax.f32 %v1112_v35, 0.0  ;;  %v1374_v44 = vsub.f32 1.0, %v1310_v13  ;;  %v1723_v34 = vand.u32 2147483647, %v1659_v14 }
 0x1f8   : > { %v1376_v33 = vsub.f32 1.0, %v1312_v5  ;;  %v1725_v43 = vand.u32 2147483647, %v1661_v16  ;;  %v1923_v38 = vsub.f32 %v8626_v8, %v8556_v27  ;;  %v1925_v15 = vsub.f32 %v8626_v8, %v8562_v0 }
 0x1f9   : > { %v7354_v25 = vpack.c.bf16 %v2176_v37, %v2174_v22  ;;  %v1438_v6 = vmax.f32 %v1374_v44, 0.0  ;;  %v1787_v40 = vsub.f32 1.0, %v1723_v34  ;;  %v981_v54 = vsub.f32 %v8577_v41, %v11851_v30 }
 0x1fa   : > { %v1440_v9 = vmax.f32 %v1376_v33, 0.0  ;;  %v1789_v23 = vsub.f32 1.0, %v1725_v43  ;;  %v1987_v31 = vand.u32 2147483647, %v1923_v38  ;;  %v1989_v48 = vand.u32 2147483647, %v1925_v15 }
 0x1fb   : > { %7355 = vmatpush1.bf16.msra.mxu0 %v7354_v25  ;;  %v1502_v53 = vmul.f32 %v1438_v6, %v1174_v21  ;;  %v1851_v2 = vmax.f32 %v1787_v40, 0.0  ;;  %v983_v35 = vsub.f32 %v8577_v41, %v8486_v12  ;;  %v1045_v13 = vand.u32 2147483647, %v981_v54 }
 0x1fc   : > { %v1504_v14 = vmul.f32 %v1440_v9, %v1176_v1  ;;  %v1853_v5 = vmax.f32 %v1789_v23, 0.0  ;;  %v2051_v16 = vsub.f32 1.0, %v1987_v31  ;;  %v2053_v22 = vsub.f32 1.0, %v1989_v48 }
 0x1fd   : > { %v1047_v37 = vand.u32 2147483647, %v983_v35  ;;  %v1109_v44 = vsub.f32 1.0, %v1045_v13  ;;  %v1245_v34 = vsub.f32 %v8580_v17, %v8556_v27  ;;  %v1247_v33 = vsub.f32 %v8580_v17, %v8562_v0 }
 0x1fe   : > { %v7292_v43 = vpack.c.bf16 %v1504_v14, %v1502_v53  ;;  %v2115_v38 = vmax.f32 %v2051_v16, 0.0  ;;  %v2117_v21 = vmax.f32 %v2053_v22, 0.0  ;;  %v1658_v15 = vsub.f32 %v8587_v56, %v11851_v30 }
 0x1ff   : > { %v1111_v25 = vsub.f32 1.0, %v1047_v37  ;;  %v1173_v6 = vmax.f32 %v1109_v44, 0.0  ;;  %v1309_v1 = vand.u32 2147483647, %v1245_v34  ;;  %v1311_v40 = vand.u32 2147483647, %v1247_v33 }
 0x200   : > { %7293 = vmatprep.subr.bf16.mxu1 %v7292_v43  ;;  %v2179_v54 = vmul.f32 %v2115_v38, %v1851_v2  ;;  %v2181_v9 = vmul.f32 %v2117_v21, %v1853_v5  ;;  %v1660_v23 = vsub.f32 %v8587_v56, %v8486_v12  ;;  %v1722_v31 = vand.u32 2147483647, %v1658_v15  ;;  %v11852_v21 = vld [vmem:[#allocation31_spill] sm:$0xff] }
 0x201   : > { %v1175_v48 = vmax.f32 %v1111_v25, 0.0  ;;  %v1373_v35 = vsub.f32 1.0, %v1309_v1  ;;  %v1375_v13 = vsub.f32 1.0, %v1311_v40  ;;  %v1922_v53 = vsub.f32 %v8590_v45, %v8556_v27 }
 0x202   : > { %v7356_v14 = vpack.c.bf16 %v2181_v9, %v2179_v54  ;;  %v1724_v16 = vand.u32 2147483647, %v1660_v23  ;;  %v1786_v22 = vsub.f32 1.0, %v1722_v31  ;;  %v1924_v37 = vsub.f32 %v8590_v45, %v8562_v0  ;;  %v11853_v54 = vld [vmem:[#allocation11_spill] sm:$0xff] }
 0x203   : > { %v1437_v44 = vmax.f32 %v1373_v35, 0.0  ;;  %v1439_v34 = vmax.f32 %v1375_v13, 0.0  ;;  %v1986_v2 = vand.u32 2147483647, %v1922_v53  ;;  %v889_v5 = vmul.f32 16.0, %v8564_v50  ;;  %v11856_v35 = vld [vmem:[#allocation12_spill] sm:$0xff] }
 0x204   : > { %7357 = vmatprep.subr.bf16.mxu0 %v7356_v14  ;;  %v1788_v33 = vsub.f32 1.0, %v1724_v16  ;;  %v1850_v43 = vmax.f32 %v1786_v22, 0.0  ;;  %v1988_v38 = vand.u32 2147483647, %v1924_v37  ;;  %v890_v15 = vmul.f32 16.0, %v11852_v21 }
 0x205   : > { %v1501_v25 = vmul.f32 %v1437_v44, %v1173_v6  ;;  %v1503_v1 = vmul.f32 %v1439_v34, %v1175_v48  ;;  %v2050_v40 = vsub.f32 1.0, %v1986_v2  ;;  %v11854_v9 = vcvt.s32.f32 %v11853_v54 }
 0x206   : > { %v1852_v31 = vmax.f32 %v1788_v33, 0.0  ;;  %v2052_v46 = vsub.f32 1.0, %v1988_v38  ;;  %v11857_v13 = vcvt.s32.f32 %v11856_v35  ;;  %v986_v14 = vsub.f32 %v8614_v18, %v8564_v50 }
 0x207   : > { %v8941_v23 = vsub.f32 %v11854_v9, %v889_v5  ;;  %v7294_v16 = vpack.c.bf16 %v1503_v1, %v1501_v25  ;;  %v2114_v22 = vmax.f32 %v2050_v40, 0.0  ;;  %v988_v6 = vsub.f32 %v8614_v18, %v11852_v21 }
 0x208   : > { %v8945_v53 = vsub.f32 %v11857_v13, %v890_v15  ;;  %v2116_v37 = vmax.f32 %v2052_v46, 0.0  ;;  %v1050_v44 = vand.u32 2147483647, %v986_v14  ;;  %v1663_v2 = vsub.f32 %v8623_v24, %v8564_v50 }
 0x209   : > { %11855 = vst [vmem:[#allocation14_spill] sm:$0xff] %v8941_v23  ;;  %v1250_v48 = vsub.f32 %v8617_v63, %v8941_v23  ;;  %7295 = vmatpush1.bf16.msra.mxu1 %v7294_v16  ;;  %v2178_v5 = vmul.f32 %v2114_v22, %v1850_v43  ;;  %v1052_v33 = vand.u32 2147483647, %v988_v6  ;;  %v1665_v15 = vsub.f32 %v8623_v24, %v11852_v21 }
 0x20a   : > { %11858 = vst [vmem:[#allocation15_spill] sm:$0xff] %v8945_v53  ;;  %v1252_v34 = vsub.f32 %v8617_v63, %v8945_v53  ;;  %v2180_v25 = vmul.f32 %v2116_v37, %v1852_v31  ;;  %v1114_v1 = vsub.f32 1.0, %v1050_v44  ;;  %v1727_v54 = vand.u32 2147483647, %v1663_v2 }
 0x20b   : > { %v1314_v38 = vand.u32 2147483647, %v1250_v48  ;;  %v1116_v9 = vsub.f32 1.0, %v1052_v33  ;;  %v1729_v35 = vand.u32 2147483647, %v1665_v15  ;;  %v1927_v13 = vsub.f32 %v8626_v8, %v8941_v23 }
 0x20c   : > { %v1316_v40 = vand.u32 2147483647, %v1252_v34  ;;  %v7358_v14 = vpack.c.bf16 %v2180_v25, %v2178_v5  ;;  %v1178_v55 = vmax.f32 %v1114_v1, 0.0  ;;  %v1791_v16 = vsub.f32 1.0, %v1727_v54 }
 0x20d   : > { %v1378_v46 = vsub.f32 1.0, %v1314_v38  ;;  %v1180_v43 = vmax.f32 %v1116_v9, 0.0  ;;  %v1793_v6 = vsub.f32 1.0, %v1729_v35  ;;  %v1929_v48 = vsub.f32 %v8626_v8, %v8945_v53 }
 0x20e   : > { %v1380_v11 = vsub.f32 1.0, %v1316_v40  ;;  %7359 = vmatpush1.bf16.msra.mxu0 %v7358_v14  ;;  %v1855_v37 = vmax.f32 %v1791_v16, 0.0  ;;  %v1991_v44 = vand.u32 2147483647, %v1927_v13  ;;  %v985_v34 = vsub.f32 %v8577_v41, %v8564_v50 }
 0x20f   : > { %v1442_v22 = vmax.f32 %v1378_v46, 0.0  ;;  %v1857_v33 = vmax.f32 %v1793_v6, 0.0  ;;  %v1993_v38 = vand.u32 2147483647, %v1929_v48  ;;  %v987_v5 = vsub.f32 %v8577_v41, %v11852_v21 }
 0x210   : > { %v1444_v31 = vmax.f32 %v1380_v11, 0.0  ;;  %v2055_v25 = vsub.f32 1.0, %v1991_v44  ;;  %v1049_v1 = vand.u32 2147483647, %v985_v34  ;;  %v1249_v40 = vsub.f32 %v8580_v17, %v8941_v23 }
 0x211   : > { %v1506_v2 = vmul.f32 %v1442_v22, %v1178_v55  ;;  %v2057_v54 = vsub.f32 1.0, %v1993_v38  ;;  %v1051_v9 = vand.u32 2147483647, %v987_v5  ;;  %v1251_v11 = vsub.f32 %v8580_v17, %v8945_v53 }
 0x212   : > { %v1508_v15 = vmul.f32 %v1444_v31, %v1180_v43  ;;  %v1662_v46 = vsub.f32 %v8587_v56, %v8564_v50  ;;  %v2119_v35 = vmax.f32 %v2055_v25, 0.0  ;;  %v1113_v13 = vsub.f32 1.0, %v1049_v1 }
 0x213   : > { %v1313_v14 = vand.u32 2147483647, %v1249_v40  ;;  %v2121_v16 = vmax.f32 %v2057_v54, 0.0  ;;  %v1115_v22 = vsub.f32 1.0, %v1051_v9  ;;  %v1315_v43 = vand.u32 2147483647, %v1251_v11 }
 0x214   : > { %v7296_v55 = vpack.c.bf16 %v1508_v15, %v1506_v2  ;;  %v1664_v6 = vsub.f32 %v8587_v56, %v11852_v21  ;;  %v2183_v48 = vmul.f32 %v2119_v35, %v1855_v37  ;;  %v1177_v31 = vmax.f32 %v1113_v13, 0.0  ;;  %v11859_v9 = vld [vmem:[#allocation2_spill] sm:$0xff] }
 0x215   : > { %v1377_v44 = vsub.f32 1.0, %v1313_v14  ;;  %v1726_v34 = vand.u32 2147483647, %v1662_v46  ;;  %v2185_v38 = vmul.f32 %v2121_v16, %v1857_v33  ;;  %v1179_v5 = vmax.f32 %v1115_v22, 0.0 }
 0x216   : > { %7297 = vmatprep.subr.bf16.mxu1 %v7296_v55  ;;  %v1379_v0 = vsub.f32 1.0, %v1315_v43  ;;  %v1728_v27 = vand.u32 2147483647, %v1664_v6  ;;  %v1926_v15 = vsub.f32 %v8590_v45, %v8941_v23  ;;  %v1928_v25 = vsub.f32 %v8590_v45, %v8945_v53 }
 0x217   : > { %v1441_v50 = vmax.f32 %v1377_v44, 0.0  ;;  %v1790_v2 = vsub.f32 1.0, %v1726_v34  ;;  %v7360_v1 = vpack.c.bf16 %v2185_v38, %v2183_v48  ;;  %v731_v37 = vadd.s32 112, %v11859_v9 }
 0x218   : > { %v1443_v40 = vmax.f32 %v1379_v0, 0.0  ;;  %v1792_v54 = vsub.f32 1.0, %v1728_v27  ;;  %v1990_v46 = vand.u32 2147483647, %v1926_v15  ;;  %v1992_v33 = vand.u32 2147483647, %v1928_v25 }
 0x219   : > { %v1505_v11 = vmul.f32 %v1441_v50, %v1177_v31  ;;  %v1854_v55 = vmax.f32 %v1790_v2, 0.0  ;;  %7361 = vmatprep.subr.bf16.mxu0 %v7360_v1  ;;  %v732_v14 = vadd.s32 120, %v11859_v9  ;;  %v763_v16 = vcvt.s32.f32 %v731_v37 }
 0x21a   : > { %v1507_v35 = vmul.f32 %v1443_v40, %v1179_v5  ;;  %v1856_v13 = vmax.f32 %v1792_v54, 0.0  ;;  %v2054_v22 = vsub.f32 1.0, %v1990_v46  ;;  %v2056_v43 = vsub.f32 1.0, %v1992_v33 }
 0x21b   : > { %v8982_v6 = vadd.s32 128, %v11859_v9  ;;  %v8985_v0 = vadd.s32 136, %v11859_v9  ;;  %v764_v48 = vcvt.s32.f32 %v732_v14  ;;  %v795_v50 = vmul.f32 0.0625, %v763_v16 }
 0x21c   : > { %v7298_v27 = vpack.c.bf16 %v1507_v35, %v1505_v11  ;;  %v8988_v31 = vadd.s32 144, %v11859_v9  ;;  %v2118_v44 = vmax.f32 %v2054_v22, 0.0  ;;  %v2120_v34 = vmax.f32 %v2056_v43, 0.0 }
 0x21d   : > { %v11507_v38 = vcvt.s32.f32 %v8982_v6  ;;  %v11506_v5 = vcvt.s32.f32 %v8985_v0  ;;  %v796_v2 = vmul.f32 0.0625, %v764_v48  ;;  %v827_v15 = vadd.f32 0.001, %v795_v50 }
 0x21e   : > { %7299 = vmatpush1.bf16.msra.mxu1 %v7298_v27  ;;  %v8993_v25 = vadd.s32 152, %v11859_v9  ;;  %v11505_v1 = vcvt.s32.f32 %v8988_v31  ;;  %v2182_v40 = vmul.f32 %v2118_v44, %v1854_v55  ;;  %v2184_v54 = vmul.f32 %v2120_v34, %v1856_v13 }
 0x21f   : > { %v797_v37 = vmul.f32 0.0625, %v11507_v38  ;;  %v798_v11 = vmul.f32 0.0625, %v11506_v5  ;;  %v828_v46 = vadd.f32 0.001, %v796_v2  ;;  %v9000_v33 = vfloor.f32 %v827_v15 }
 0x220   : > { %v9005_v14 = vmul.f32 0.0625, %v11505_v1  ;;  %v7362_v22 = vpack.c.bf16 %v2184_v54, %v2182_v40  ;;  %v9008_v55 = vadd.s32 160, %v11859_v9 }
 0x221   : > { %11860 = vst [vmem:[#allocation11_spill] sm:$0xff] %v9000_v33  ;;  %v829_v43 = vadd.f32 0.001, %v797_v37  ;;  %v830_v27 = vadd.f32 0.001, %v798_v11  ;;  %v9010_v13 = vfloor.f32 %v828_v46  ;;  %v891_v50 = vmul.f32 16.0, %v9000_v33 }
 0x222   : > { %v990_v44 = vsub.f32 %v8614_v18, %v9000_v33  ;;  %v1667_v34 = vsub.f32 %v8623_v24, %v9000_v33  ;;  %7363 = vmatpush1.bf16.msra.mxu0 %v7362_v22  ;;  %v989_v2 = vsub.f32 %v8577_v41, %v9000_v33  ;;  %v1666_v15 = vsub.f32 %v8587_v56, %v9000_v33 }
 0x223   : > { %11861 = vst [vmem:[#allocation12_spill] sm:$0xff] %v9010_v13  ;;  %v9021_v40 = vfloor.f32 %v829_v43  ;;  %v9023_v54 = vfloor.f32 %v830_v27  ;;  %v892_v37 = vmul.f32 16.0, %v9010_v13  ;;  %v9026_v11 = vsub.f32 %v763_v16, %v891_v50 }
 0x224   : > { %v992_v46 = vsub.f32 %v8614_v18, %v9010_v13  ;;  %v1054_v1 = vand.u32 2147483647, %v990_v44  ;;  %v1669_v22 = vsub.f32 %v8623_v24, %v9010_v13  ;;  %v1731_v35 = vand.u32 2147483647, %v1667_v34 }
 0x225   : > { %11862 = vst [vmem:[#allocation2_spill] sm:$0xff] %v9021_v40  ;;  %11863 = vst [vmem:[#allocation61_spill] sm:$0xff] %v9023_v54  ;;  %v991_v5 = vsub.f32 %v8577_v41, %v9010_v13  ;;  %v1053_v38 = vand.u32 2147483647, %v989_v2  ;;  %v9034_v43 = vsub.f32 %v764_v48, %v892_v37  ;;  %v1254_v16 = vsub.f32 %v8617_v63, %v9026_v11 }
 0x226   : > { %11864 = vst [vmem:[#allocation62_spill] sm:$0xff] %v9026_v11  ;;  %v1056_v27 = vand.u32 2147483647, %v992_v46  ;;  %v1118_v33 = vsub.f32 1.0, %v1054_v1  ;;  %v1733_v50 = vand.u32 2147483647, %v1669_v22  ;;  %v1931_v44 = vsub.f32 %v8626_v8, %v9026_v11 }
 0x227   : > { %11865 = vst [vmem:[#allocation63_spill] sm:$0xff] %v9034_v43  ;;  %v1795_v53 = vsub.f32 1.0, %v1731_v35  ;;  %v1055_v23 = vand.u32 2147483647, %v991_v5  ;;  %v1256_v34 = vsub.f32 %v8617_v63, %v9034_v43  ;;  %v1318_v30 = vand.u32 2147483647, %v1254_v16 }
 0x228   : > { %v1120_v21 = vsub.f32 1.0, %v1056_v27  ;;  %v1182_v12 = vmax.f32 %v1118_v33, 0.0  ;;  %v1797_v2 = vsub.f32 1.0, %v1733_v50  ;;  %v1933_v1 = vsub.f32 %v8626_v8, %v9034_v43 }
 0x229   : > { %v1859_v48 = vmax.f32 %v1795_v53, 0.0  ;;  %v1995_v37 = vand.u32 2147483647, %v1931_v44  ;;  %v1320_v42 = vand.u32 2147483647, %v1256_v34  ;;  %v1382_v22 = vsub.f32 1.0, %v1318_v30 }
 0x22a   : > { %v1184_v46 = vmax.f32 %v1120_v21, 0.0  ;;  %v1117_v35 = vsub.f32 1.0, %v1053_v38  ;;  %v1861_v32 = vmax.f32 %v1797_v2, 0.0  ;;  %v1997_v51 = vand.u32 2147483647, %v1933_v1 }
 0x22b   : > { %v2059_v28 = vsub.f32 1.0, %v1995_v37  ;;  %v1119_v5 = vsub.f32 1.0, %v1055_v23  ;;  %v1384_v27 = vsub.f32 1.0, %v1320_v42  ;;  %v1446_v33 = vmax.f32 %v1382_v22, 0.0 }
 0x22c   : > { %v1181_v29 = vmax.f32 %v1117_v35, 0.0  ;;  %v1253_v16 = vsub.f32 %v8580_v17, %v9026_v11  ;;  %v2061_v50 = vsub.f32 1.0, %v1997_v51  ;;  %v1255_v44 = vsub.f32 %v8580_v17, %v9034_v43 }
 0x22d   : > { %v2123_v53 = vmax.f32 %v2059_v28, 0.0  ;;  %v1183_v26 = vmax.f32 %v1119_v5, 0.0  ;;  %v1448_v21 = vmax.f32 %v1384_v27, 0.0  ;;  %v1510_v34 = vmul.f32 %v1446_v33, %v1182_v12 }
 0x22e   : > { %v1317_v30 = vand.u32 2147483647, %v1253_v16  ;;  %v1668_v38 = vsub.f32 %v8587_v56, %v9010_v13  ;;  %v2125_v2 = vmax.f32 %v2061_v50, 0.0  ;;  %v1319_v42 = vand.u32 2147483647, %v1255_v44 }
 0x22f   : > { %v2187_v23 = vmul.f32 %v2123_v53, %v1859_v48  ;;  %v1730_v1 = vand.u32 2147483647, %v1666_v15  ;;  %v1512_v37 = vmul.f32 %v1448_v21, %v1184_v46  ;;  %v1930_v28 = vsub.f32 %v8590_v45, %v9026_v11 }
 0x230   : > { %v1381_v22 = vsub.f32 1.0, %v1317_v30  ;;  %v1732_v35 = vand.u32 2147483647, %v1668_v38  ;;  %v2189_v51 = vmul.f32 %v2125_v2, %v1861_v32  ;;  %v1383_v5 = vsub.f32 1.0, %v1319_v42 }
 0x231   : > { %v1794_v62 = vsub.f32 1.0, %v1730_v1  ;;  %v1932_v12 = vsub.f32 %v8590_v45, %v9034_v43  ;;  %v7300_v27 = vpack.c.bf16 %v1512_v37, %v1510_v34  ;;  %v1994_v13 = vand.u32 2147483647, %v1930_v28 }
 0x232   : > { %v1445_v33 = vmax.f32 %v1381_v22, 0.0  ;;  %v1796_v16 = vsub.f32 1.0, %v1732_v35  ;;  %v7364_v50 = vpack.c.bf16 %v2189_v51, %v2187_v23  ;;  %v1447_v48 = vmax.f32 %v1383_v5, 0.0 }
 0x233   : > { %v1858_v53 = vmax.f32 %v1794_v62, 0.0  ;;  %v1996_v15 = vand.u32 2147483647, %v1932_v12  ;;  %7301 = vmatprep.subr.bf16.mxu1 %v7300_v27  ;;  %v2058_v21 = vsub.f32 1.0, %v1994_v13  ;;  %v893_v30 = vmul.f32 16.0, %v9021_v40 }
 0x234   : > { %v1509_v46 = vmul.f32 %v1445_v33, %v1181_v29  ;;  %v1860_v44 = vmax.f32 %v1796_v16, 0.0  ;;  %7365 = vmatprep.subr.bf16.mxu0 %v7364_v50  ;;  %v1511_v32 = vmul.f32 %v1447_v48, %v1183_v26  ;;  %v894_v2 = vmul.f32 16.0, %v9023_v54 }
 0x235   : > { %v2060_v38 = vsub.f32 1.0, %v1996_v15  ;;  %v994_v34 = vsub.f32 %v8614_v18, %v9021_v40  ;;  %v2122_v42 = vmax.f32 %v2058_v21, 0.0  ;;  %v11866_v23 = vcvt.s32.f32 %v8982_v6 }
 0x236   : > { %v996_v29 = vsub.f32 %v8614_v18, %v9023_v54  ;;  %v1671_v62 = vsub.f32 %v8623_v24, %v9021_v40  ;;  %v7302_v13 = vpack.c.bf16 %v1511_v32, %v1509_v46  ;;  %v11868_v26 = vcvt.s32.f32 %v8985_v0 }
 0x237   : > { %v9060_v1 = vsub.f32 %v11866_v23, %v893_v30  ;;  %v2124_v37 = vmax.f32 %v2060_v38, 0.0  ;;  %v1058_v35 = vand.u32 2147483647, %v994_v34  ;;  %v2186_v28 = vmul.f32 %v2122_v42, %v1858_v53 }
 0x238   : > { %v9068_v22 = vsub.f32 %v11868_v26, %v894_v2  ;;  %v1060_v51 = vand.u32 2147483647, %v996_v29  ;;  %v1673_v5 = vsub.f32 %v8623_v24, %v9023_v54  ;;  %7303 = vmatpush1.bf16.msra.mxu1 %v7302_v13  ;;  %v1735_v16 = vand.u32 2147483647, %v1671_v62 }
 0x239   : > { %11867 = vst [vmem:[#allocation64_spill] sm:$0xff] %v9060_v1  ;;  %v1258_v6 = vsub.f32 %v8617_v63, %v9060_v1  ;;  %v2188_v12 = vmul.f32 %v2124_v37, %v1860_v44  ;;  %v1122_v27 = vsub.f32 1.0, %v1058_v35  ;;  %v1935_v53 = vsub.f32 %v8626_v8, %v9060_v1 }
 0x23a   : > { %11869 = vst [vmem:[#allocation65_spill] sm:$0xff] %v9068_v22  ;;  %v1260_v33 = vsub.f32 %v8617_v63, %v9068_v22  ;;  %v1124_v50 = vsub.f32 1.0, %v1060_v51  ;;  %v1737_v48 = vand.u32 2147483647, %v1673_v5  ;;  %v1799_v30 = vsub.f32 1.0, %v1735_v16 }
 0x23b   : > { %v1322_v0 = vand.u32 2147483647, %v1258_v6  ;;  %v7366_v15 = vpack.c.bf16 %v2188_v12, %v2186_v28  ;;  %v1186_v46 = vmax.f32 %v1122_v27, 0.0  ;;  %v1937_v44 = vsub.f32 %v8626_v8, %v9068_v22 }
 0x23c   : > { %v1324_v21 = vand.u32 2147483647, %v1260_v33  ;;  %v1188_v32 = vmax.f32 %v1124_v50, 0.0  ;;  %v1801_v2 = vsub.f32 1.0, %v1737_v48  ;;  %v1863_v42 = vmax.f32 %v1799_v30, 0.0 }
 0x23d   : > { %v1386_v38 = vsub.f32 1.0, %v1322_v0  ;;  %7367 = vmatpush1.bf16.msra.mxu0 %v7366_v15  ;;  %v1999_v23 = vand.u32 2147483647, %v1935_v53  ;;  %v993_v29 = vsub.f32 %v8577_v41, %v9021_v40  ;;  %v2001_v37 = vand.u32 2147483647, %v1937_v44 }
 0x23e   : > { %v1388_v34 = vsub.f32 1.0, %v1324_v21  ;;  %v1865_v13 = vmax.f32 %v1801_v2, 0.0  ;;  %v995_v26 = vsub.f32 %v8577_v41, %v9023_v54  ;;  %v1257_v6 = vsub.f32 %v8580_v17, %v9060_v1 }
 0x23f   : > { %v1450_v62 = vmax.f32 %v1386_v38, 0.0  ;;  %v2063_v28 = vsub.f32 1.0, %v1999_v23  ;;  %v1057_v51 = vand.u32 2147483647, %v993_v29  ;;  %v2065_v12 = vsub.f32 1.0, %v2001_v37 }
 0x240   : > { %v1452_v35 = vmax.f32 %v1388_v34, 0.0  ;;  %v1059_v27 = vand.u32 2147483647, %v995_v26  ;;  %v1259_v33 = vsub.f32 %v8580_v17, %v9068_v22  ;;  %v1321_v48 = vand.u32 2147483647, %v1257_v6 }
 0x241   : > { %v1514_v5 = vmul.f32 %v1450_v62, %v1186_v46  ;;  %v2127_v50 = vmax.f32 %v2063_v28, 0.0  ;;  %v1121_v0 = vsub.f32 1.0, %v1057_v51  ;;  %v2129_v53 = vmax.f32 %v2065_v12, 0.0 }
 0x242   : > { %v1516_v16 = vmul.f32 %v1452_v35, %v1188_v32  ;;  %v1123_v15 = vsub.f32 1.0, %v1059_v27  ;;  %v1323_v21 = vand.u32 2147483647, %v1259_v33  ;;  %v1670_v30 = vsub.f32 %v8587_v56, %v9021_v40 }
 0x243   : > { %v2191_v2 = vmul.f32 %v2127_v50, %v1863_v42  ;;  %v1185_v44 = vmax.f32 %v1121_v0, 0.0  ;;  %v1385_v34 = vsub.f32 1.0, %v1321_v48  ;;  %v2193_v46 = vmul.f32 %v2129_v53, %v1865_v13 }
 0x244   : > { %v7304_v38 = vpack.c.bf16 %v1516_v16, %v1514_v5  ;;  %v1187_v23 = vmax.f32 %v1123_v15, 0.0  ;;  %v1387_v29 = vsub.f32 1.0, %v1323_v21  ;;  %v1672_v62 = vsub.f32 %v8587_v56, %v9023_v54 }
 0x245   : > { %v1449_v32 = vmax.f32 %v1385_v34, 0.0  ;;  %v1734_v37 = vand.u32 2147483647, %v1670_v30  ;;  %v1934_v26 = vsub.f32 %v8590_v45, %v9060_v1  ;;  %v1936_v35 = vsub.f32 %v8590_v45, %v9068_v22 }
 0x246   : > { %7305 = vmatprep.subr.bf16.mxu1 %v7304_v38  ;;  %v7368_v28 = vpack.c.bf16 %v2193_v46, %v2191_v2  ;;  %v1451_v51 = vmax.f32 %v1387_v29, 0.0  ;;  %v1736_v42 = vand.u32 2147483647, %v1672_v62  ;;  %v11870_v6 = vcvt.s32.f32 %v8993_v25 }
 0x247   : > { %v1513_v5 = vmul.f32 %v1449_v32, %v1185_v44  ;;  %v1798_v12 = vsub.f32 1.0, %v1734_v37  ;;  %v1998_v27 = vand.u32 2147483647, %v1934_v26  ;;  %v2000_v33 = vand.u32 2147483647, %v1936_v35 }
 0x248   : > { %v800_v13 = vmul.f32 0.0625, %v11870_v6  ;;  %7369 = vmatprep.subr.bf16.mxu0 %v7368_v28  ;;  %v1515_v16 = vmul.f32 %v1451_v51, %v1187_v23  ;;  %v1800_v50 = vsub.f32 1.0, %v1736_v42  ;;  %v831_v0 = vadd.f32 0.001, %v9005_v14 }
 0x249   : > { %v1862_v53 = vmax.f32 %v1798_v12, 0.0  ;;  %v2062_v15 = vsub.f32 1.0, %v1998_v27  ;;  %v2064_v21 = vsub.f32 1.0, %v2000_v33  ;;  %v9100_v30 = vadd.s32 168, %v11859_v9 }
 0x24a   : > { %v832_v48 = vadd.f32 0.001, %v800_v13  ;;  %v7306_v38 = vpack.c.bf16 %v1515_v16, %v1513_v5  ;;  %v1864_v2 = vmax.f32 %v1800_v50, 0.0  ;;  %v9102_v34 = vfloor.f32 %v831_v0 }
 0x24b   : > { %v2126_v46 = vmax.f32 %v2062_v15, 0.0  ;;  %v2128_v29 = vmax.f32 %v2064_v21, 0.0  ;;  %v11873_v6 = vcvt.s32.f32 %v8988_v31  ;;  %v11875_v5 = vcvt.s32.f32 %v8993_v25 }
 0x24c   : > { %11871 = vst [vmem:[#allocation66_spill] sm:$0xff] %v9102_v34  ;;  %v9104_v44 = vfloor.f32 %v832_v48  ;;  %7307 = vmatpush1.bf16.msra.mxu1 %v7306_v38  ;;  %v895_v14 = vmul.f32 16.0, %v9102_v34  ;;  %v998_v37 = vsub.f32 %v8614_v18, %v9102_v34  ;;  %v1675_v51 = vsub.f32 %v8623_v24, %v9102_v34 }
 0x24d   : > { %v2190_v35 = vmul.f32 %v2126_v46, %v1862_v53  ;;  %v2192_v28 = vmul.f32 %v2128_v29, %v1864_v2  ;;  %v997_v48 = vsub.f32 %v8577_v41, %v9102_v34 }
 0x24e   : > { %11872 = vst [vmem:[#allocation67_spill] sm:$0xff] %v9104_v44  ;;  %v896_v32 = vmul.f32 16.0, %v9104_v44  ;;  %v1000_v26 = vsub.f32 %v8614_v18, %v9104_v44  ;;  %v1677_v42 = vsub.f32 %v8623_v24, %v9104_v44  ;;  %v9120_v13 = vsub.f32 %v11873_v6, %v895_v14 }
 0x24f   : > { %v1062_v27 = vand.u32 2147483647, %v998_v37  ;;  %v7370_v16 = vpack.c.bf16 %v2192_v28, %v2190_v35  ;;  %v1739_v50 = vand.u32 2147483647, %v1675_v51 }
 0x250   : > { %11874 = vst [vmem:[#allocation68_spill] sm:$0xff] %v9120_v13  ;;  %v9124_v12 = vsub.f32 %v11875_v5, %v896_v32  ;;  %v1064_v33 = vand.u32 2147483647, %v1000_v26  ;;  %v1741_v0 = vand.u32 2147483647, %v1677_v42  ;;  %v1262_v21 = vsub.f32 %v8617_v63, %v9120_v13 }
 0x251   : > { %v1126_v53 = vsub.f32 1.0, %v1062_v27  ;;  %7371 = vmatpush1.bf16.msra.mxu0 %v7370_v16  ;;  %v1803_v25 = vsub.f32 1.0, %v1739_v50  ;;  %v1939_v2 = vsub.f32 %v8626_v8, %v9120_v13  ;;  %v999_v5 = vsub.f32 %v8577_v41, %v9104_v44 }
 0x252   : > { %11876 = vst [vmem:[#allocation69_spill] sm:$0xff] %v9124_v12  ;;  %v1128_v15 = vsub.f32 1.0, %v1064_v33  ;;  %v1264_v31 = vsub.f32 %v8617_v63, %v9124_v12  ;;  %v1805_v38 = vsub.f32 1.0, %v1741_v0  ;;  %v1941_v46 = vsub.f32 %v8626_v8, %v9124_v12 }
 0x253   : > { %v1190_v29 = vmax.f32 %v1126_v53, 0.0  ;;  %v1326_v32 = vand.u32 2147483647, %v1262_v21  ;;  %v1867_v26 = vmax.f32 %v1803_v25, 0.0  ;;  %v2003_v28 = vand.u32 2147483647, %v1939_v2 }
 0x254   : > { %v1192_v14 = vmax.f32 %v1128_v15, 0.0  ;;  %v1328_v37 = vand.u32 2147483647, %v1264_v31  ;;  %v1869_v35 = vmax.f32 %v1805_v38, 0.0  ;;  %v2005_v51 = vand.u32 2147483647, %v1941_v46 }
 0x255   : > { %v1390_v42 = vsub.f32 1.0, %v1326_v32  ;;  %v1061_v27 = vand.u32 2147483647, %v997_v48  ;;  %v2067_v33 = vsub.f32 1.0, %v2003_v28  ;;  %v1261_v50 = vsub.f32 %v8580_v17, %v9120_v13 }
 0x256   : > { %v1392_v6 = vsub.f32 1.0, %v1328_v37  ;;  %v2069_v16 = vsub.f32 1.0, %v2005_v51  ;;  %v1263_v0 = vsub.f32 %v8580_v17, %v9124_v12  ;;  %v1063_v21 = vand.u32 2147483647, %v999_v5 }
 0x257   : > { %v1454_v53 = vmax.f32 %v1390_v42, 0.0  ;;  %v1125_v31 = vsub.f32 1.0, %v1061_v27  ;;  %v2131_v25 = vmax.f32 %v2067_v33, 0.0  ;;  %v1325_v2 = vand.u32 2147483647, %v1261_v50 }
 0x258   : > { %v1456_v15 = vmax.f32 %v1392_v6, 0.0  ;;  %v2133_v38 = vmax.f32 %v2069_v16, 0.0  ;;  %v1327_v46 = vand.u32 2147483647, %v1263_v0  ;;  %v1127_v62 = vsub.f32 1.0, %v1063_v21 }
 0x259   : > { %v1518_v32 = vmul.f32 %v1454_v53, %v1190_v29  ;;  %v1189_v48 = vmax.f32 %v1125_v31, 0.0  ;;  %v2195_v28 = vmul.f32 %v2131_v25, %v1867_v26  ;;  %v1389_v23 = vsub.f32 1.0, %v1325_v2 }
 0x25a   : > { %v1520_v37 = vmul.f32 %v1456_v15, %v1192_v14  ;;  %v2197_v51 = vmul.f32 %v2133_v38, %v1869_v35  ;;  %v1391_v22 = vsub.f32 1.0, %v1327_v46  ;;  %v1191_v54 = vmax.f32 %v1127_v62, 0.0 }
 0x25b   : > { %v1674_v42 = vsub.f32 %v8587_v56, %v9102_v34  ;;  %v1676_v6 = vsub.f32 %v8587_v56, %v9104_v44  ;;  %v1453_v27 = vmax.f32 %v1389_v23, 0.0  ;;  %v1938_v29 = vsub.f32 %v8590_v45, %v9120_v13 }
 0x25c   : > { %v7308_v1 = vpack.c.bf16 %v1520_v37, %v1518_v32  ;;  %v7372_v5 = vpack.c.bf16 %v2197_v51, %v2195_v28  ;;  %v1455_v33 = vmax.f32 %v1391_v22, 0.0  ;;  %v1940_v35 = vsub.f32 %v8590_v45, %v9124_v12 }
 0x25d   : > { %v1738_v14 = vand.u32 2147483647, %v1674_v42  ;;  %v1740_v26 = vand.u32 2147483647, %v1676_v6  ;;  %v11877_v62 = vcvt.s32.f32 %v9008_v55  ;;  %v1517_v50 = vmul.f32 %v1453_v27, %v1189_v48 }
 0x25e   : > { %7309 = vmatprep.subr.bf16.mxu1 %v7308_v1  ;;  %7373 = vmatprep.subr.bf16.mxu0 %v7372_v5  ;;  %v1519_v0 = vmul.f32 %v1455_v33, %v1191_v54  ;;  %v2002_v53 = vand.u32 2147483647, %v1938_v29  ;;  %v11878_v15 = vcvt.s32.f32 %v9100_v30  ;;  %v2004_v31 = vand.u32 2147483647, %v1940_v35 }
 0x25f   : > { %v801_v16 = vmul.f32 0.0625, %v11877_v62  ;;  %v1802_v22 = vsub.f32 1.0, %v1738_v14  ;;  %v1804_v21 = vsub.f32 1.0, %v1740_v26  ;;  %v9155_v46 = vadd.s32 176, %v11859_v9 }
 0x260   : > { %v802_v23 = vmul.f32 0.0625, %v11878_v15  ;;  %v7310_v1 = vpack.c.bf16 %v1519_v0, %v1517_v50  ;;  %v2066_v38 = vsub.f32 1.0, %v2002_v53  ;;  %v2068_v28 = vsub.f32 1.0, %v2004_v31 }
 0x261   : > { %v833_v25 = vadd.f32 0.001, %v801_v16  ;;  %v1866_v32 = vmax.f32 %v1802_v22, 0.0  ;;  %v1868_v37 = vmax.f32 %v1804_v21, 0.0  ;;  %v9162_v42 = vadd.s32 184, %v11859_v9 }
 0x262   : > { %v834_v2 = vadd.f32 0.001, %v802_v23  ;;  %7311 = vmatpush1.bf16.msra.mxu1 %v7310_v1  ;;  %v2130_v54 = vmax.f32 %v2066_v38, 0.0  ;;  %v2132_v5 = vmax.f32 %v2068_v28, 0.0  ;;  %v11881_v50 = vcvt.s32.f32 %v9008_v55 }
 0x263   : > { %v9157_v51 = vfloor.f32 %v833_v25  ;;  %v11883_v23 = vcvt.s32.f32 %v9100_v30 }
 0x264   : > { %v9159_v48 = vfloor.f32 %v834_v2  ;;  %v2194_v14 = vmul.f32 %v2130_v54, %v1866_v32  ;;  %v2196_v16 = vmul.f32 %v2132_v5, %v1868_v37 }
 0x265   : > { %11879 = vst [vmem:[#allocation70_spill] sm:$0xff] %v9157_v51  ;;  %v897_v27 = vmul.f32 16.0, %v9157_v51  ;;  %v1002_v33 = vsub.f32 %v8614_v18, %v9157_v51  ;;  %v1679_v29 = vsub.f32 %v8623_v24, %v9157_v51  ;;  %v1001_v25 = vsub.f32 %v8577_v41, %v9157_v51 }
 0x266   : > { %11880 = vst [vmem:[#allocation71_spill] sm:$0xff] %v9159_v48  ;;  %v898_v26 = vmul.f32 16.0, %v9159_v48  ;;  %v1004_v35 = vsub.f32 %v8614_v18, %v9159_v48  ;;  %v1681_v62 = vsub.f32 %v8623_v24, %v9159_v48  ;;  %v7374_v1 = vpack.c.bf16 %v2196_v16, %v2194_v14 }
 0x267   : > { %v9177_v0 = vsub.f32 %v11881_v50, %v897_v27  ;;  %v1066_v53 = vand.u32 2147483647, %v1002_v33  ;;  %v1743_v15 = vand.u32 2147483647, %v1679_v29  ;;  %v1003_v50 = vsub.f32 %v8577_v41, %v9159_v48 }
 0x268   : > { %v9181_v22 = vsub.f32 %v11883_v23, %v898_v26  ;;  %v1068_v21 = vand.u32 2147483647, %v1004_v35  ;;  %v1745_v31 = vand.u32 2147483647, %v1681_v62  ;;  %7375 = vmatpush1.bf16.msra.mxu0 %v7374_v1 }
 0x269   : > { %11882 = vst [vmem:[#allocation72_spill] sm:$0xff] %v9177_v0  ;;  %v1130_v38 = vsub.f32 1.0, %v1066_v53  ;;  %v1266_v2 = vsub.f32 %v8617_v63, %v9177_v0  ;;  %v1807_v32 = vsub.f32 1.0, %v1743_v15  ;;  %v1943_v30 = vsub.f32 %v8626_v8, %v9177_v0 }
 0x26a   : > { %11884 = vst [vmem:[#allocation73_spill] sm:$0xff] %v9181_v22  ;;  %v1132_v55 = vsub.f32 1.0, %v1068_v21  ;;  %v1268_v37 = vsub.f32 %v8617_v63, %v9181_v22  ;;  %v1809_v28 = vsub.f32 1.0, %v1745_v31  ;;  %v1945_v33 = vsub.f32 %v8626_v8, %v9181_v22 }
 0x26b   : > { %v1194_v54 = vmax.f32 %v1130_v38, 0.0  ;;  %v1330_v5 = vand.u32 2147483647, %v1266_v2  ;;  %v1871_v27 = vmax.f32 %v1807_v32, 0.0  ;;  %v2007_v35 = vand.u32 2147483647, %v1943_v30 }
 0x26c   : > { %v1196_v29 = vmax.f32 %v1132_v55, 0.0  ;;  %v1332_v14 = vand.u32 2147483647, %v1268_v37  ;;  %v1873_v26 = vmax.f32 %v1809_v28, 0.0  ;;  %v2009_v16 = vand.u32 2147483647, %v1945_v33 }
 0x26d   : > { %v1394_v62 = vsub.f32 1.0, %v1330_v5  ;;  %v1065_v53 = vand.u32 2147483647, %v1001_v25  ;;  %v2071_v23 = vsub.f32 1.0, %v2007_v35  ;;  %v1265_v21 = vsub.f32 %v8580_v17, %v9177_v0 }
 0x26e   : > { %v1396_v15 = vsub.f32 1.0, %v1332_v14  ;;  %v1267_v31 = vsub.f32 %v8580_v17, %v9181_v22  ;;  %v2073_v38 = vsub.f32 1.0, %v2009_v16  ;;  %v1067_v2 = vand.u32 2147483647, %v1003_v50 }
 0x26f   : > { %v1458_v1 = vmax.f32 %v1394_v62, 0.0  ;;  %v1129_v32 = vsub.f32 1.0, %v1065_v53  ;;  %v2135_v37 = vmax.f32 %v2071_v23, 0.0  ;;  %v1329_v28 = vand.u32 2147483647, %v1265_v21 }
 0x270   : > { %v1460_v55 = vmax.f32 %v1396_v15, 0.0  ;;  %v1331_v30 = vand.u32 2147483647, %v1267_v31  ;;  %v2137_v33 = vmax.f32 %v2073_v38, 0.0  ;;  %v1131_v6 = vsub.f32 1.0, %v1067_v2 }
 0x271   : > { %v1522_v5 = vmul.f32 %v1458_v1, %v1194_v54  ;;  %v1193_v25 = vmax.f32 %v1129_v32, 0.0  ;;  %v2199_v35 = vmul.f32 %v2135_v37, %v1871_v27  ;;  %v1393_v12 = vsub.f32 1.0, %v1329_v28 }
 0x272   : > { %v1524_v14 = vmul.f32 %v1460_v55, %v1196_v29  ;;  %v1395_v13 = vsub.f32 1.0, %v1331_v30  ;;  %v2201_v44 = vmul.f32 %v2137_v33, %v1873_v26  ;;  %v1195_v34 = vmax.f32 %v1131_v6, 0.0  ;;  %v9220_v33 = vld [vmem:[%s9217_s15 + $0x8] sm:$0xff] }
 0x273   : > { %v1678_v62 = vsub.f32 %v8587_v56, %v9157_v51  ;;  %v1680_v16 = vsub.f32 %v8587_v56, %v9159_v48  ;;  %v1457_v53 = vmax.f32 %v1393_v12, 0.0  ;;  %v1942_v54 = vsub.f32 %v8590_v45, %v9177_v0  ;;  %1609 = vmatprep.mubr.f32.mxu1 %v9220_v33  ;;  %2286 = vmatprep.mubr.f32.mxu0 %v9220_v33 }
 0x274   : > { %v7312_v50 = vpack.c.bf16 %v1524_v14, %v1522_v5  ;;  %v1459_v15 = vmax.f32 %v1395_v13, 0.0  ;;  %v7376_v23 = vpack.c.bf16 %v2201_v44, %v2199_v35  ;;  %v1944_v27 = vsub.f32 %v8590_v45, %v9181_v22 }
 0x275   : > { %v1742_v21 = vand.u32 2147483647, %v1678_v62  ;;  %v1744_v29 = vand.u32 2147483647, %v1680_v16  ;;  %v1521_v6 = vmul.f32 %v1457_v53, %v1193_v25  ;;  %v2006_v31 = vand.u32 2147483647, %v1942_v54 }
 0x276   : > { %7313 = vmatprep.subr.bf16.mxu1 %v7312_v50  ;;  %v1523_v26 = vmul.f32 %v1459_v15, %v1195_v34  ;;  %v772_v1 = vcvt.s32.f32 %v9162_v42  ;;  %7377 = vmatprep.subr.bf16.mxu0 %v7376_v23  ;;  %v2008_v13 = vand.u32 2147483647, %v1944_v27  ;;  %v11885_v2 = vcvt.s32.f32 %v9155_v46 }
 0x277   : > { %v1806_v38 = vsub.f32 1.0, %v1742_v21  ;;  %v1808_v12 = vsub.f32 1.0, %v1744_v29  ;;  %v2070_v55 = vsub.f32 1.0, %v2006_v31  ;;  %v9211_v28 = vadd.s32 192, %v11859_v9 }
 0x278   : > { %v803_v32 = vmul.f32 0.0625, %v11885_v2  ;;  %v7314_v44 = vpack.c.bf16 %v1523_v26, %v1521_v6  ;;  %v804_v37 = vmul.f32 0.0625, %v772_v1  ;;  %v2072_v30 = vsub.f32 1.0, %v2008_v13 }
 0x279   : > { %v1870_v34 = vmax.f32 %v1806_v38, 0.0  ;;  %v1872_v42 = vmax.f32 %v1808_v12, 0.0  ;;  %v2134_v25 = vmax.f32 %v2070_v55, 0.0  ;;  %v9223_v35 = vadd.s32 200, %v11859_v9 }
 0x27a   : > { %v835_v5 = vadd.f32 0.001, %v803_v32  ;;  %7315 = vmatpush1.bf16.msra.mxu1 %v7314_v44  ;;  %v836_v14 = vadd.f32 0.001, %v804_v37  ;;  %v11545_v62 = vcvt.s32.f32 %v9211_v28  ;;  %v2136_v16 = vmax.f32 %v2072_v30, 0.0 }
 0x27b   : > { %v9230_v53 = vadd.s32 208, %v11859_v9  ;;  %v9233_v15 = vadd.s32 216, %v11859_v9  ;;  %v2198_v54 = vmul.f32 %v2134_v25, %v1870_v34  ;;  %v11888_v44 = vcvt.s32.f32 %v9155_v46 }
 0x27c   : > { %v9227_v50 = vfloor.f32 %v835_v5  ;;  %v9236_v23 = vfloor.f32 %v836_v14  ;;  %v9241_v29 = vmul.f32 0.0625, %v11545_v62  ;;  %v2200_v27 = vmul.f32 %v2136_v16, %v1872_v42 }
 0x27e   : > { %11886 = vst [vmem:[#allocation74_spill] sm:$0xff] %v9227_v50  ;;  %11887 = vst [vmem:[#allocation75_spill] sm:$0xff] %v9236_v23  ;;  %v899_v6 = vmul.f32 16.0, %v9227_v50  ;;  %v1006_v26 = vsub.f32 %v8614_v18, %v9227_v50  ;;  %v1683_v31 = vsub.f32 %v8623_v24, %v9227_v50  ;;  %v900_v38 = vmul.f32 16.0, %v9236_v23 }
 0x27f   : > { %v1008_v12 = vsub.f32 %v8614_v18, %v9236_v23  ;;  %v1685_v13 = vsub.f32 %v8623_v24, %v9236_v23  ;;  %v1005_v2 = vsub.f32 %v8577_v41, %v9227_v50  ;;  %v7378_v32 = vpack.c.bf16 %v2200_v27, %v2198_v54 }
 0x280   : > { %v9257_v55 = vsub.f32 %v11888_v44, %v899_v6  ;;  %v1070_v37 = vand.u32 2147483647, %v1006_v26  ;;  %v1747_v34 = vand.u32 2147483647, %v1683_v31  ;;  %v9259_v42 = vsub.f32 %v772_v1, %v900_v38 }
 0x281   : > { %v1072_v30 = vand.u32 2147483647, %v1008_v12  ;;  %v1749_v5 = vand.u32 2147483647, %v1685_v13  ;;  %v1007_v25 = vsub.f32 %v8577_v41, %v9236_v23  ;;  %7379 = vmatpush1.bf16.msra.mxu0 %v7378_v32  ;;  %v1069_v22 = vand.u32 2147483647, %v1005_v2 }
 0x282   : > { %11889 = vst [vmem:[#allocation76_spill] sm:$0xff] %v9257_v55  ;;  %11890 = vst [vmem:[#allocation77_spill] sm:$0xff] %v9259_v42  ;;  %v1134_v14 = vsub.f32 1.0, %v1070_v37  ;;  %v1270_v16 = vsub.f32 %v8617_v63, %v9257_v55  ;;  %v1811_v62 = vsub.f32 1.0, %v1747_v34  ;;  %v1947_v46 = vsub.f32 %v8626_v8, %v9257_v55 }
 0x283   : > { %v1136_v54 = vsub.f32 1.0, %v1072_v30  ;;  %v1272_v27 = vsub.f32 %v8617_v63, %v9259_v42  ;;  %v1813_v1 = vsub.f32 1.0, %v1749_v5  ;;  %v1949_v6 = vsub.f32 %v8626_v8, %v9259_v42 }
 0x284   : > { %v1198_v26 = vmax.f32 %v1134_v14, 0.0  ;;  %v1334_v31 = vand.u32 2147483647, %v1270_v16  ;;  %v1875_v38 = vmax.f32 %v1811_v62, 0.0  ;;  %v2011_v12 = vand.u32 2147483647, %v1947_v46 }
 0x285   : > { %v1200_v13 = vmax.f32 %v1136_v54, 0.0  ;;  %v1336_v32 = vand.u32 2147483647, %v1272_v27  ;;  %v1877_v44 = vmax.f32 %v1813_v1, 0.0  ;;  %v2013_v37 = vand.u32 2147483647, %v1949_v6 }
 0x286   : > { %v1398_v34 = vsub.f32 1.0, %v1334_v31  ;;  %v2075_v21 = vsub.f32 1.0, %v2011_v12  ;;  %v1071_v0 = vand.u32 2147483647, %v1007_v25  ;;  %v1269_v5 = vsub.f32 %v8580_v17, %v9257_v55 }
 0x287   : > { %v1400_v30 = vsub.f32 1.0, %v1336_v32  ;;  %v2077_v48 = vsub.f32 1.0, %v2013_v37  ;;  %v1271_v51 = vsub.f32 %v8580_v17, %v9259_v42  ;;  %v1133_v62 = vsub.f32 1.0, %v1069_v22 }
 0x288   : > { %v1462_v14 = vmax.f32 %v1398_v34, 0.0  ;;  %v2139_v16 = vmax.f32 %v2075_v21, 0.0  ;;  %v1135_v46 = vsub.f32 1.0, %v1071_v0  ;;  %v1333_v1 = vand.u32 2147483647, %v1269_v5 }
 0x289   : > { %v1464_v54 = vmax.f32 %v1400_v30, 0.0  ;;  %v2141_v27 = vmax.f32 %v2077_v48, 0.0  ;;  %v1335_v6 = vand.u32 2147483647, %v1271_v51  ;;  %v1197_v2 = vmax.f32 %v1133_v62, 0.0 }
 0x28a   : > { %v1526_v31 = vmul.f32 %v1462_v14, %v1198_v26  ;;  %v2203_v12 = vmul.f32 %v2139_v16, %v1875_v38  ;;  %v1199_v25 = vmax.f32 %v1135_v46, 0.0  ;;  %v1397_v40 = vsub.f32 1.0, %v1333_v1 }
 0x28b   : > { %v1528_v32 = vmul.f32 %v1464_v54, %v1200_v13  ;;  %v2205_v37 = vmul.f32 %v2141_v27, %v1877_v44  ;;  %v1399_v43 = vsub.f32 1.0, %v1335_v6  ;;  %v1682_v11 = vsub.f32 %v8587_v56, %v9227_v50 }
 0x28c   : > { %v1684_v21 = vsub.f32 %v8587_v56, %v9236_v23  ;;  %v1946_v0 = vsub.f32 %v8590_v45, %v9257_v55  ;;  %v1948_v51 = vsub.f32 %v8590_v45, %v9259_v42  ;;  %v1461_v26 = vmax.f32 %v1397_v40, 0.0 }
 0x28d   : > { %v7316_v48 = vpack.c.bf16 %v1528_v32, %v1526_v31  ;;  %v7380_v22 = vpack.c.bf16 %v2205_v37, %v2203_v12  ;;  %v1463_v38 = vmax.f32 %v1399_v43, 0.0  ;;  %v1746_v13 = vand.u32 2147483647, %v1682_v11 }
 0x28e   : > { %v1748_v44 = vand.u32 2147483647, %v1684_v21  ;;  %v2010_v34 = vand.u32 2147483647, %v1946_v0  ;;  %v11561_v30 = vcvt.s32.f32 %v9230_v53  ;;  %v1525_v5 = vmul.f32 %v1461_v26, %v1197_v2 }
 0x28f   : > { %7317 = vmatprep.subr.bf16.mxu1 %v7316_v48  ;;  %7381 = vmatprep.subr.bf16.mxu0 %v7380_v22  ;;  %v1527_v14 = vmul.f32 %v1463_v38, %v1199_v25  ;;  %v2012_v16 = vand.u32 2147483647, %v1948_v51  ;;  %v11891_v62 = vcvt.s32.f32 %v9223_v35  ;;  %v1810_v54 = vsub.f32 1.0, %v1746_v13 }
 0x290   : > { %v1812_v27 = vsub.f32 1.0, %v1748_v44  ;;  %v2074_v1 = vsub.f32 1.0, %v2010_v34  ;;  %v837_v6 = vadd.f32 0.001, %v9241_v29  ;;  %v11560_v31 = vcvt.s32.f32 %v9233_v15 }
 0x291   : > { %v806_v46 = vmul.f32 0.0625, %v11891_v62  ;;  %v7318_v40 = vpack.c.bf16 %v1527_v14, %v1525_v5  ;;  %v2076_v43 = vsub.f32 1.0, %v2012_v16  ;;  %v1874_v12 = vmax.f32 %v1810_v54, 0.0 }
 0x292   : > { %v1876_v32 = vmax.f32 %v1812_v27, 0.0  ;;  %v2138_v37 = vmax.f32 %v2074_v1, 0.0  ;;  %v9288_v21 = vfloor.f32 %v837_v6  ;;  %v9294_v0 = vmul.f32 0.0625, %v11561_v30 }
 0x293   : > { %v838_v11 = vadd.f32 0.001, %v806_v46  ;;  %7319 = vmatpush1.bf16.msra.mxu1 %v7318_v40  ;;  %v2140_v2 = vmax.f32 %v2076_v43, 0.0  ;;  %v9298_v29 = vmul.f32 0.0625, %v11560_v31  ;;  %v11894_v5 = vcvt.s32.f32 %v9211_v28 }
 0x294   : > { %11892 = vst [vmem:[#allocation78_spill] sm:$0xff] %v9288_v21  ;;  %v2202_v51 = vmul.f32 %v2138_v37, %v1874_v12  ;;  %v901_v48 = vmul.f32 16.0, %v9288_v21  ;;  %v1010_v22 = vsub.f32 %v8614_v18, %v9288_v21  ;;  %v1687_v26 = vsub.f32 %v8623_v24, %v9288_v21 }
 0x295   : > { %v9290_v25 = vfloor.f32 %v838_v11  ;;  %v2204_v38 = vmul.f32 %v2140_v2, %v1876_v32  ;;  %v1009_v46 = vsub.f32 %v8577_v41, %v9288_v21  ;;  %v11896_v27 = vcvt.s32.f32 %v9223_v35 }
 0x296   : > { %v9312_v14 = vsub.f32 %v11894_v5, %v901_v48  ;;  %v1074_v16 = vand.u32 2147483647, %v1010_v22  ;;  %v1751_v62 = vand.u32 2147483647, %v1687_v26  ;;  %v1686_v50 = vsub.f32 %v8587_v56, %v9288_v21 }
 0x297   : > { %11893 = vst [vmem:[#allocation79_spill] sm:$0xff] %v9290_v25  ;;  %v902_v13 = vmul.f32 16.0, %v9290_v25  ;;  %v1012_v44 = vsub.f32 %v8614_v18, %v9290_v25  ;;  %v1689_v34 = vsub.f32 %v8623_v24, %v9290_v25  ;;  %v7382_v54 = vpack.c.bf16 %v2204_v38, %v2202_v51 }
 0x298   : > { %11895 = vst [vmem:[#allocation80_spill] sm:$0xff] %v9312_v14  ;;  %v1138_v43 = vsub.f32 1.0, %v1074_v16  ;;  %v1274_v11 = vsub.f32 %v8617_v63, %v9312_v14  ;;  %v1815_v12 = vsub.f32 1.0, %v1751_v62  ;;  %v1951_v28 = vsub.f32 %v8626_v8, %v9312_v14 }
 0x299   : > { %v9318_v1 = vsub.f32 %v11896_v27, %v902_v13  ;;  %v1076_v6 = vand.u32 2147483647, %v1012_v44  ;;  %v1753_v40 = vand.u32 2147483647, %v1689_v34  ;;  %7383 = vmatpush1.bf16.msra.mxu0 %v7382_v54  ;;  %v1011_v62 = vsub.f32 %v8577_v41, %v9290_v25 }
 0x29a   : > { %v1202_v51 = vmax.f32 %v1138_v43, 0.0  ;;  %v1338_v48 = vand.u32 2147483647, %v1274_v11  ;;  %v1879_v22 = vmax.f32 %v1815_v12, 0.0  ;;  %v2015_v26 = vand.u32 2147483647, %v1951_v28 }
 0x29b   : > { %11897 = vst [vmem:[#allocation81_spill] sm:$0xff] %v9318_v1  ;;  %v1140_v32 = vsub.f32 1.0, %v1076_v6  ;;  %v1276_v37 = vsub.f32 %v8617_v63, %v9318_v1  ;;  %v1817_v2 = vsub.f32 1.0, %v1753_v40  ;;  %v1953_v35 = vsub.f32 %v8626_v8, %v9318_v1 }
 0x29c   : > { %v1402_v5 = vsub.f32 1.0, %v1338_v48  ;;  %v2079_v16 = vsub.f32 1.0, %v2015_v26  ;;  %v1073_v54 = vand.u32 2147483647, %v1009_v46  ;;  %v1273_v40 = vsub.f32 %v8580_v17, %v9312_v14 }
 0x29d   : > { %v1204_v38 = vmax.f32 %v1140_v32, 0.0  ;;  %v1340_v13 = vand.u32 2147483647, %v1276_v37  ;;  %v1881_v44 = vmax.f32 %v1817_v2, 0.0  ;;  %v2017_v34 = vand.u32 2147483647, %v1953_v35 }
 0x29e   : > { %v1275_v43 = vsub.f32 %v8580_v17, %v9318_v1  ;;  %v1466_v11 = vmax.f32 %v1402_v5, 0.0  ;;  %v2143_v12 = vmax.f32 %v2079_v16, 0.0  ;;  %v1075_v28 = vand.u32 2147483647, %v1011_v62 }
 0x29f   : > { %v1404_v27 = vsub.f32 1.0, %v1340_v13  ;;  %v2081_v6 = vsub.f32 1.0, %v2017_v34  ;;  %v1137_v32 = vsub.f32 1.0, %v1073_v54  ;;  %v1337_v35 = vand.u32 2147483647, %v1273_v40 }
 0x2a0   : > { %v1339_v48 = vand.u32 2147483647, %v1275_v43  ;;  %v1530_v26 = vmul.f32 %v1466_v11, %v1202_v51  ;;  %v2207_v31 = vmul.f32 %v2143_v12, %v1879_v22  ;;  %v1139_v30 = vsub.f32 1.0, %v1075_v28 }
 0x2a1   : > { %v1468_v37 = vmax.f32 %v1404_v27, 0.0  ;;  %v2145_v2 = vmax.f32 %v2081_v6, 0.0  ;;  %v1201_v46 = vmax.f32 %v1137_v32, 0.0  ;;  %v1401_v42 = vsub.f32 1.0, %v1337_v35 }
 0x2a2   : > { %v1403_v55 = vsub.f32 1.0, %v1339_v48  ;;  %v1203_v23 = vmax.f32 %v1139_v30, 0.0  ;;  %v1688_v5 = vsub.f32 %v8587_v56, %v9290_v25  ;;  %v1950_v16 = vsub.f32 %v8590_v45, %v9312_v14 }
 0x2a3   : > { %v1532_v13 = vmul.f32 %v1468_v37, %v1204_v38  ;;  %v2209_v34 = vmul.f32 %v2145_v2, %v1881_v44  ;;  %v1465_v51 = vmax.f32 %v1401_v42, 0.0  ;;  %v1750_v27 = vand.u32 2147483647, %v1686_v50 }
 0x2a4   : > { %v1467_v22 = vmax.f32 %v1403_v55, 0.0  ;;  %v1752_v6 = vand.u32 2147483647, %v1688_v5  ;;  %v1952_v38 = vsub.f32 %v8590_v45, %v9318_v1  ;;  %v2014_v44 = vand.u32 2147483647, %v1950_v16 }
 0x2a5   : > { %v7320_v62 = vpack.c.bf16 %v1532_v13, %v1530_v26  ;;  %v7384_v54 = vpack.c.bf16 %v2209_v34, %v2207_v31  ;;  %v1529_v30 = vmul.f32 %v1465_v51, %v1201_v46  ;;  %v839_v43 = vadd.f32 0.001, %v9294_v0 }
 0x2a6   : > { %v1531_v40 = vmul.f32 %v1467_v22, %v1203_v23  ;;  %v840_v11 = vadd.f32 0.001, %v9298_v29  ;;  %v1814_v12 = vsub.f32 1.0, %v1750_v27  ;;  %v1816_v28 = vsub.f32 1.0, %v1752_v6 }
 0x2a7   : > { %7321 = vmatprep.subr.bf16.mxu1 %v7320_v62  ;;  %7385 = vmatprep.subr.bf16.mxu0 %v7384_v54  ;;  %v2016_v32 = vand.u32 2147483647, %v1952_v38  ;;  %v2078_v31 = vsub.f32 1.0, %v2014_v44  ;;  %v9344_v55 = vfloor.f32 %v839_v43  ;;  %v9349_v37 = vadd.s32 224, %v11859_v9 }
 0x2a8   : > { %v7322_v42 = vpack.c.bf16 %v1531_v40, %v1529_v30  ;;  %v9346_v50 = vfloor.f32 %v840_v11  ;;  %v1878_v2 = vmax.f32 %v1814_v12, 0.0  ;;  %v1880_v35 = vmax.f32 %v1816_v28, 0.0 }
 0x2a9   : > { %11898 = vst [vmem:[#allocation82_spill] sm:$0xff] %v9344_v55  ;;  %v2080_v48 = vsub.f32 1.0, %v2016_v32  ;;  %v2142_v23 = vmax.f32 %v2078_v31, 0.0  ;;  %v903_v0 = vmul.f32 16.0, %v9344_v55  ;;  %v1014_v26 = vsub.f32 %v8614_v18, %v9344_v55 }
 0x2aa   : > { %11899 = vst [vmem:[#allocation83_spill] sm:$0xff] %v9346_v50  ;;  %7323 = vmatpush1.bf16.msra.mxu1 %v7322_v42  ;;  %v904_v29 = vmul.f32 16.0, %v9346_v50  ;;  %v1016_v46 = vsub.f32 %v8614_v18, %v9346_v50  ;;  %v1691_v5 = vsub.f32 %v8623_v24, %v9344_v55  ;;  %v1693_v16 = vsub.f32 %v8623_v24, %v9346_v50 }
 0x2ab   : > { %v2144_v13 = vmax.f32 %v2080_v48, 0.0  ;;  %v2206_v34 = vmul.f32 %v2142_v23, %v1878_v2  ;;  %v11900_v62 = vcvt.s32.f32 %v9230_v53  ;;  %v11902_v51 = vcvt.s32.f32 %v9233_v15 }
 0x2ac   : > { %v1078_v27 = vand.u32 2147483647, %v1014_v26  ;;  %v1080_v6 = vand.u32 2147483647, %v1016_v46  ;;  %v1755_v44 = vand.u32 2147483647, %v1691_v5  ;;  %v1013_v40 = vsub.f32 %v8577_v41, %v9344_v55 }
 0x2ad   : > { %v9363_v54 = vsub.f32 %v11900_v62, %v903_v0  ;;  %v9367_v22 = vsub.f32 %v11902_v51, %v904_v29  ;;  %v2208_v38 = vmul.f32 %v2144_v13, %v1880_v35  ;;  %v1757_v30 = vand.u32 2147483647, %v1693_v16 }
 0x2ae   : > { %v1142_v43 = vsub.f32 1.0, %v1078_v27  ;;  %v1144_v11 = vsub.f32 1.0, %v1080_v6  ;;  %v1819_v15 = vsub.f32 1.0, %v1755_v44  ;;  %v1077_v5 = vand.u32 2147483647, %v1013_v40 }
 0x2af   : > { %11901 = vst [vmem:[#allocation84_spill] sm:$0xff] %v9363_v54  ;;  %11903 = vst [vmem:[#allocation85_spill] sm:$0xff] %v9367_v22  ;;  %v1278_v12 = vsub.f32 %v8617_v63, %v9363_v54  ;;  %v1280_v53 = vsub.f32 %v8617_v63, %v9367_v22  ;;  %v7386_v28 = vpack.c.bf16 %v2208_v38, %v2206_v34  ;;  %v1821_v32 = vsub.f32 1.0, %v1757_v30 }
 0x2b0   : > { %v1955_v31 = vsub.f32 %v8626_v8, %v9363_v54  ;;  %v1206_v42 = vmax.f32 %v1142_v43, 0.0  ;;  %v1208_v2 = vmax.f32 %v1144_v11, 0.0  ;;  %v1883_v23 = vmax.f32 %v1819_v15, 0.0 }
 0x2b1   : > { %v1342_v35 = vand.u32 2147483647, %v1278_v12  ;;  %v1344_v48 = vand.u32 2147483647, %v1280_v53  ;;  %7387 = vmatpush1.bf16.msra.mxu0 %v7386_v28  ;;  %v1885_v0 = vmax.f32 %v1821_v32, 0.0  ;;  %v1957_v29 = vsub.f32 %v8626_v8, %v9367_v22 }
 0x2b2   : > { %v2019_v26 = vand.u32 2147483647, %v1955_v31  ;;  %v1015_v34 = vsub.f32 %v8577_v41, %v9346_v50  ;;  %v1277_v51 = vsub.f32 %v8580_v17, %v9363_v54  ;;  %v1279_v27 = vsub.f32 %v8580_v17, %v9367_v22 }
 0x2b3   : > { %v1406_v46 = vsub.f32 1.0, %v1342_v35  ;;  %v1408_v13 = vsub.f32 1.0, %v1344_v48  ;;  %v2021_v16 = vand.u32 2147483647, %v1957_v29  ;;  %v1141_v30 = vsub.f32 1.0, %v1077_v5 }
 0x2b4   : > { %v2083_v62 = vsub.f32 1.0, %v2019_v26  ;;  %v1079_v44 = vand.u32 2147483647, %v1015_v34  ;;  %v1341_v12 = vand.u32 2147483647, %v1277_v51  ;;  %v746_v51 = vadd.s32 232, %v11859_v9 }
 0x2b5   : > { %v1470_v6 = vmax.f32 %v1406_v46, 0.0  ;;  %v1472_v38 = vmax.f32 %v1408_v13, 0.0  ;;  %v2085_v43 = vsub.f32 1.0, %v2021_v16  ;;  %v1343_v53 = vand.u32 2147483647, %v1279_v27 }
 0x2b6   : > { %v2147_v11 = vmax.f32 %v2083_v62, 0.0  ;;  %v1143_v32 = vsub.f32 1.0, %v1079_v44  ;;  %v1205_v40 = vmax.f32 %v1141_v30, 0.0  ;;  %v1405_v48 = vsub.f32 1.0, %v1341_v12 }
 0x2b7   : > { %v1534_v28 = vmul.f32 %v1470_v6, %v1206_v42  ;;  %v1536_v15 = vmul.f32 %v1472_v38, %v1208_v2  ;;  %v2149_v31 = vmax.f32 %v2085_v43, 0.0  ;;  %v1407_v29 = vsub.f32 1.0, %v1343_v53 }
 0x2b8   : > { %v2211_v35 = vmul.f32 %v2147_v11, %v1883_v23  ;;  %v1207_v1 = vmax.f32 %v1143_v32, 0.0  ;;  %v1690_v46 = vsub.f32 %v8587_v56, %v9344_v55  ;;  %v1692_v13 = vsub.f32 %v8587_v56, %v9346_v50 }
 0x2b9   : > { %v7324_v26 = vpack.c.bf16 %v1536_v15, %v1534_v28  ;;  %v2213_v34 = vmul.f32 %v2149_v31, %v1885_v0  ;;  %v1469_v5 = vmax.f32 %v1405_v48, 0.0  ;;  %v1471_v16 = vmax.f32 %v1407_v29, 0.0 }
 0x2ba   : > { %v1954_v42 = vsub.f32 %v8590_v45, %v9363_v54  ;;  %v1754_v2 = vand.u32 2147483647, %v1690_v46  ;;  %v1756_v62 = vand.u32 2147483647, %v1692_v13  ;;  %v1956_v23 = vsub.f32 %v8590_v45, %v9367_v22 }
 0x2bb   : > { %7325 = vmatprep.subr.bf16.mxu1 %v7324_v26  ;;  %v7388_v27 = vpack.c.bf16 %v2213_v34, %v2211_v35  ;;  %v1533_v6 = vmul.f32 %v1469_v5, %v1205_v40  ;;  %v1535_v38 = vmul.f32 %v1471_v16, %v1207_v1  ;;  %v777_v11 = vcvt.s32.f32 %v9349_v37 }
 0x2bc   : > { %v2018_v44 = vand.u32 2147483647, %v1954_v42  ;;  %v1818_v30 = vsub.f32 1.0, %v1754_v2  ;;  %v1820_v43 = vsub.f32 1.0, %v1756_v62  ;;  %v2020_v0 = vand.u32 2147483647, %v1956_v23 }
 0x2bd   : > { %7389 = vmatprep.subr.bf16.mxu0 %v7388_v27  ;;  %v7326_v12 = vpack.c.bf16 %v1535_v38, %v1533_v6  ;;  %v778_v28 = vcvt.s32.f32 %v746_v51  ;;  %v9396_v15 = vadd.s32 240, %v11859_v9  ;;  %v809_v29 = vmul.f32 0.0625, %v777_v11 }
 0x2be   : > { %v2082_v53 = vsub.f32 1.0, %v2018_v44  ;;  %v1882_v32 = vmax.f32 %v1818_v30, 0.0  ;;  %v1884_v31 = vmax.f32 %v1820_v43, 0.0  ;;  %v2084_v48 = vsub.f32 1.0, %v2020_v0 }
 0x2bf   : > { %7327 = vmatpush1.bf16.msra.mxu1 %v7326_v12  ;;  %v810_v1 = vmul.f32 0.0625, %v778_v28  ;;  %v9399_v35 = vadd.s32 248, %v11859_v9  ;;  %v11573_v26 = vcvt.s32.f32 %v9396_v15  ;;  %v841_v46 = vadd.f32 0.001, %v809_v29 }
 0x2c0   : > { %v2146_v40 = vmax.f32 %v2082_v53, 0.0  ;;  %v2148_v37 = vmax.f32 %v2084_v48, 0.0  ;;  %v2316_v13 = vsub.f32 %v8629_v60, %v8426_v59  ;;  %v2318_v34 = vsub.f32 %v8629_v60, %v8449_v10 }
 0x2c1   : > { %v842_v16 = vadd.f32 0.001, %v810_v1  ;;  %v11572_v42 = vcvt.s32.f32 %v9399_v35  ;;  %v811_v2 = vmul.f32 0.0625, %v11573_v26  ;;  %v9409_v9 = vfloor.f32 %v841_v46 }
 0x2c2   : > { %v2210_v5 = vmul.f32 %v2146_v40, %v1882_v32  ;;  %v2212_v62 = vmul.f32 %v2148_v37, %v1884_v31  ;;  %v9411_v23 = vand.u32 2147483647, %v2316_v13  ;;  %v9413_v51 = vand.u32 2147483647, %v2318_v34 }
 0x2c3   : > { %11904 = vst [vmem:[#allocation86_spill] sm:$0xff] %v9409_v9  ;;  %v9415_v27 = vfloor.f32 %v842_v16  ;;  %v9419_v6 = vmul.f32 0.0625, %v11572_v42  ;;  %v9421_v38 = vadd.f32 0.001, %v811_v2  ;;  %v905_v43 = vmul.f32 16.0, %v9409_v9 }
 0x2c4   : > { %v7390_v30 = vpack.c.bf16 %v2212_v62, %v2210_v5  ;;  %v1018_v0 = vsub.f32 %v8614_v18, %v9409_v9  ;;  %v1695_v12 = vsub.f32 %v8623_v24, %v9409_v9  ;;  %v1017_v48 = vsub.f32 %v8577_v41, %v9409_v9 }
 0x2c5   : > { %v906_v53 = vmul.f32 16.0, %v9415_v27  ;;  %v1020_v32 = vsub.f32 %v8614_v18, %v9415_v27  ;;  %v1697_v31 = vsub.f32 %v8623_v24, %v9415_v27  ;;  %v9437_v29 = vsub.f32 %v777_v11, %v905_v43 }
 0x2c6   : > { %7391 = vmatpush1.bf16.msra.mxu0 %v7390_v30  ;;  %v1082_v40 = vand.u32 2147483647, %v1018_v0  ;;  %v1759_v1 = vand.u32 2147483647, %v1695_v12  ;;  %v1019_v37 = vsub.f32 %v8577_v41, %v9415_v27  ;;  %v1081_v5 = vand.u32 2147483647, %v1017_v48 }
 0x2c7   : > { %v9441_v46 = vsub.f32 %v778_v28, %v906_v53  ;;  %v1084_v13 = vand.u32 2147483647, %v1020_v32  ;;  %v1761_v34 = vand.u32 2147483647, %v1697_v31  ;;  %v1282_v2 = vsub.f32 %v8617_v63, %v9437_v29 }
 0x2c8   : > { %v1146_v16 = vsub.f32 1.0, %v1082_v40  ;;  %v1823_v62 = vsub.f32 1.0, %v1759_v1  ;;  %v1959_v30 = vsub.f32 %v8626_v8, %v9437_v29  ;;  %v1083_v22 = vand.u32 2147483647, %v1019_v37 }
 0x2c9   : > { %v1148_v11 = vsub.f32 1.0, %v1084_v13  ;;  %v1284_v43 = vsub.f32 %v8617_v63, %v9441_v46  ;;  %v1825_v0 = vsub.f32 1.0, %v1761_v34  ;;  %v1961_v28 = vsub.f32 %v8626_v8, %v9441_v46 }
 0x2ca   : > { %v1210_v12 = vmax.f32 %v1146_v16, 0.0  ;;  %v1346_v53 = vand.u32 2147483647, %v1282_v2  ;;  %v1887_v32 = vmax.f32 %v1823_v62, 0.0  ;;  %v2023_v31 = vand.u32 2147483647, %v1959_v30 }
 0x2cb   : > { %v1212_v48 = vmax.f32 %v1148_v11, 0.0  ;;  %v1348_v40 = vand.u32 2147483647, %v1284_v43  ;;  %v1889_v44 = vmax.f32 %v1825_v0, 0.0  ;;  %v2025_v42 = vand.u32 2147483647, %v1961_v28 }
 0x2cc   : > { %v1410_v1 = vsub.f32 1.0, %v1346_v53  ;;  %v2087_v26 = vsub.f32 1.0, %v2023_v31  ;;  %v1145_v54 = vsub.f32 1.0, %v1081_v5  ;;  %v1281_v34 = vsub.f32 %v8580_v17, %v9437_v29 }
 0x2cd   : > { %v1412_v13 = vsub.f32 1.0, %v1348_v40  ;;  %v2089_v50 = vsub.f32 1.0, %v2025_v42  ;;  %v1283_v55 = vsub.f32 %v8580_v17, %v9441_v46  ;;  %v1147_v62 = vsub.f32 1.0, %v1083_v22 }
 0x2ce   : > { %v1474_v16 = vmax.f32 %v1410_v1, 0.0  ;;  %v2151_v2 = vmax.f32 %v2087_v26, 0.0  ;;  %v1209_v30 = vmax.f32 %v1145_v54, 0.0  ;;  %v1345_v0 = vand.u32 2147483647, %v1281_v34 }
 0x2cf   : > { %v1476_v11 = vmax.f32 %v1412_v13, 0.0  ;;  %v2153_v43 = vmax.f32 %v2089_v50, 0.0  ;;  %v1347_v28 = vand.u32 2147483647, %v1283_v55  ;;  %v1211_v37 = vmax.f32 %v1147_v62, 0.0 }
 0x2d0   : > { %v1538_v53 = vmul.f32 %v1474_v16, %v1210_v12  ;;  %v2215_v31 = vmul.f32 %v2151_v2, %v1887_v32  ;;  %v1694_v42 = vsub.f32 %v8587_v56, %v9409_v9  ;;  %v1409_v14 = vsub.f32 1.0, %v1345_v0 }
 0x2d1   : > { %v1540_v5 = vmul.f32 %v1476_v11, %v1212_v48  ;;  %v2217_v40 = vmul.f32 %v2153_v43, %v1889_v44  ;;  %v1411_v25 = vsub.f32 1.0, %v1347_v28  ;;  %v1696_v1 = vsub.f32 %v8587_v56, %v9415_v27 }
 0x2d2   : > { %v1758_v26 = vand.u32 2147483647, %v1694_v42  ;;  %v1958_v54 = vsub.f32 %v8590_v45, %v9437_v29  ;;  %v1960_v55 = vsub.f32 %v8590_v45, %v9441_v46  ;;  %v1473_v12 = vmax.f32 %v1409_v14, 0.0 }
 0x2d3   : > { %v7328_v50 = vpack.c.bf16 %v1540_v5, %v1538_v53  ;;  %v7392_v22 = vpack.c.bf16 %v2217_v40, %v2215_v31  ;;  %v1475_v32 = vmax.f32 %v1411_v25, 0.0  ;;  %v1760_v13 = vand.u32 2147483647, %v1696_v1 }
 0x2d4   : > { %v1822_v34 = vsub.f32 1.0, %v1758_v26  ;;  %v2022_v48 = vand.u32 2147483647, %v1958_v54  ;;  %v9464_v44 = vfloor.f32 %v9421_v38  ;;  %v1537_v16 = vmul.f32 %v1473_v12, %v1209_v30 }
 0x2d5   : > { %7329 = vmatprep.subr.bf16.mxu1 %v7328_v50  ;;  %7393 = vmatprep.subr.bf16.mxu0 %v7392_v22  ;;  %v1539_v2 = vmul.f32 %v1475_v32, %v1211_v37  ;;  %v2024_v62 = vand.u32 2147483647, %v1960_v55  ;;  %v844_v11 = vadd.f32 0.001, %v9419_v6  ;;  %v1824_v43 = vsub.f32 1.0, %v1760_v13 }
 0x2d6   : > { %v1886_v0 = vmax.f32 %v1822_v34, 0.0  ;;  %v2086_v28 = vsub.f32 1.0, %v2022_v48  ;;  %v907_v53 = vmul.f32 16.0, %v9464_v44  ;;  %v1022_v38 = vsub.f32 %v8614_v18, %v9464_v44 }
 0x2d7   : > { %v7330_v14 = vpack.c.bf16 %v1539_v2, %v1537_v16  ;;  %v2088_v25 = vsub.f32 1.0, %v2024_v62  ;;  %v9468_v31 = vfloor.f32 %v844_v11  ;;  %v1888_v42 = vmax.f32 %v1824_v43, 0.0 }
 0x2d8   : > { %v2150_v5 = vmax.f32 %v2086_v28, 0.0  ;;  %v11905_v30 = vcvt.s32.f32 %v9396_v15  ;;  %v1699_v6 = vsub.f32 %v8623_v24, %v9464_v44  ;;  %v1086_v54 = vand.u32 2147483647, %v1022_v38 }
 0x2d9   : > { %7331 = vmatpush1.bf16.msra.mxu1 %v7330_v14  ;;  %v2152_v40 = vmax.f32 %v2088_v25, 0.0  ;;  %v908_v1 = vmul.f32 16.0, %v9468_v31  ;;  %v1024_v26 = vsub.f32 %v8614_v18, %v9468_v31  ;;  %v1701_v15 = vsub.f32 %v8623_v24, %v9468_v31 }
 0x2da   : > { %v9474_v37 = vsub.f32 %v11905_v30, %v907_v53  ;;  %v2214_v55 = vmul.f32 %v2150_v5, %v1886_v0  ;;  %v1763_v22 = vand.u32 2147483647, %v1699_v6  ;;  %v11906_v32 = vcvt.s32.f32 %v9399_v35 }
 0x2db   : > { %v2216_v12 = vmul.f32 %v2152_v40, %v1888_v42  ;;  %v1088_v34 = vand.u32 2147483647, %v1024_v26  ;;  %v1150_v48 = vsub.f32 1.0, %v1086_v54  ;;  %v1765_v2 = vand.u32 2147483647, %v1701_v15 }
 0x2dc   : > { %v1286_v50 = vsub.f32 %v8617_v63, %v9474_v37  ;;  %v9487_v13 = vsub.f32 %v11906_v32, %v908_v1  ;;  %v1827_v62 = vsub.f32 1.0, %v1763_v22  ;;  %v1963_v18 = vsub.f32 %v8626_v8, %v9474_v37 }
 0x2dd   : > { %v7394_v11 = vpack.c.bf16 %v2216_v12, %v2214_v55  ;;  %v1152_v43 = vsub.f32 1.0, %v1088_v34  ;;  %v1214_v0 = vmax.f32 %v1150_v48, 0.0  ;;  %v1829_v53 = vsub.f32 1.0, %v1765_v2 }
 0x2de   : > { %v1350_v16 = vand.u32 2147483647, %v1286_v50  ;;  %v1288_v24 = vsub.f32 %v8617_v63, %v9487_v13  ;;  %v1891_v14 = vmax.f32 %v1827_v62, 0.0  ;;  %v1965_v35 = vsub.f32 %v8626_v8, %v9487_v13 }
 0x2df   : > { %7395 = vmatpush1.bf16.msra.mxu0 %v7394_v11  ;;  %v1216_v25 = vmax.f32 %v1152_v43, 0.0  ;;  %v2027_v42 = vand.u32 2147483647, %v1963_v18  ;;  %v1021_v5 = vsub.f32 %v8577_v41, %v9464_v44  ;;  %v1893_v6 = vmax.f32 %v1829_v53, 0.0 }
 0x2e0   : > { %v1414_v28 = vsub.f32 1.0, %v1350_v16  ;;  %v1352_v38 = vand.u32 2147483647, %v1288_v24  ;;  %v2029_v40 = vand.u32 2147483647, %v1965_v35  ;;  %v1023_v1 = vsub.f32 %v8577_v41, %v9468_v31 }
 0x2e1   : > { %v2091_v26 = vsub.f32 1.0, %v2027_v42  ;;  %v1085_v54 = vand.u32 2147483647, %v1021_v5  ;;  %v1285_v55 = vsub.f32 %v8580_v17, %v9474_v37  ;;  %v1287_v22 = vsub.f32 %v8580_v17, %v9487_v13 }
 0x2e2   : > { %v1478_v30 = vmax.f32 %v1414_v28, 0.0  ;;  %v1416_v63 = vsub.f32 1.0, %v1352_v38  ;;  %v2093_v50 = vsub.f32 1.0, %v2029_v40  ;;  %v1087_v15 = vand.u32 2147483647, %v1023_v1 }
 0x2e3   : > { %v2155_v32 = vmax.f32 %v2091_v26, 0.0  ;;  %v1149_v34 = vsub.f32 1.0, %v1085_v54  ;;  %v1349_v48 = vand.u32 2147483647, %v1285_v55  ;;  %v1351_v62 = vand.u32 2147483647, %v1287_v22 }
 0x2e4   : > { %v1542_v8 = vmul.f32 %v1478_v30, %v1214_v0  ;;  %v1480_v12 = vmax.f32 %v1416_v63, 0.0  ;;  %v2157_v16 = vmax.f32 %v2093_v50, 0.0  ;;  %v1151_v2 = vsub.f32 1.0, %v1087_v15 }
 0x2e5   : > { %v1698_v41 = vsub.f32 %v8587_v56, %v9464_v44  ;;  %v2219_v11 = vmul.f32 %v2155_v32, %v1891_v14  ;;  %v1213_v43 = vmax.f32 %v1149_v34, 0.0  ;;  %v1413_v24 = vsub.f32 1.0, %v1349_v48 }
 0x2e6   : > { %v1544_v18 = vmul.f32 %v1480_v12, %v1216_v25  ;;  %v2221_v0 = vmul.f32 %v2157_v16, %v1893_v6  ;;  %v1215_v28 = vmax.f32 %v1151_v2, 0.0  ;;  %v1415_v53 = vsub.f32 1.0, %v1351_v62 }
 0x2e7   : > { %v1700_v17 = vsub.f32 %v8587_v56, %v9468_v31  ;;  %v1477_v38 = vmax.f32 %v1413_v24, 0.0  ;;  %v1762_v42 = vand.u32 2147483647, %v1698_v41  ;;  %v1962_v5 = vsub.f32 %v8590_v45, %v9474_v37  ;;  %v11908_v41 = vld [vmem:[#allocation37_spill] sm:$0xff] }
 0x2e8   : > { %v7332_v35 = vpack.c.bf16 %v1544_v18, %v1542_v8  ;;  %v7396_v30 = vpack.c.bf16 %v2221_v0, %v2219_v11  ;;  %v1479_v40 = vmax.f32 %v1415_v53, 0.0  ;;  %v1964_v14 = vsub.f32 %v8590_v45, %v9487_v13 }
 0x2e9   : > { %v1764_v1 = vand.u32 2147483647, %v1700_v17  ;;  %v1541_v25 = vmul.f32 %v1477_v38, %v1213_v43  ;;  %v1826_v6 = vsub.f32 1.0, %v1762_v42  ;;  %v2026_v63 = vand.u32 2147483647, %v1962_v5  ;;  %v11909_v43 = vld [vmem:[#allocation38_spill] sm:$0xff] }
 0x2ea   : > { %7333 = vmatprep.subr.bf16.mxu1 %v7332_v35  ;;  %v2444_v26 = vsub.f32 1.0, %v9411_v23  ;;  %7397 = vmatprep.subr.bf16.mxu0 %v7396_v30  ;;  %v1543_v56 = vmul.f32 %v1479_v40, %v1215_v28  ;;  %v2028_v55 = vand.u32 2147483647, %v1964_v14  ;;  %v2446_v8 = vsub.f32 1.0, %v9413_v51  ;;  %v308_v28 = vld [vmem:[%s9217_s15] sm:$0xff] }
 0x2eb   : > { %v1828_v54 = vsub.f32 1.0, %v1764_v1  ;;  %v1890_v50 = vmax.f32 %v1826_v6, 0.0  ;;  %v2090_v15 = vsub.f32 1.0, %v2026_v63  ;;  %v2582_v12 = vsub.f32 %v8727_v36, %v8504_v4  ;;  %v11910_v6 = vld [vmem:[#allocation32_spill] sm:$0xff] }
 0x2ec   : > { %v2508_v22 = vmax.f32 %v2444_v26, 0.0  ;;  %v7334_v45 = vpack.c.bf16 %v1543_v56, %v1541_v25  ;;  %v2092_v34 = vsub.f32 1.0, %v2028_v55  ;;  %v2510_v48 = vmax.f32 %v2446_v8, 0.0 }
 0x2ed   : > { %v1892_v32 = vmax.f32 %v1828_v54, 0.0  ;;  %v2154_v16 = vmax.f32 %v2090_v15, 0.0  ;;  %v11907_v23 = vsub.f32 %v8727_v36, %v8494_v47  ;;  %v2646_v62 = vand.u32 2147483647, %v2582_v12 }
 0x2ee   : > { %v2993_v51 = vsub.f32 %v11908_v41, %v8426_v59  ;;  %7335 = vmatpush1.bf16.msra.mxu1 %v7334_v45  ;;  %v2156_v18 = vmax.f32 %v2092_v34, 0.0  ;;  %v2995_v11 = vsub.f32 %v11908_v41, %v8449_v10  ;;  %v3257_v24 = vsub.f32 %v11909_v43, %v8494_v47 }
 0x2ef   : > { %v2644_v2 = vand.u32 2147483647, %v11907_v23  ;;  %v3259_v0 = vsub.f32 %v11909_v43, %v8504_v4  ;;  %v2218_v53 = vmul.f32 %v2154_v16, %v1890_v50  ;;  %v2710_v35 = vsub.f32 1.0, %v2646_v62 }
 0x2f0   : > { %v3057_v38 = vand.u32 2147483647, %v2993_v51  ;;  %v2220_v42 = vmul.f32 %v2156_v18, %v1892_v32  ;;  %v3059_v5 = vand.u32 2147483647, %v2995_v11  ;;  %v3321_v30 = vand.u32 2147483647, %v3257_v24 }
 0x2f1   : > { %v2708_v17 = vsub.f32 1.0, %v2644_v2  ;;  %v3323_v40 = vand.u32 2147483647, %v3259_v0  ;;  %v2774_v14 = vmax.f32 %v2710_v35, 0.0  ;;  %1610 = vmatmul.mubr.f32.vlgmr.msra.gmra.mrb[0].mxu1 %v308_v28  ;;  %v2315_v63 = vsub.f32 %v11910_v6, %v8426_v59  ;;  %v11911_v18 = vld [vmem:[#allocation33_spill] sm:$0xff] }
 0x2f2   : > { %v3121_v25 = vsub.f32 1.0, %v3057_v38  ;;  %v7398_v26 = vpack.c.bf16 %v2220_v42, %v2218_v53  ;;  %v3123_v56 = vsub.f32 1.0, %v3059_v5  ;;  %v3385_v54 = vsub.f32 1.0, %v3321_v30  ;;  %2963 = vmatprep.mubr.f32.mxu1 %v9220_v33  ;;  %v11912_v5 = vld [vmem:[#allocation34_spill] sm:$0xff] }
 0x2f3   : > { %v2772_v1 = vmax.f32 %v2708_v17, 0.0  ;;  %v3387_v55 = vsub.f32 1.0, %v3323_v40  ;;  %v2838_v50 = vmul.f32 %v2774_v14, %v2510_v48  ;;  %v2317_v12 = vsub.f32 %v11910_v6, %v8449_v10  ;;  %v7900_v40 = vld [vmem:[%s9217_s15 + $0x8] sm:$0xff] }
 0x2f4   : > { %v3185_v15 = vmax.f32 %v3121_v25, 0.0  ;;  %7399 = vmatpush1.bf16.msra.mxu0 %v7398_v26  ;;  %v3187_v45 = vmax.f32 %v3123_v56, 0.0  ;;  %v3449_v32 = vmax.f32 %v3385_v54, 0.0  ;;  %v2379_v16 = vand.u32 2147483647, %v2315_v63 }
 0x2f5   : > { %v2836_v8 = vmul.f32 %v2772_v1, %v2508_v22  ;;  %v3451_v34 = vmax.f32 %v3387_v55, 0.0  ;;  %v2381_v2 = vand.u32 2147483647, %v2317_v12  ;;  %v2579_v62 = vsub.f32 %v8694_v39, %v8494_v47 }
 0x2f6   : > { %v2581_v33 = vsub.f32 %v8694_v39, %v8504_v4  ;;  %v3513_v22 = vmul.f32 %v3449_v32, %v3185_v15  ;;  %v2443_v51 = vsub.f32 1.0, %v2379_v16  ;;  %v2992_v11 = vsub.f32 %v11911_v18, %v8426_v59 }
 0x2f7   : > { %v7400_v23 = vpack.c.bf16 %v2838_v50, %v2836_v8  ;;  %v3515_v48 = vmul.f32 %v3451_v34, %v3187_v45  ;;  %2287 = vmatmul.mubr.f32.vlgmr.msra.gmra.mrb[8].mxu0 %v308_v28  ;;  %v2445_v24 = vsub.f32 1.0, %v2381_v2  ;;  %v2643_v0 = vand.u32 2147483647, %v2579_v62 }
 0x2f8   : > { %v2645_v53 = vand.u32 2147483647, %v2581_v33  ;;  %v2994_v17 = vsub.f32 %v11911_v18, %v8449_v10  ;;  %v2507_v38 = vmax.f32 %v2443_v51, 0.0  ;;  %v3056_v42 = vand.u32 2147483647, %v2992_v11  ;;  %3640 = vmatprep.mubr.f32.mxu0 %v7900_v40 }
 0x2f9   : > { %7401 = vmatprep.subr.bf16.mxu1 %v7400_v23  ;;  %v7464_v35 = vpack.c.bf16 %v3515_v48, %v3513_v22  ;;  %v3256_v30 = vsub.f32 %v11912_v5, %v8494_v47  ;;  %v2509_v1 = vmax.f32 %v2445_v24, 0.0  ;;  %v2707_v14 = vsub.f32 1.0, %v2643_v0 }
 0x2fa   : > { %v2709_v25 = vsub.f32 1.0, %v2645_v53  ;;  %v3058_v63 = vand.u32 2147483647, %v2994_v17  ;;  %v3120_v28 = vsub.f32 1.0, %v3056_v42  ;;  %v3258_v26 = vsub.f32 %v11912_v5, %v8504_v4 }
 0x2fb   : > { %7465 = vmatprep.subr.bf16.mxu0 %v7464_v35  ;;  %v3320_v56 = vand.u32 2147483647, %v3256_v30  ;;  %v2320_v54 = vsub.f32 %v8629_v60, %v8455_v49  ;;  %v2771_v55 = vmax.f32 %v2707_v14, 0.0  ;;  %v2322_v15 = vsub.f32 %v8629_v60, %v8464_v57 }
 0x2fc   : > { %v2773_v8 = vmax.f32 %v2709_v25, 0.0  ;;  %v3122_v50 = vsub.f32 1.0, %v3058_v63  ;;  %v3184_v12 = vmax.f32 %v3120_v28, 0.0  ;;  %v3322_v45 = vand.u32 2147483647, %v3258_v26 }
 0x2fd   : > { %v3384_v32 = vsub.f32 1.0, %v3320_v56  ;;  %v2384_v34 = vand.u32 2147483647, %v2320_v54  ;;  %v2835_v16 = vmul.f32 %v2771_v55, %v2507_v38  ;;  %v2386_v62 = vand.u32 2147483647, %v2322_v15 }
 0x2fe   : > { %v2837_v23 = vmul.f32 %v2773_v8, %v2509_v1  ;;  %v3186_v2 = vmax.f32 %v3122_v50, 0.0  ;;  %v3386_v33 = vsub.f32 1.0, %v3322_v45  ;;  %v2584_v51 = vsub.f32 %v8727_v36, %v8515_v61 }
 0x2ff   : > { %v3448_v22 = vmax.f32 %v3384_v32, 0.0  ;;  %v2448_v48 = vsub.f32 1.0, %v2384_v34  ;;  %v2450_v24 = vsub.f32 1.0, %v2386_v62  ;;  %v2586_v0 = vsub.f32 %v8727_v36, %v8522_v3 }
 0x300   : > { %v7402_v11 = vpack.c.bf16 %v2837_v23, %v2835_v16  ;;  %v2997_v53 = vsub.f32 %v11908_v41, %v8455_v49  ;;  %v3450_v17 = vmax.f32 %v3386_v33, 0.0  ;;  %v2648_v42 = vand.u32 2147483647, %v2584_v51 }
 0x301   : > { %v3512_v35 = vmul.f32 %v3448_v22, %v3184_v12  ;;  %v2512_v38 = vmax.f32 %v2448_v48, 0.0  ;;  %v2514_v30 = vmax.f32 %v2450_v24, 0.0  ;;  %v2650_v40 = vand.u32 2147483647, %v2586_v0 }
 0x302   : > { %7403 = vmatpush1.bf16.msra.mxu1 %v7402_v11  ;;  %v2999_v1 = vsub.f32 %v11908_v41, %v8464_v57  ;;  %v3061_v14 = vand.u32 2147483647, %v2997_v53  ;;  %v3514_v25 = vmul.f32 %v3450_v17, %v3186_v2  ;;  %v2712_v63 = vsub.f32 1.0, %v2648_v42 }
 0x303   : > { %v3261_v28 = vsub.f32 %v11909_v43, %v8515_v61  ;;  %v3263_v26 = vsub.f32 %v11909_v43, %v8522_v3  ;;  %v2714_v56 = vsub.f32 1.0, %v2650_v40  ;;  %v2319_v8 = vsub.f32 %v11910_v6, %v8455_v49 }
 0x304   : > { %v3063_v54 = vand.u32 2147483647, %v2999_v1  ;;  %v3125_v55 = vsub.f32 1.0, %v3061_v14  ;;  %v7466_v50 = vpack.c.bf16 %v3514_v25, %v3512_v35  ;;  %v2776_v15 = vmax.f32 %v2712_v63, 0.0 }
 0x305   : > { %v3325_v12 = vand.u32 2147483647, %v3261_v28  ;;  %v3327_v45 = vand.u32 2147483647, %v3263_v26  ;;  %v2778_v32 = vmax.f32 %v2714_v56, 0.0  ;;  %v2321_v23 = vsub.f32 %v11910_v6, %v8464_v57 }
 0x306   : > { %v3127_v34 = vsub.f32 1.0, %v3063_v54  ;;  %v3189_v16 = vmax.f32 %v3125_v55, 0.0  ;;  %7467 = vmatpush1.bf16.msra.mxu0 %v7466_v50  ;;  %v2840_v2 = vmul.f32 %v2776_v15, %v2512_v38  ;;  %v2383_v22 = vand.u32 2147483647, %v2319_v8 }
 0x307   : > { %v3389_v62 = vsub.f32 1.0, %v3325_v12  ;;  %v3391_v33 = vsub.f32 1.0, %v3327_v45  ;;  %v2842_v48 = vmul.f32 %v2778_v32, %v2514_v30  ;;  %v2385_v11 = vand.u32 2147483647, %v2321_v23 }
 0x308   : > { %v3191_v51 = vmax.f32 %v3127_v34, 0.0  ;;  %v2583_v24 = vsub.f32 %v8694_v39, %v8515_v61  ;;  %v2447_v17 = vsub.f32 1.0, %v2383_v22  ;;  %v2585_v35 = vsub.f32 %v8694_v39, %v8522_v3 }
 0x309   : > { %v3453_v0 = vmax.f32 %v3389_v62, 0.0  ;;  %v3455_v53 = vmax.f32 %v3391_v33, 0.0  ;;  %v7404_v42 = vpack.c.bf16 %v2842_v48, %v2840_v2  ;;  %v2449_v40 = vsub.f32 1.0, %v2385_v11 }
 0x30a   : > { %v2647_v1 = vand.u32 2147483647, %v2583_v24  ;;  %v2996_v38 = vsub.f32 %v11911_v18, %v8455_v49  ;;  %v2511_v30 = vmax.f32 %v2447_v17, 0.0  ;;  %v2649_v63 = vand.u32 2147483647, %v2585_v35 }
 0x30b   : > { %v3517_v14 = vmul.f32 %v3453_v0, %v3189_v16  ;;  %v3519_v25 = vmul.f32 %v3455_v53, %v3191_v51  ;;  %7405 = vmatprep.subr.bf16.mxu1 %v7404_v42  ;;  %v2513_v28 = vmax.f32 %v2449_v40, 0.0  ;;  %v2998_v56 = vsub.f32 %v11911_v18, %v8464_v57 }
 0x30c   : > { %v2711_v26 = vsub.f32 1.0, %v2647_v1  ;;  %v3060_v54 = vand.u32 2147483647, %v2996_v38  ;;  %v2713_v8 = vsub.f32 1.0, %v2649_v63  ;;  %v3260_v50 = vsub.f32 %v11912_v5, %v8515_v61 }
 0x30d   : > { %v7468_v55 = vpack.c.bf16 %v3519_v25, %v3517_v14  ;;  %v3262_v15 = vsub.f32 %v11912_v5, %v8522_v3  ;;  %v3062_v45 = vand.u32 2147483647, %v2998_v56  ;;  %v2324_v34 = vsub.f32 %v8629_v60, %v11845_v19 }
 0x30e   : > { %v2775_v12 = vmax.f32 %v2711_v26, 0.0  ;;  %v3124_v32 = vsub.f32 1.0, %v3060_v54  ;;  %v2777_v16 = vmax.f32 %v2713_v8, 0.0  ;;  %v3324_v23 = vand.u32 2147483647, %v3260_v50 }
 0x30f   : > { %7469 = vmatprep.subr.bf16.mxu0 %v7468_v55  ;;  %v3326_v2 = vand.u32 2147483647, %v3262_v15  ;;  %v2326_v62 = vsub.f32 %v8629_v60, %v11846_v52  ;;  %v3126_v22 = vsub.f32 1.0, %v3062_v45  ;;  %v2388_v51 = vand.u32 2147483647, %v2324_v34 }
 0x310   : > { %v2839_v33 = vmul.f32 %v2775_v12, %v2511_v30  ;;  %v3188_v48 = vmax.f32 %v3124_v32, 0.0  ;;  %v2841_v11 = vmul.f32 %v2777_v16, %v2513_v28  ;;  %v3388_v24 = vsub.f32 1.0, %v3324_v23 }
 0x311   : > { %v3390_v0 = vsub.f32 1.0, %v3326_v2  ;;  %v2390_v53 = vand.u32 2147483647, %v2326_v62  ;;  %v3190_v17 = vmax.f32 %v3126_v22, 0.0  ;;  %v2452_v35 = vsub.f32 1.0, %v2388_v51 }
 0x312   : > { %v2588_v42 = vsub.f32 %v8727_v36, %v8526_v58  ;;  %v2590_v40 = vsub.f32 %v8727_v36, %v8530_v20  ;;  %v7406_v1 = vpack.c.bf16 %v2841_v11, %v2839_v33  ;;  %v3452_v38 = vmax.f32 %v3388_v24, 0.0 }
 0x313   : > { %v3454_v14 = vmax.f32 %v3390_v0, 0.0  ;;  %v2454_v25 = vsub.f32 1.0, %v2390_v53  ;;  %v2516_v30 = vmax.f32 %v2452_v35, 0.0  ;;  %v3001_v28 = vsub.f32 %v11908_v41, %v11845_v19 }
 0x314   : > { %v2652_v63 = vand.u32 2147483647, %v2588_v42  ;;  %v2654_v26 = vand.u32 2147483647, %v2590_v40  ;;  %7407 = vmatpush1.bf16.msra.mxu1 %v7406_v1  ;;  %v3516_v56 = vmul.f32 %v3452_v38, %v3188_v48  ;;  %v3003_v8 = vsub.f32 %v11908_v41, %v11846_v52 }
 0x315   : > { %v3518_v54 = vmul.f32 %v3454_v14, %v3190_v17  ;;  %v2518_v55 = vmax.f32 %v2454_v25, 0.0  ;;  %v3065_v12 = vand.u32 2147483647, %v3001_v28  ;;  %v3265_v45 = vsub.f32 %v11909_v43, %v8526_v58 }
 0x316   : > { %v2716_v50 = vsub.f32 1.0, %v2652_v63  ;;  %v2718_v15 = vsub.f32 1.0, %v2654_v26  ;;  %v3067_v34 = vand.u32 2147483647, %v3003_v8  ;;  %v3267_v16 = vsub.f32 %v11909_v43, %v8530_v20 }
 0x317   : > { %v7470_v32 = vpack.c.bf16 %v3518_v54, %v3516_v56  ;;  %v2323_v23 = vsub.f32 %v11910_v6, %v11845_v19  ;;  %v3129_v33 = vsub.f32 1.0, %v3065_v12  ;;  %v3329_v22 = vand.u32 2147483647, %v3265_v45 }
 0x318   : > { %v2780_v2 = vmax.f32 %v2716_v50, 0.0  ;;  %v2782_v62 = vmax.f32 %v2718_v15, 0.0  ;;  %v3131_v48 = vsub.f32 1.0, %v3067_v34  ;;  %v3331_v51 = vand.u32 2147483647, %v3267_v16 }
 0x319   : > { %7471 = vmatpush1.bf16.msra.mxu0 %v7470_v32  ;;  %v2325_v11 = vsub.f32 %v11910_v6, %v11846_v52  ;;  %v2387_v24 = vand.u32 2147483647, %v2323_v23  ;;  %v3193_v17 = vmax.f32 %v3129_v33, 0.0  ;;  %v3393_v35 = vsub.f32 1.0, %v3329_v22 }
 0x31a   : > { %v2844_v0 = vmul.f32 %v2780_v2, %v2516_v30  ;;  %v2846_v53 = vmul.f32 %v2782_v62, %v2518_v55  ;;  %v3195_v42 = vmax.f32 %v3131_v48, 0.0  ;;  %v3395_v40 = vsub.f32 1.0, %v3331_v51 }
 0x31b   : > { %v2389_v1 = vand.u32 2147483647, %v2325_v11  ;;  %v2451_v38 = vsub.f32 1.0, %v2387_v24  ;;  %v3457_v25 = vmax.f32 %v3393_v35, 0.0  ;;  %v2587_v63 = vsub.f32 %v8694_v39, %v8526_v58 }
 0x31c   : > { %v7408_v14 = vpack.c.bf16 %v2846_v53, %v2844_v0  ;;  %v2589_v26 = vsub.f32 %v8694_v39, %v8530_v20  ;;  %v3459_v28 = vmax.f32 %v3395_v40, 0.0  ;;  %v3000_v30 = vsub.f32 %v11911_v18, %v11845_v19 }
 0x31d   : > { %v2453_v56 = vsub.f32 1.0, %v2389_v1  ;;  %v2515_v54 = vmax.f32 %v2451_v38, 0.0  ;;  %v3521_v55 = vmul.f32 %v3457_v25, %v3193_v17  ;;  %v2651_v8 = vand.u32 2147483647, %v2587_v63 }
 0x31e   : > { %7409 = vmatprep.subr.bf16.mxu1 %v7408_v14  ;;  %v2653_v50 = vand.u32 2147483647, %v2589_v26  ;;  %v3002_v15 = vsub.f32 %v11911_v18, %v11846_v52  ;;  %v3523_v12 = vmul.f32 %v3459_v28, %v3195_v42  ;;  %v3064_v32 = vand.u32 2147483647, %v3000_v30  ;;  %v11913_v42 = vld [vmem:[#allocation16_spill] sm:$0xff] }
 0x31f   : > { %v2517_v45 = vmax.f32 %v2453_v56, 0.0  ;;  %v3264_v34 = vsub.f32 %v11912_v5, %v8526_v58  ;;  %v2715_v16 = vsub.f32 1.0, %v2651_v8  ;;  %v3266_v62 = vsub.f32 %v11912_v5, %v8530_v20  ;;  %v11914_v30 = vld [vmem:[#allocation24_spill] sm:$0xff] }
 0x320   : > { %v2717_v23 = vsub.f32 1.0, %v2653_v50  ;;  %v3066_v2 = vand.u32 2147483647, %v3002_v15  ;;  %v7472_v33 = vpack.c.bf16 %v3523_v12, %v3521_v55  ;;  %v3128_v22 = vsub.f32 1.0, %v3064_v32  ;;  %v11915_v15 = vld [vmem:[#allocation25_spill] sm:$0xff] }
 0x321   : > { %v3328_v48 = vand.u32 2147483647, %v3264_v34  ;;  %v2328_v51 = vsub.f32 %v8629_v60, %v11847_v7  ;;  %v2779_v11 = vmax.f32 %v2715_v16, 0.0  ;;  %v3330_v53 = vand.u32 2147483647, %v3266_v62 }
 0x322   : > { %v2781_v24 = vmax.f32 %v2717_v23, 0.0  ;;  %v3130_v0 = vsub.f32 1.0, %v3066_v2  ;;  %7473 = vmatprep.subr.bf16.mxu0 %v7472_v33  ;;  %v3192_v17 = vmax.f32 %v3128_v22, 0.0  ;;  %v2330_v40 = vsub.f32 %v8629_v60, %v11913_v42 }
 0x323   : > { %v3392_v35 = vsub.f32 1.0, %v3328_v48  ;;  %v2392_v1 = vand.u32 2147483647, %v2328_v51  ;;  %v2843_v38 = vmul.f32 %v2779_v11, %v2515_v54  ;;  %v3394_v63 = vsub.f32 1.0, %v3330_v53 }
 0x324   : > { %v2845_v14 = vmul.f32 %v2781_v24, %v2517_v45  ;;  %v3194_v25 = vmax.f32 %v3130_v0, 0.0  ;;  %v2394_v28 = vand.u32 2147483647, %v2330_v40  ;;  %v2592_v55 = vsub.f32 %v8727_v36, %v11914_v30 }
 0x325   : > { %v3456_v26 = vmax.f32 %v3392_v35, 0.0  ;;  %v2456_v56 = vsub.f32 1.0, %v2392_v1  ;;  %v3458_v50 = vmax.f32 %v3394_v63, 0.0  ;;  %v2594_v12 = vsub.f32 %v8727_v36, %v11915_v15 }
 0x326   : > { %v7410_v8 = vpack.c.bf16 %v2845_v14, %v2843_v38  ;;  %v3005_v32 = vsub.f32 %v11908_v41, %v11847_v7  ;;  %v2458_v16 = vsub.f32 1.0, %v2394_v28  ;;  %v2656_v45 = vand.u32 2147483647, %v2592_v55 }
 0x327   : > { %v3520_v34 = vmul.f32 %v3456_v26, %v3192_v17  ;;  %v2520_v54 = vmax.f32 %v2456_v56, 0.0  ;;  %v3522_v23 = vmul.f32 %v3458_v50, %v3194_v25  ;;  %v2658_v2 = vand.u32 2147483647, %v2594_v12 }
 0x328   : > { %7411 = vmatpush1.bf16.msra.mxu1 %v7410_v8  ;;  %v3007_v62 = vsub.f32 %v11908_v41, %v11913_v42  ;;  %v3069_v33 = vand.u32 2147483647, %v3005_v32  ;;  %v2522_v22 = vmax.f32 %v2458_v16, 0.0  ;;  %v2720_v48 = vsub.f32 1.0, %v2656_v45 }
 0x329   : > { %v3269_v51 = vsub.f32 %v11909_v43, %v11914_v30  ;;  %v3271_v11 = vsub.f32 %v11909_v43, %v11915_v15  ;;  %v7474_v24 = vpack.c.bf16 %v3522_v23, %v3520_v34  ;;  %v2722_v0 = vsub.f32 1.0, %v2658_v2 }
 0x32a   : > { %v3071_v53 = vand.u32 2147483647, %v3007_v62  ;;  %v3133_v17 = vsub.f32 1.0, %v3069_v33  ;;  %v2784_v35 = vmax.f32 %v2720_v48, 0.0  ;;  %v2327_v38 = vsub.f32 %v11910_v6, %v11847_v7 }
 0x32b   : > { %v3333_v40 = vand.u32 2147483647, %v3269_v51  ;;  %v3335_v1 = vand.u32 2147483647, %v3271_v11  ;;  %7475 = vmatpush1.bf16.msra.mxu0 %v7474_v24  ;;  %v2786_v14 = vmax.f32 %v2722_v0, 0.0  ;;  %v2329_v26 = vsub.f32 %v11910_v6, %v11913_v42 }
 0x32c   : > { %v3135_v25 = vsub.f32 1.0, %v3071_v53  ;;  %v3197_v63 = vmax.f32 %v3133_v17, 0.0  ;;  %v2848_v28 = vmul.f32 %v2784_v35, %v2520_v54  ;;  %v2391_v8 = vand.u32 2147483647, %v2327_v38 }
 0x32d   : > { %v3397_v56 = vsub.f32 1.0, %v3333_v40  ;;  %v3399_v55 = vsub.f32 1.0, %v3335_v1  ;;  %v2850_v50 = vmul.f32 %v2786_v14, %v2522_v22  ;;  %v2393_v32 = vand.u32 2147483647, %v2329_v26 }
 0x32e   : > { %v3199_v12 = vmax.f32 %v3135_v25, 0.0  ;;  %v2591_v34 = vsub.f32 %v8694_v39, %v11914_v30  ;;  %v2455_v23 = vsub.f32 1.0, %v2391_v8  ;;  %v2593_v2 = vsub.f32 %v8694_v39, %v11915_v15 }
 0x32f   : > { %v3461_v16 = vmax.f32 %v3397_v56, 0.0  ;;  %v3463_v45 = vmax.f32 %v3399_v55, 0.0  ;;  %v7412_v62 = vpack.c.bf16 %v2850_v50, %v2848_v28  ;;  %v2457_v33 = vsub.f32 1.0, %v2393_v32  ;;  %v11916_v28 = vld [vmem:[#allocation17_spill] sm:$0xff] }
 0x330   : > { %v2655_v48 = vand.u32 2147483647, %v2591_v34  ;;  %v3004_v54 = vsub.f32 %v11911_v18, %v11847_v7  ;;  %v2519_v22 = vmax.f32 %v2455_v23, 0.0  ;;  %v2657_v24 = vand.u32 2147483647, %v2593_v2 }
 0x331   : > { %v3525_v51 = vmul.f32 %v3461_v16, %v3197_v63  ;;  %v3527_v11 = vmul.f32 %v3463_v45, %v3199_v12  ;;  %7413 = vmatprep.subr.bf16.mxu1 %v7412_v62  ;;  %v2521_v0 = vmax.f32 %v2457_v33, 0.0  ;;  %v3006_v17 = vsub.f32 %v11911_v18, %v11913_v42  ;;  %v11917_v12 = vld [vmem:[#allocation18_spill] sm:$0xff] }
 0x332   : > { %v2719_v53 = vsub.f32 1.0, %v2655_v48  ;;  %v3068_v35 = vand.u32 2147483647, %v3004_v54  ;;  %v2721_v1 = vsub.f32 1.0, %v2657_v24  ;;  %v3268_v38 = vsub.f32 %v11912_v5, %v11914_v30 }
 0x333   : > { %v7476_v40 = vpack.c.bf16 %v3527_v11, %v3525_v51  ;;  %v3270_v14 = vsub.f32 %v11912_v5, %v11915_v15  ;;  %v3070_v63 = vand.u32 2147483647, %v3006_v17  ;;  %v2332_v56 = vsub.f32 %v8629_v60, %v11916_v28  ;;  %v11918_v11 = vld [vmem:[#allocation26_spill] sm:$0xff] }
 0x334   : > { %v2783_v25 = vmax.f32 %v2719_v53, 0.0  ;;  %v3132_v26 = vsub.f32 1.0, %v3068_v35  ;;  %v2785_v55 = vmax.f32 %v2721_v1, 0.0  ;;  %v3332_v8 = vand.u32 2147483647, %v3268_v38  ;;  %v11919_v53 = vld [vmem:[#allocation27_spill] sm:$0xff] }
 0x335   : > { %7477 = vmatprep.subr.bf16.mxu0 %v7476_v40  ;;  %v3334_v50 = vand.u32 2147483647, %v3270_v14  ;;  %v2334_v32 = vsub.f32 %v8629_v60, %v11917_v12  ;;  %v3134_v16 = vsub.f32 1.0, %v3070_v63  ;;  %v2396_v23 = vand.u32 2147483647, %v2332_v56 }
 0x336   : > { %v2847_v34 = vmul.f32 %v2783_v25, %v2519_v22  ;;  %v3196_v45 = vmax.f32 %v3132_v26, 0.0  ;;  %v2849_v2 = vmul.f32 %v2785_v55, %v2521_v0  ;;  %v3396_v62 = vsub.f32 1.0, %v3332_v8 }
 0x337   : > { %v3398_v33 = vsub.f32 1.0, %v3334_v50  ;;  %v2398_v48 = vand.u32 2147483647, %v2334_v32  ;;  %v3198_v54 = vmax.f32 %v3134_v16, 0.0  ;;  %v2460_v51 = vsub.f32 1.0, %v2396_v23 }
 0x338   : > { %v2596_v24 = vsub.f32 %v8727_v36, %v11918_v11  ;;  %v2598_v17 = vsub.f32 %v8727_v36, %v11919_v53  ;;  %v7414_v35 = vpack.c.bf16 %v2849_v2, %v2847_v34  ;;  %v3460_v40 = vmax.f32 %v3396_v62, 0.0 }
 0x339   : > { %v3462_v1 = vmax.f32 %v3398_v33, 0.0  ;;  %v2462_v38 = vsub.f32 1.0, %v2398_v48  ;;  %v2524_v22 = vmax.f32 %v2460_v51, 0.0  ;;  %v3009_v0 = vsub.f32 %v11908_v41, %v11916_v28 }
 0x33a   : > { %v2660_v14 = vand.u32 2147483647, %v2596_v24  ;;  %v2662_v25 = vand.u32 2147483647, %v2598_v17  ;;  %7415 = vmatpush1.bf16.msra.mxu1 %v7414_v35  ;;  %v3524_v63 = vmul.f32 %v3460_v40, %v3196_v45  ;;  %v3011_v55 = vsub.f32 %v11908_v41, %v11917_v12 }
 0x33b   : > { %v3526_v26 = vmul.f32 %v3462_v1, %v3198_v54  ;;  %v2526_v56 = vmax.f32 %v2462_v38, 0.0  ;;  %v3073_v32 = vand.u32 2147483647, %v3009_v0  ;;  %v3273_v34 = vsub.f32 %v11909_v43, %v11918_v11 }
 0x33c   : > { %v2724_v8 = vsub.f32 1.0, %v2660_v14  ;;  %v2726_v50 = vsub.f32 1.0, %v2662_v25  ;;  %v3075_v23 = vand.u32 2147483647, %v3011_v55  ;;  %v3275_v2 = vsub.f32 %v11909_v43, %v11919_v53 }
 0x33d   : > { %v7478_v16 = vpack.c.bf16 %v3526_v26, %v3524_v63  ;;  %v2331_v62 = vsub.f32 %v11910_v6, %v11916_v28  ;;  %v3137_v48 = vsub.f32 1.0, %v3073_v32  ;;  %v3337_v54 = vand.u32 2147483647, %v3273_v34 }
 0x33e   : > { %v2788_v45 = vmax.f32 %v2724_v8, 0.0  ;;  %v2790_v33 = vmax.f32 %v2726_v50, 0.0  ;;  %v3139_v51 = vsub.f32 1.0, %v3075_v23  ;;  %v3339_v24 = vand.u32 2147483647, %v3275_v2 }
 0x33f   : > { %7479 = vmatpush1.bf16.msra.mxu0 %v7478_v16  ;;  %v2333_v17 = vsub.f32 %v11910_v6, %v11917_v12  ;;  %v2395_v35 = vand.u32 2147483647, %v2331_v62  ;;  %v3201_v38 = vmax.f32 %v3137_v48, 0.0  ;;  %v3401_v14 = vsub.f32 1.0, %v3337_v54 }
 0x340   : > { %v2852_v40 = vmul.f32 %v2788_v45, %v2524_v22  ;;  %v2854_v1 = vmul.f32 %v2790_v33, %v2526_v56  ;;  %v3203_v25 = vmax.f32 %v3139_v51, 0.0  ;;  %v3403_v0 = vsub.f32 1.0, %v3339_v24 }
 0x341   : > { %v2397_v63 = vand.u32 2147483647, %v2333_v17  ;;  %v2459_v26 = vsub.f32 1.0, %v2395_v35  ;;  %v3465_v8 = vmax.f32 %v3401_v14, 0.0  ;;  %v2595_v50 = vsub.f32 %v8694_v39, %v11918_v11 }
 0x342   : > { %v7416_v55 = vpack.c.bf16 %v2854_v1, %v2852_v40  ;;  %v2597_v32 = vsub.f32 %v8694_v39, %v11919_v53  ;;  %v3467_v34 = vmax.f32 %v3403_v0, 0.0  ;;  %v3008_v22 = vsub.f32 %v11911_v18, %v11916_v28  ;;  %v11920_v0 = vld [vmem:[#allocation19_spill] sm:$0xff] }
 0x343   : > { %v2461_v16 = vsub.f32 1.0, %v2397_v63  ;;  %v2523_v23 = vmax.f32 %v2459_v26, 0.0  ;;  %v3529_v56 = vmul.f32 %v3465_v8, %v3201_v38  ;;  %v2659_v2 = vand.u32 2147483647, %v2595_v50 }
 0x344   : > { %7417 = vmatprep.subr.bf16.mxu1 %v7416_v55  ;;  %v2661_v62 = vand.u32 2147483647, %v2597_v32  ;;  %v3010_v45 = vsub.f32 %v11911_v18, %v11917_v12  ;;  %v3531_v33 = vmul.f32 %v3467_v34, %v3203_v25  ;;  %v3072_v54 = vand.u32 2147483647, %v3008_v22  ;;  %v11921_v34 = vld [vmem:[#allocation20_spill] sm:$0xff] }
 0x345   : > { %v2525_v48 = vmax.f32 %v2461_v16, 0.0  ;;  %v3272_v51 = vsub.f32 %v11912_v5, %v11918_v11  ;;  %v2723_v24 = vsub.f32 1.0, %v2659_v2  ;;  %v3274_v40 = vsub.f32 %v11912_v5, %v11919_v53  ;;  %v11922_v53 = vld [vmem:[#allocation28_spill] sm:$0xff] }
 0x346   : > { %v2725_v17 = vsub.f32 1.0, %v2661_v62  ;;  %v3074_v35 = vand.u32 2147483647, %v3010_v45  ;;  %v7480_v1 = vpack.c.bf16 %v3531_v33, %v3529_v56  ;;  %v3136_v14 = vsub.f32 1.0, %v3072_v54 }
 0x347   : > { %v3336_v38 = vand.u32 2147483647, %v3272_v51  ;;  %v2336_v63 = vsub.f32 %v8629_v60, %v11920_v0  ;;  %v2787_v26 = vmax.f32 %v2723_v24, 0.0  ;;  %v3338_v8 = vand.u32 2147483647, %v3274_v40  ;;  %v11923_v40 = vld [vmem:[#allocation29_spill] sm:$0xff] }
 0x348   : > { %v2789_v55 = vmax.f32 %v2725_v17, 0.0  ;;  %v3138_v25 = vsub.f32 1.0, %v3074_v35  ;;  %7481 = vmatprep.subr.bf16.mxu0 %v7480_v1  ;;  %v3200_v50 = vmax.f32 %v3136_v14, 0.0  ;;  %v2338_v16 = vsub.f32 %v8629_v60, %v11921_v34 }
 0x349   : > { %v3400_v32 = vsub.f32 1.0, %v3336_v38  ;;  %v2400_v22 = vand.u32 2147483647, %v2336_v63  ;;  %v2851_v2 = vmul.f32 %v2787_v26, %v2523_v23  ;;  %v3402_v56 = vsub.f32 1.0, %v3338_v8 }
 0x34a   : > { %v2853_v62 = vmul.f32 %v2789_v55, %v2525_v48  ;;  %v3202_v45 = vmax.f32 %v3138_v25, 0.0  ;;  %v2402_v54 = vand.u32 2147483647, %v2338_v16  ;;  %v2600_v24 = vsub.f32 %v8727_v36, %v11922_v53 }
 0x34b   : > { %v3464_v33 = vmax.f32 %v3400_v32, 0.0  ;;  %v2464_v51 = vsub.f32 1.0, %v2400_v22  ;;  %v3466_v35 = vmax.f32 %v3402_v56, 0.0  ;;  %v2602_v1 = vsub.f32 %v8727_v36, %v11923_v40 }
 0x34c   : > { %v7418_v17 = vpack.c.bf16 %v2853_v62, %v2851_v2  ;;  %v3013_v14 = vsub.f32 %v11908_v41, %v11920_v0  ;;  %v2466_v63 = vsub.f32 1.0, %v2402_v54  ;;  %v2664_v48 = vand.u32 2147483647, %v2600_v24 }
 0x34d   : > { %v3528_v38 = vmul.f32 %v3464_v33, %v3200_v50  ;;  %v2528_v23 = vmax.f32 %v2464_v51, 0.0  ;;  %v3530_v26 = vmul.f32 %v3466_v35, %v3202_v45  ;;  %v2666_v55 = vand.u32 2147483647, %v2602_v1 }
 0x34e   : > { %7419 = vmatpush1.bf16.msra.mxu1 %v7418_v17  ;;  %v3015_v25 = vsub.f32 %v11908_v41, %v11921_v34  ;;  %v3077_v8 = vand.u32 2147483647, %v3013_v14  ;;  %v2530_v32 = vmax.f32 %v2466_v63, 0.0  ;;  %v2728_v16 = vsub.f32 1.0, %v2664_v48 }
 0x34f   : > { %v3277_v22 = vsub.f32 %v11909_v43, %v11922_v53  ;;  %v3279_v2 = vsub.f32 %v11909_v43, %v11923_v40  ;;  %v7482_v62 = vpack.c.bf16 %v3530_v26, %v3528_v38  ;;  %v2730_v50 = vsub.f32 1.0, %v2666_v55 }
 0x350   : > { %v3079_v56 = vand.u32 2147483647, %v3015_v25  ;;  %v3141_v33 = vsub.f32 1.0, %v3077_v8  ;;  %v2792_v54 = vmax.f32 %v2728_v16, 0.0  ;;  %v2335_v24 = vsub.f32 %v11910_v6, %v11920_v0 }
 0x351   : > { %v3341_v51 = vand.u32 2147483647, %v3277_v22  ;;  %v3343_v45 = vand.u32 2147483647, %v3279_v2  ;;  %7483 = vmatpush1.bf16.msra.mxu0 %v7482_v62  ;;  %v2794_v17 = vmax.f32 %v2730_v50, 0.0  ;;  %v2337_v14 = vsub.f32 %v11910_v6, %v11921_v34 }
 0x352   : > { %v3143_v35 = vsub.f32 1.0, %v3079_v56  ;;  %v3205_v1 = vmax.f32 %v3141_v33, 0.0  ;;  %v2856_v63 = vmul.f32 %v2792_v54, %v2528_v23  ;;  %v2399_v38 = vand.u32 2147483647, %v2335_v24 }
 0x353   : > { %v3405_v48 = vsub.f32 1.0, %v3341_v51  ;;  %v3407_v11 = vsub.f32 1.0, %v3343_v45  ;;  %v2858_v26 = vmul.f32 %v2794_v17, %v2530_v32  ;;  %v2401_v25 = vand.u32 2147483647, %v2337_v14 }
 0x354   : > { %v3207_v55 = vmax.f32 %v3143_v35, 0.0  ;;  %v2599_v8 = vsub.f32 %v8694_v39, %v11922_v53  ;;  %v2463_v2 = vsub.f32 1.0, %v2399_v38  ;;  %v2601_v62 = vsub.f32 %v8694_v39, %v11923_v40 }
 0x355   : > { %v3469_v16 = vmax.f32 %v3405_v48, 0.0  ;;  %v3471_v22 = vmax.f32 %v3407_v11, 0.0  ;;  %v7420_v50 = vpack.c.bf16 %v2858_v26, %v2856_v63  ;;  %v2465_v56 = vsub.f32 1.0, %v2401_v25  ;;  %v11924_v25 = vld [vmem:[#allocation30_spill] sm:$0xff] }
 0x356   : > { %v2663_v33 = vand.u32 2147483647, %v2599_v8  ;;  %v3012_v23 = vsub.f32 %v11911_v18, %v11920_v0  ;;  %v2527_v32 = vmax.f32 %v2463_v2, 0.0  ;;  %v2665_v45 = vand.u32 2147483647, %v2601_v62  ;;  %v11925_v62 = vld [vmem:[#allocation31_spill] sm:$0xff] }
 0x357   : > { %v3533_v54 = vmul.f32 %v3469_v16, %v3205_v1  ;;  %v3535_v51 = vmul.f32 %v3471_v22, %v3207_v55  ;;  %7421 = vmatprep.subr.bf16.mxu1 %v7420_v50  ;;  %v2529_v24 = vmax.f32 %v2465_v56, 0.0  ;;  %v3014_v11 = vsub.f32 %v11911_v18, %v11921_v34 }
 0x358   : > { %v2727_v17 = vsub.f32 1.0, %v2663_v33  ;;  %v3076_v35 = vand.u32 2147483647, %v3012_v23  ;;  %v2729_v48 = vsub.f32 1.0, %v2665_v45  ;;  %v3276_v63 = vsub.f32 %v11912_v5, %v11922_v53  ;;  %v11926_v53 = vld [vmem:[#allocation14_spill] sm:$0xff] }
 0x359   : > { %v7484_v14 = vpack.c.bf16 %v3535_v51, %v3533_v54  ;;  %v3278_v38 = vsub.f32 %v11912_v5, %v11923_v40  ;;  %v3078_v1 = vand.u32 2147483647, %v3014_v11  ;;  %v2340_v8 = vsub.f32 %v8629_v60, %v11924_v25 }
 0x35a   : > { %v2791_v26 = vmax.f32 %v2727_v17, 0.0  ;;  %v3140_v55 = vsub.f32 1.0, %v3076_v35  ;;  %v2793_v16 = vmax.f32 %v2729_v48, 0.0  ;;  %v3340_v22 = vand.u32 2147483647, %v3276_v63 }
 0x35b   : > { %7485 = vmatprep.subr.bf16.mxu0 %v7484_v14  ;;  %v3342_v2 = vand.u32 2147483647, %v3278_v38  ;;  %v2342_v50 = vsub.f32 %v8629_v60, %v11925_v62  ;;  %v3142_v33 = vsub.f32 1.0, %v3078_v1  ;;  %v2404_v54 = vand.u32 2147483647, %v2340_v8  ;;  %v11927_v14 = vld [vmem:[#allocation15_spill] sm:$0xff] }
 0x35c   : > { %v2855_v56 = vmul.f32 %v2791_v26, %v2527_v32  ;;  %v3204_v23 = vmax.f32 %v3140_v55, 0.0  ;;  %v2857_v51 = vmul.f32 %v2793_v16, %v2529_v24  ;;  %v3404_v45 = vsub.f32 1.0, %v3340_v22 }
 0x35d   : > { %v3406_v40 = vsub.f32 1.0, %v3342_v2  ;;  %v2406_v17 = vand.u32 2147483647, %v2342_v50  ;;  %v3206_v11 = vmax.f32 %v3142_v33, 0.0  ;;  %v2468_v35 = vsub.f32 1.0, %v2404_v54 }
 0x35e   : > { %v2604_v34 = vsub.f32 %v8727_v36, %v11926_v53  ;;  %v2606_v48 = vsub.f32 %v8727_v36, %v11927_v14  ;;  %v7422_v63 = vpack.c.bf16 %v2857_v51, %v2855_v56  ;;  %v3468_v38 = vmax.f32 %v3404_v45, 0.0 }
 0x35f   : > { %v3470_v0 = vmax.f32 %v3406_v40, 0.0  ;;  %v2470_v12 = vsub.f32 1.0, %v2406_v17  ;;  %v2532_v32 = vmax.f32 %v2468_v35, 0.0  ;;  %v3017_v24 = vsub.f32 %v11908_v41, %v11924_v25 }
 0x360   : > { %v2668_v26 = vand.u32 2147483647, %v2604_v34  ;;  %v2670_v1 = vand.u32 2147483647, %v2606_v48  ;;  %7423 = vmatpush1.bf16.msra.mxu1 %v7422_v63  ;;  %v3532_v55 = vmul.f32 %v3468_v38, %v3204_v23  ;;  %v3019_v22 = vsub.f32 %v11908_v41, %v11925_v62 }
 0x361   : > { %v3534_v8 = vmul.f32 %v3470_v0, %v3206_v11  ;;  %v2534_v16 = vmax.f32 %v2470_v12, 0.0  ;;  %v3081_v33 = vand.u32 2147483647, %v3017_v24  ;;  %v3281_v40 = vsub.f32 %v11909_v43, %v11926_v53 }
 0x362   : > { %v2732_v2 = vsub.f32 1.0, %v2668_v26  ;;  %v2734_v50 = vsub.f32 1.0, %v2670_v1  ;;  %v3083_v54 = vand.u32 2147483647, %v3019_v22  ;;  %v3283_v34 = vsub.f32 %v11909_v43, %v11927_v14 }
 0x363   : > { %v7486_v56 = vpack.c.bf16 %v3534_v8, %v3532_v55  ;;  %v2339_v51 = vsub.f32 %v11910_v6, %v11924_v25  ;;  %v3145_v12 = vsub.f32 1.0, %v3081_v33  ;;  %v3345_v45 = vand.u32 2147483647, %v3281_v40 }
 0x364   : > { %v2796_v23 = vmax.f32 %v2732_v2, 0.0  ;;  %v2798_v0 = vmax.f32 %v2734_v50, 0.0  ;;  %v3147_v17 = vsub.f32 1.0, %v3083_v54  ;;  %v3347_v11 = vand.u32 2147483647, %v3283_v34 }
 0x365   : > { %7487 = vmatpush1.bf16.msra.mxu0 %v7486_v56  ;;  %v2341_v35 = vsub.f32 %v11910_v6, %v11925_v62  ;;  %v2403_v48 = vand.u32 2147483647, %v2339_v51  ;;  %v3209_v26 = vmax.f32 %v3145_v12, 0.0  ;;  %v3409_v1 = vsub.f32 1.0, %v3345_v45 }
 0x366   : > { %v2860_v63 = vmul.f32 %v2796_v23, %v2532_v32  ;;  %v2862_v38 = vmul.f32 %v2798_v0, %v2534_v16  ;;  %v3211_v24 = vmax.f32 %v3147_v17, 0.0  ;;  %v3411_v55 = vsub.f32 1.0, %v3347_v11 }
 0x367   : > { %v2405_v8 = vand.u32 2147483647, %v2341_v35  ;;  %v2467_v22 = vsub.f32 1.0, %v2403_v48  ;;  %v3473_v2 = vmax.f32 %v3409_v1, 0.0  ;;  %v2603_v50 = vsub.f32 %v8694_v39, %v11926_v53  ;;  %v11928_v1 = vld [vmem:[#allocation11_spill] sm:$0xff] }
 0x368   : > { %v7424_v28 = vpack.c.bf16 %v2862_v38, %v2860_v63  ;;  %v2605_v33 = vsub.f32 %v8694_v39, %v11927_v14  ;;  %v3475_v40 = vmax.f32 %v3411_v55, 0.0  ;;  %v3016_v32 = vsub.f32 %v11911_v18, %v11924_v25 }
 0x369   : > { %v2469_v56 = vsub.f32 1.0, %v2405_v8  ;;  %v2531_v54 = vmax.f32 %v2467_v22, 0.0  ;;  %v3537_v16 = vmul.f32 %v3473_v2, %v3209_v26  ;;  %v2667_v34 = vand.u32 2147483647, %v2603_v50 }
 0x36a   : > { %7425 = vmatprep.subr.bf16.mxu1 %v7424_v28  ;;  %v2669_v51 = vand.u32 2147483647, %v2605_v33  ;;  %v3018_v23 = vsub.f32 %v11911_v18, %v11925_v62  ;;  %v3539_v0 = vmul.f32 %v3475_v40, %v3211_v24  ;;  %v3080_v45 = vand.u32 2147483647, %v3016_v32  ;;  %v11929_v40 = vld [vmem:[#allocation12_spill] sm:$0xff] }
 0x36b   : > { %v2533_v12 = vmax.f32 %v2469_v56, 0.0  ;;  %v3280_v17 = vsub.f32 %v11912_v5, %v11926_v53  ;;  %v2731_v11 = vsub.f32 1.0, %v2667_v34  ;;  %v3282_v63 = vsub.f32 %v11912_v5, %v11927_v14  ;;  %v11930_v14 = vld [vmem:[#allocation62_spill] sm:$0xff] }
 0x36c   : > { %v2733_v35 = vsub.f32 1.0, %v2669_v51  ;;  %v3082_v48 = vand.u32 2147483647, %v3018_v23  ;;  %v7488_v38 = vpack.c.bf16 %v3539_v0, %v3537_v16  ;;  %v3144_v28 = vsub.f32 1.0, %v3080_v45 }
 0x36d   : > { %v3344_v26 = vand.u32 2147483647, %v3280_v17  ;;  %v2344_v55 = vsub.f32 %v8629_v60, %v11928_v1  ;;  %v2795_v8 = vmax.f32 %v2731_v11, 0.0  ;;  %v3346_v2 = vand.u32 2147483647, %v3282_v63  ;;  %v11931_v63 = vld [vmem:[#allocation63_spill] sm:$0xff] }
 0x36e   : > { %v2797_v22 = vmax.f32 %v2733_v35, 0.0  ;;  %v3146_v24 = vsub.f32 1.0, %v3082_v48  ;;  %7489 = vmatprep.subr.bf16.mxu0 %v7488_v38  ;;  %v3208_v50 = vmax.f32 %v3144_v28, 0.0  ;;  %v2346_v56 = vsub.f32 %v8629_v60, %v11929_v40 }
 0x36f   : > { %v3408_v33 = vsub.f32 1.0, %v3344_v26  ;;  %v2408_v32 = vand.u32 2147483647, %v2344_v55  ;;  %v2859_v34 = vmul.f32 %v2795_v8, %v2531_v54  ;;  %v3410_v16 = vsub.f32 1.0, %v3346_v2 }
 0x370   : > { %v2861_v51 = vmul.f32 %v2797_v22, %v2533_v12  ;;  %v3210_v23 = vmax.f32 %v3146_v24, 0.0  ;;  %v2410_v45 = vand.u32 2147483647, %v2346_v56  ;;  %v2608_v11 = vsub.f32 %v8727_v36, %v11930_v14 }
 0x371   : > { %v3472_v0 = vmax.f32 %v3408_v33, 0.0  ;;  %v2472_v17 = vsub.f32 1.0, %v2408_v32  ;;  %v3474_v48 = vmax.f32 %v3410_v16, 0.0  ;;  %v2610_v38 = vsub.f32 %v8727_v36, %v11931_v63 }
 0x372   : > { %v7426_v35 = vpack.c.bf16 %v2861_v51, %v2859_v34  ;;  %v3021_v28 = vsub.f32 %v11908_v41, %v11928_v1  ;;  %v2474_v55 = vsub.f32 1.0, %v2410_v45  ;;  %v2672_v12 = vand.u32 2147483647, %v2608_v11 }
 0x373   : > { %v3536_v26 = vmul.f32 %v3472_v0, %v3208_v50  ;;  %v2536_v54 = vmax.f32 %v2472_v17, 0.0  ;;  %v3538_v8 = vmul.f32 %v3474_v48, %v3210_v23  ;;  %v2674_v22 = vand.u32 2147483647, %v2610_v38 }
 0x374   : > { %7427 = vmatpush1.bf16.msra.mxu1 %v7426_v35  ;;  %v3023_v24 = vsub.f32 %v11908_v41, %v11929_v40  ;;  %v3085_v2 = vand.u32 2147483647, %v3021_v28  ;;  %v2538_v33 = vmax.f32 %v2474_v55, 0.0  ;;  %v2736_v56 = vsub.f32 1.0, %v2672_v12 }
 0x375   : > { %v3285_v32 = vsub.f32 %v11909_v43, %v11930_v14  ;;  %v3287_v34 = vsub.f32 %v11909_v43, %v11931_v63  ;;  %v7490_v51 = vpack.c.bf16 %v3538_v8, %v3536_v26  ;;  %v2738_v50 = vsub.f32 1.0, %v2674_v22 }
 0x376   : > { %v3087_v16 = vand.u32 2147483647, %v3023_v24  ;;  %v3149_v0 = vsub.f32 1.0, %v3085_v2  ;;  %v2800_v45 = vmax.f32 %v2736_v56, 0.0  ;;  %v2343_v11 = vsub.f32 %v11910_v6, %v11928_v1 }
 0x377   : > { %v3349_v17 = vand.u32 2147483647, %v3285_v32  ;;  %v3351_v23 = vand.u32 2147483647, %v3287_v34  ;;  %7491 = vmatpush1.bf16.msra.mxu0 %v7490_v51  ;;  %v2802_v35 = vmax.f32 %v2738_v50, 0.0  ;;  %v2345_v28 = vsub.f32 %v11910_v6, %v11929_v40 }
 0x378   : > { %v3151_v48 = vsub.f32 1.0, %v3087_v16  ;;  %v3213_v38 = vmax.f32 %v3149_v0, 0.0  ;;  %v2864_v55 = vmul.f32 %v2800_v45, %v2536_v54  ;;  %v2407_v26 = vand.u32 2147483647, %v2343_v11 }
 0x379   : > { %v3413_v12 = vsub.f32 1.0, %v3349_v17  ;;  %v3415_v53 = vsub.f32 1.0, %v3351_v23  ;;  %v2866_v8 = vmul.f32 %v2802_v35, %v2538_v33  ;;  %v2409_v24 = vand.u32 2147483647, %v2345_v28 }
 0x37a   : > { %v3215_v22 = vmax.f32 %v3151_v48, 0.0  ;;  %v2607_v2 = vsub.f32 %v8694_v39, %v11930_v14  ;;  %v2471_v34 = vsub.f32 1.0, %v2407_v26  ;;  %v2609_v51 = vsub.f32 %v8694_v39, %v11931_v63 }
 0x37b   : > { %v3477_v56 = vmax.f32 %v3413_v12, 0.0  ;;  %v3479_v32 = vmax.f32 %v3415_v53, 0.0  ;;  %v7428_v50 = vpack.c.bf16 %v2866_v8, %v2864_v55  ;;  %v2473_v16 = vsub.f32 1.0, %v2409_v24  ;;  %v11932_v24 = vld [vmem:[#allocation2_spill] sm:$0xff] }
 0x37c   : > { %v2671_v0 = vand.u32 2147483647, %v2607_v2  ;;  %v3020_v54 = vsub.f32 %v11911_v18, %v11928_v1  ;;  %v2535_v33 = vmax.f32 %v2471_v34, 0.0  ;;  %v2673_v23 = vand.u32 2147483647, %v2609_v51  ;;  %v11933_v51 = vld [vmem:[#allocation61_spill] sm:$0xff] }
 0x37d   : > { %v3541_v45 = vmul.f32 %v3477_v56, %v3213_v38  ;;  %v3543_v17 = vmul.f32 %v3479_v32, %v3215_v22  ;;  %7429 = vmatprep.subr.bf16.mxu1 %v7428_v50  ;;  %v2537_v11 = vmax.f32 %v2473_v16, 0.0  ;;  %v3022_v53 = vsub.f32 %v11911_v18, %v11929_v40 }
 0x37e   : > { %v2735_v35 = vsub.f32 1.0, %v2671_v0  ;;  %v3084_v48 = vand.u32 2147483647, %v3020_v54  ;;  %v2737_v12 = vsub.f32 1.0, %v2673_v23  ;;  %v3284_v55 = vsub.f32 %v11912_v5, %v11930_v14  ;;  %v11934_v14 = vld [vmem:[#allocation64_spill] sm:$0xff] }
 0x37f   : > { %v7492_v28 = vpack.c.bf16 %v3543_v17, %v3541_v45  ;;  %v3286_v26 = vsub.f32 %v11912_v5, %v11931_v63  ;;  %v3086_v38 = vand.u32 2147483647, %v3022_v53  ;;  %v2348_v2 = vsub.f32 %v8629_v60, %v11932_v24 }
 0x380   : > { %v2799_v8 = vmax.f32 %v2735_v35, 0.0  ;;  %v3148_v22 = vsub.f32 1.0, %v3084_v48  ;;  %v2801_v56 = vmax.f32 %v2737_v12, 0.0  ;;  %v3348_v32 = vand.u32 2147483647, %v3284_v55 }
 0x381   : > { %7493 = vmatprep.subr.bf16.mxu0 %v7492_v28  ;;  %v3350_v34 = vand.u32 2147483647, %v3286_v26  ;;  %v2350_v50 = vsub.f32 %v8629_v60, %v11933_v51  ;;  %v3150_v0 = vsub.f32 1.0, %v3086_v38  ;;  %v2412_v45 = vand.u32 2147483647, %v2348_v2  ;;  %v11935_v28 = vld [vmem:[#allocation65_spill] sm:$0xff] }
 0x382   : > { %v2863_v16 = vmul.f32 %v2799_v8, %v2535_v33  ;;  %v3212_v54 = vmax.f32 %v3148_v22, 0.0  ;;  %v2865_v17 = vmul.f32 %v2801_v56, %v2537_v11  ;;  %v3412_v23 = vsub.f32 1.0, %v3348_v32 }
 0x383   : > { %v3414_v63 = vsub.f32 1.0, %v3350_v34  ;;  %v2414_v35 = vand.u32 2147483647, %v2350_v50  ;;  %v3214_v53 = vmax.f32 %v3150_v0, 0.0  ;;  %v2476_v48 = vsub.f32 1.0, %v2412_v45 }
 0x384   : > { %v2612_v40 = vsub.f32 %v8727_v36, %v11934_v14  ;;  %v2614_v12 = vsub.f32 %v8727_v36, %v11935_v28  ;;  %v7430_v55 = vpack.c.bf16 %v2865_v17, %v2863_v16  ;;  %v3476_v26 = vmax.f32 %v3412_v23, 0.0 }
 0x385   : > { %v3478_v1 = vmax.f32 %v3414_v63, 0.0  ;;  %v2478_v62 = vsub.f32 1.0, %v2414_v35  ;;  %v2540_v33 = vmax.f32 %v2476_v48, 0.0  ;;  %v3025_v11 = vsub.f32 %v11908_v41, %v11932_v24 }
 0x386   : > { %v2676_v8 = vand.u32 2147483647, %v2612_v40  ;;  %v2678_v38 = vand.u32 2147483647, %v2614_v12  ;;  %7431 = vmatpush1.bf16.msra.mxu1 %v7430_v55  ;;  %v3540_v22 = vmul.f32 %v3476_v26, %v3212_v54  ;;  %v3027_v32 = vsub.f32 %v11908_v41, %v11933_v51 }
 0x387   : > { %v3542_v2 = vmul.f32 %v3478_v1, %v3214_v53  ;;  %v2542_v56 = vmax.f32 %v2478_v62, 0.0  ;;  %v3089_v0 = vand.u32 2147483647, %v3025_v11  ;;  %v3289_v63 = vsub.f32 %v11909_v43, %v11934_v14 }
 0x388   : > { %v2740_v34 = vsub.f32 1.0, %v2676_v8  ;;  %v2742_v50 = vsub.f32 1.0, %v2678_v38  ;;  %v3091_v45 = vand.u32 2147483647, %v3027_v32  ;;  %v3291_v40 = vsub.f32 %v11909_v43, %v11935_v28 }
 0x389   : > { %v7494_v16 = vpack.c.bf16 %v3542_v2, %v3540_v22  ;;  %v2347_v17 = vsub.f32 %v11910_v6, %v11932_v24  ;;  %v3153_v62 = vsub.f32 1.0, %v3089_v0  ;;  %v3353_v23 = vand.u32 2147483647, %v3289_v63 }
 0x38a   : > { %v2804_v54 = vmax.f32 %v2740_v34, 0.0  ;;  %v2806_v1 = vmax.f32 %v2742_v50, 0.0  ;;  %v3155_v35 = vsub.f32 1.0, %v3091_v45  ;;  %v3355_v53 = vand.u32 2147483647, %v3291_v40 }
 0x38b   : > { %7495 = vmatpush1.bf16.msra.mxu0 %v7494_v16  ;;  %v2349_v48 = vsub.f32 %v11910_v6, %v11933_v51  ;;  %v2411_v12 = vand.u32 2147483647, %v2347_v17  ;;  %v3217_v8 = vmax.f32 %v3153_v62, 0.0  ;;  %v3417_v38 = vsub.f32 1.0, %v3353_v23 }
 0x38c   : > { %v2868_v55 = vmul.f32 %v2804_v54, %v2540_v33  ;;  %v2870_v26 = vmul.f32 %v2806_v1, %v2542_v56  ;;  %v3219_v11 = vmax.f32 %v3155_v35, 0.0  ;;  %v3419_v22 = vsub.f32 1.0, %v3355_v53 }
 0x38d   : > { %v2413_v2 = vand.u32 2147483647, %v2349_v48  ;;  %v2475_v32 = vsub.f32 1.0, %v2411_v12  ;;  %v3481_v34 = vmax.f32 %v3417_v38, 0.0  ;;  %v2611_v50 = vsub.f32 %v8694_v39, %v11934_v14  ;;  %v11936_v38 = vld [vmem:[#allocation66_spill] sm:$0xff] }
 0x38e   : > { %v7432_v25 = vpack.c.bf16 %v2870_v26, %v2868_v55  ;;  %v2613_v0 = vsub.f32 %v8694_v39, %v11935_v28  ;;  %v3483_v63 = vmax.f32 %v3419_v22, 0.0  ;;  %v3024_v33 = vsub.f32 %v11911_v18, %v11932_v24 }
 0x38f   : > { %v2477_v16 = vsub.f32 1.0, %v2413_v2  ;;  %v2539_v45 = vmax.f32 %v2475_v32, 0.0  ;;  %v3545_v56 = vmul.f32 %v3481_v34, %v3217_v8  ;;  %v2675_v40 = vand.u32 2147483647, %v2611_v50 }
 0x390   : > { %7433 = vmatprep.subr.bf16.mxu1 %v7432_v25  ;;  %v2677_v17 = vand.u32 2147483647, %v2613_v0  ;;  %v3026_v54 = vsub.f32 %v11911_v18, %v11933_v51  ;;  %v3547_v1 = vmul.f32 %v3483_v63, %v3219_v11  ;;  %v3088_v23 = vand.u32 2147483647, %v3024_v33  ;;  %v11937_v63 = vld [vmem:[#allocation67_spill] sm:$0xff] }
 0x391   : > { %v2541_v62 = vmax.f32 %v2477_v16, 0.0  ;;  %v3288_v35 = vsub.f32 %v11912_v5, %v11934_v14  ;;  %v2739_v53 = vsub.f32 1.0, %v2675_v40  ;;  %v3290_v55 = vsub.f32 %v11912_v5, %v11935_v28  ;;  %v11938_v28 = vld [vmem:[#allocation68_spill] sm:$0xff] }
 0x392   : > { %v2741_v48 = vsub.f32 1.0, %v2677_v17  ;;  %v3090_v12 = vand.u32 2147483647, %v3026_v54  ;;  %v7496_v26 = vpack.c.bf16 %v3547_v1, %v3545_v56  ;;  %v3152_v25 = vsub.f32 1.0, %v3088_v23 }
 0x393   : > { %v3352_v8 = vand.u32 2147483647, %v3288_v35  ;;  %v2352_v22 = vsub.f32 %v8629_v60, %v11936_v38  ;;  %v2803_v2 = vmax.f32 %v2739_v53, 0.0  ;;  %v3354_v34 = vand.u32 2147483647, %v3290_v55  ;;  %v11939_v55 = vld [vmem:[#allocation69_spill] sm:$0xff] }
 0x394   : > { %v2805_v32 = vmax.f32 %v2741_v48, 0.0  ;;  %v3154_v11 = vsub.f32 1.0, %v3090_v12  ;;  %7497 = vmatprep.subr.bf16.mxu0 %v7496_v26  ;;  %v3216_v50 = vmax.f32 %v3152_v25, 0.0  ;;  %v2354_v16 = vsub.f32 %v8629_v60, %v11937_v63 }
 0x395   : > { %v3416_v0 = vsub.f32 1.0, %v3352_v8  ;;  %v2416_v33 = vand.u32 2147483647, %v2352_v22  ;;  %v2867_v40 = vmul.f32 %v2803_v2, %v2539_v45  ;;  %v3418_v56 = vsub.f32 1.0, %v3354_v34 }
 0x396   : > { %v2869_v17 = vmul.f32 %v2805_v32, %v2541_v62  ;;  %v3218_v54 = vmax.f32 %v3154_v11, 0.0  ;;  %v2418_v23 = vand.u32 2147483647, %v2354_v16  ;;  %v2616_v53 = vsub.f32 %v8727_v36, %v11938_v28 }
 0x397   : > { %v3480_v1 = vmax.f32 %v3416_v0, 0.0  ;;  %v2480_v35 = vsub.f32 1.0, %v2416_v33  ;;  %v3482_v12 = vmax.f32 %v3418_v56, 0.0  ;;  %v2618_v26 = vsub.f32 %v8727_v36, %v11939_v55 }
 0x398   : > { %v7434_v48 = vpack.c.bf16 %v2869_v17, %v2867_v40  ;;  %v3029_v25 = vsub.f32 %v11908_v41, %v11936_v38  ;;  %v2482_v22 = vsub.f32 1.0, %v2418_v23  ;;  %v2680_v62 = vand.u32 2147483647, %v2616_v53 }
 0x399   : > { %v3544_v8 = vmul.f32 %v3480_v1, %v3216_v50  ;;  %v2544_v45 = vmax.f32 %v2480_v35, 0.0  ;;  %v3546_v2 = vmul.f32 %v3482_v12, %v3218_v54  ;;  %v2682_v32 = vand.u32 2147483647, %v2618_v26 }
 0x39a   : > { %7435 = vmatpush1.bf16.msra.mxu1 %v7434_v48  ;;  %v3031_v11 = vsub.f32 %v11908_v41, %v11937_v63  ;;  %v3093_v34 = vand.u32 2147483647, %v3029_v25  ;;  %v2546_v0 = vmax.f32 %v2482_v22, 0.0  ;;  %v2744_v16 = vsub.f32 1.0, %v2680_v62 }
 0x39b   : > { %v3293_v33 = vsub.f32 %v11909_v43, %v11938_v28  ;;  %v3295_v40 = vsub.f32 %v11909_v43, %v11939_v55  ;;  %v7498_v17 = vpack.c.bf16 %v3546_v2, %v3544_v8  ;;  %v2746_v50 = vsub.f32 1.0, %v2682_v32 }
 0x39c   : > { %v3095_v56 = vand.u32 2147483647, %v3031_v11  ;;  %v3157_v1 = vsub.f32 1.0, %v3093_v34  ;;  %v2808_v23 = vmax.f32 %v2744_v16, 0.0  ;;  %v2351_v53 = vsub.f32 %v11910_v6, %v11936_v38 }
 0x39d   : > { %v3357_v35 = vand.u32 2147483647, %v3293_v33  ;;  %v3359_v54 = vand.u32 2147483647, %v3295_v40  ;;  %7499 = vmatpush1.bf16.msra.mxu0 %v7498_v17  ;;  %v2810_v48 = vmax.f32 %v2746_v50, 0.0  ;;  %v2353_v25 = vsub.f32 %v11910_v6, %v11937_v63 }
 0x39e   : > { %v3159_v12 = vsub.f32 1.0, %v3095_v56  ;;  %v3221_v26 = vmax.f32 %v3157_v1, 0.0  ;;  %v2872_v22 = vmul.f32 %v2808_v23, %v2544_v45  ;;  %v2415_v8 = vand.u32 2147483647, %v2351_v53 }
 0x39f   : > { %v3421_v62 = vsub.f32 1.0, %v3357_v35  ;;  %v3423_v14 = vsub.f32 1.0, %v3359_v54  ;;  %v2874_v2 = vmul.f32 %v2810_v48, %v2546_v0  ;;  %v2417_v11 = vand.u32 2147483647, %v2353_v25 }
 0x3a0   : > { %v3223_v32 = vmax.f32 %v3159_v12, 0.0  ;;  %v2615_v34 = vsub.f32 %v8694_v39, %v11938_v28  ;;  %v2479_v40 = vsub.f32 1.0, %v2415_v8  ;;  %v2617_v17 = vsub.f32 %v8694_v39, %v11939_v55 }
 0x3a1   : > { %v3485_v16 = vmax.f32 %v3421_v62, 0.0  ;;  %v3487_v33 = vmax.f32 %v3423_v14, 0.0  ;;  %v7436_v50 = vpack.c.bf16 %v2874_v2, %v2872_v22  ;;  %v2481_v56 = vsub.f32 1.0, %v2417_v11  ;;  %v11940_v11 = vld [vmem:[#allocation70_spill] sm:$0xff] }
 0x3a2   : > { %v2679_v1 = vand.u32 2147483647, %v2615_v34  ;;  %v3028_v45 = vsub.f32 %v11911_v18, %v11936_v38  ;;  %v2543_v0 = vmax.f32 %v2479_v40, 0.0  ;;  %v2681_v54 = vand.u32 2147483647, %v2617_v17  ;;  %v11941_v17 = vld [vmem:[#allocation71_spill] sm:$0xff] }
 0x3a3   : > { %v3549_v23 = vmul.f32 %v3485_v16, %v3221_v26  ;;  %v3551_v35 = vmul.f32 %v3487_v33, %v3223_v32  ;;  %7437 = vmatprep.subr.bf16.mxu1 %v7436_v50  ;;  %v2545_v53 = vmax.f32 %v2481_v56, 0.0  ;;  %v3030_v14 = vsub.f32 %v11911_v18, %v11937_v63 }
 0x3a4   : > { %v2743_v48 = vsub.f32 1.0, %v2679_v1  ;;  %v3092_v12 = vand.u32 2147483647, %v3028_v45  ;;  %v2745_v62 = vsub.f32 1.0, %v2681_v54  ;;  %v3292_v22 = vsub.f32 %v11912_v5, %v11938_v28  ;;  %v11942_v28 = vld [vmem:[#allocation72_spill] sm:$0xff] }
 0x3a5   : > { %v7500_v25 = vpack.c.bf16 %v3551_v35, %v3549_v23  ;;  %v3294_v8 = vsub.f32 %v11912_v5, %v11939_v55  ;;  %v3094_v26 = vand.u32 2147483647, %v3030_v14  ;;  %v2356_v34 = vsub.f32 %v8629_v60, %v11940_v11 }
 0x3a6   : > { %v2807_v2 = vmax.f32 %v2743_v48, 0.0  ;;  %v3156_v32 = vsub.f32 1.0, %v3092_v12  ;;  %v2809_v16 = vmax.f32 %v2745_v62, 0.0  ;;  %v3356_v33 = vand.u32 2147483647, %v3292_v22 }
 0x3a7   : > { %7501 = vmatprep.subr.bf16.mxu0 %v7500_v25  ;;  %v3358_v40 = vand.u32 2147483647, %v3294_v8  ;;  %v2358_v50 = vsub.f32 %v8629_v60, %v11941_v17  ;;  %v3158_v1 = vsub.f32 1.0, %v3094_v26  ;;  %v2420_v23 = vand.u32 2147483647, %v2356_v34  ;;  %v11943_v25 = vld [vmem:[#allocation73_spill] sm:$0xff] }
 0x3a8   : > { %v2871_v56 = vmul.f32 %v2807_v2, %v2543_v0  ;;  %v3220_v45 = vmax.f32 %v3156_v32, 0.0  ;;  %v2873_v35 = vmul.f32 %v2809_v16, %v2545_v53  ;;  %v3420_v54 = vsub.f32 1.0, %v3356_v33 }
 0x3a9   : > { %v3422_v55 = vsub.f32 1.0, %v3358_v40  ;;  %v2422_v48 = vand.u32 2147483647, %v2358_v50  ;;  %v3222_v14 = vmax.f32 %v3158_v1, 0.0  ;;  %v2484_v12 = vsub.f32 1.0, %v2420_v23 }
 0x3aa   : > { %v2620_v63 = vsub.f32 %v8727_v36, %v11942_v28  ;;  %v2622_v62 = vsub.f32 %v8727_v36, %v11943_v25  ;;  %v7438_v22 = vpack.c.bf16 %v2873_v35, %v2871_v56  ;;  %v3484_v8 = vmax.f32 %v3420_v54, 0.0 }
 0x3ab   : > { %v3486_v38 = vmax.f32 %v3422_v55, 0.0  ;;  %v2486_v51 = vsub.f32 1.0, %v2422_v48  ;;  %v2548_v0 = vmax.f32 %v2484_v12, 0.0  ;;  %v3033_v53 = vsub.f32 %v11908_v41, %v11940_v11 }
 0x3ac   : > { %v2684_v2 = vand.u32 2147483647, %v2620_v63  ;;  %v2686_v26 = vand.u32 2147483647, %v2622_v62  ;;  %7439 = vmatpush1.bf16.msra.mxu1 %v7438_v22  ;;  %v3548_v32 = vmul.f32 %v3484_v8, %v3220_v45  ;;  %v3035_v33 = vsub.f32 %v11908_v41, %v11941_v17 }
 0x3ad   : > { %v3550_v34 = vmul.f32 %v3486_v38, %v3222_v14  ;;  %v2550_v16 = vmax.f32 %v2486_v51, 0.0  ;;  %v3097_v1 = vand.u32 2147483647, %v3033_v53  ;;  %v3297_v55 = vsub.f32 %v11909_v43, %v11942_v28 }
 0x3ae   : > { %v2748_v40 = vsub.f32 1.0, %v2684_v2  ;;  %v2750_v50 = vsub.f32 1.0, %v2686_v26  ;;  %v3099_v23 = vand.u32 2147483647, %v3035_v33  ;;  %v3299_v63 = vsub.f32 %v11909_v43, %v11943_v25 }
 0x3af   : > { %v7502_v56 = vpack.c.bf16 %v3550_v34, %v3548_v32  ;;  %v2355_v35 = vsub.f32 %v11910_v6, %v11940_v11  ;;  %v3161_v51 = vsub.f32 1.0, %v3097_v1  ;;  %v3361_v54 = vand.u32 2147483647, %v3297_v55 }
 0x3b0   : > { %v2812_v45 = vmax.f32 %v2748_v40, 0.0  ;;  %v2814_v38 = vmax.f32 %v2750_v50, 0.0  ;;  %v3163_v48 = vsub.f32 1.0, %v3099_v23  ;;  %v3363_v14 = vand.u32 2147483647, %v3299_v63 }
 0x3b1   : > { %7503 = vmatpush1.bf16.msra.mxu0 %v7502_v56  ;;  %v2357_v12 = vsub.f32 %v11910_v6, %v11941_v17  ;;  %v2419_v62 = vand.u32 2147483647, %v2355_v35  ;;  %v3225_v2 = vmax.f32 %v3161_v51, 0.0  ;;  %v3425_v26 = vsub.f32 1.0, %v3361_v54 }
 0x3b2   : > { %v2876_v22 = vmul.f32 %v2812_v45, %v2548_v0  ;;  %v2878_v8 = vmul.f32 %v2814_v38, %v2550_v16  ;;  %v3227_v53 = vmax.f32 %v3163_v48, 0.0  ;;  %v3427_v32 = vsub.f32 1.0, %v3363_v14 }
 0x3b3   : > { %v2421_v34 = vand.u32 2147483647, %v2357_v12  ;;  %v2483_v33 = vsub.f32 1.0, %v2419_v62  ;;  %v3489_v40 = vmax.f32 %v3425_v26, 0.0  ;;  %v2619_v50 = vsub.f32 %v8694_v39, %v11942_v28  ;;  %v11944_v26 = vld [vmem:[#allocation74_spill] sm:$0xff] }
 0x3b4   : > { %v7440_v24 = vpack.c.bf16 %v2878_v8, %v2876_v22  ;;  %v2621_v1 = vsub.f32 %v8694_v39, %v11943_v25  ;;  %v3491_v55 = vmax.f32 %v3427_v32, 0.0  ;;  %v3032_v0 = vsub.f32 %v11911_v18, %v11940_v11 }
 0x3b5   : > { %v2485_v56 = vsub.f32 1.0, %v2421_v34  ;;  %v2547_v23 = vmax.f32 %v2483_v33, 0.0  ;;  %v3553_v16 = vmul.f32 %v3489_v40, %v3225_v2  ;;  %v2683_v63 = vand.u32 2147483647, %v2619_v50 }
 0x3b6   : > { %7441 = vmatprep.subr.bf16.mxu1 %v7440_v24  ;;  %v2685_v35 = vand.u32 2147483647, %v2621_v1  ;;  %v3034_v45 = vsub.f32 %v11911_v18, %v11941_v17  ;;  %v3555_v38 = vmul.f32 %v3491_v55, %v3227_v53  ;;  %v3096_v54 = vand.u32 2147483647, %v3032_v0  ;;  %v11945_v55 = vld [vmem:[#allocation75_spill] sm:$0xff] }
 0x3b7   : > { %v2549_v51 = vmax.f32 %v2485_v56, 0.0  ;;  %v3296_v48 = vsub.f32 %v11912_v5, %v11942_v28  ;;  %v2747_v14 = vsub.f32 1.0, %v2683_v63  ;;  %v3298_v22 = vsub.f32 %v11912_v5, %v11943_v25  ;;  %v11946_v25 = vld [vmem:[#allocation76_spill] sm:$0xff] }
 0x3b8   : > { %v2749_v12 = vsub.f32 1.0, %v2685_v35  ;;  %v3098_v62 = vand.u32 2147483647, %v3034_v45  ;;  %v7504_v8 = vpack.c.bf16 %v3555_v38, %v3553_v16  ;;  %v3160_v24 = vsub.f32 1.0, %v3096_v54 }
 0x3b9   : > { %v3360_v2 = vand.u32 2147483647, %v3296_v48  ;;  %v2360_v32 = vsub.f32 %v8629_v60, %v11944_v26  ;;  %v2811_v34 = vmax.f32 %v2747_v14, 0.0  ;;  %v3362_v40 = vand.u32 2147483647, %v3298_v22  ;;  %v11947_v22 = vld [vmem:[#allocation77_spill] sm:$0xff] }
 0x3ba   : > { %v2813_v33 = vmax.f32 %v2749_v12, 0.0  ;;  %v3162_v53 = vsub.f32 1.0, %v3098_v62  ;;  %7505 = vmatprep.subr.bf16.mxu0 %v7504_v8  ;;  %v3224_v50 = vmax.f32 %v3160_v24, 0.0  ;;  %v2362_v56 = vsub.f32 %v8629_v60, %v11945_v55 }
 0x3bb   : > { %v3424_v1 = vsub.f32 1.0, %v3360_v2  ;;  %v2424_v0 = vand.u32 2147483647, %v2360_v32  ;;  %v2875_v63 = vmul.f32 %v2811_v34, %v2547_v23  ;;  %v3426_v16 = vsub.f32 1.0, %v3362_v40 }
 0x3bc   : > { %v2877_v35 = vmul.f32 %v2813_v33, %v2549_v51  ;;  %v3226_v45 = vmax.f32 %v3162_v53, 0.0  ;;  %v2426_v54 = vand.u32 2147483647, %v2362_v56  ;;  %v2624_v14 = vsub.f32 %v8727_v36, %v11946_v25 }
 0x3bd   : > { %v3488_v38 = vmax.f32 %v3424_v1, 0.0  ;;  %v2488_v48 = vsub.f32 1.0, %v2424_v0  ;;  %v3490_v62 = vmax.f32 %v3426_v16, 0.0  ;;  %v2626_v8 = vsub.f32 %v8727_v36, %v11947_v22 }
 0x3be   : > { %v7442_v12 = vpack.c.bf16 %v2877_v35, %v2875_v63  ;;  %v3037_v24 = vsub.f32 %v11908_v41, %v11944_v26  ;;  %v2490_v32 = vsub.f32 1.0, %v2426_v54  ;;  %v2688_v51 = vand.u32 2147483647, %v2624_v14 }
 0x3bf   : > { %v3552_v2 = vmul.f32 %v3488_v38, %v3224_v50  ;;  %v2552_v23 = vmax.f32 %v2488_v48, 0.0  ;;  %v3554_v34 = vmul.f32 %v3490_v62, %v3226_v45  ;;  %v2690_v33 = vand.u32 2147483647, %v2626_v8 }
 0x3c0   : > { %7443 = vmatpush1.bf16.msra.mxu1 %v7442_v12  ;;  %v3039_v53 = vsub.f32 %v11908_v41, %v11945_v55  ;;  %v3101_v40 = vand.u32 2147483647, %v3037_v24  ;;  %v2554_v1 = vmax.f32 %v2490_v32, 0.0  ;;  %v2752_v56 = vsub.f32 1.0, %v2688_v51 }
 0x3c1   : > { %v3301_v0 = vsub.f32 %v11909_v43, %v11946_v25  ;;  %v3303_v63 = vsub.f32 %v11909_v43, %v11947_v22  ;;  %v7506_v35 = vpack.c.bf16 %v3554_v34, %v3552_v2  ;;  %v2754_v50 = vsub.f32 1.0, %v2690_v33 }
 0x3c2   : > { %v3103_v16 = vand.u32 2147483647, %v3039_v53  ;;  %v3165_v38 = vsub.f32 1.0, %v3101_v40  ;;  %v2816_v54 = vmax.f32 %v2752_v56, 0.0  ;;  %v2359_v14 = vsub.f32 %v11910_v6, %v11944_v26 }
 0x3c3   : > { %v3365_v48 = vand.u32 2147483647, %v3301_v0  ;;  %v3367_v45 = vand.u32 2147483647, %v3303_v63  ;;  %7507 = vmatpush1.bf16.msra.mxu0 %v7506_v35  ;;  %v2818_v12 = vmax.f32 %v2754_v50, 0.0  ;;  %v2361_v24 = vsub.f32 %v11910_v6, %v11945_v55 }
 0x3c4   : > { %v3167_v62 = vsub.f32 1.0, %v3103_v16  ;;  %v3229_v8 = vmax.f32 %v3165_v38, 0.0  ;;  %v2880_v32 = vmul.f32 %v2816_v54, %v2552_v23  ;;  %v2423_v2 = vand.u32 2147483647, %v2359_v14 }
 0x3c5   : > { %v3429_v51 = vsub.f32 1.0, %v3365_v48  ;;  %v3431_v28 = vsub.f32 1.0, %v3367_v45  ;;  %v2882_v34 = vmul.f32 %v2818_v12, %v2554_v1  ;;  %v2425_v53 = vand.u32 2147483647, %v2361_v24 }
 0x3c6   : > { %v3231_v33 = vmax.f32 %v3167_v62, 0.0  ;;  %v2623_v40 = vsub.f32 %v8694_v39, %v11946_v25  ;;  %v2487_v63 = vsub.f32 1.0, %v2423_v2  ;;  %v2625_v35 = vsub.f32 %v8694_v39, %v11947_v22 }
 0x3c7   : > { %v3493_v56 = vmax.f32 %v3429_v51, 0.0  ;;  %v3495_v0 = vmax.f32 %v3431_v28, 0.0  ;;  %v7444_v50 = vpack.c.bf16 %v2882_v34, %v2880_v32  ;;  %v2489_v16 = vsub.f32 1.0, %v2425_v53 }
 0x3c8   : > { %v2687_v38 = vand.u32 2147483647, %v2623_v40  ;;  %v3036_v23 = vsub.f32 %v11911_v18, %v11944_v26  ;;  %v2551_v1 = vmax.f32 %v2487_v63, 0.0  ;;  %v2689_v45 = vand.u32 2147483647, %v2625_v35  ;;  %v11948_v63 = vld [vmem:[#allocation79_spill] sm:$0xff] }
 0x3c9   : > { %v3557_v54 = vmul.f32 %v3493_v56, %v3229_v8  ;;  %v3559_v48 = vmul.f32 %v3495_v0, %v3231_v33  ;;  %7445 = vmatprep.subr.bf16.mxu1 %v7444_v50  ;;  %v2553_v14 = vmax.f32 %v2489_v16, 0.0  ;;  %v3038_v28 = vsub.f32 %v11911_v18, %v11945_v55 }
 0x3ca   : > { %v2751_v12 = vsub.f32 1.0, %v2687_v38  ;;  %v3100_v62 = vand.u32 2147483647, %v3036_v23  ;;  %v2753_v51 = vsub.f32 1.0, %v2689_v45  ;;  %v3300_v32 = vsub.f32 %v11912_v5, %v11946_v25 }
 0x3cb   : > { %v7508_v24 = vpack.c.bf16 %v3559_v48, %v3557_v54  ;;  %v3302_v2 = vsub.f32 %v11912_v5, %v11947_v22  ;;  %v3102_v8 = vand.u32 2147483647, %v3038_v28  ;;  %v2364_v53 = vsub.f32 %v8629_v60, %v9288_v21  ;;  %v11949_v22 = vld [vmem:[#allocation80_spill] sm:$0xff] }
 0x3cc   : > { %v2815_v34 = vmax.f32 %v2751_v12, 0.0  ;;  %v3164_v33 = vsub.f32 1.0, %v3100_v62  ;;  %v2817_v40 = vmax.f32 %v2753_v51, 0.0  ;;  %v3364_v56 = vand.u32 2147483647, %v3300_v32 }
 0x3cd   : > { %7509 = vmatprep.subr.bf16.mxu0 %v7508_v24  ;;  %v3366_v0 = vand.u32 2147483647, %v3302_v2  ;;  %v2366_v35 = vsub.f32 %v8629_v60, %v11948_v63  ;;  %v3166_v16 = vsub.f32 1.0, %v3102_v8  ;;  %v2428_v23 = vand.u32 2147483647, %v2364_v53  ;;  %v11950_v24 = vld [vmem:[#allocation81_spill] sm:$0xff] }
 0x3ce   : > { %v2879_v50 = vmul.f32 %v2815_v34, %v2551_v1  ;;  %v3228_v38 = vmax.f32 %v3164_v33, 0.0  ;;  %v2881_v54 = vmul.f32 %v2817_v40, %v2553_v14  ;;  %v3428_v48 = vsub.f32 1.0, %v3364_v56 }
 0x3cf   : > { %v3430_v45 = vsub.f32 1.0, %v3366_v0  ;;  %v2430_v12 = vand.u32 2147483647, %v2366_v35  ;;  %v3230_v28 = vmax.f32 %v3166_v16, 0.0  ;;  %v2492_v62 = vsub.f32 1.0, %v2428_v23 }
 0x3d0   : > { %v2628_v25 = vsub.f32 %v8727_v36, %v11949_v22  ;;  %v2630_v51 = vsub.f32 %v8727_v36, %v11950_v24  ;;  %v7446_v32 = vpack.c.bf16 %v2881_v54, %v2879_v50  ;;  %v3492_v2 = vmax.f32 %v3428_v48, 0.0 }
 0x3d1   : > { %v3494_v55 = vmax.f32 %v3430_v45, 0.0  ;;  %v2494_v26 = vsub.f32 1.0, %v2430_v12  ;;  %v2556_v1 = vmax.f32 %v2492_v62, 0.0  ;;  %v3041_v14 = vsub.f32 %v11908_v41, %v9288_v21 }
 0x3d2   : > { %v2692_v34 = vand.u32 2147483647, %v2628_v25  ;;  %v2694_v8 = vand.u32 2147483647, %v2630_v51  ;;  %7447 = vmatpush1.bf16.msra.mxu1 %v7446_v32  ;;  %v3556_v33 = vmul.f32 %v3492_v2, %v3228_v38  ;;  %v3043_v56 = vsub.f32 %v11908_v41, %v11948_v63 }
 0x3d3   : > { %v3558_v53 = vmul.f32 %v3494_v55, %v3230_v28  ;;  %v2558_v40 = vmax.f32 %v2494_v26, 0.0  ;;  %v3105_v16 = vand.u32 2147483647, %v3041_v14  ;;  %v3305_v50 = vsub.f32 %v11909_v43, %v11949_v22 }
 0x3d4   : > { %v2756_v0 = vsub.f32 1.0, %v2692_v34  ;;  %v2758_v35 = vsub.f32 1.0, %v2694_v8  ;;  %v3107_v54 = vand.u32 2147483647, %v3043_v56  ;;  %v3307_v25 = vsub.f32 %v11909_v43, %v11950_v24 }
 0x3d5   : > { %v7510_v23 = vpack.c.bf16 %v3558_v53, %v3556_v33  ;;  %v2363_v48 = vsub.f32 %v11910_v6, %v9288_v21  ;;  %v3169_v26 = vsub.f32 1.0, %v3105_v16  ;;  %v3369_v45 = vand.u32 2147483647, %v3305_v50 }
 0x3d6   : > { %v2820_v38 = vmax.f32 %v2756_v0, 0.0  ;;  %v2822_v55 = vmax.f32 %v2758_v35, 0.0  ;;  %v3171_v12 = vsub.f32 1.0, %v3107_v54  ;;  %v3371_v28 = vand.u32 2147483647, %v3307_v25 }
 0x3d7   : > { %7511 = vmatpush1.bf16.msra.mxu0 %v7510_v23  ;;  %v2365_v62 = vsub.f32 %v11910_v6, %v11948_v63  ;;  %v2427_v51 = vand.u32 2147483647, %v2363_v48  ;;  %v3233_v34 = vmax.f32 %v3169_v26, 0.0  ;;  %v3433_v8 = vsub.f32 1.0, %v3369_v45 }
 0x3d8   : > { %v2884_v32 = vmul.f32 %v2820_v38, %v2556_v1  ;;  %v2886_v2 = vmul.f32 %v2822_v55, %v2558_v40  ;;  %v3235_v14 = vmax.f32 %v3171_v12, 0.0  ;;  %v3435_v33 = vsub.f32 1.0, %v3371_v28 }
 0x3d9   : > { %v2429_v53 = vand.u32 2147483647, %v2365_v62  ;;  %v2491_v56 = vsub.f32 1.0, %v2427_v51  ;;  %v3497_v0 = vmax.f32 %v3433_v8, 0.0  ;;  %v2627_v35 = vsub.f32 %v8694_v39, %v11949_v22  ;;  %v11951_v8 = vld [vmem:[#allocation82_spill] sm:$0xff] }
 0x3da   : > { %v7448_v17 = vpack.c.bf16 %v2886_v2, %v2884_v32  ;;  %v2629_v16 = vsub.f32 %v8694_v39, %v11950_v24  ;;  %v3499_v50 = vmax.f32 %v3435_v33, 0.0  ;;  %v3040_v1 = vsub.f32 %v11911_v18, %v9288_v21 }
 0x3db   : > { %v2493_v23 = vsub.f32 1.0, %v2429_v53  ;;  %v2555_v54 = vmax.f32 %v2491_v56, 0.0  ;;  %v3561_v40 = vmul.f32 %v3497_v0, %v3233_v34  ;;  %v2691_v25 = vand.u32 2147483647, %v2627_v35 }
 0x3dc   : > { %7449 = vmatprep.subr.bf16.mxu1 %v7448_v17  ;;  %v2693_v48 = vand.u32 2147483647, %v2629_v16  ;;  %v3042_v38 = vsub.f32 %v11911_v18, %v11948_v63  ;;  %v3563_v55 = vmul.f32 %v3499_v50, %v3235_v14  ;;  %v3104_v45 = vand.u32 2147483647, %v3040_v1  ;;  %v11952_v50 = vld [vmem:[#allocation83_spill] sm:$0xff] }
 0x3dd   : > { %v2557_v26 = vmax.f32 %v2493_v23, 0.0  ;;  %v3304_v12 = vsub.f32 %v11912_v5, %v11949_v22  ;;  %v2755_v28 = vsub.f32 1.0, %v2691_v25  ;;  %v3306_v32 = vsub.f32 %v11912_v5, %v11950_v24  ;;  %v11953_v24 = vld [vmem:[#allocation84_spill] sm:$0xff] }
 0x3de   : > { %v2757_v62 = vsub.f32 1.0, %v2693_v48  ;;  %v3106_v51 = vand.u32 2147483647, %v3042_v38  ;;  %v7512_v2 = vpack.c.bf16 %v3563_v55, %v3561_v40  ;;  %v3168_v17 = vsub.f32 1.0, %v3104_v45 }
 0x3df   : > { %v3368_v34 = vand.u32 2147483647, %v3304_v12  ;;  %v2368_v33 = vsub.f32 %v8629_v60, %v11951_v8  ;;  %v2819_v53 = vmax.f32 %v2755_v28, 0.0  ;;  %v3370_v0 = vand.u32 2147483647, %v3306_v32  ;;  %v11954_v32 = vld [vmem:[#allocation85_spill] sm:$0xff] }
 0x3e0   : > { %v2821_v56 = vmax.f32 %v2757_v62, 0.0  ;;  %v3170_v14 = vsub.f32 1.0, %v3106_v51  ;;  %7513 = vmatprep.subr.bf16.mxu0 %v7512_v2  ;;  %v3232_v35 = vmax.f32 %v3168_v17, 0.0  ;;  %v2370_v23 = vsub.f32 %v8629_v60, %v11952_v50 }
 0x3e1   : > { %v3432_v16 = vsub.f32 1.0, %v3368_v34  ;;  %v2432_v1 = vand.u32 2147483647, %v2368_v33  ;;  %v2883_v25 = vmul.f32 %v2819_v53, %v2555_v54  ;;  %v3434_v40 = vsub.f32 1.0, %v3370_v0 }
 0x3e2   : > { %v2885_v48 = vmul.f32 %v2821_v56, %v2557_v26  ;;  %v3234_v38 = vmax.f32 %v3170_v14, 0.0  ;;  %v2434_v45 = vand.u32 2147483647, %v2370_v23  ;;  %v2632_v28 = vsub.f32 %v8727_v36, %v11953_v24 }
 0x3e3   : > { %v3496_v55 = vmax.f32 %v3432_v16, 0.0  ;;  %v2496_v12 = vsub.f32 1.0, %v2432_v1  ;;  %v3498_v51 = vmax.f32 %v3434_v40, 0.0  ;;  %v2634_v2 = vsub.f32 %v8727_v36, %v11954_v32 }
 0x3e4   : > { %v7450_v62 = vpack.c.bf16 %v2885_v48, %v2883_v25  ;;  %v3045_v17 = vsub.f32 %v11908_v41, %v11951_v8  ;;  %v2498_v33 = vsub.f32 1.0, %v2434_v45  ;;  %v2696_v26 = vand.u32 2147483647, %v2632_v28 }
 0x3e5   : > { %v3560_v34 = vmul.f32 %v3496_v55, %v3232_v35  ;;  %v2560_v54 = vmax.f32 %v2496_v12, 0.0  ;;  %v3562_v53 = vmul.f32 %v3498_v51, %v3234_v38  ;;  %v2698_v56 = vand.u32 2147483647, %v2634_v2 }
 0x3e6   : > { %7451 = vmatpush1.bf16.msra.mxu1 %v7450_v62  ;;  %v3047_v14 = vsub.f32 %v11908_v41, %v11952_v50  ;;  %v3109_v0 = vand.u32 2147483647, %v3045_v17  ;;  %v2562_v16 = vmax.f32 %v2498_v33, 0.0  ;;  %v2760_v23 = vsub.f32 1.0, %v2696_v26 }
 0x3e7   : > { %v3309_v1 = vsub.f32 %v11909_v43, %v11953_v24  ;;  %v3311_v25 = vsub.f32 %v11909_v43, %v11954_v32  ;;  %v7514_v48 = vpack.c.bf16 %v3562_v53, %v3560_v34  ;;  %v2762_v35 = vsub.f32 1.0, %v2698_v56 }
 0x3e8   : > { %v3111_v40 = vand.u32 2147483647, %v3047_v14  ;;  %v3173_v55 = vsub.f32 1.0, %v3109_v0  ;;  %v2824_v45 = vmax.f32 %v2760_v23, 0.0  ;;  %v2367_v28 = vsub.f32 %v11910_v6, %v11951_v8 }
 0x3e9   : > { %v3373_v12 = vand.u32 2147483647, %v3309_v1  ;;  %v3375_v38 = vand.u32 2147483647, %v3311_v25  ;;  %7515 = vmatpush1.bf16.msra.mxu0 %v7514_v48  ;;  %v2826_v62 = vmax.f32 %v2762_v35, 0.0  ;;  %v2369_v17 = vsub.f32 %v11910_v6, %v11952_v50 }
 0x3ea   : > { %v3175_v51 = vsub.f32 1.0, %v3111_v40  ;;  %v3237_v2 = vmax.f32 %v3173_v55, 0.0  ;;  %v2888_v33 = vmul.f32 %v2824_v45, %v2560_v54  ;;  %v2431_v34 = vand.u32 2147483647, %v2367_v28 }
 0x3eb   : > { %v3437_v26 = vsub.f32 1.0, %v3373_v12  ;;  %v3439_v22 = vsub.f32 1.0, %v3375_v38  ;;  %v2890_v53 = vmul.f32 %v2826_v62, %v2562_v16  ;;  %v2433_v14 = vand.u32 2147483647, %v2369_v17 }
 0x3ec   : > { %v3239_v56 = vmax.f32 %v3175_v51, 0.0  ;;  %v2631_v0 = vsub.f32 %v8694_v39, %v11953_v24  ;;  %v2495_v25 = vsub.f32 1.0, %v2431_v34  ;;  %v2633_v48 = vsub.f32 %v8694_v39, %v11954_v32 }
 0x3ed   : > { %v3501_v23 = vmax.f32 %v3437_v26, 0.0  ;;  %v3503_v1 = vmax.f32 %v3439_v22, 0.0  ;;  %v7452_v35 = vpack.c.bf16 %v2890_v53, %v2888_v33  ;;  %v2497_v40 = vsub.f32 1.0, %v2433_v14 }
 0x3ee   : > { %v2695_v55 = vand.u32 2147483647, %v2631_v0  ;;  %v3044_v54 = vsub.f32 %v11911_v18, %v11951_v8  ;;  %v2559_v16 = vmax.f32 %v2495_v25, 0.0  ;;  %v2697_v38 = vand.u32 2147483647, %v2633_v48 }
 0x3ef   : > { %v3565_v45 = vmul.f32 %v3501_v23, %v3237_v2  ;;  %v3567_v12 = vmul.f32 %v3503_v1, %v3239_v56  ;;  %7453 = vmatprep.subr.bf16.mxu1 %v7452_v35  ;;  %v2561_v28 = vmax.f32 %v2497_v40, 0.0  ;;  %v3046_v22 = vsub.f32 %v11911_v18, %v11952_v50 }
 0x3f0   : > { %v2759_v62 = vsub.f32 1.0, %v2695_v55  ;;  %v3108_v51 = vand.u32 2147483647, %v3044_v54  ;;  %v2761_v26 = vsub.f32 1.0, %v2697_v38  ;;  %v3308_v33 = vsub.f32 %v11912_v5, %v11953_v24 }
 0x3f1   : > { %v7516_v17 = vpack.c.bf16 %v3567_v12, %v3565_v45  ;;  %v3310_v34 = vsub.f32 %v11912_v5, %v11954_v32  ;;  %v3110_v2 = vand.u32 2147483647, %v3046_v22  ;;  %v2372_v14 = vsub.f32 %v8629_v60, %v9409_v9 }
 0x3f2   : > { %v2823_v53 = vmax.f32 %v2759_v62, 0.0  ;;  %v3172_v56 = vsub.f32 1.0, %v3108_v51  ;;  %v2825_v0 = vmax.f32 %v2761_v26, 0.0  ;;  %v3372_v23 = vand.u32 2147483647, %v3308_v33 }
 0x3f3   : > { %7517 = vmatprep.subr.bf16.mxu0 %v7516_v17  ;;  %v3374_v1 = vand.u32 2147483647, %v3310_v34  ;;  %v2374_v25 = vsub.f32 %v8629_v60, %v9415_v27  ;;  %v3174_v35 = vsub.f32 1.0, %v3110_v2  ;;  %v2436_v55 = vand.u32 2147483647, %v2372_v14 }
 0x3f4   : > { %v2887_v48 = vmul.f32 %v2823_v53, %v2559_v16  ;;  %v3236_v40 = vmax.f32 %v3172_v56, 0.0  ;;  %v2889_v54 = vmul.f32 %v2825_v0, %v2561_v28  ;;  %v3436_v45 = vsub.f32 1.0, %v3372_v23 }
 0x3f5   : > { %v3438_v12 = vsub.f32 1.0, %v3374_v1  ;;  %v2438_v38 = vand.u32 2147483647, %v2374_v25  ;;  %v3238_v62 = vmax.f32 %v3174_v35, 0.0  ;;  %v2500_v22 = vsub.f32 1.0, %v2436_v55 }
 0x3f6   : > { %v2636_v51 = vsub.f32 %v8727_v36, %v9437_v29  ;;  %v2638_v17 = vsub.f32 %v8727_v36, %v9441_v46  ;;  %v7454_v26 = vpack.c.bf16 %v2889_v54, %v2887_v48  ;;  %v3500_v33 = vmax.f32 %v3436_v45, 0.0 }
 0x3f7   : > { %v3502_v34 = vmax.f32 %v3438_v12, 0.0  ;;  %v2502_v32 = vsub.f32 1.0, %v2438_v38  ;;  %v2564_v16 = vmax.f32 %v2500_v22, 0.0  ;;  %v3049_v28 = vsub.f32 %v11908_v41, %v9409_v9 }
 0x3f8   : > { %v2700_v53 = vand.u32 2147483647, %v2636_v51  ;;  %v2702_v2 = vand.u32 2147483647, %v2638_v17  ;;  %7455 = vmatpush1.bf16.msra.mxu1 %v7454_v26  ;;  %v3564_v56 = vmul.f32 %v3500_v33, %v3236_v40  ;;  %v3051_v23 = vsub.f32 %v11908_v41, %v9415_v27 }
 0x3f9   : > { %v3566_v14 = vmul.f32 %v3502_v34, %v3238_v62  ;;  %v2566_v0 = vmax.f32 %v2502_v32, 0.0  ;;  %v3113_v35 = vand.u32 2147483647, %v3049_v28  ;;  %v3313_v48 = vsub.f32 %v11909_v43, %v9437_v29 }
 0x3fa   : > { %v2764_v1 = vsub.f32 1.0, %v2700_v53  ;;  %v2766_v25 = vsub.f32 1.0, %v2702_v2  ;;  %v3115_v54 = vand.u32 2147483647, %v3051_v23  ;;  %v3315_v45 = vsub.f32 %v11909_v43, %v9441_v46 }
 0x3fb   : > { %v7518_v55 = vpack.c.bf16 %v3566_v14, %v3564_v56  ;;  %v2371_v12 = vsub.f32 %v11910_v6, %v9409_v9  ;;  %v3177_v32 = vsub.f32 1.0, %v3113_v35  ;;  %v3377_v62 = vand.u32 2147483647, %v3313_v48 }
 0x3fc   : > { %v2828_v40 = vmax.f32 %v2764_v1, 0.0  ;;  %v2830_v38 = vmax.f32 %v2766_v25, 0.0  ;;  %v3179_v22 = vsub.f32 1.0, %v3115_v54  ;;  %v3379_v51 = vand.u32 2147483647, %v3315_v45 }
 0x3fd   : > { %7519 = vmatpush1.bf16.msra.mxu0 %v7518_v55  ;;  %v2373_v17 = vsub.f32 %v11910_v6, %v9415_v27  ;;  %v2435_v26 = vand.u32 2147483647, %v2371_v12  ;;  %v3241_v53 = vmax.f32 %v3177_v32, 0.0  ;;  %v3441_v2 = vsub.f32 1.0, %v3377_v62 }
 0x3fe   : > { %v2892_v33 = vmul.f32 %v2828_v40, %v2564_v16  ;;  %v2894_v34 = vmul.f32 %v2830_v38, %v2566_v0  ;;  %v3243_v28 = vmax.f32 %v3179_v22, 0.0  ;;  %v3443_v56 = vsub.f32 1.0, %v3379_v51 }
 0x3ff   : > { %v2437_v14 = vand.u32 2147483647, %v2373_v17  ;;  %v2499_v23 = vsub.f32 1.0, %v2435_v26  ;;  %v3505_v1 = vmax.f32 %v3441_v2, 0.0  ;;  %v2635_v25 = vsub.f32 %v8694_v39, %v9437_v29 }
 0x400   : > { %v7456_v24 = vpack.c.bf16 %v2894_v34, %v2892_v33  ;;  %v2637_v35 = vsub.f32 %v8694_v39, %v9441_v46  ;;  %v3507_v48 = vmax.f32 %v3443_v56, 0.0  ;;  %v3048_v16 = vsub.f32 %v11911_v18, %v9409_v9 }
 0x401   : > { %v2501_v55 = vsub.f32 1.0, %v2437_v14  ;;  %v2563_v54 = vmax.f32 %v2499_v23, 0.0  ;;  %v3569_v0 = vmul.f32 %v3505_v1, %v3241_v53  ;;  %v2699_v45 = vand.u32 2147483647, %v2635_v25 }
 0x402   : > { %7457 = vmatprep.subr.bf16.mxu1 %v7456_v24  ;;  %v2701_v12 = vand.u32 2147483647, %v2637_v35  ;;  %v3050_v40 = vsub.f32 %v11911_v18, %v9415_v27  ;;  %v3571_v38 = vmul.f32 %v3507_v48, %v3243_v28  ;;  %v3112_v62 = vand.u32 2147483647, %v3048_v16 }
 0x403   : > { %v2565_v32 = vmax.f32 %v2501_v55, 0.0  ;;  %v3312_v22 = vsub.f32 %v11912_v5, %v9437_v29  ;;  %v2763_v51 = vsub.f32 1.0, %v2699_v45  ;;  %v3314_v33 = vsub.f32 %v11912_v5, %v9441_v46 }
 0x404   : > { %v2765_v17 = vsub.f32 1.0, %v2701_v12  ;;  %v3114_v26 = vand.u32 2147483647, %v3050_v40  ;;  %v7520_v34 = vpack.c.bf16 %v3571_v38, %v3569_v0  ;;  %v3176_v24 = vsub.f32 1.0, %v3112_v62 }
 0x405   : > { %v3376_v53 = vand.u32 2147483647, %v3312_v22  ;;  %v2376_v2 = vsub.f32 %v8629_v60, %v9464_v44  ;;  %v2827_v56 = vmax.f32 %v2763_v51, 0.0  ;;  %v3378_v23 = vand.u32 2147483647, %v3314_v33 }
 0x406   : > { %v2829_v14 = vmax.f32 %v2765_v17, 0.0  ;;  %v3178_v28 = vsub.f32 1.0, %v3114_v26  ;;  %7521 = vmatprep.subr.bf16.mxu0 %v7520_v34  ;;  %v3240_v1 = vmax.f32 %v3176_v24, 0.0  ;;  %v2378_v35 = vsub.f32 %v8629_v60, %v9468_v31 }
 0x407   : > { %v3440_v25 = vsub.f32 1.0, %v3376_v53  ;;  %v2440_v48 = vand.u32 2147483647, %v2376_v2  ;;  %v2891_v55 = vmul.f32 %v2827_v56, %v2563_v54  ;;  %v3442_v0 = vsub.f32 1.0, %v3378_v23 }
 0x408   : > { %v2893_v16 = vmul.f32 %v2829_v14, %v2565_v32  ;;  %v3242_v45 = vmax.f32 %v3178_v28, 0.0  ;;  %v2442_v40 = vand.u32 2147483647, %v2378_v35  ;;  %v2640_v62 = vsub.f32 %v8727_v36, %v9474_v37 }
 0x409   : > { %v3504_v12 = vmax.f32 %v3440_v25, 0.0  ;;  %v2504_v38 = vsub.f32 1.0, %v2440_v48  ;;  %v3506_v51 = vmax.f32 %v3442_v0, 0.0  ;;  %v2642_v17 = vsub.f32 %v8727_v36, %v9487_v13 }
 0x40a   : > { %v7458_v22 = vpack.c.bf16 %v2893_v16, %v2891_v55  ;;  %v3053_v26 = vsub.f32 %v11908_v41, %v9464_v44  ;;  %v2506_v33 = vsub.f32 1.0, %v2442_v40  ;;  %v2704_v32 = vand.u32 2147483647, %v2640_v62 }
 0x40b   : > { %v3568_v60 = vmul.f32 %v3504_v12, %v3240_v1  ;;  %v2568_v54 = vmax.f32 %v2504_v38, 0.0  ;;  %v3570_v34 = vmul.f32 %v3506_v51, %v3242_v45  ;;  %v2706_v24 = vand.u32 2147483647, %v2642_v17 }
 0x40c   : > { %7459 = vmatpush1.bf16.msra.mxu1 %v7458_v22  ;;  %v3055_v53 = vsub.f32 %v11908_v41, %v9468_v31  ;;  %v3117_v2 = vand.u32 2147483647, %v3053_v26  ;;  %v2570_v56 = vmax.f32 %v2506_v33, 0.0  ;;  %v2768_v14 = vsub.f32 1.0, %v2704_v32 }
 0x40d   : > { %v3317_v28 = vsub.f32 %v11909_v43, %v9474_v37  ;;  %v3319_v36 = vsub.f32 %v11909_v43, %v9487_v13  ;;  %v7522_v23 = vpack.c.bf16 %v3570_v34, %v3568_v60  ;;  %v2770_v1 = vsub.f32 1.0, %v2706_v24 }
 0x40e   : > { %v3119_v25 = vand.u32 2147483647, %v3055_v53  ;;  %v3181_v35 = vsub.f32 1.0, %v3117_v2  ;;  %v2832_v48 = vmax.f32 %v2768_v14, 0.0  ;;  %v2375_v45 = vsub.f32 %v11910_v6, %v9464_v44 }
 0x40f   : > { %v3381_v55 = vand.u32 2147483647, %v3317_v28  ;;  %v3383_v16 = vand.u32 2147483647, %v3319_v36  ;;  %7523 = vmatpush1.bf16.msra.mxu0 %v7522_v23  ;;  %v2834_v41 = vmax.f32 %v2770_v1, 0.0  ;;  %v2377_v40 = vsub.f32 %v11910_v6, %v9468_v31 }
 0x410   : > { %v3183_v0 = vsub.f32 1.0, %v3119_v25  ;;  %v3245_v12 = vmax.f32 %v3181_v35, 0.0  ;;  %v2896_v38 = vmul.f32 %v2832_v48, %v2568_v54  ;;  %v2439_v22 = vand.u32 2147483647, %v2375_v45 }
 0x411   : > { %v3445_v62 = vsub.f32 1.0, %v3381_v55  ;;  %v3447_v43 = vsub.f32 1.0, %v3383_v16  ;;  %v2898_v51 = vmul.f32 %v2834_v41, %v2570_v56  ;;  %v2441_v26 = vand.u32 2147483647, %v2377_v40 }
 0x412   : > { %v3247_v17 = vmax.f32 %v3183_v0, 0.0  ;;  %v2639_v60 = vsub.f32 %v8694_v39, %v9474_v37  ;;  %v2503_v34 = vsub.f32 1.0, %v2439_v22  ;;  %v2641_v24 = vsub.f32 %v8694_v39, %v9487_v13 }
 0x413   : > { %v3509_v33 = vmax.f32 %v3445_v62, 0.0  ;;  %v3511_v32 = vmax.f32 %v3447_v43, 0.0  ;;  %v7460_v53 = vpack.c.bf16 %v2898_v51, %v2896_v38  ;;  %v2505_v2 = vsub.f32 1.0, %v2441_v26 }
 0x414   : > { %v2703_v14 = vand.u32 2147483647, %v2639_v60  ;;  %v3052_v6 = vsub.f32 %v11911_v18, %v9464_v44  ;;  %v2567_v56 = vmax.f32 %v2503_v34, 0.0  ;;  %v2705_v36 = vand.u32 2147483647, %v2641_v24 }
 0x415   : > { %v3573_v54 = vmul.f32 %v3509_v33, %v3245_v12  ;;  %v3575_v28 = vmul.f32 %v3511_v32, %v3247_v17  ;;  %7461 = vmatprep.subr.bf16.mxu1 %v7460_v53  ;;  %v2569_v23 = vmax.f32 %v2505_v2, 0.0  ;;  %v3054_v25 = vsub.f32 %v11911_v18, %v9468_v31  ;;  %v11955_v12 = vld [vmem:[#allocation44_spill] sm:$0xff]  ;;  %v11956_v53 = vld [vmem:[#allocation45_spill] sm:$0xff] }
 0x416   : > { %v2767_v1 = vsub.f32 1.0, %v2703_v14  ;;  %v3116_v35 = vand.u32 2147483647, %v3052_v6  ;;  %v2769_v55 = vsub.f32 1.0, %v2705_v36  ;;  %v3316_v39 = vsub.f32 %v11912_v5, %v9474_v37 }
 0x417   : > { %v7524_v48 = vpack.c.bf16 %v3575_v28, %v3573_v54  ;;  %v3318_v16 = vsub.f32 %v11912_v5, %v9487_v13  ;;  %v3118_v41 = vand.u32 2147483647, %v3054_v25  ;;  %v3670_v40 = vsub.f32 %v11955_v12, %v8426_v59 }
 0x418   : > { %v2831_v45 = vmax.f32 %v2767_v1, 0.0  ;;  %v3180_v0 = vsub.f32 1.0, %v3116_v35  ;;  %v2833_v38 = vmax.f32 %v2769_v55, 0.0  ;;  %v3380_v62 = vand.u32 2147483647, %v3316_v39 }
 0x419   : > { %7525 = vmatprep.subr.bf16.mxu0 %v7524_v48  ;;  %v3382_v43 = vand.u32 2147483647, %v3318_v16  ;;  %v3672_v18 = vsub.f32 %v11955_v12, %v8449_v10  ;;  %v3182_v51 = vsub.f32 1.0, %v3118_v41  ;;  %v3734_v26 = vand.u32 2147483647, %v3670_v40  ;;  %v11958_v40 = vld [vmem:[#allocation54_spill] sm:$0xff] }
 0x41a   : > { %v2895_v22 = vmul.f32 %v2831_v45, %v2567_v56  ;;  %v3244_v17 = vmax.f32 %v3180_v0, 0.0  ;;  %v2897_v60 = vmul.f32 %v2833_v38, %v2569_v23  ;;  %v3444_v33 = vsub.f32 1.0, %v3380_v62  ;;  %v11957_v23 = vld [vmem:[#allocation46_spill] sm:$0xff] }
 0x41b   : > { %v3446_v5 = vsub.f32 1.0, %v3382_v43  ;;  %v3736_v32 = vand.u32 2147483647, %v3672_v18  ;;  %v3246_v34 = vmax.f32 %v3182_v51, 0.0  ;;  %v3798_v24 = vsub.f32 1.0, %v3734_v26 }
 0x41c   : > { %v3934_v2 = vsub.f32 %v11956_v53, %v8494_v47  ;;  %v3936_v14 = vsub.f32 %v11956_v53, %v8504_v4  ;;  %v7462_v6 = vpack.c.bf16 %v2897_v60, %v2895_v22  ;;  %v3508_v54 = vmax.f32 %v3444_v33, 0.0  ;;  %v11959_v22 = vld [vmem:[#allocation39_spill] sm:$0xff] }
 0x41d   : > { %v3510_v28 = vmax.f32 %v3446_v5, 0.0  ;;  %v3800_v36 = vsub.f32 1.0, %v3736_v32  ;;  %v3862_v56 = vmax.f32 %v3798_v24, 0.0  ;;  %v4345_v35 = vsub.f32 %v11957_v23, %v8426_v59  ;;  %v7901_v5 = vld [vmem:[%s9217_s15] sm:$0xff] }
 0x41e   : > { %v3998_v1 = vand.u32 2147483647, %v3934_v2  ;;  %v4000_v25 = vand.u32 2147483647, %v3936_v14  ;;  %7463 = vmatpush1.bf16.msra.mxu1 %v7462_v6  ;;  %v3572_v48 = vmul.f32 %v3508_v54, %v3244_v17  ;;  %v4347_v16 = vsub.f32 %v11957_v23, %v8449_v10  ;;  %v7902_v14 = vld [vmem:[%s9217_s15 + $0x8] sm:$0xff] }
 0x41f   : > { %v3574_v55 = vmul.f32 %v3510_v28, %v3246_v34  ;;  %v3864_v39 = vmax.f32 %v3800_v36, 0.0  ;;  %v4409_v0 = vand.u32 2147483647, %v4345_v35  ;;  %v4609_v38 = vsub.f32 %v11958_v40, %v8494_v47 }
 0x420   : > { %v4062_v45 = vsub.f32 1.0, %v3998_v1  ;;  %v4064_v41 = vsub.f32 1.0, %v4000_v25  ;;  %v4411_v43 = vand.u32 2147483647, %v4347_v16  ;;  %v4611_v18 = vsub.f32 %v11958_v40, %v8504_v4 }
 0x421   : > { %v7526_v62 = vpack.c.bf16 %v3574_v55, %v3572_v48  ;;  %v3669_v51 = vsub.f32 %v11959_v22, %v8426_v59  ;;  %v4473_v60 = vsub.f32 1.0, %v4409_v0  ;;  %v4673_v33 = vand.u32 2147483647, %v4609_v38  ;;  %2964 = vmatmul.mubr.f32.vlgmr.msra.gmra.mrb[2].mxu1 %v7901_v5 }
 0x422   : > { %v4126_v17 = vmax.f32 %v4062_v45, 0.0  ;;  %v4128_v26 = vmax.f32 %v4064_v41, 0.0  ;;  %v4475_v32 = vsub.f32 1.0, %v4411_v43  ;;  %v4675_v34 = vand.u32 2147483647, %v4611_v18  ;;  %4317 = vmatprep.mubr.f32.mxu1 %v7902_v14  ;;  %v11960_v45 = vld [vmem:[#allocation40_spill] sm:$0xff] }
 0x423   : > { %7527 = vmatpush1.bf16.msra.mxu0 %v7526_v62  ;;  %v3671_v24 = vsub.f32 %v11959_v22, %v8449_v10  ;;  %v3733_v2 = vand.u32 2147483647, %v3669_v51  ;;  %v4537_v28 = vmax.f32 %v4473_v60, 0.0  ;;  %v4737_v36 = vsub.f32 1.0, %v4673_v33 }
 0x424   : > { %v4190_v6 = vmul.f32 %v4126_v17, %v3862_v56  ;;  %v4192_v54 = vmul.f32 %v4128_v26, %v3864_v39  ;;  %v4539_v1 = vmax.f32 %v4475_v32, 0.0  ;;  %v4739_v25 = vsub.f32 1.0, %v4675_v34  ;;  %v11961_v56 = vld [vmem:[#allocation41_spill] sm:$0xff] }
 0x425   : > { %v3735_v35 = vand.u32 2147483647, %v3671_v24  ;;  %v3797_v48 = vsub.f32 1.0, %v3733_v2  ;;  %v4801_v16 = vmax.f32 %v4737_v36, 0.0  ;;  %v3933_v41 = vsub.f32 %v11960_v45, %v8494_v47  ;;  %v11962_v32 = vld [vmem:[#allocation49_spill] sm:$0xff] }
 0x426   : > { %v7528_v55 = vpack.c.bf16 %v4192_v54, %v4190_v6  ;;  %3641 = vmatmul.mubr.f32.vlgmr.msra.gmra.mrb[10].mxu0 %v7901_v5  ;;  %v3935_v0 = vsub.f32 %v11960_v45, %v8504_v4  ;;  %v4803_v38 = vmax.f32 %v4739_v25, 0.0  ;;  %v4344_v39 = vsub.f32 %v11961_v56, %v8426_v59 }
 0x427   : > { %v3799_v62 = vsub.f32 1.0, %v3735_v35  ;;  %v3861_v43 = vmax.f32 %v3797_v48, 0.0  ;;  %4992 = vmatprep.mubr.f32.mxu0 %v7902_v14  ;;  %v4865_v18 = vmul.f32 %v4801_v16, %v4537_v28  ;;  %v3997_v51 = vand.u32 2147483647, %v3933_v41 }
 0x428   : > { %7529 = vmatprep.subr.bf16.mxu1 %v7528_v55  ;;  %v3999_v17 = vand.u32 2147483647, %v3935_v0  ;;  %v4346_v26 = vsub.f32 %v11961_v56, %v8449_v10  ;;  %v4867_v60 = vmul.f32 %v4803_v38, %v4539_v1  ;;  %v4408_v5 = vand.u32 2147483647, %v4344_v39 }
 0x429   : > { %v3863_v33 = vmax.f32 %v3799_v62, 0.0  ;;  %v4608_v34 = vsub.f32 %v11962_v32, %v8494_v47  ;;  %v4061_v24 = vsub.f32 1.0, %v3997_v51  ;;  %v4610_v54 = vsub.f32 %v11962_v32, %v8504_v4  ;;  %v10063_v62 = vpop.permute.xlu0 %559 }
 0x42a   : > { %v4063_v2 = vsub.f32 1.0, %v3999_v17  ;;  %v4410_v6 = vand.u32 2147483647, %v4346_v26  ;;  %v7592_v14 = vpack.c.bf16 %v4867_v60, %v4865_v18  ;;  %v4472_v36 = vsub.f32 1.0, %v4408_v5  ;;  %11963 = vst [vmem:[#allocation37_spill] sm:$0xff] %v10063_v62 }
 0x42b   : > { %v4672_v28 = vand.u32 2147483647, %v4608_v34  ;;  %v3674_v25 = vsub.f32 %v11955_v12, %v8455_v49  ;;  %v4125_v35 = vmax.f32 %v4061_v24, 0.0  ;;  %v4674_v55 = vand.u32 2147483647, %v4610_v54 }
 0x42c   : > { %v4127_v48 = vmax.f32 %v4063_v2, 0.0  ;;  %v4474_v1 = vsub.f32 1.0, %v4410_v6  ;;  %7593 = vmatprep.subr.bf16.mxu0 %v7592_v14  ;;  %v4536_v16 = vmax.f32 %v4472_v36, 0.0  ;;  %v3676_v0 = vsub.f32 %v11955_v12, %v8464_v57 }
 0x42d   : > { %v4736_v41 = vsub.f32 1.0, %v4672_v28  ;;  %v3738_v38 = vand.u32 2147483647, %v3674_v25  ;;  %v4189_v39 = vmul.f32 %v4125_v35, %v3861_v43  ;;  %v4738_v17 = vsub.f32 1.0, %v4674_v55 }
 0x42e   : > { %v4191_v18 = vmul.f32 %v4127_v48, %v3863_v33  ;;  %v4538_v51 = vmax.f32 %v4474_v1, 0.0  ;;  %v3740_v60 = vand.u32 2147483647, %v3676_v0  ;;  %v3938_v34 = vsub.f32 %v11956_v53, %v8515_v61  ;;  %v675_v1 = vpop.xlane.xlu0 %674 }
 0x42f   : > { %v4800_v26 = vmax.f32 %v4736_v41, 0.0  ;;  %v3802_v5 = vsub.f32 1.0, %v3738_v38  ;;  %v4802_v2 = vmax.f32 %v4738_v17, 0.0  ;;  %v3940_v6 = vsub.f32 %v11956_v53, %v8522_v3 }
 0x430   : > { %v7530_v24 = vpack.c.bf16 %v4191_v18, %v4189_v39  ;;  %v4349_v54 = vsub.f32 %v11957_v23, %v8455_v49  ;;  %v3804_v36 = vsub.f32 1.0, %v3740_v60  ;;  %v4002_v33 = vand.u32 2147483647, %v3938_v34 }
 0x431   : > { %v4864_v14 = vmul.f32 %v4800_v26, %v4536_v16  ;;  %v3866_v43 = vmax.f32 %v3802_v5, 0.0  ;;  %v4866_v28 = vmul.f32 %v4802_v2, %v4538_v51  ;;  %v4004_v25 = vand.u32 2147483647, %v3940_v6  ;;  %v672_v16 = vpop.xlane.xlu1 %671 }
 0x432   : > { %7531 = vmatpush1.bf16.msra.mxu1 %v7530_v24  ;;  %v4351_v35 = vsub.f32 %v11957_v23, %v8464_v57  ;;  %v4413_v48 = vand.u32 2147483647, %v4349_v54  ;;  %v3868_v55 = vmax.f32 %v3804_v36, 0.0  ;;  %v4066_v41 = vsub.f32 1.0, %v4002_v33 }
 0x433   : > { %v4613_v0 = vsub.f32 %v11958_v40, %v8515_v61  ;;  %v4615_v38 = vsub.f32 %v11958_v40, %v8522_v3  ;;  %v7594_v39 = vpack.c.bf16 %v4866_v28, %v4864_v14  ;;  %v4068_v18 = vsub.f32 1.0, %v4004_v25 }
 0x434   : > { %v4415_v17 = vand.u32 2147483647, %v4351_v35  ;;  %v4477_v26 = vsub.f32 1.0, %v4413_v48  ;;  %v4130_v51 = vmax.f32 %v4066_v41, 0.0  ;;  %v10077_v34 = vadd.f32 %v675_v1, %v672_v16 }
 0x435   : > { %v4677_v60 = vand.u32 2147483647, %v4613_v0  ;;  %v4679_v5 = vand.u32 2147483647, %v4615_v38  ;;  %7595 = vmatpush1.bf16.msra.mxu0 %v7594_v39  ;;  %v4132_v24 = vmax.f32 %v4068_v18, 0.0  ;;  %v3673_v54 = vsub.f32 %v11959_v22, %v8455_v49 }
 0x436   : > { %v4479_v2 = vsub.f32 1.0, %v4415_v17  ;;  %v4541_v6 = vmax.f32 %v4477_v26, 0.0  ;;  %v4194_v36 = vmul.f32 %v4130_v51, %v3866_v43  ;;  %v3675_v14 = vsub.f32 %v11959_v22, %v8464_v57 }
 0x437   : > { %v4741_v33 = vsub.f32 1.0, %v4677_v60  ;;  %v4743_v62 = vsub.f32 1.0, %v4679_v5  ;;  %v4196_v28 = vmul.f32 %v4132_v24, %v3868_v55  ;;  %v3737_v35 = vand.u32 2147483647, %v3673_v54 }
 0x438   : > { %v4543_v25 = vmax.f32 %v4479_v2, 0.0  ;;  %v3937_v48 = vsub.f32 %v11960_v45, %v8515_v61  ;;  %v3739_v0 = vand.u32 2147483647, %v3675_v14  ;;  %v3939_v38 = vsub.f32 %v11960_v45, %v8522_v3 }
 0x439   : > { %v4805_v1 = vmax.f32 %v4741_v33, 0.0  ;;  %v4807_v41 = vmax.f32 %v4743_v62, 0.0  ;;  %v7532_v16 = vpack.c.bf16 %v4196_v28, %v4194_v36  ;;  %v3801_v39 = vsub.f32 1.0, %v3737_v35 }
 0x43a   : > { %v4001_v43 = vand.u32 2147483647, %v3937_v48  ;;  %v4348_v18 = vsub.f32 %v11961_v56, %v8455_v49  ;;  %v3803_v55 = vsub.f32 1.0, %v3739_v0  ;;  %v4003_v51 = vand.u32 2147483647, %v3939_v38 }
 0x43b   : > { %v4869_v17 = vmul.f32 %v4805_v1, %v4541_v6  ;;  %v4871_v26 = vmul.f32 %v4807_v41, %v4543_v25  ;;  %7533 = vmatprep.subr.bf16.mxu1 %v7532_v16  ;;  %v3865_v60 = vmax.f32 %v3801_v39, 0.0  ;;  %v4350_v62 = vsub.f32 %v11961_v56, %v8464_v57 }
 0x43c   : > { %v4065_v5 = vsub.f32 1.0, %v4001_v43  ;;  %v4412_v24 = vand.u32 2147483647, %v4348_v18  ;;  %v3867_v54 = vmax.f32 %v3803_v55, 0.0  ;;  %v4067_v33 = vsub.f32 1.0, %v4003_v51 }
 0x43d   : > { %v7596_v2 = vpack.c.bf16 %v4871_v26, %v4869_v17  ;;  %v4612_v36 = vsub.f32 %v11962_v32, %v8515_v61  ;;  %v4414_v28 = vand.u32 2147483647, %v4350_v62  ;;  %v4614_v6 = vsub.f32 %v11962_v32, %v8522_v3 }
 0x43e   : > { %v4129_v14 = vmax.f32 %v4065_v5, 0.0  ;;  %v4476_v35 = vsub.f32 1.0, %v4412_v24  ;;  %v4131_v25 = vmax.f32 %v4067_v33, 0.0  ;;  %v3678_v1 = vsub.f32 %v11955_v12, %v11845_v19 }
 0x43f   : > { %7597 = vmatprep.subr.bf16.mxu0 %v7596_v2  ;;  %v4676_v48 = vand.u32 2147483647, %v4612_v36  ;;  %v3680_v41 = vsub.f32 %v11955_v12, %v11846_v52  ;;  %v4478_v38 = vsub.f32 1.0, %v4414_v28  ;;  %v4678_v39 = vand.u32 2147483647, %v4614_v6 }
 0x440   : > { %v4193_v0 = vmul.f32 %v4129_v14, %v3865_v60  ;;  %v4540_v16 = vmax.f32 %v4476_v35, 0.0  ;;  %v4195_v43 = vmul.f32 %v4131_v25, %v3867_v54  ;;  %v3742_v17 = vand.u32 2147483647, %v3678_v1 }
 0x441   : > { %v4740_v18 = vsub.f32 1.0, %v4676_v48  ;;  %v3744_v26 = vand.u32 2147483647, %v3680_v41  ;;  %v4542_v55 = vmax.f32 %v4478_v38, 0.0  ;;  %v4742_v51 = vsub.f32 1.0, %v4678_v39 }
 0x442   : > { %v3942_v5 = vsub.f32 %v11956_v53, %v8526_v58  ;;  %v3944_v62 = vsub.f32 %v11956_v53, %v8530_v20  ;;  %v7534_v24 = vpack.c.bf16 %v4195_v43, %v4193_v0  ;;  %v3806_v33 = vsub.f32 1.0, %v3742_v17 }
 0x443   : > { %v4804_v2 = vmax.f32 %v4740_v18, 0.0  ;;  %v3808_v36 = vsub.f32 1.0, %v3744_v26  ;;  %v4806_v60 = vmax.f32 %v4742_v51, 0.0  ;;  %v4353_v54 = vsub.f32 %v11957_v23, %v11845_v19 }
 0x444   : > { %v4006_v14 = vand.u32 2147483647, %v3942_v5  ;;  %v4008_v28 = vand.u32 2147483647, %v3944_v62  ;;  %7535 = vmatpush1.bf16.msra.mxu1 %v7534_v24  ;;  %v3870_v6 = vmax.f32 %v3806_v33, 0.0  ;;  %v4355_v48 = vsub.f32 %v11957_v23, %v11846_v52 }
 0x445   : > { %v4868_v35 = vmul.f32 %v4804_v2, %v4540_v16  ;;  %v3872_v25 = vmax.f32 %v3808_v36, 0.0  ;;  %v4870_v1 = vmul.f32 %v4806_v60, %v4542_v55  ;;  %v4417_v0 = vand.u32 2147483647, %v4353_v54 }
 0x446   : > { %v4070_v41 = vsub.f32 1.0, %v4006_v14  ;;  %v4072_v38 = vsub.f32 1.0, %v4008_v28  ;;  %v4419_v39 = vand.u32 2147483647, %v4355_v48  ;;  %v4617_v43 = vsub.f32 %v11958_v40, %v8526_v58 }
 0x447   : > { %v4619_v18 = vsub.f32 %v11958_v40, %v8530_v20  ;;  %v3677_v17 = vsub.f32 %v11959_v22, %v11845_v19  ;;  %v7598_v16 = vpack.c.bf16 %v4870_v1, %v4868_v35  ;;  %v4481_v5 = vsub.f32 1.0, %v4417_v0 }
 0x448   : > { %v4134_v26 = vmax.f32 %v4070_v41, 0.0  ;;  %v4136_v51 = vmax.f32 %v4072_v38, 0.0  ;;  %v4483_v62 = vsub.f32 1.0, %v4419_v39  ;;  %v4681_v24 = vand.u32 2147483647, %v4617_v43 }
 0x449   : > { %v4683_v55 = vand.u32 2147483647, %v4619_v18  ;;  %v3679_v2 = vsub.f32 %v11959_v22, %v11846_v52  ;;  %7599 = vmatpush1.bf16.msra.mxu0 %v7598_v16  ;;  %v4545_v60 = vmax.f32 %v4481_v5, 0.0  ;;  %v3741_v14 = vand.u32 2147483647, %v3677_v17  ;;  %v681_v16 = vpop.xlane.xlu0 %680 }
 0x44a   : > { %v4198_v33 = vmul.f32 %v4134_v26, %v3870_v6  ;;  %v4200_v36 = vmul.f32 %v4136_v51, %v3872_v25  ;;  %v4547_v28 = vmax.f32 %v4483_v62, 0.0  ;;  %v4745_v54 = vsub.f32 1.0, %v4681_v24 }
 0x44b   : > { %v4747_v48 = vsub.f32 1.0, %v4683_v55  ;;  %v3743_v3 = vand.u32 2147483647, %v3679_v2  ;;  %v3805_v35 = vsub.f32 1.0, %v3741_v14  ;;  %v3941_v1 = vsub.f32 %v11960_v45, %v8526_v58 }
 0x44c   : > { %v7536_v61 = vpack.c.bf16 %v4200_v36, %v4198_v33  ;;  %v3943_v41 = vsub.f32 %v11960_v45, %v8530_v20  ;;  %v4809_v38 = vmax.f32 %v4745_v54, 0.0  ;;  %v4352_v6 = vsub.f32 %v11961_v56, %v11845_v19 }
 0x44d   : > { %v4811_v0 = vmax.f32 %v4747_v48, 0.0  ;;  %v3807_v39 = vsub.f32 1.0, %v3743_v3  ;;  %v3869_v25 = vmax.f32 %v3805_v35, 0.0  ;;  %v4005_v43 = vand.u32 2147483647, %v3941_v1 }
 0x44e   : > { %7537 = vmatprep.subr.bf16.mxu1 %v7536_v61  ;;  %v4007_v18 = vand.u32 2147483647, %v3943_v41  ;;  %v4354_v17 = vsub.f32 %v11961_v56, %v11846_v52  ;;  %v4873_v26 = vmul.f32 %v4809_v38, %v4545_v60  ;;  %v4416_v62 = vand.u32 2147483647, %v4352_v6 }
 0x44f   : > { %v4875_v51 = vmul.f32 %v4811_v0, %v4547_v28  ;;  %v3871_v5 = vmax.f32 %v3807_v39, 0.0  ;;  %v4069_v24 = vsub.f32 1.0, %v4005_v43  ;;  %v4616_v3 = vsub.f32 %v11962_v32, %v8526_v58 }
 0x450   : > { %v4071_v55 = vsub.f32 1.0, %v4007_v18  ;;  %v4418_v2 = vand.u32 2147483647, %v4354_v17  ;;  %v4480_v36 = vsub.f32 1.0, %v4416_v62  ;;  %v4618_v61 = vsub.f32 %v11962_v32, %v8530_v20 }
 0x451   : > { %v7600_v33 = vpack.c.bf16 %v4875_v51, %v4873_v26  ;;  %v683_v14 = vsel %vm676_vm11, %v681_v16, 0.0  ;;  %v4133_v54 = vmax.f32 %v4069_v24, 0.0  ;;  %v4680_v60 = vand.u32 2147483647, %v4616_v3 }
 0x452   : > { %v4135_v48 = vmax.f32 %v4071_v55, 0.0  ;;  %v4482_v35 = vsub.f32 1.0, %v4418_v2  ;;  %v4544_v28 = vmax.f32 %v4480_v36, 0.0  ;;  %v4682_v1 = vand.u32 2147483647, %v4618_v61 }
 0x453   : > { %7601 = vmatprep.subr.bf16.mxu0 %v7600_v33  ;;  %v684_v41 = vadd.f32 %v683_v14, %v10077_v34  ;;  %v3682_v38 = vsub.f32 %v11955_v12, %v11847_v7  ;;  %v4197_v0 = vmul.f32 %v4133_v54, %v3869_v25  ;;  %v4744_v43 = vsub.f32 1.0, %v4680_v60 }
 0x454   : > { %v4199_v39 = vmul.f32 %v4135_v48, %v3871_v5  ;;  %v4546_v6 = vmax.f32 %v4482_v35, 0.0  ;;  %v4746_v18 = vsub.f32 1.0, %v4682_v1  ;;  %v3684_v16 = vsub.f32 %v11955_v12, %v11913_v42 }
 0x455   : > { %v685_v17 = vrot.slane %v684_v41, 4  ;;  %v3746_v26 = vand.u32 2147483647, %v3682_v38  ;;  %v4808_v62 = vmax.f32 %v4744_v43, 0.0  ;;  %v3946_v24 = vsub.f32 %v11956_v53, %v11914_v30 }
 0x456   : > { %v7538_v51 = vpack.c.bf16 %v4199_v39, %v4197_v0  ;;  %v3948_v34 = vsub.f32 %v11956_v53, %v11915_v15  ;;  %v4810_v55 = vmax.f32 %v4746_v18, 0.0  ;;  %v3748_v25 = vand.u32 2147483647, %v3684_v16 }
 0x457   : > { %v686_v2 = vadd.f32 %v685_v17, %v684_v41  ;;  %v3810_v5 = vsub.f32 1.0, %v3746_v26  ;;  %v4872_v3 = vmul.f32 %v4808_v62, %v4544_v28  ;;  %v4010_v33 = vand.u32 2147483647, %v3946_v24 }
 0x458   : > { %7539 = vmatpush1.bf16.msra.mxu1 %v7538_v51  ;;  %v4012_v36 = vand.u32 2147483647, %v3948_v34  ;;  %v4357_v61 = vsub.f32 %v11957_v23, %v11847_v7  ;;  %v4874_v14 = vmul.f32 %v4810_v55, %v4546_v6  ;;  %v3812_v48 = vsub.f32 1.0, %v3748_v25 }
 0x459   : > { %v687_v54 = vrot.slane %v686_v2, 2  ;;  %v3874_v35 = vmax.f32 %v3810_v5, 0.0  ;;  %v4074_v60 = vsub.f32 1.0, %v4010_v33  ;;  %v4359_v38 = vsub.f32 %v11957_v23, %v11913_v42 }
 0x45a   : > { %v4076_v1 = vsub.f32 1.0, %v4012_v36  ;;  %v4421_v41 = vand.u32 2147483647, %v4357_v61  ;;  %v7602_v0 = vpack.c.bf16 %v4874_v14, %v4872_v3  ;;  %v3876_v43 = vmax.f32 %v3812_v48, 0.0 }
 0x45b   : > { %v688_v39 = vadd.f32 %v687_v54, %v686_v2  ;;  %v4621_v28 = vsub.f32 %v11958_v40, %v11914_v30  ;;  %v4138_v18 = vmax.f32 %v4074_v60, 0.0  ;;  %v4423_v16 = vand.u32 2147483647, %v4359_v38 }
 0x45c   : > { %v4140_v17 = vmax.f32 %v4076_v1, 0.0  ;;  %v4485_v6 = vsub.f32 1.0, %v4421_v41  ;;  %7603 = vmatpush1.bf16.msra.mxu0 %v7602_v0  ;;  %v4623_v51 = vsub.f32 %v11958_v40, %v11915_v15  ;;  %v3681_v24 = vsub.f32 %v11959_v22, %v11847_v7 }
 0x45d   : > { %v689_v26 = vrot.slane %v688_v39, 1  ;;  %v4685_v62 = vand.u32 2147483647, %v4621_v28  ;;  %v4202_v34 = vmul.f32 %v4138_v18, %v3874_v35  ;;  %v4487_v2 = vsub.f32 1.0, %v4423_v16 }
 0x45e   : > { %v4204_v55 = vmul.f32 %v4140_v17, %v3876_v43  ;;  %v4549_v25 = vmax.f32 %v4485_v6, 0.0  ;;  %v4687_v3 = vand.u32 2147483647, %v4623_v51  ;;  %v3683_v36 = vsub.f32 %v11959_v22, %v11913_v42 }
 0x45f   : > { %v690_v5 = vadd.f32 %v689_v26, %v688_v39  ;;  %v4749_v33 = vsub.f32 1.0, %v4685_v62  ;;  %v4551_v14 = vmax.f32 %v4487_v2, 0.0  ;;  %v3745_v54 = vand.u32 2147483647, %v3681_v24 }
 0x460   : > { %v7540_v61 = vpack.c.bf16 %v4204_v55, %v4202_v34  ;;  %v3945_v48 = vsub.f32 %v11960_v45, %v11914_v30  ;;  %v4751_v60 = vsub.f32 1.0, %v4687_v3  ;;  %v3747_v38 = vand.u32 2147483647, %v3683_v36 }
 0x461   : > { %691 = vst [vmem:[%s307_s18] sm:$0x1] %v690_v5  ;;  %v4813_v1 = vmax.f32 %v4749_v33, 0.0  ;;  %v3947_v35 = vsub.f32 %v11960_v45, %v11915_v15  ;;  %v3809_v41 = vsub.f32 1.0, %v3745_v54  ;;  %v4356_v39 = vsub.f32 %v11961_v56, %v11847_v7 }
 0x462   : > { %7541 = vmatprep.subr.bf16.mxu1 %v7540_v61  ;;  %v4009_v0 = vand.u32 2147483647, %v3945_v48  ;;  %v4358_v43 = vsub.f32 %v11961_v56, %v11913_v42  ;;  %v4815_v28 = vmax.f32 %v4751_v60, 0.0  ;;  %v3811_v17 = vsub.f32 1.0, %v3747_v38  ;;  %v11964_v48 = vld [vmem:[#allocation17_spill] sm:$0xff] }
 0x463   : > { %v4877_v18 = vmul.f32 %v4813_v1, %v4549_v25  ;;  %v4011_v16 = vand.u32 2147483647, %v3947_v35  ;;  %v3873_v6 = vmax.f32 %v3809_v41, 0.0  ;;  %v4420_v51 = vand.u32 2147483647, %v4356_v39  ;;  %v11965_v39 = vld [vmem:[#allocation18_spill] sm:$0xff] }
 0x464   : > { %v4073_v26 = vsub.f32 1.0, %v4009_v0  ;;  %v4422_v62 = vand.u32 2147483647, %v4358_v43  ;;  %v4879_v24 = vmul.f32 %v4815_v28, %v4551_v14  ;;  %v3875_v34 = vmax.f32 %v3811_v17, 0.0 }
 0x465   : > { %v4075_v55 = vsub.f32 1.0, %v4011_v16  ;;  %v4620_v2 = vsub.f32 %v11962_v32, %v11914_v30  ;;  %v4484_v3 = vsub.f32 1.0, %v4420_v51  ;;  %v4622_v36 = vsub.f32 %v11962_v32, %v11915_v15  ;;  %v11966_v16 = vld [vmem:[#allocation26_spill] sm:$0xff] }
 0x466   : > { %v4137_v5 = vmax.f32 %v4073_v26, 0.0  ;;  %v4486_v33 = vsub.f32 1.0, %v4422_v62  ;;  %v7604_v61 = vpack.c.bf16 %v4879_v24, %v4877_v18  ;;  %v3686_v60 = vsub.f32 %v11955_v12, %v11964_v48  ;;  %v11967_v26 = vld [vmem:[#allocation27_spill] sm:$0xff] }
 0x467   : > { %v4139_v25 = vmax.f32 %v4075_v55, 0.0  ;;  %v4684_v54 = vand.u32 2147483647, %v4620_v2  ;;  %v4548_v38 = vmax.f32 %v4484_v3, 0.0  ;;  %v4686_v35 = vand.u32 2147483647, %v4622_v36 }
 0x468   : > { %v4201_v1 = vmul.f32 %v4137_v5, %v3873_v6  ;;  %v4550_v14 = vmax.f32 %v4486_v33, 0.0  ;;  %7605 = vmatprep.subr.bf16.mxu0 %v7604_v61  ;;  %v3688_v43 = vsub.f32 %v11955_v12, %v11965_v39  ;;  %v3750_v28 = vand.u32 2147483647, %v3686_v60 }
 0x469   : > { %v4203_v41 = vmul.f32 %v4139_v25, %v3875_v34  ;;  %v4748_v0 = vsub.f32 1.0, %v4684_v54  ;;  %v4750_v17 = vsub.f32 1.0, %v4686_v35  ;;  %v3950_v18 = vsub.f32 %v11956_v53, %v11966_v16 }
 0x46a   : > { %v3952_v51 = vsub.f32 %v11956_v53, %v11967_v26  ;;  %v4361_v6 = vsub.f32 %v11957_v23, %v11964_v48  ;;  %v3752_v55 = vand.u32 2147483647, %v3688_v43  ;;  %v3814_v2 = vsub.f32 1.0, %v3750_v28 }
 0x46b   : > { %v7542_v62 = vpack.c.bf16 %v4203_v41, %v4201_v1  ;;  %v4812_v24 = vmax.f32 %v4748_v0, 0.0  ;;  %v4814_v34 = vmax.f32 %v4750_v17, 0.0  ;;  %v4014_v5 = vand.u32 2147483647, %v3950_v18 }
 0x46c   : > { %v4016_v3 = vand.u32 2147483647, %v3952_v51  ;;  %v4363_v33 = vsub.f32 %v11957_v23, %v11965_v39  ;;  %v3816_v61 = vsub.f32 1.0, %v3752_v55  ;;  %v3878_v25 = vmax.f32 %v3814_v2, 0.0 }
 0x46d   : > { %7543 = vmatpush1.bf16.msra.mxu1 %v7542_v62  ;;  %v4876_v36 = vmul.f32 %v4812_v24, %v4548_v38  ;;  %v4425_v54 = vand.u32 2147483647, %v4361_v6  ;;  %v4878_v60 = vmul.f32 %v4814_v34, %v4550_v14  ;;  %v4078_v35 = vsub.f32 1.0, %v4014_v5 }
 0x46e   : > { %v4080_v15 = vsub.f32 1.0, %v4016_v3  ;;  %v4427_v30 = vand.u32 2147483647, %v4363_v33  ;;  %v3880_v42 = vmax.f32 %v3816_v61, 0.0  ;;  %v4625_v41 = vsub.f32 %v11958_v40, %v11966_v16 }
 0x46f   : > { %v4489_v1 = vsub.f32 1.0, %v4425_v54  ;;  %v4627_v0 = vsub.f32 %v11958_v40, %v11967_v26  ;;  %v7606_v43 = vpack.c.bf16 %v4878_v60, %v4876_v36  ;;  %v4142_v28 = vmax.f32 %v4078_v35, 0.0 }
 0x470   : > { %v4144_v17 = vmax.f32 %v4080_v15, 0.0  ;;  %v4491_v18 = vsub.f32 1.0, %v4427_v30  ;;  %v4689_v51 = vand.u32 2147483647, %v4625_v41  ;;  %v3685_v14 = vsub.f32 %v11959_v22, %v11964_v48 }
 0x471   : > { %v4553_v38 = vmax.f32 %v4489_v1, 0.0  ;;  %v4691_v62 = vand.u32 2147483647, %v4627_v0  ;;  %7607 = vmatpush1.bf16.msra.mxu0 %v7606_v43  ;;  %v4206_v6 = vmul.f32 %v4142_v28, %v3878_v25  ;;  %v3687_v2 = vsub.f32 %v11959_v22, %v11965_v39 }
 0x472   : > { %v4208_v24 = vmul.f32 %v4144_v17, %v3880_v42  ;;  %v4555_v55 = vmax.f32 %v4491_v18, 0.0  ;;  %v4753_v34 = vsub.f32 1.0, %v4689_v51  ;;  %v3749_v3 = vand.u32 2147483647, %v3685_v14 }
 0x473   : > { %v4755_v5 = vsub.f32 1.0, %v4691_v62  ;;  %v3949_v15 = vsub.f32 %v11960_v45, %v11966_v16  ;;  %v3751_v33 = vand.u32 2147483647, %v3687_v2  ;;  %v3951_v36 = vsub.f32 %v11960_v45, %v11967_v26 }
 0x474   : > { %v7544_v30 = vpack.c.bf16 %v4208_v24, %v4206_v6  ;;  %v4360_v61 = vsub.f32 %v11961_v56, %v11964_v48  ;;  %v4817_v25 = vmax.f32 %v4753_v34, 0.0  ;;  %v3813_v54 = vsub.f32 1.0, %v3749_v3 }
 0x475   : > { %v4819_v42 = vmax.f32 %v4755_v5, 0.0  ;;  %v4013_v60 = vand.u32 2147483647, %v3949_v15  ;;  %v3815_v35 = vsub.f32 1.0, %v3751_v33  ;;  %v4015_v1 = vand.u32 2147483647, %v3951_v36 }
 0x476   : > { %7545 = vmatprep.subr.bf16.mxu1 %v7544_v30  ;;  %v4362_v41 = vsub.f32 %v11961_v56, %v11965_v39  ;;  %v4424_v0 = vand.u32 2147483647, %v4360_v61  ;;  %v4881_v43 = vmul.f32 %v4817_v25, %v4553_v38  ;;  %v3877_v17 = vmax.f32 %v3813_v54, 0.0  ;;  %v11968_v33 = vld [vmem:[#allocation19_spill] sm:$0xff]  ;;  %v11969_v25 = vld [vmem:[#allocation20_spill] sm:$0xff] }
 0x477   : > { %v4883_v28 = vmul.f32 %v4819_v42, %v4555_v55  ;;  %v4077_v18 = vsub.f32 1.0, %v4013_v60  ;;  %v3879_v51 = vmax.f32 %v3815_v35, 0.0  ;;  %v4079_v62 = vsub.f32 1.0, %v4015_v1  ;;  %v11970_v1 = vld [vmem:[#allocation28_spill] sm:$0xff] }
 0x478   : > { %v4426_v14 = vand.u32 2147483647, %v4362_v41  ;;  %v4488_v6 = vsub.f32 1.0, %v4424_v0  ;;  %v4624_v34 = vsub.f32 %v11962_v32, %v11966_v16  ;;  %v4626_v5 = vsub.f32 %v11962_v32, %v11967_v26 }
 0x479   : > { %v7608_v24 = vpack.c.bf16 %v4883_v28, %v4881_v43  ;;  %v4141_v2 = vmax.f32 %v4077_v18, 0.0  ;;  %v4143_v3 = vmax.f32 %v4079_v62, 0.0  ;;  %v3690_v38 = vsub.f32 %v11955_v12, %v11968_v33  ;;  %v11971_v18 = vld [vmem:[#allocation29_spill] sm:$0xff] }
 0x47a   : > { %v4490_v15 = vsub.f32 1.0, %v4426_v14  ;;  %v4552_v30 = vmax.f32 %v4488_v6, 0.0  ;;  %v4688_v36 = vand.u32 2147483647, %v4624_v34  ;;  %v4690_v61 = vand.u32 2147483647, %v4626_v5 }
 0x47b   : > { %7609 = vmatprep.subr.bf16.mxu0 %v7608_v24  ;;  %v4205_v55 = vmul.f32 %v4141_v2, %v3877_v17  ;;  %v3692_v42 = vsub.f32 %v11955_v12, %v11969_v25  ;;  %v4207_v54 = vmul.f32 %v4143_v3, %v3879_v51  ;;  %v3754_v35 = vand.u32 2147483647, %v3690_v38 }
 0x47c   : > { %v4554_v60 = vmax.f32 %v4490_v15, 0.0  ;;  %v3954_v41 = vsub.f32 %v11956_v53, %v11970_v1  ;;  %v4752_v0 = vsub.f32 1.0, %v4688_v36  ;;  %v4754_v43 = vsub.f32 1.0, %v4690_v61 }
 0x47d   : > { %v3756_v28 = vand.u32 2147483647, %v3692_v42  ;;  %v3956_v62 = vsub.f32 %v11956_v53, %v11971_v18  ;;  %v7546_v14 = vpack.c.bf16 %v4207_v54, %v4205_v55  ;;  %v3818_v6 = vsub.f32 1.0, %v3754_v35 }
 0x47e   : > { %v4018_v17 = vand.u32 2147483647, %v3954_v41  ;;  %v4365_v24 = vsub.f32 %v11957_v23, %v11968_v33  ;;  %v4816_v2 = vmax.f32 %v4752_v0, 0.0  ;;  %v4818_v34 = vmax.f32 %v4754_v43, 0.0 }
 0x47f   : > { %v3820_v51 = vsub.f32 1.0, %v3756_v28  ;;  %v4020_v5 = vand.u32 2147483647, %v3956_v62  ;;  %7547 = vmatpush1.bf16.msra.mxu1 %v7546_v14  ;;  %v3882_v3 = vmax.f32 %v3818_v6, 0.0  ;;  %v4367_v38 = vsub.f32 %v11957_v23, %v11969_v25 }
 0x480   : > { %v4082_v15 = vsub.f32 1.0, %v4018_v17  ;;  %v4429_v36 = vand.u32 2147483647, %v4365_v24  ;;  %v4880_v61 = vmul.f32 %v4816_v2, %v4552_v30  ;;  %v4882_v42 = vmul.f32 %v4818_v34, %v4554_v60 }
 0x481   : > { %v3884_v26 = vmax.f32 %v3820_v51, 0.0  ;;  %v4084_v55 = vsub.f32 1.0, %v4020_v5  ;;  %v4431_v35 = vand.u32 2147483647, %v4367_v38  ;;  %v4629_v0 = vsub.f32 %v11958_v40, %v11970_v1 }
 0x482   : > { %v4146_v54 = vmax.f32 %v4082_v15, 0.0  ;;  %v4493_v41 = vsub.f32 1.0, %v4429_v36  ;;  %v7610_v43 = vpack.c.bf16 %v4882_v42, %v4880_v61  ;;  %v4631_v62 = vsub.f32 %v11958_v40, %v11971_v18 }
 0x483   : > { %v4148_v28 = vmax.f32 %v4084_v55, 0.0  ;;  %v3689_v14 = vsub.f32 %v11959_v22, %v11968_v33  ;;  %v4495_v17 = vsub.f32 1.0, %v4431_v35  ;;  %v4693_v60 = vand.u32 2147483647, %v4629_v0 }
 0x484   : > { %v4210_v6 = vmul.f32 %v4146_v54, %v3882_v3  ;;  %v4557_v30 = vmax.f32 %v4493_v41, 0.0  ;;  %7611 = vmatpush1.bf16.msra.mxu0 %v7610_v43  ;;  %v4695_v2 = vand.u32 2147483647, %v4631_v62  ;;  %v3691_v34 = vsub.f32 %v11959_v22, %v11969_v25 }
 0x485   : > { %v4212_v24 = vmul.f32 %v4148_v28, %v3884_v26  ;;  %v3753_v51 = vand.u32 2147483647, %v3689_v14  ;;  %v4559_v5 = vmax.f32 %v4495_v17, 0.0  ;;  %v4757_v15 = vsub.f32 1.0, %v4693_v60 }
 0x486   : > { %v3953_v38 = vsub.f32 %v11960_v45, %v11970_v1  ;;  %v3955_v36 = vsub.f32 %v11960_v45, %v11971_v18  ;;  %v4759_v3 = vsub.f32 1.0, %v4695_v2  ;;  %v3755_v42 = vand.u32 2147483647, %v3691_v34 }
 0x487   : > { %v7548_v61 = vpack.c.bf16 %v4212_v24, %v4210_v6  ;;  %v3817_v55 = vsub.f32 1.0, %v3753_v51  ;;  %v4821_v54 = vmax.f32 %v4757_v15, 0.0  ;;  %v4364_v41 = vsub.f32 %v11961_v56, %v11968_v33 }
 0x488   : > { %v4017_v35 = vand.u32 2147483647, %v3953_v38  ;;  %v4019_v26 = vand.u32 2147483647, %v3955_v36  ;;  %v4823_v0 = vmax.f32 %v4759_v3, 0.0  ;;  %v3819_v43 = vsub.f32 1.0, %v3755_v42 }
 0x489   : > { %7549 = vmatprep.subr.bf16.mxu1 %v7548_v61  ;;  %v3881_v28 = vmax.f32 %v3817_v55, 0.0  ;;  %v4366_v62 = vsub.f32 %v11961_v56, %v11969_v25  ;;  %v4885_v14 = vmul.f32 %v4821_v54, %v4557_v30  ;;  %v4428_v6 = vand.u32 2147483647, %v4364_v41  ;;  %v11972_v25 = vld [vmem:[#allocation30_spill] sm:$0xff] }
 0x48a   : > { %v4081_v17 = vsub.f32 1.0, %v4017_v35  ;;  %v4083_v60 = vsub.f32 1.0, %v4019_v26  ;;  %v4887_v24 = vmul.f32 %v4823_v0, %v4559_v5  ;;  %v3883_v2 = vmax.f32 %v3819_v43, 0.0  ;;  %v11973_v43 = vld [vmem:[#allocation31_spill] sm:$0xff] }
 0x48b   : > { %v4430_v34 = vand.u32 2147483647, %v4366_v62  ;;  %v4628_v51 = vsub.f32 %v11962_v32, %v11970_v1  ;;  %v4492_v36 = vsub.f32 1.0, %v4428_v6  ;;  %v4630_v61 = vsub.f32 %v11962_v32, %v11971_v18  ;;  %v11974_v18 = vld [vmem:[#allocation14_spill] sm:$0xff] }
 0x48c   : > { %v4145_v15 = vmax.f32 %v4081_v17, 0.0  ;;  %v4147_v38 = vmax.f32 %v4083_v60, 0.0  ;;  %v7612_v3 = vpack.c.bf16 %v4887_v24, %v4885_v14  ;;  %v3694_v30 = vsub.f32 %v11955_v12, %v11972_v25  ;;  %v11975_v24 = vld [vmem:[#allocation15_spill] sm:$0xff] }
 0x48d   : > { %v4494_v42 = vsub.f32 1.0, %v4430_v34  ;;  %v4692_v55 = vand.u32 2147483647, %v4628_v51  ;;  %v4556_v5 = vmax.f32 %v4492_v36, 0.0  ;;  %v4694_v26 = vand.u32 2147483647, %v4630_v61 }
 0x48e   : > { %v4209_v54 = vmul.f32 %v4145_v15, %v3881_v28  ;;  %v4211_v35 = vmul.f32 %v4147_v38, %v3883_v2  ;;  %7613 = vmatprep.subr.bf16.mxu0 %v7612_v3  ;;  %v3696_v62 = vsub.f32 %v11955_v12, %v11973_v43  ;;  %v3758_v17 = vand.u32 2147483647, %v3694_v30 }
 0x48f   : > { %v4558_v41 = vmax.f32 %v4494_v42, 0.0  ;;  %v4756_v0 = vsub.f32 1.0, %v4692_v55  ;;  %v4758_v6 = vsub.f32 1.0, %v4694_v26  ;;  %v3958_v14 = vsub.f32 %v11956_v53, %v11974_v18 }
 0x490   : > { %v7550_v60 = vpack.c.bf16 %v4211_v35, %v4209_v54  ;;  %v3960_v34 = vsub.f32 %v11956_v53, %v11975_v24  ;;  %v3760_v28 = vand.u32 2147483647, %v3696_v62  ;;  %v3822_v2 = vsub.f32 1.0, %v3758_v17 }
 0x491   : > { %v4820_v51 = vmax.f32 %v4756_v0, 0.0  ;;  %v4369_v15 = vsub.f32 %v11957_v23, %v11972_v25  ;;  %v4822_v38 = vmax.f32 %v4758_v6, 0.0  ;;  %v4022_v36 = vand.u32 2147483647, %v3958_v14 }
 0x492   : > { %7551 = vmatpush1.bf16.msra.mxu1 %v7550_v60  ;;  %v4024_v61 = vand.u32 2147483647, %v3960_v34  ;;  %v4371_v3 = vsub.f32 %v11957_v23, %v11973_v43  ;;  %v3824_v55 = vsub.f32 1.0, %v3760_v28  ;;  %v3886_v30 = vmax.f32 %v3822_v2, 0.0 }
 0x493   : > { %v4884_v42 = vmul.f32 %v4820_v51, %v4556_v5  ;;  %v4433_v54 = vand.u32 2147483647, %v4369_v15  ;;  %v4886_v35 = vmul.f32 %v4822_v38, %v4558_v41  ;;  %v4086_v26 = vsub.f32 1.0, %v4022_v36 }
 0x494   : > { %v4088_v1 = vsub.f32 1.0, %v4024_v61  ;;  %v4435_v0 = vand.u32 2147483647, %v4371_v3  ;;  %v3888_v62 = vmax.f32 %v3824_v55, 0.0  ;;  %v4633_v33 = vsub.f32 %v11958_v40, %v11974_v18 }
 0x495   : > { %v4497_v17 = vsub.f32 1.0, %v4433_v54  ;;  %v4635_v60 = vsub.f32 %v11958_v40, %v11975_v24  ;;  %v7614_v6 = vpack.c.bf16 %v4886_v35, %v4884_v42  ;;  %v4150_v14 = vmax.f32 %v4086_v26, 0.0 }
 0x496   : > { %v4152_v34 = vmax.f32 %v4088_v1, 0.0  ;;  %v4499_v16 = vsub.f32 1.0, %v4435_v0  ;;  %v4697_v51 = vand.u32 2147483647, %v4633_v33  ;;  %v3693_v41 = vsub.f32 %v11959_v22, %v11972_v25 }
 0x497   : > { %v4561_v5 = vmax.f32 %v4497_v17, 0.0  ;;  %v4699_v28 = vand.u32 2147483647, %v4635_v60  ;;  %7615 = vmatpush1.bf16.msra.mxu0 %v7614_v6  ;;  %v4214_v2 = vmul.f32 %v4150_v14, %v3886_v30  ;;  %v3695_v36 = vsub.f32 %v11959_v22, %v11973_v43 }
 0x498   : > { %v4216_v15 = vmul.f32 %v4152_v34, %v3888_v62  ;;  %v4563_v38 = vmax.f32 %v4499_v16, 0.0  ;;  %v4761_v61 = vsub.f32 1.0, %v4697_v51  ;;  %v3757_v55 = vand.u32 2147483647, %v3693_v41 }
 0x499   : > { %v4763_v3 = vsub.f32 1.0, %v4699_v28  ;;  %v3957_v1 = vsub.f32 %v11960_v45, %v11974_v18  ;;  %v3759_v54 = vand.u32 2147483647, %v3695_v36  ;;  %v3959_v33 = vsub.f32 %v11960_v45, %v11975_v24 }
 0x49a   : > { %v7552_v42 = vpack.c.bf16 %v4216_v15, %v4214_v2  ;;  %v4368_v35 = vsub.f32 %v11961_v56, %v11972_v25  ;;  %v4825_v30 = vmax.f32 %v4761_v61, 0.0  ;;  %v3821_v16 = vsub.f32 1.0, %v3757_v55 }
 0x49b   : > { %v4827_v26 = vmax.f32 %v4763_v3, 0.0  ;;  %v4021_v0 = vand.u32 2147483647, %v3957_v1  ;;  %v3823_v62 = vsub.f32 1.0, %v3759_v54  ;;  %v4023_v17 = vand.u32 2147483647, %v3959_v33 }
 0x49c   : > { %7553 = vmatprep.subr.bf16.mxu1 %v7552_v42  ;;  %v4370_v60 = vsub.f32 %v11961_v56, %v11973_v43  ;;  %v4432_v6 = vand.u32 2147483647, %v4368_v35  ;;  %v4889_v14 = vmul.f32 %v4825_v30, %v4561_v5  ;;  %v3885_v51 = vmax.f32 %v3821_v16, 0.0  ;;  %v11976_v33 = vld [vmem:[#allocation11_spill] sm:$0xff] }
 0x49d   : > { %v4891_v34 = vmul.f32 %v4827_v26, %v4563_v38  ;;  %v4085_v28 = vsub.f32 1.0, %v4021_v0  ;;  %v3887_v41 = vmax.f32 %v3823_v62, 0.0  ;;  %v4087_v2 = vsub.f32 1.0, %v4023_v17  ;;  %v11977_v26 = vld [vmem:[#allocation12_spill] sm:$0xff] }
 0x49e   : > { %v4434_v15 = vand.u32 2147483647, %v4370_v60  ;;  %v4496_v36 = vsub.f32 1.0, %v4432_v6  ;;  %v4632_v3 = vsub.f32 %v11962_v32, %v11974_v18  ;;  %v4634_v55 = vsub.f32 %v11962_v32, %v11975_v24  ;;  %v11978_v60 = vld [vmem:[#allocation62_spill] sm:$0xff] }
 0x49f   : > { %v7616_v25 = vpack.c.bf16 %v4891_v34, %v4889_v14  ;;  %v4149_v61 = vmax.f32 %v4085_v28, 0.0  ;;  %v4151_v1 = vmax.f32 %v4087_v2, 0.0  ;;  %v3698_v5 = vsub.f32 %v11955_v12, %v11976_v33  ;;  %v11979_v2 = vld [vmem:[#allocation63_spill] sm:$0xff] }
 0x4a0   : > { %v4498_v42 = vsub.f32 1.0, %v4434_v15  ;;  %v4560_v54 = vmax.f32 %v4496_v36, 0.0  ;;  %v4696_v35 = vand.u32 2147483647, %v4632_v3  ;;  %v4698_v30 = vand.u32 2147483647, %v4634_v55 }
 0x4a1   : > { %7617 = vmatprep.subr.bf16.mxu0 %v7616_v25  ;;  %v4213_v38 = vmul.f32 %v4149_v61, %v3885_v51  ;;  %v3700_v16 = vsub.f32 %v11955_v12, %v11977_v26  ;;  %v4215_v0 = vmul.f32 %v4151_v1, %v3887_v41  ;;  %v3762_v17 = vand.u32 2147483647, %v3698_v5 }
 0x4a2   : > { %v4562_v62 = vmax.f32 %v4498_v42, 0.0  ;;  %v3962_v6 = vsub.f32 %v11956_v53, %v11978_v60  ;;  %v4760_v14 = vsub.f32 1.0, %v4696_v35  ;;  %v4762_v34 = vsub.f32 1.0, %v4698_v30 }
 0x4a3   : > { %v3764_v28 = vand.u32 2147483647, %v3700_v16  ;;  %v3964_v15 = vsub.f32 %v11956_v53, %v11979_v2  ;;  %v7554_v36 = vpack.c.bf16 %v4215_v0, %v4213_v38  ;;  %v3826_v25 = vsub.f32 1.0, %v3762_v17 }
 0x4a4   : > { %v4026_v51 = vand.u32 2147483647, %v3962_v6  ;;  %v4373_v61 = vsub.f32 %v11957_v23, %v11976_v33  ;;  %v4824_v3 = vmax.f32 %v4760_v14, 0.0  ;;  %v4826_v55 = vmax.f32 %v4762_v34, 0.0 }
 0x4a5   : > { %v3828_v41 = vsub.f32 1.0, %v3764_v28  ;;  %v4028_v1 = vand.u32 2147483647, %v3964_v15  ;;  %7555 = vmatpush1.bf16.msra.mxu1 %v7554_v36  ;;  %v3890_v42 = vmax.f32 %v3826_v25, 0.0  ;;  %v4375_v35 = vsub.f32 %v11957_v23, %v11977_v26 }
 0x4a6   : > { %v4090_v5 = vsub.f32 1.0, %v4026_v51  ;;  %v4437_v30 = vand.u32 2147483647, %v4373_v61  ;;  %v4888_v16 = vmul.f32 %v4824_v3, %v4560_v54  ;;  %v4890_v24 = vmul.f32 %v4826_v55, %v4562_v62 }
 0x4a7   : > { %v3892_v18 = vmax.f32 %v3828_v41, 0.0  ;;  %v4092_v38 = vsub.f32 1.0, %v4028_v1  ;;  %v4439_v17 = vand.u32 2147483647, %v4375_v35  ;;  %v4637_v14 = vsub.f32 %v11958_v40, %v11978_v60 }
 0x4a8   : > { %v4154_v0 = vmax.f32 %v4090_v5, 0.0  ;;  %v4501_v6 = vsub.f32 1.0, %v4437_v30  ;;  %v7618_v34 = vpack.c.bf16 %v4890_v24, %v4888_v16  ;;  %v4639_v15 = vsub.f32 %v11958_v40, %v11979_v2 }
 0x4a9   : > { %v4156_v28 = vmax.f32 %v4092_v38, 0.0  ;;  %v3697_v36 = vsub.f32 %v11959_v22, %v11976_v33  ;;  %v4503_v51 = vsub.f32 1.0, %v4439_v17  ;;  %v4701_v62 = vand.u32 2147483647, %v4637_v14 }
 0x4aa   : > { %v4218_v25 = vmul.f32 %v4154_v0, %v3890_v42  ;;  %v4565_v54 = vmax.f32 %v4501_v6, 0.0  ;;  %7619 = vmatpush1.bf16.msra.mxu0 %v7618_v34  ;;  %v4703_v3 = vand.u32 2147483647, %v4639_v15  ;;  %v3699_v55 = vsub.f32 %v11959_v22, %v11977_v26 }
 0x4ab   : > { %v4220_v61 = vmul.f32 %v4156_v28, %v3892_v18  ;;  %v3761_v41 = vand.u32 2147483647, %v3697_v36  ;;  %v4567_v1 = vmax.f32 %v4503_v51, 0.0  ;;  %v4765_v24 = vsub.f32 1.0, %v4701_v62 }
 0x4ac   : > { %v3961_v5 = vsub.f32 %v11960_v45, %v11978_v60  ;;  %v3963_v35 = vsub.f32 %v11960_v45, %v11979_v2  ;;  %v4767_v42 = vsub.f32 1.0, %v4703_v3  ;;  %v3763_v16 = vand.u32 2147483647, %v3699_v55 }
 0x4ad   : > { %v7556_v30 = vpack.c.bf16 %v4220_v61, %v4218_v25  ;;  %v3825_v38 = vsub.f32 1.0, %v3761_v41  ;;  %v4829_v0 = vmax.f32 %v4765_v24, 0.0  ;;  %v4372_v6 = vsub.f32 %v11961_v56, %v11976_v33 }
 0x4ae   : > { %v4025_v17 = vand.u32 2147483647, %v3961_v5  ;;  %v4027_v18 = vand.u32 2147483647, %v3963_v35  ;;  %v4831_v14 = vmax.f32 %v4767_v42, 0.0  ;;  %v3827_v34 = vsub.f32 1.0, %v3763_v16 }
 0x4af   : > { %7557 = vmatprep.subr.bf16.mxu1 %v7556_v30  ;;  %v3889_v28 = vmax.f32 %v3825_v38, 0.0  ;;  %v4374_v15 = vsub.f32 %v11961_v56, %v11977_v26  ;;  %v4893_v36 = vmul.f32 %v4829_v0, %v4565_v54  ;;  %v4436_v25 = vand.u32 2147483647, %v4372_v6  ;;  %v11980_v26 = vld [vmem:[#allocation2_spill] sm:$0xff] }
 0x4b0   : > { %v4089_v51 = vsub.f32 1.0, %v4025_v17  ;;  %v4091_v62 = vsub.f32 1.0, %v4027_v18  ;;  %v4895_v61 = vmul.f32 %v4831_v14, %v4567_v1  ;;  %v3891_v3 = vmax.f32 %v3827_v34, 0.0  ;;  %v11981_v34 = vld [vmem:[#allocation61_spill] sm:$0xff] }
 0x4b1   : > { %v4438_v55 = vand.u32 2147483647, %v4374_v15  ;;  %v4636_v41 = vsub.f32 %v11962_v32, %v11978_v60  ;;  %v4500_v35 = vsub.f32 1.0, %v4436_v25  ;;  %v4638_v30 = vsub.f32 %v11962_v32, %v11979_v2  ;;  %v11982_v2 = vld [vmem:[#allocation64_spill] sm:$0xff] }
 0x4b2   : > { %v4153_v24 = vmax.f32 %v4089_v51, 0.0  ;;  %v4155_v5 = vmax.f32 %v4091_v62, 0.0  ;;  %v7620_v42 = vpack.c.bf16 %v4895_v61, %v4893_v36  ;;  %v3702_v54 = vsub.f32 %v11955_v12, %v11980_v26  ;;  %v11983_v61 = vld [vmem:[#allocation65_spill] sm:$0xff] }
 0x4b3   : > { %v4502_v16 = vsub.f32 1.0, %v4438_v55  ;;  %v4700_v38 = vand.u32 2147483647, %v4636_v41  ;;  %v4564_v1 = vmax.f32 %v4500_v35, 0.0  ;;  %v4702_v18 = vand.u32 2147483647, %v4638_v30 }
 0x4b4   : > { %v4217_v0 = vmul.f32 %v4153_v24, %v3889_v28  ;;  %v4219_v17 = vmul.f32 %v4155_v5, %v3891_v3  ;;  %7621 = vmatprep.subr.bf16.mxu0 %v7620_v42  ;;  %v3704_v15 = vsub.f32 %v11955_v12, %v11981_v34  ;;  %v3766_v51 = vand.u32 2147483647, %v3702_v54 }
 0x4b5   : > { %v4566_v6 = vmax.f32 %v4502_v16, 0.0  ;;  %v4764_v14 = vsub.f32 1.0, %v4700_v38  ;;  %v4766_v25 = vsub.f32 1.0, %v4702_v18  ;;  %v3966_v36 = vsub.f32 %v11956_v53, %v11982_v2 }
 0x4b6   : > { %v7558_v62 = vpack.c.bf16 %v4219_v17, %v4217_v0  ;;  %v3968_v55 = vsub.f32 %v11956_v53, %v11983_v61  ;;  %v3768_v28 = vand.u32 2147483647, %v3704_v15  ;;  %v3830_v3 = vsub.f32 1.0, %v3766_v51 }
 0x4b7   : > { %v4828_v41 = vmax.f32 %v4764_v14, 0.0  ;;  %v4377_v24 = vsub.f32 %v11957_v23, %v11980_v26  ;;  %v4830_v5 = vmax.f32 %v4766_v25, 0.0  ;;  %v4030_v35 = vand.u32 2147483647, %v3966_v36 }
 0x4b8   : > { %7559 = vmatpush1.bf16.msra.mxu1 %v7558_v62  ;;  %v4032_v30 = vand.u32 2147483647, %v3968_v55  ;;  %v4379_v42 = vsub.f32 %v11957_v23, %v11981_v34  ;;  %v3832_v38 = vsub.f32 1.0, %v3768_v28  ;;  %v3894_v54 = vmax.f32 %v3830_v3, 0.0 }
 0x4b9   : > { %v4892_v16 = vmul.f32 %v4828_v41, %v4564_v1  ;;  %v4441_v0 = vand.u32 2147483647, %v4377_v24  ;;  %v4894_v17 = vmul.f32 %v4830_v5, %v4566_v6  ;;  %v4094_v18 = vsub.f32 1.0, %v4030_v35 }
 0x4ba   : > { %v4096_v60 = vsub.f32 1.0, %v4032_v30  ;;  %v4443_v14 = vand.u32 2147483647, %v4379_v42  ;;  %v3896_v15 = vmax.f32 %v3832_v38, 0.0  ;;  %v4641_v33 = vsub.f32 %v11958_v40, %v11982_v2 }
 0x4bb   : > { %v4505_v51 = vsub.f32 1.0, %v4441_v0  ;;  %v4643_v62 = vsub.f32 %v11958_v40, %v11983_v61  ;;  %v7622_v25 = vpack.c.bf16 %v4894_v17, %v4892_v16  ;;  %v4158_v36 = vmax.f32 %v4094_v18, 0.0 }
 0x4bc   : > { %v4160_v55 = vmax.f32 %v4096_v60, 0.0  ;;  %v4507_v43 = vsub.f32 1.0, %v4443_v14  ;;  %v4705_v41 = vand.u32 2147483647, %v4641_v33  ;;  %v3701_v6 = vsub.f32 %v11959_v22, %v11980_v26 }
 0x4bd   : > { %v4569_v1 = vmax.f32 %v4505_v51, 0.0  ;;  %v4707_v28 = vand.u32 2147483647, %v4643_v62  ;;  %7623 = vmatpush1.bf16.msra.mxu0 %v7622_v25  ;;  %v4222_v3 = vmul.f32 %v4158_v36, %v3894_v54  ;;  %v3703_v35 = vsub.f32 %v11959_v22, %v11981_v34 }
 0x4be   : > { %v4224_v24 = vmul.f32 %v4160_v55, %v3896_v15  ;;  %v4571_v5 = vmax.f32 %v4507_v43, 0.0  ;;  %v4769_v30 = vsub.f32 1.0, %v4705_v41  ;;  %v3765_v38 = vand.u32 2147483647, %v3701_v6 }
 0x4bf   : > { %v4771_v42 = vsub.f32 1.0, %v4707_v28  ;;  %v3965_v60 = vsub.f32 %v11960_v45, %v11982_v2  ;;  %v3767_v0 = vand.u32 2147483647, %v3703_v35  ;;  %v3967_v33 = vsub.f32 %v11960_v45, %v11983_v61 }
 0x4c0   : > { %v7560_v16 = vpack.c.bf16 %v4224_v24, %v4222_v3  ;;  %v4376_v17 = vsub.f32 %v11961_v56, %v11980_v26  ;;  %v4833_v54 = vmax.f32 %v4769_v30, 0.0  ;;  %v3829_v43 = vsub.f32 1.0, %v3765_v38 }
 0x4c1   : > { %v4835_v18 = vmax.f32 %v4771_v42, 0.0  ;;  %v4029_v14 = vand.u32 2147483647, %v3965_v60  ;;  %v3831_v15 = vsub.f32 1.0, %v3767_v0  ;;  %v4031_v51 = vand.u32 2147483647, %v3967_v33 }
 0x4c2   : > { %7561 = vmatprep.subr.bf16.mxu1 %v7560_v16  ;;  %v4378_v62 = vsub.f32 %v11961_v56, %v11981_v34  ;;  %v4440_v25 = vand.u32 2147483647, %v4376_v17  ;;  %v4897_v36 = vmul.f32 %v4833_v54, %v4569_v1  ;;  %v3893_v41 = vmax.f32 %v3829_v43, 0.0  ;;  %v11984_v33 = vld [vmem:[#allocation66_spill] sm:$0xff] }
 0x4c3   : > { %v4899_v55 = vmul.f32 %v4835_v18, %v4571_v5  ;;  %v4093_v28 = vsub.f32 1.0, %v4029_v14  ;;  %v3895_v6 = vmax.f32 %v3831_v15, 0.0  ;;  %v4095_v3 = vsub.f32 1.0, %v4031_v51  ;;  %v11985_v18 = vld [vmem:[#allocation67_spill] sm:$0xff] }
 0x4c4   : > { %v4442_v24 = vand.u32 2147483647, %v4378_v62  ;;  %v4504_v35 = vsub.f32 1.0, %v4440_v25  ;;  %v4640_v42 = vsub.f32 %v11962_v32, %v11982_v2  ;;  %v4642_v38 = vsub.f32 %v11962_v32, %v11983_v61  ;;  %v11986_v62 = vld [vmem:[#allocation68_spill] sm:$0xff] }
 0x4c5   : > { %v7624_v26 = vpack.c.bf16 %v4899_v55, %v4897_v36  ;;  %v4157_v30 = vmax.f32 %v4093_v28, 0.0  ;;  %v4159_v60 = vmax.f32 %v4095_v3, 0.0  ;;  %v3706_v1 = vsub.f32 %v11955_v12, %v11984_v33  ;;  %v11987_v3 = vld [vmem:[#allocation69_spill] sm:$0xff] }
 0x4c6   : > { %v4506_v16 = vsub.f32 1.0, %v4442_v24  ;;  %v4568_v0 = vmax.f32 %v4504_v35, 0.0  ;;  %v4704_v17 = vand.u32 2147483647, %v4640_v42  ;;  %v4706_v54 = vand.u32 2147483647, %v4642_v38 }
 0x4c7   : > { %7625 = vmatprep.subr.bf16.mxu0 %v7624_v26  ;;  %v4221_v5 = vmul.f32 %v4157_v30, %v3893_v41  ;;  %v3708_v43 = vsub.f32 %v11955_v12, %v11985_v18  ;;  %v4223_v14 = vmul.f32 %v4159_v60, %v3895_v6  ;;  %v3770_v51 = vand.u32 2147483647, %v3706_v1 }
 0x4c8   : > { %v4570_v15 = vmax.f32 %v4506_v16, 0.0  ;;  %v3970_v25 = vsub.f32 %v11956_v53, %v11986_v62  ;;  %v4768_v36 = vsub.f32 1.0, %v4704_v17  ;;  %v4770_v55 = vsub.f32 1.0, %v4706_v54 }
 0x4c9   : > { %v3772_v28 = vand.u32 2147483647, %v3708_v43  ;;  %v3972_v24 = vsub.f32 %v11956_v53, %v11987_v3  ;;  %v7562_v35 = vpack.c.bf16 %v4223_v14, %v4221_v5  ;;  %v3834_v26 = vsub.f32 1.0, %v3770_v51 }
 0x4ca   : > { %v4034_v41 = vand.u32 2147483647, %v3970_v25  ;;  %v4381_v30 = vsub.f32 %v11957_v23, %v11984_v33  ;;  %v4832_v42 = vmax.f32 %v4768_v36, 0.0  ;;  %v4834_v38 = vmax.f32 %v4770_v55, 0.0 }
 0x4cb   : > { %v3836_v6 = vsub.f32 1.0, %v3772_v28  ;;  %v4036_v60 = vand.u32 2147483647, %v3972_v24  ;;  %7563 = vmatpush1.bf16.msra.mxu1 %v7562_v35  ;;  %v3898_v16 = vmax.f32 %v3834_v26, 0.0  ;;  %v4383_v17 = vsub.f32 %v11957_v23, %v11985_v18 }
 0x4cc   : > { %v4098_v1 = vsub.f32 1.0, %v4034_v41  ;;  %v4445_v54 = vand.u32 2147483647, %v4381_v30  ;;  %v4896_v43 = vmul.f32 %v4832_v42, %v4568_v0  ;;  %v4898_v61 = vmul.f32 %v4834_v38, %v4570_v15 }
 0x4cd   : > { %v3900_v2 = vmax.f32 %v3836_v6, 0.0  ;;  %v4100_v5 = vsub.f32 1.0, %v4036_v60  ;;  %v4447_v51 = vand.u32 2147483647, %v4383_v17  ;;  %v4645_v36 = vsub.f32 %v11958_v40, %v11986_v62 }
 0x4ce   : > { %v4162_v14 = vmax.f32 %v4098_v1, 0.0  ;;  %v4509_v25 = vsub.f32 1.0, %v4445_v54  ;;  %v7626_v55 = vpack.c.bf16 %v4898_v61, %v4896_v43  ;;  %v4647_v24 = vsub.f32 %v11958_v40, %v11987_v3 }
 0x4cf   : > { %v4164_v28 = vmax.f32 %v4100_v5, 0.0  ;;  %v3705_v35 = vsub.f32 %v11959_v22, %v11984_v33  ;;  %v4511_v41 = vsub.f32 1.0, %v4447_v51  ;;  %v4709_v15 = vand.u32 2147483647, %v4645_v36 }
 0x4d0   : > { %v4226_v26 = vmul.f32 %v4162_v14, %v3898_v16  ;;  %v4573_v0 = vmax.f32 %v4509_v25, 0.0  ;;  %7627 = vmatpush1.bf16.msra.mxu0 %v7626_v55  ;;  %v4711_v42 = vand.u32 2147483647, %v4647_v24  ;;  %v3707_v38 = vsub.f32 %v11959_v22, %v11985_v18 }
 0x4d1   : > { %v4228_v30 = vmul.f32 %v4164_v28, %v3900_v2  ;;  %v3769_v6 = vand.u32 2147483647, %v3705_v35  ;;  %v4575_v60 = vmax.f32 %v4511_v41, 0.0  ;;  %v4773_v61 = vsub.f32 1.0, %v4709_v15 }
 0x4d2   : > { %v3969_v1 = vsub.f32 %v11960_v45, %v11986_v62  ;;  %v3971_v17 = vsub.f32 %v11960_v45, %v11987_v3  ;;  %v4775_v16 = vsub.f32 1.0, %v4711_v42  ;;  %v3771_v43 = vand.u32 2147483647, %v3707_v38 }
 0x4d3   : > { %v7564_v54 = vpack.c.bf16 %v4228_v30, %v4226_v26  ;;  %v3833_v5 = vsub.f32 1.0, %v3769_v6  ;;  %v4837_v14 = vmax.f32 %v4773_v61, 0.0  ;;  %v4380_v25 = vsub.f32 %v11961_v56, %v11984_v33 }
 0x4d4   : > { %v4033_v51 = vand.u32 2147483647, %v3969_v1  ;;  %v4035_v2 = vand.u32 2147483647, %v3971_v17  ;;  %v4839_v36 = vmax.f32 %v4775_v16, 0.0  ;;  %v3835_v55 = vsub.f32 1.0, %v3771_v43 }
 0x4d5   : > { %7565 = vmatprep.subr.bf16.mxu1 %v7564_v54  ;;  %v3897_v28 = vmax.f32 %v3833_v5, 0.0  ;;  %v4382_v24 = vsub.f32 %v11961_v56, %v11985_v18  ;;  %v4901_v35 = vmul.f32 %v4837_v14, %v4573_v0  ;;  %v4444_v26 = vand.u32 2147483647, %v4380_v25 }
 0x4d6   : > { %v4097_v41 = vsub.f32 1.0, %v4033_v51  ;;  %v4099_v15 = vsub.f32 1.0, %v4035_v2  ;;  %v4903_v30 = vmul.f32 %v4839_v36, %v4575_v60  ;;  %v3899_v42 = vmax.f32 %v3835_v55, 0.0  ;;  %v11988_v55 = vld [vmem:[#allocation71_spill] sm:$0xff] }
 0x4d7   : > { %v4446_v38 = vand.u32 2147483647, %v4382_v24  ;;  %v4644_v6 = vsub.f32 %v11962_v32, %v11986_v62  ;;  %v4508_v17 = vsub.f32 1.0, %v4444_v26  ;;  %v4646_v54 = vsub.f32 %v11962_v32, %v11987_v3  ;;  %v11989_v3 = vld [vmem:[#allocation72_spill] sm:$0xff] }
 0x4d8   : > { %v4161_v61 = vmax.f32 %v4097_v41, 0.0  ;;  %v4163_v1 = vmax.f32 %v4099_v15, 0.0  ;;  %v7628_v16 = vpack.c.bf16 %v4903_v30, %v4901_v35  ;;  %v3710_v0 = vsub.f32 %v11955_v12, %v11940_v11  ;;  %v11990_v30 = vld [vmem:[#allocation73_spill] sm:$0xff] }
 0x4d9   : > { %v4510_v43 = vsub.f32 1.0, %v4446_v38  ;;  %v4708_v5 = vand.u32 2147483647, %v4644_v6  ;;  %v4572_v60 = vmax.f32 %v4508_v17, 0.0  ;;  %v4710_v2 = vand.u32 2147483647, %v4646_v54 }
 0x4da   : > { %v4225_v14 = vmul.f32 %v4161_v61, %v3897_v28  ;;  %v4227_v51 = vmul.f32 %v4163_v1, %v3899_v42  ;;  %7629 = vmatprep.subr.bf16.mxu0 %v7628_v16  ;;  %v3712_v24 = vsub.f32 %v11955_v12, %v11988_v55  ;;  %v3774_v41 = vand.u32 2147483647, %v3710_v0 }
 0x4db   : > { %v4574_v25 = vmax.f32 %v4510_v43, 0.0  ;;  %v4772_v36 = vsub.f32 1.0, %v4708_v5  ;;  %v4774_v26 = vsub.f32 1.0, %v4710_v2  ;;  %v3974_v35 = vsub.f32 %v11956_v53, %v11989_v3 }
 0x4dc   : > { %v7566_v15 = vpack.c.bf16 %v4227_v51, %v4225_v14  ;;  %v3976_v38 = vsub.f32 %v11956_v53, %v11990_v30  ;;  %v3776_v28 = vand.u32 2147483647, %v3712_v24  ;;  %v3838_v42 = vsub.f32 1.0, %v3774_v41 }
 0x4dd   : > { %v4836_v6 = vmax.f32 %v4772_v36, 0.0  ;;  %v4385_v61 = vsub.f32 %v11957_v23, %v11940_v11  ;;  %v4838_v1 = vmax.f32 %v4774_v26, 0.0  ;;  %v4038_v17 = vand.u32 2147483647, %v3974_v35 }
 0x4de   : > { %7567 = vmatpush1.bf16.msra.mxu1 %v7566_v15  ;;  %v4040_v54 = vand.u32 2147483647, %v3976_v38  ;;  %v4387_v16 = vsub.f32 %v11957_v23, %v11988_v55  ;;  %v3840_v5 = vsub.f32 1.0, %v3776_v28  ;;  %v3902_v0 = vmax.f32 %v3838_v42, 0.0 }
 0x4df   : > { %v4900_v43 = vmul.f32 %v4836_v6, %v4572_v60  ;;  %v4449_v14 = vand.u32 2147483647, %v4385_v61  ;;  %v4902_v51 = vmul.f32 %v4838_v1, %v4574_v25  ;;  %v4102_v2 = vsub.f32 1.0, %v4038_v17 }
 0x4e0   : > { %v4104_v62 = vsub.f32 1.0, %v4040_v54  ;;  %v4451_v36 = vand.u32 2147483647, %v4387_v16  ;;  %v3904_v24 = vmax.f32 %v3840_v5, 0.0  ;;  %v4649_v18 = vsub.f32 %v11958_v40, %v11989_v3 }
 0x4e1   : > { %v4513_v41 = vsub.f32 1.0, %v4449_v14  ;;  %v4651_v15 = vsub.f32 %v11958_v40, %v11990_v30  ;;  %v7630_v26 = vpack.c.bf16 %v4902_v51, %v4900_v43  ;;  %v4166_v35 = vmax.f32 %v4102_v2, 0.0 }
 0x4e2   : > { %v4168_v38 = vmax.f32 %v4104_v62, 0.0  ;;  %v4515_v33 = vsub.f32 1.0, %v4451_v36  ;;  %v4713_v6 = vand.u32 2147483647, %v4649_v18  ;;  %v3709_v25 = vsub.f32 %v11959_v22, %v11940_v11 }
 0x4e3   : > { %v4577_v60 = vmax.f32 %v4513_v41, 0.0  ;;  %v4715_v28 = vand.u32 2147483647, %v4651_v15  ;;  %7631 = vmatpush1.bf16.msra.mxu0 %v7630_v26  ;;  %v4230_v42 = vmul.f32 %v4166_v35, %v3902_v0  ;;  %v3711_v17 = vsub.f32 %v11959_v22, %v11988_v55 }
 0x4e4   : > { %v4232_v61 = vmul.f32 %v4168_v38, %v3904_v24  ;;  %v4579_v1 = vmax.f32 %v4515_v33, 0.0  ;;  %v4777_v54 = vsub.f32 1.0, %v4713_v6  ;;  %v3773_v5 = vand.u32 2147483647, %v3709_v25 }
 0x4e5   : > { %v4779_v16 = vsub.f32 1.0, %v4715_v28  ;;  %v3973_v62 = vsub.f32 %v11960_v45, %v11989_v3  ;;  %v3775_v14 = vand.u32 2147483647, %v3711_v17  ;;  %v3975_v18 = vsub.f32 %v11960_v45, %v11990_v30 }
 0x4e6   : > { %v7568_v43 = vpack.c.bf16 %v4232_v61, %v4230_v42  ;;  %v4384_v51 = vsub.f32 %v11961_v56, %v11940_v11  ;;  %v4841_v0 = vmax.f32 %v4777_v54, 0.0  ;;  %v3837_v33 = vsub.f32 1.0, %v3773_v5 }
 0x4e7   : > { %v4843_v2 = vmax.f32 %v4779_v16, 0.0  ;;  %v4037_v36 = vand.u32 2147483647, %v3973_v62  ;;  %v3839_v24 = vsub.f32 1.0, %v3775_v14  ;;  %v4039_v41 = vand.u32 2147483647, %v3975_v18 }
 0x4e8   : > { %7569 = vmatprep.subr.bf16.mxu1 %v7568_v43  ;;  %v4386_v15 = vsub.f32 %v11961_v56, %v11988_v55  ;;  %v4448_v26 = vand.u32 2147483647, %v4384_v51  ;;  %v4905_v35 = vmul.f32 %v4841_v0, %v4577_v60  ;;  %v3901_v6 = vmax.f32 %v3837_v33, 0.0  ;;  %v11991_v18 = vld [vmem:[#allocation74_spill] sm:$0xff] }
 0x4e9   : > { %v4907_v38 = vmul.f32 %v4843_v2, %v4579_v1  ;;  %v4101_v28 = vsub.f32 1.0, %v4037_v36  ;;  %v3903_v25 = vmax.f32 %v3839_v24, 0.0  ;;  %v4103_v42 = vsub.f32 1.0, %v4039_v41  ;;  %v11992_v2 = vld [vmem:[#allocation75_spill] sm:$0xff] }
 0x4ea   : > { %v4450_v61 = vand.u32 2147483647, %v4386_v15  ;;  %v4512_v17 = vsub.f32 1.0, %v4448_v26  ;;  %v4648_v16 = vsub.f32 %v11962_v32, %v11989_v3  ;;  %v4650_v5 = vsub.f32 %v11962_v32, %v11990_v30  ;;  %v11993_v15 = vld [vmem:[#allocation76_spill] sm:$0xff] }
 0x4eb   : > { %v7632_v11 = vpack.c.bf16 %v4907_v38, %v4905_v35  ;;  %v4165_v54 = vmax.f32 %v4101_v28, 0.0  ;;  %v4167_v62 = vmax.f32 %v4103_v42, 0.0  ;;  %v3714_v60 = vsub.f32 %v11955_v12, %v11991_v18  ;;  %v11994_v42 = vld [vmem:[#allocation77_spill] sm:$0xff] }
 0x4ec   : > { %v4514_v43 = vsub.f32 1.0, %v4450_v61  ;;  %v4576_v14 = vmax.f32 %v4512_v17, 0.0  ;;  %v4712_v51 = vand.u32 2147483647, %v4648_v16  ;;  %v4714_v0 = vand.u32 2147483647, %v4650_v5 }
 0x4ed   : > { %7633 = vmatprep.subr.bf16.mxu0 %v7632_v11  ;;  %v4229_v1 = vmul.f32 %v4165_v54, %v3901_v6  ;;  %v3716_v33 = vsub.f32 %v11955_v12, %v11992_v2  ;;  %v4231_v36 = vmul.f32 %v4167_v62, %v3903_v25  ;;  %v3778_v41 = vand.u32 2147483647, %v3714_v60 }
 0x4ee   : > { %v4578_v24 = vmax.f32 %v4514_v43, 0.0  ;;  %v3978_v26 = vsub.f32 %v11956_v53, %v11993_v15  ;;  %v4776_v35 = vsub.f32 1.0, %v4712_v51  ;;  %v4778_v38 = vsub.f32 1.0, %v4714_v0 }
 0x4ef   : > { %v3780_v28 = vand.u32 2147483647, %v3716_v33  ;;  %v3980_v61 = vsub.f32 %v11956_v53, %v11994_v42  ;;  %v7570_v17 = vpack.c.bf16 %v4231_v36, %v4229_v1  ;;  %v3842_v11 = vsub.f32 1.0, %v3778_v41 }
 0x4f0   : > { %v4042_v6 = vand.u32 2147483647, %v3978_v26  ;;  %v4389_v54 = vsub.f32 %v11957_v23, %v11991_v18  ;;  %v4840_v16 = vmax.f32 %v4776_v35, 0.0  ;;  %v4842_v5 = vmax.f32 %v4778_v38, 0.0 }
 0x4f1   : > { %v3844_v25 = vsub.f32 1.0, %v3780_v28  ;;  %v4044_v62 = vand.u32 2147483647, %v3980_v61  ;;  %7571 = vmatpush1.bf16.msra.mxu1 %v7570_v17  ;;  %v3906_v43 = vmax.f32 %v3842_v11, 0.0  ;;  %v4391_v51 = vsub.f32 %v11957_v23, %v11992_v2 }
 0x4f2   : > { %v4106_v60 = vsub.f32 1.0, %v4042_v6  ;;  %v4453_v0 = vand.u32 2147483647, %v4389_v54  ;;  %v4904_v33 = vmul.f32 %v4840_v16, %v4576_v14  ;;  %v4906_v30 = vmul.f32 %v4842_v5, %v4578_v24 }
 0x4f3   : > { %v3908_v3 = vmax.f32 %v3844_v25, 0.0  ;;  %v4108_v1 = vsub.f32 1.0, %v4044_v62  ;;  %v4455_v41 = vand.u32 2147483647, %v4391_v51  ;;  %v4653_v35 = vsub.f32 %v11958_v40, %v11993_v15 }
 0x4f4   : > { %v4170_v36 = vmax.f32 %v4106_v60, 0.0  ;;  %v4517_v26 = vsub.f32 1.0, %v4453_v0  ;;  %v7634_v38 = vpack.c.bf16 %v4906_v30, %v4904_v33  ;;  %v4655_v61 = vsub.f32 %v11958_v40, %v11994_v42 }
 0x4f5   : > { %v4172_v28 = vmax.f32 %v4108_v1, 0.0  ;;  %v3713_v17 = vsub.f32 %v11959_v22, %v11991_v18  ;;  %v4519_v6 = vsub.f32 1.0, %v4455_v41  ;;  %v4717_v24 = vand.u32 2147483647, %v4653_v35 }
 0x4f6   : > { %v4234_v11 = vmul.f32 %v4170_v36, %v3906_v43  ;;  %v4581_v14 = vmax.f32 %v4517_v26, 0.0  ;;  %7635 = vmatpush1.bf16.msra.mxu0 %v7634_v38  ;;  %v4719_v16 = vand.u32 2147483647, %v4655_v61  ;;  %v3715_v5 = vsub.f32 %v11959_v22, %v11992_v2 }
 0x4f7   : > { %v4236_v54 = vmul.f32 %v4172_v28, %v3908_v3  ;;  %v3777_v25 = vand.u32 2147483647, %v3713_v17  ;;  %v4583_v62 = vmax.f32 %v4519_v6, 0.0  ;;  %v4781_v30 = vsub.f32 1.0, %v4717_v24 }
 0x4f8   : > { %v3977_v60 = vsub.f32 %v11960_v45, %v11993_v15  ;;  %v3979_v51 = vsub.f32 %v11960_v45, %v11994_v42  ;;  %v4783_v43 = vsub.f32 1.0, %v4719_v16  ;;  %v3779_v33 = vand.u32 2147483647, %v3715_v5 }
 0x4f9   : > { %v7572_v0 = vpack.c.bf16 %v4236_v54, %v4234_v11  ;;  %v3841_v1 = vsub.f32 1.0, %v3777_v25  ;;  %v4845_v36 = vmax.f32 %v4781_v30, 0.0  ;;  %v4388_v26 = vsub.f32 %v11961_v56, %v11991_v18 }
 0x4fa   : > { %v4041_v41 = vand.u32 2147483647, %v3977_v60  ;;  %v4043_v3 = vand.u32 2147483647, %v3979_v51  ;;  %v4847_v35 = vmax.f32 %v4783_v43, 0.0  ;;  %v3843_v38 = vsub.f32 1.0, %v3779_v33 }
 0x4fb   : > { %7573 = vmatprep.subr.bf16.mxu1 %v7572_v0  ;;  %v3905_v28 = vmax.f32 %v3841_v1, 0.0  ;;  %v4390_v61 = vsub.f32 %v11961_v56, %v11992_v2  ;;  %v4909_v17 = vmul.f32 %v4845_v36, %v4581_v14  ;;  %v4452_v11 = vand.u32 2147483647, %v4388_v26 }
 0x4fc   : > { %v4105_v6 = vsub.f32 1.0, %v4041_v41  ;;  %v4107_v24 = vsub.f32 1.0, %v4043_v3  ;;  %v4911_v54 = vmul.f32 %v4847_v35, %v4583_v62  ;;  %v3907_v16 = vmax.f32 %v3843_v38, 0.0 }
 0x4fd   : > { %v4454_v5 = vand.u32 2147483647, %v4390_v61  ;;  %v4652_v25 = vsub.f32 %v11962_v32, %v11993_v15  ;;  %v4516_v51 = vsub.f32 1.0, %v4452_v11  ;;  %v4654_v0 = vsub.f32 %v11962_v32, %v11994_v42  ;;  %v11995_v11 = vld [vmem:[#allocation80_spill] sm:$0xff] }
 0x4fe   : > { %v4169_v30 = vmax.f32 %v4105_v6, 0.0  ;;  %v4171_v60 = vmax.f32 %v4107_v24, 0.0  ;;  %v7636_v43 = vpack.c.bf16 %v4911_v54, %v4909_v17  ;;  %v3718_v14 = vsub.f32 %v11955_v12, %v9288_v21  ;;  %v11996_v54 = vld [vmem:[#allocation81_spill] sm:$0xff] }
 0x4ff   : > { %v4518_v33 = vsub.f32 1.0, %v4454_v5  ;;  %v4716_v1 = vand.u32 2147483647, %v4652_v25  ;;  %v4580_v62 = vmax.f32 %v4516_v51, 0.0  ;;  %v4718_v3 = vand.u32 2147483647, %v4654_v0 }
 0x500   : > { %v4233_v36 = vmul.f32 %v4169_v30, %v3905_v28  ;;  %v4235_v41 = vmul.f32 %v4171_v60, %v3907_v16  ;;  %7637 = vmatprep.subr.bf16.mxu0 %v7636_v43  ;;  %v3720_v38 = vsub.f32 %v11955_v12, %v11948_v63  ;;  %v3782_v61 = vand.u32 2147483647, %v3718_v14 }
 0x501   : > { %v4582_v26 = vmax.f32 %v4518_v33, 0.0  ;;  %v4780_v35 = vsub.f32 1.0, %v4716_v1  ;;  %v4782_v24 = vsub.f32 1.0, %v4718_v3  ;;  %v3982_v17 = vsub.f32 %v11956_v53, %v11995_v11 }
 0x502   : > { %v7574_v6 = vpack.c.bf16 %v4235_v41, %v4233_v36  ;;  %v3984_v5 = vsub.f32 %v11956_v53, %v11996_v54  ;;  %v3784_v28 = vand.u32 2147483647, %v3720_v38  ;;  %v3846_v16 = vsub.f32 1.0, %v3782_v61 }
 0x503   : > { %v4844_v25 = vmax.f32 %v4780_v35, 0.0  ;;  %v4393_v30 = vsub.f32 %v11957_v23, %v9288_v21  ;;  %v4846_v60 = vmax.f32 %v4782_v24, 0.0  ;;  %v4046_v51 = vand.u32 2147483647, %v3982_v17 }
 0x504   : > { %7575 = vmatpush1.bf16.msra.mxu1 %v7574_v6  ;;  %v4048_v0 = vand.u32 2147483647, %v3984_v5  ;;  %v4395_v43 = vsub.f32 %v11957_v23, %v11948_v63  ;;  %v3848_v1 = vsub.f32 1.0, %v3784_v28  ;;  %v3910_v14 = vmax.f32 %v3846_v16, 0.0 }
 0x505   : > { %v4908_v33 = vmul.f32 %v4844_v25, %v4580_v62  ;;  %v4457_v36 = vand.u32 2147483647, %v4393_v30  ;;  %v4910_v41 = vmul.f32 %v4846_v60, %v4582_v26  ;;  %v4110_v3 = vsub.f32 1.0, %v4046_v51 }
 0x506   : > { %v4112_v42 = vsub.f32 1.0, %v4048_v0  ;;  %v4459_v35 = vand.u32 2147483647, %v4395_v43  ;;  %v3912_v38 = vmax.f32 %v3848_v1, 0.0  ;;  %v4657_v15 = vsub.f32 %v11958_v40, %v11995_v11 }
 0x507   : > { %v4521_v61 = vsub.f32 1.0, %v4457_v36  ;;  %v4659_v6 = vsub.f32 %v11958_v40, %v11996_v54  ;;  %v7638_v24 = vpack.c.bf16 %v4910_v41, %v4908_v33  ;;  %v4174_v17 = vmax.f32 %v4110_v3, 0.0 }
 0x508   : > { %v4176_v5 = vmax.f32 %v4112_v42, 0.0  ;;  %v4523_v2 = vsub.f32 1.0, %v4459_v35  ;;  %v4721_v25 = vand.u32 2147483647, %v4657_v15  ;;  %v3717_v26 = vsub.f32 %v11959_v22, %v9288_v21 }
 0x509   : > { %v4585_v62 = vmax.f32 %v4521_v61, 0.0  ;;  %v4723_v28 = vand.u32 2147483647, %v4659_v6  ;;  %7639 = vmatpush1.bf16.msra.mxu0 %v7638_v24  ;;  %v4238_v16 = vmul.f32 %v4174_v17, %v3910_v14  ;;  %v3719_v51 = vsub.f32 %v11959_v22, %v11948_v63 }
 0x50a   : > { %v4240_v30 = vmul.f32 %v4176_v5, %v3912_v38  ;;  %v4587_v60 = vmax.f32 %v4523_v2, 0.0  ;;  %v4785_v0 = vsub.f32 1.0, %v4721_v25  ;;  %v3781_v1 = vand.u32 2147483647, %v3717_v26 }
 0x50b   : > { %v4787_v43 = vsub.f32 1.0, %v4723_v28  ;;  %v3981_v42 = vsub.f32 %v11960_v45, %v11995_v11  ;;  %v3783_v36 = vand.u32 2147483647, %v3719_v51  ;;  %v3983_v15 = vsub.f32 %v11960_v45, %v11996_v54 }
 0x50c   : > { %v7576_v33 = vpack.c.bf16 %v4240_v30, %v4238_v16  ;;  %v4392_v41 = vsub.f32 %v11961_v56, %v9288_v21  ;;  %v4849_v14 = vmax.f32 %v4785_v0, 0.0  ;;  %v3845_v2 = vsub.f32 1.0, %v3781_v1 }
 0x50d   : > { %v4851_v3 = vmax.f32 %v4787_v43, 0.0  ;;  %v4045_v35 = vand.u32 2147483647, %v3981_v42  ;;  %v3847_v38 = vsub.f32 1.0, %v3783_v36  ;;  %v4047_v61 = vand.u32 2147483647, %v3983_v15 }
 0x50e   : > { %7577 = vmatprep.subr.bf16.mxu1 %v7576_v33  ;;  %v4394_v6 = vsub.f32 %v11961_v56, %v11948_v63  ;;  %v4456_v24 = vand.u32 2147483647, %v4392_v41  ;;  %v4913_v17 = vmul.f32 %v4849_v14, %v4585_v62  ;;  %v3909_v25 = vmax.f32 %v3845_v2, 0.0 }
 0x50f   : > { %v4915_v5 = vmul.f32 %v4851_v3, %v4587_v60  ;;  %v4109_v28 = vsub.f32 1.0, %v4045_v35  ;;  %v3911_v26 = vmax.f32 %v3847_v38, 0.0  ;;  %v4111_v16 = vsub.f32 1.0, %v4047_v61  ;;  %v11997_v38 = vld [vmem:[#allocation84_spill] sm:$0xff] }
 0x510   : > { %v4458_v30 = vand.u32 2147483647, %v4394_v6  ;;  %v4520_v51 = vsub.f32 1.0, %v4456_v24  ;;  %v4656_v43 = vsub.f32 %v11962_v32, %v11995_v11  ;;  %v4658_v1 = vsub.f32 %v11962_v32, %v11996_v54 }
 0x511   : > { %v7640_v21 = vpack.c.bf16 %v4915_v5, %v4913_v17  ;;  %v4173_v0 = vmax.f32 %v4109_v28, 0.0  ;;  %v4175_v42 = vmax.f32 %v4111_v16, 0.0  ;;  %v3722_v62 = vsub.f32 %v11955_v12, %v11951_v8  ;;  %v11998_v5 = vld [vmem:[#allocation85_spill] sm:$0xff] }
 0x512   : > { %v4522_v33 = vsub.f32 1.0, %v4458_v30  ;;  %v4584_v36 = vmax.f32 %v4520_v51, 0.0  ;;  %v4720_v15 = vand.u32 2147483647, %v4656_v43  ;;  %v4722_v41 = vand.u32 2147483647, %v4658_v1 }
 0x513   : > { %7641 = vmatprep.subr.bf16.mxu0 %v7640_v21  ;;  %v4237_v60 = vmul.f32 %v4173_v0, %v3909_v25  ;;  %v3724_v14 = vsub.f32 %v11955_v12, %v11952_v50  ;;  %v4239_v3 = vmul.f32 %v4175_v42, %v3911_v26  ;;  %v3786_v35 = vand.u32 2147483647, %v3722_v62 }
 0x514   : > { %v4586_v2 = vmax.f32 %v4522_v33, 0.0  ;;  %v3986_v61 = vsub.f32 %v11956_v53, %v11997_v38  ;;  %v4784_v6 = vsub.f32 1.0, %v4720_v15  ;;  %v4786_v24 = vsub.f32 1.0, %v4722_v41 }
 0x515   : > { %v3788_v17 = vand.u32 2147483647, %v3724_v14  ;;  %v3988_v28 = vsub.f32 %v11956_v53, %v11998_v5  ;;  %v7578_v16 = vpack.c.bf16 %v4239_v3, %v4237_v60  ;;  %v3850_v21 = vsub.f32 1.0, %v3786_v35 }
 0x516   : > { %v4050_v25 = vand.u32 2147483647, %v3986_v61  ;;  %v4397_v30 = vsub.f32 %v11957_v23, %v11951_v8  ;;  %v4848_v51 = vmax.f32 %v4784_v6, 0.0  ;;  %v4850_v0 = vmax.f32 %v4786_v24, 0.0 }
 0x517   : > { %v3852_v26 = vsub.f32 1.0, %v3788_v17  ;;  %v4052_v43 = vand.u32 2147483647, %v3988_v28  ;;  %7579 = vmatpush1.bf16.msra.mxu1 %v7578_v16  ;;  %v3914_v1 = vmax.f32 %v3850_v21, 0.0  ;;  %v4399_v33 = vsub.f32 %v11957_v23, %v11952_v50 }
 0x518   : > { %v4114_v42 = vsub.f32 1.0, %v4050_v25  ;;  %v4461_v62 = vand.u32 2147483647, %v4397_v30  ;;  %v4912_v15 = vmul.f32 %v4848_v51, %v4584_v36  ;;  %v4914_v41 = vmul.f32 %v4850_v0, %v4586_v2 }
 0x519   : > { %v3916_v14 = vmax.f32 %v3852_v26, 0.0  ;;  %v4116_v60 = vsub.f32 1.0, %v4052_v43  ;;  %v4463_v35 = vand.u32 2147483647, %v4399_v33  ;;  %v4661_v6 = vsub.f32 %v11958_v40, %v11997_v38 }
 0x51a   : > { %v4178_v3 = vmax.f32 %v4114_v42, 0.0  ;;  %v4525_v61 = vsub.f32 1.0, %v4461_v62  ;;  %v7642_v24 = vpack.c.bf16 %v4914_v41, %v4912_v15  ;;  %v4663_v28 = vsub.f32 %v11958_v40, %v11998_v5 }
 0x51b   : > { %v4180_v17 = vmax.f32 %v4116_v60, 0.0  ;;  %v3721_v16 = vsub.f32 %v11959_v22, %v11951_v8  ;;  %v4527_v25 = vsub.f32 1.0, %v4463_v35  ;;  %v4725_v2 = vand.u32 2147483647, %v4661_v6 }
 0x51c   : > { %v4242_v21 = vmul.f32 %v4178_v3, %v3914_v1  ;;  %v4589_v36 = vmax.f32 %v4525_v61, 0.0  ;;  %7643 = vmatpush1.bf16.msra.mxu0 %v7642_v24  ;;  %v4727_v51 = vand.u32 2147483647, %v4663_v28  ;;  %v3723_v0 = vsub.f32 %v11959_v22, %v11952_v50 }
 0x51d   : > { %v4244_v30 = vmul.f32 %v4180_v17, %v3916_v14  ;;  %v3785_v26 = vand.u32 2147483647, %v3721_v16  ;;  %v4591_v43 = vmax.f32 %v4527_v25, 0.0  ;;  %v4789_v42 = vsub.f32 1.0, %v4725_v2 }
 0x51e   : > { %v3985_v33 = vsub.f32 %v11960_v45, %v11997_v38  ;;  %v3987_v62 = vsub.f32 %v11960_v45, %v11998_v5  ;;  %v4791_v1 = vsub.f32 1.0, %v4727_v51  ;;  %v3787_v41 = vand.u32 2147483647, %v3723_v0 }
 0x51f   : > { %v7580_v15 = vpack.c.bf16 %v4244_v30, %v4242_v21  ;;  %v3849_v60 = vsub.f32 1.0, %v3785_v26  ;;  %v4853_v3 = vmax.f32 %v4789_v42, 0.0  ;;  %v4396_v61 = vsub.f32 %v11961_v56, %v11951_v8 }
 0x520   : > { %v4049_v35 = vand.u32 2147483647, %v3985_v33  ;;  %v4051_v14 = vand.u32 2147483647, %v3987_v62  ;;  %v4855_v6 = vmax.f32 %v4791_v1, 0.0  ;;  %v3851_v24 = vsub.f32 1.0, %v3787_v41 }
 0x521   : > { %7581 = vmatprep.subr.bf16.mxu1 %v7580_v15  ;;  %v3913_v17 = vmax.f32 %v3849_v60, 0.0  ;;  %v4398_v28 = vsub.f32 %v11961_v56, %v11952_v50  ;;  %v4917_v16 = vmul.f32 %v4853_v3, %v4589_v36  ;;  %v4460_v21 = vand.u32 2147483647, %v4396_v61 }
 0x522   : > { %v4113_v25 = vsub.f32 1.0, %v4049_v35  ;;  %v4115_v2 = vsub.f32 1.0, %v4051_v14  ;;  %v4919_v30 = vmul.f32 %v4855_v6, %v4591_v43  ;;  %v3915_v51 = vmax.f32 %v3851_v24, 0.0 }
 0x523   : > { %v4462_v0 = vand.u32 2147483647, %v4398_v28  ;;  %v4660_v26 = vsub.f32 %v11962_v32, %v11997_v38  ;;  %v4524_v62 = vsub.f32 1.0, %v4460_v21  ;;  %v4662_v15 = vsub.f32 %v11962_v32, %v11998_v5 }
 0x524   : > { %v4177_v42 = vmax.f32 %v4113_v25, 0.0  ;;  %v4179_v33 = vmax.f32 %v4115_v2, 0.0  ;;  %v7644_v1 = vpack.c.bf16 %v4919_v30, %v4917_v16  ;;  %v3726_v36 = vsub.f32 %v11955_v12, %v9409_v9 }
 0x525   : > { %v4526_v41 = vsub.f32 1.0, %v4462_v0  ;;  %v4724_v60 = vand.u32 2147483647, %v4660_v26  ;;  %v4588_v43 = vmax.f32 %v4524_v62, 0.0  ;;  %v4726_v14 = vand.u32 2147483647, %v4662_v15 }
 0x526   : > { %v4241_v3 = vmul.f32 %v4177_v42, %v3913_v17  ;;  %v4243_v35 = vmul.f32 %v4179_v33, %v3915_v51  ;;  %7645 = vmatprep.subr.bf16.mxu0 %v7644_v1  ;;  %v3728_v24 = vsub.f32 %v11955_v12, %v9415_v27  ;;  %v3790_v28 = vand.u32 2147483647, %v3726_v36 }
 0x527   : > { %v4590_v61 = vmax.f32 %v4526_v41, 0.0  ;;  %v4788_v6 = vsub.f32 1.0, %v4724_v60  ;;  %v4790_v2 = vsub.f32 1.0, %v4726_v14  ;;  %v3990_v16 = vsub.f32 %v11956_v53, %v9437_v29 }
 0x528   : > { %v7582_v25 = vpack.c.bf16 %v4243_v35, %v4241_v3  ;;  %v3992_v21 = vsub.f32 %v11956_v53, %v9441_v46  ;;  %v3792_v17 = vand.u32 2147483647, %v3728_v24  ;;  %v3854_v51 = vsub.f32 1.0, %v3790_v28 }
 0x529   : > { %v4852_v30 = vmax.f32 %v4788_v6, 0.0  ;;  %v4401_v0 = vsub.f32 %v11957_v23, %v9409_v9  ;;  %v4854_v26 = vmax.f32 %v4790_v2, 0.0  ;;  %v4054_v42 = vand.u32 2147483647, %v3990_v16 }
 0x52a   : > { %7583 = vmatpush1.bf16.msra.mxu1 %v7582_v25  ;;  %v4056_v33 = vand.u32 2147483647, %v3992_v21  ;;  %v4403_v62 = vsub.f32 %v11957_v23, %v9415_v27  ;;  %v3856_v1 = vsub.f32 1.0, %v3792_v17  ;;  %v3918_v41 = vmax.f32 %v3854_v51, 0.0 }
 0x52b   : > { %v4916_v15 = vmul.f32 %v4852_v30, %v4588_v43  ;;  %v4465_v60 = vand.u32 2147483647, %v4401_v0  ;;  %v4918_v36 = vmul.f32 %v4854_v26, %v4590_v61  ;;  %v4118_v3 = vsub.f32 1.0, %v4054_v42 }
 0x52c   : > { %v4120_v35 = vsub.f32 1.0, %v4056_v33  ;;  %v4467_v14 = vand.u32 2147483647, %v4403_v62  ;;  %v3920_v6 = vmax.f32 %v3856_v1, 0.0  ;;  %v4665_v28 = vsub.f32 %v11958_v40, %v9437_v29 }
 0x52d   : > { %v4529_v24 = vsub.f32 1.0, %v4465_v60  ;;  %v4667_v25 = vsub.f32 %v11958_v40, %v9441_v46  ;;  %v7646_v2 = vpack.c.bf16 %v4918_v36, %v4916_v15  ;;  %v4182_v16 = vmax.f32 %v4118_v3, 0.0 }
 0x52e   : > { %v4184_v21 = vmax.f32 %v4120_v35, 0.0  ;;  %v4531_v5 = vsub.f32 1.0, %v4467_v14  ;;  %v4729_v30 = vand.u32 2147483647, %v4665_v28  ;;  %v3725_v61 = vsub.f32 %v11959_v22, %v9409_v9 }
 0x52f   : > { %v4593_v43 = vmax.f32 %v4529_v24, 0.0  ;;  %v4731_v17 = vand.u32 2147483647, %v4667_v25  ;;  %7647 = vmatpush1.bf16.msra.mxu0 %v7646_v2  ;;  %v4246_v51 = vmul.f32 %v4182_v16, %v3918_v41  ;;  %v3727_v42 = vsub.f32 %v11959_v22, %v9415_v27 }
 0x530   : > { %v4248_v0 = vmul.f32 %v4184_v21, %v3920_v6  ;;  %v4595_v26 = vmax.f32 %v4531_v5, 0.0  ;;  %v4793_v33 = vsub.f32 1.0, %v4729_v30  ;;  %v3789_v1 = vand.u32 2147483647, %v3725_v61 }
 0x531   : > { %v4795_v62 = vsub.f32 1.0, %v4731_v17  ;;  %v3989_v15 = vsub.f32 %v11960_v45, %v9437_v29  ;;  %v3791_v36 = vand.u32 2147483647, %v3727_v42  ;;  %v3991_v3 = vsub.f32 %v11960_v45, %v9441_v46 }
 0x532   : > { %v7584_v60 = vpack.c.bf16 %v4248_v0, %v4246_v51  ;;  %v4400_v35 = vsub.f32 %v11961_v56, %v9409_v9  ;;  %v4857_v41 = vmax.f32 %v4793_v33, 0.0  ;;  %v3853_v5 = vsub.f32 1.0, %v3789_v1 }
 0x533   : > { %v4859_v14 = vmax.f32 %v4795_v62, 0.0  ;;  %v4053_v6 = vand.u32 2147483647, %v3989_v15  ;;  %v3855_v24 = vsub.f32 1.0, %v3791_v36  ;;  %v4055_v28 = vand.u32 2147483647, %v3991_v3 }
 0x534   : > { %7585 = vmatprep.subr.bf16.mxu1 %v7584_v60  ;;  %v4402_v25 = vsub.f32 %v11961_v56, %v9415_v27  ;;  %v4464_v2 = vand.u32 2147483647, %v4400_v35  ;;  %v4921_v16 = vmul.f32 %v4857_v41, %v4593_v43  ;;  %v3917_v30 = vmax.f32 %v3853_v5, 0.0 }
 0x535   : > { %v4923_v21 = vmul.f32 %v4859_v14, %v4595_v26  ;;  %v4117_v17 = vsub.f32 1.0, %v4053_v6  ;;  %v3919_v61 = vmax.f32 %v3855_v24, 0.0  ;;  %v4119_v51 = vsub.f32 1.0, %v4055_v28 }
 0x536   : > { %v4466_v0 = vand.u32 2147483647, %v4402_v25  ;;  %v4528_v42 = vsub.f32 1.0, %v4464_v2  ;;  %v4664_v62 = vsub.f32 %v11962_v32, %v9437_v29  ;;  %v4666_v1 = vsub.f32 %v11962_v32, %v9441_v46 }
 0x537   : > { %v7648_v9 = vpack.c.bf16 %v4923_v21, %v4921_v16  ;;  %v4181_v33 = vmax.f32 %v4117_v17, 0.0  ;;  %v4183_v15 = vmax.f32 %v4119_v51, 0.0  ;;  %v3730_v43 = vsub.f32 %v11955_v12, %v9464_v44 }
 0x538   : > { %v4530_v60 = vsub.f32 1.0, %v4466_v0  ;;  %v4592_v36 = vmax.f32 %v4528_v42, 0.0  ;;  %v4728_v3 = vand.u32 2147483647, %v4664_v62  ;;  %v4730_v35 = vand.u32 2147483647, %v4666_v1 }
 0x539   : > { %7649 = vmatprep.subr.bf16.mxu0 %v7648_v9  ;;  %v4245_v26 = vmul.f32 %v4181_v33, %v3917_v30  ;;  %v3732_v41 = vsub.f32 %v11955_v12, %v9468_v31  ;;  %v4247_v14 = vmul.f32 %v4183_v15, %v3919_v61  ;;  %v3794_v6 = vand.u32 2147483647, %v3730_v43 }
 0x53a   : > { %v4594_v5 = vmax.f32 %v4530_v60, 0.0  ;;  %v3994_v24 = vsub.f32 %v11956_v53, %v9474_v37  ;;  %v4792_v28 = vsub.f32 1.0, %v4728_v3  ;;  %v4794_v25 = vsub.f32 1.0, %v4730_v35 }
 0x53b   : > { %v3796_v2 = vand.u32 2147483647, %v3732_v41  ;;  %v3996_v16 = vsub.f32 %v11956_v53, %v9487_v13  ;;  %v7586_v21 = vpack.c.bf16 %v4247_v14, %v4245_v26  ;;  %v3858_v9 = vsub.f32 1.0, %v3794_v6 }
 0x53c   : > { %v4058_v30 = vand.u32 2147483647, %v3994_v24  ;;  %v4405_v17 = vsub.f32 %v11957_v23, %v9464_v44  ;;  %v4856_v51 = vmax.f32 %v4792_v28, 0.0  ;;  %v4858_v12 = vmax.f32 %v4794_v25, 0.0 }
 0x53d   : > { %v3860_v61 = vsub.f32 1.0, %v3796_v2  ;;  %v4060_v0 = vand.u32 2147483647, %v3996_v16  ;;  %7587 = vmatpush1.bf16.msra.mxu1 %v7586_v21  ;;  %v3922_v42 = vmax.f32 %v3858_v9, 0.0  ;;  %v4407_v62 = vsub.f32 %v11957_v23, %v9468_v31 }
 0x53e   : > { %v4122_v33 = vsub.f32 1.0, %v4058_v30  ;;  %v4469_v1 = vand.u32 2147483647, %v4405_v17  ;;  %v4920_v15 = vmul.f32 %v4856_v51, %v4592_v36  ;;  %v4922_v60 = vmul.f32 %v4858_v12, %v4594_v5 }
 0x53f   : > { %v3924_v53 = vmax.f32 %v3860_v61, 0.0  ;;  %v4124_v43 = vsub.f32 1.0, %v4060_v0  ;;  %v4471_v3 = vand.u32 2147483647, %v4407_v62  ;;  %v4669_v41 = vsub.f32 %v11958_v40, %v9474_v37 }
 0x540   : > { %v4186_v26 = vmax.f32 %v4122_v33, 0.0  ;;  %v4533_v35 = vsub.f32 1.0, %v4469_v1  ;;  %v7650_v14 = vpack.c.bf16 %v4922_v60, %v4920_v15  ;;  %v4671_v24 = vsub.f32 %v11958_v40, %v9487_v13 }
 0x541   : > { %v4188_v6 = vmax.f32 %v4124_v43, 0.0  ;;  %v3729_v28 = vsub.f32 %v11959_v22, %v9464_v44  ;;  %v4535_v25 = vsub.f32 1.0, %v4471_v3  ;;  %v4733_v5 = vand.u32 2147483647, %v4669_v41 }
 0x542   : > { %v4250_v23 = vmul.f32 %v4186_v26, %v3922_v42  ;;  %v4597_v36 = vmax.f32 %v4533_v35, 0.0  ;;  %7651 = vmatpush1.bf16.msra.mxu0 %v7650_v14  ;;  %v4735_v16 = vand.u32 2147483647, %v4671_v24  ;;  %v3731_v21 = vsub.f32 %v11959_v22, %v9468_v31 }
 0x543   : > { %v4252_v2 = vmul.f32 %v4188_v6, %v3924_v53  ;;  %v3793_v9 = vand.u32 2147483647, %v3729_v28  ;;  %v4599_v30 = vmax.f32 %v4535_v25, 0.0  ;;  %v4797_v17 = vsub.f32 1.0, %v4733_v5 }
 0x544   : > { %v3993_v51 = vsub.f32 %v11960_v45, %v9474_v37  ;;  %v3995_v40 = vsub.f32 %v11960_v45, %v9487_v13  ;;  %v4799_v61 = vsub.f32 1.0, %v4735_v16  ;;  %v3795_v0 = vand.u32 2147483647, %v3731_v21 }
 0x545   : > { %v7588_v12 = vpack.c.bf16 %v4252_v2, %v4250_v23  ;;  %v3857_v42 = vsub.f32 1.0, %v3793_v9  ;;  %v4861_v33 = vmax.f32 %v4797_v17, 0.0  ;;  %v4404_v15 = vsub.f32 %v11961_v56, %v9464_v44 }
 0x546   : > { %v4057_v62 = vand.u32 2147483647, %v3993_v51  ;;  %v4059_v1 = vand.u32 2147483647, %v3995_v40  ;;  %v4863_v22 = vmax.f32 %v4799_v61, 0.0  ;;  %v3859_v60 = vsub.f32 1.0, %v3795_v0 }
 0x547   : > { %7589 = vmatprep.subr.bf16.mxu1 %v7588_v12  ;;  %v3921_v53 = vmax.f32 %v3857_v42, 0.0  ;;  %v4406_v43 = vsub.f32 %v11961_v56, %v9468_v31  ;;  %v4925_v26 = vmul.f32 %v4861_v33, %v4597_v36  ;;  %v4468_v35 = vand.u32 2147483647, %v4404_v15  ;;  %v11999_v56 = vld [vmem:[#allocation55_spill] sm:$0xff] }
 0x548   : > { %v4121_v3 = vsub.f32 1.0, %v4057_v62  ;;  %v4123_v45 = vsub.f32 1.0, %v4059_v1  ;;  %v4927_v41 = vmul.f32 %v4863_v22, %v4599_v30  ;;  %v3923_v14 = vmax.f32 %v3859_v60, 0.0 }
 0x549   : > { %v4470_v6 = vand.u32 2147483647, %v4406_v43  ;;  %v4668_v24 = vsub.f32 %v11962_v32, %v9474_v37  ;;  %v4532_v25 = vsub.f32 1.0, %v4468_v35  ;;  %v4670_v5 = vsub.f32 %v11962_v32, %v9487_v13  ;;  %v12000_v32 = vld [vmem:[#allocation47_spill] sm:$0xff] }
 0x54a   : > { %v4185_v28 = vmax.f32 %v4121_v3, 0.0  ;;  %v4187_v23 = vmax.f32 %v4123_v45, 0.0  ;;  %v7652_v2 = vpack.c.bf16 %v4927_v41, %v4925_v26  ;;  %v5024_v36 = vsub.f32 %v11999_v56, %v8426_v59 }
 0x54b   : > { %v4534_v16 = vsub.f32 1.0, %v4470_v6  ;;  %v4732_v21 = vand.u32 2147483647, %v4668_v24  ;;  %v4596_v30 = vmax.f32 %v4532_v25, 0.0  ;;  %v4734_v51 = vand.u32 2147483647, %v4670_v5 }
 0x54c   : > { %v4249_v9 = vmul.f32 %v4185_v28, %v3921_v53  ;;  %v4251_v17 = vmul.f32 %v4187_v23, %v3923_v14  ;;  %7653 = vmatprep.subr.bf16.mxu0 %v7652_v2  ;;  %v5026_v61 = vsub.f32 %v11999_v56, %v8449_v10  ;;  %v5088_v0 = vand.u32 2147483647, %v5024_v36  ;;  %v12001_v53 = vld [vmem:[#allocation56_spill] sm:$0xff] }
 0x54d   : > { %v4598_v40 = vmax.f32 %v4534_v16, 0.0  ;;  %v4796_v12 = vsub.f32 1.0, %v4732_v21  ;;  %v4798_v33 = vsub.f32 1.0, %v4734_v51  ;;  %v5288_v62 = vsub.f32 %v12000_v32, %v8494_v47  ;;  %v12002_v21 = vld [vmem:[#allocation48_spill] sm:$0xff] }
 0x54e   : > { %v7590_v42 = vpack.c.bf16 %v4251_v17, %v4249_v9  ;;  %v5290_v1 = vsub.f32 %v12000_v32, %v8504_v4  ;;  %v5090_v22 = vand.u32 2147483647, %v5026_v61  ;;  %v5152_v60 = vsub.f32 1.0, %v5088_v0  ;;  %v7903_v17 = vld [vmem:[%s9217_s15] sm:$0xff]  ;;  %v7904_v0 = vld [vmem:[%s9217_s15 + $0x8] sm:$0xff] }
 0x54f   : > { %v4860_v15 = vmax.f32 %v4796_v12, 0.0  ;;  %v5697_v43 = vsub.f32 %v12001_v53, %v8426_v59  ;;  %v4862_v26 = vmax.f32 %v4798_v33, 0.0  ;;  %v5352_v3 = vand.u32 2147483647, %v5288_v62  ;;  %v12003_v62 = vld [vmem:[#allocation50_spill] sm:$0xff] }
 0x550   : > { %7591 = vmatpush1.bf16.msra.mxu1 %v7590_v42  ;;  %v5354_v45 = vand.u32 2147483647, %v5290_v1  ;;  %v5699_v35 = vsub.f32 %v12001_v53, %v8449_v10  ;;  %v5154_v14 = vsub.f32 1.0, %v5090_v22  ;;  %v5216_v6 = vmax.f32 %v5152_v60, 0.0 }
 0x551   : > { %v4924_v41 = vmul.f32 %v4860_v15, %v4596_v30  ;;  %v5761_v24 = vand.u32 2147483647, %v5697_v43  ;;  %v4926_v28 = vmul.f32 %v4862_v26, %v4598_v40  ;;  %v5416_v23 = vsub.f32 1.0, %v5352_v3 }
 0x552   : > { %v5418_v25 = vsub.f32 1.0, %v5354_v45  ;;  %v5763_v5 = vand.u32 2147483647, %v5699_v35  ;;  %v5218_v2 = vmax.f32 %v5154_v14, 0.0  ;;  %v5961_v36 = vsub.f32 %v12002_v21, %v8494_v47  ;;  %v12004_v35 = vld [vmem:[#allocation42_spill] sm:$0xff] }
 0x553   : > { %v5825_v16 = vsub.f32 1.0, %v5761_v24  ;;  %v5963_v9 = vsub.f32 %v12002_v21, %v8504_v4  ;;  %4318 = vmatmul.mubr.f32.vlgmr.msra.gmra.mrb[4].mxu1 %v7903_v17  ;;  %v7654_v51 = vpack.c.bf16 %v4926_v28, %v4924_v41  ;;  %v5480_v30 = vmax.f32 %v5416_v23, 0.0  ;;  %v12005_v23 = vld [vmem:[#allocation51_spill] sm:$0xff] }
 0x554   : > { %v5482_v12 = vmax.f32 %v5418_v25, 0.0  ;;  %v5827_v61 = vsub.f32 1.0, %v5763_v5  ;;  %5671 = vmatprep.mubr.f32.mxu1 %v7904_v0  ;;  %v6025_v42 = vand.u32 2147483647, %v5961_v36  ;;  %v5023_v1 = vsub.f32 %v12003_v62, %v8426_v59 }
 0x555   : > { %v5889_v40 = vmax.f32 %v5825_v16, 0.0  ;;  %v6027_v33 = vand.u32 2147483647, %v5963_v9  ;;  %7655 = vmatpush1.bf16.msra.mxu0 %v7654_v51  ;;  %v5544_v15 = vmul.f32 %v5480_v30, %v5216_v6  ;;  %v5025_v43 = vsub.f32 %v12003_v62, %v8449_v10 }
 0x556   : > { %v5546_v22 = vmul.f32 %v5482_v12, %v5218_v2  ;;  %v5891_v60 = vmax.f32 %v5827_v61, 0.0  ;;  %v6089_v26 = vsub.f32 1.0, %v6025_v42  ;;  %v5087_v45 = vand.u32 2147483647, %v5023_v1 }
 0x557   : > { %v6091_v3 = vsub.f32 1.0, %v6027_v33  ;;  %v5287_v41 = vsub.f32 %v12004_v35, %v8494_v47  ;;  %v5089_v24 = vand.u32 2147483647, %v5025_v43  ;;  %v5289_v28 = vsub.f32 %v12004_v35, %v8504_v4 }
 0x558   : > { %v7656_v14 = vpack.c.bf16 %v5546_v22, %v5544_v15  ;;  %v5696_v25 = vsub.f32 %v12005_v23, %v8426_v59  ;;  %v6153_v6 = vmax.f32 %v6089_v26, 0.0  ;;  %4993 = vmatmul.mubr.f32.vlgmr.msra.gmra.mrb[12].mxu0 %v7903_v17  ;;  %v5151_v2 = vsub.f32 1.0, %v5087_v45 }
 0x559   : > { %v6155_v5 = vmax.f32 %v6091_v3, 0.0  ;;  %v5351_v16 = vand.u32 2147483647, %v5287_v41  ;;  %v5153_v36 = vsub.f32 1.0, %v5089_v24  ;;  %v5353_v9 = vand.u32 2147483647, %v5289_v28  ;;  %6344 = vmatprep.mubr.f32.mxu0 %v7904_v0 }
 0x55a   : > { %7657 = vmatprep.subr.bf16.mxu1 %v7656_v14  ;;  %v5698_v51 = vsub.f32 %v12005_v23, %v8449_v10  ;;  %v5760_v30 = vand.u32 2147483647, %v5696_v25  ;;  %v6217_v12 = vmul.f32 %v6153_v6, %v5889_v40  ;;  %v5215_v42 = vmax.f32 %v5151_v2, 0.0  ;;  %v12006_v3 = vld [vmem:[#allocation43_spill] sm:$0xff] }
 0x55b   : > { %v6219_v61 = vmul.f32 %v6155_v5, %v5891_v60  ;;  %v5415_v33 = vsub.f32 1.0, %v5351_v16  ;;  %v5217_v1 = vmax.f32 %v5153_v36, 0.0  ;;  %v5417_v15 = vsub.f32 1.0, %v5353_v9  ;;  %v12007_v36 = vld [vmem:[#allocation21_spill] sm:$0xff] }
 0x55c   : > { %v5762_v22 = vand.u32 2147483647, %v5698_v51  ;;  %v5824_v43 = vsub.f32 1.0, %v5760_v30  ;;  %v5960_v45 = vsub.f32 %v12006_v3, %v8494_v47  ;;  %v5962_v41 = vsub.f32 %v12006_v3, %v8504_v4 }
 0x55d   : > { %v7720_v26 = vpack.c.bf16 %v6219_v61, %v6217_v12  ;;  %v5479_v17 = vmax.f32 %v5415_v33, 0.0  ;;  %v5481_v14 = vmax.f32 %v5417_v15, 0.0  ;;  %v5028_v0 = vsub.f32 %v11999_v56, %v8455_v49  ;;  %v12008_v61 = vld [vmem:[#allocation22_spill] sm:$0xff] }
 0x55e   : > { %v5826_v24 = vsub.f32 1.0, %v5762_v22  ;;  %v5888_v28 = vmax.f32 %v5824_v43, 0.0  ;;  %v6024_v60 = vand.u32 2147483647, %v5960_v45  ;;  %v6026_v25 = vand.u32 2147483647, %v5962_v41 }
 0x55f   : > { %7721 = vmatprep.subr.bf16.mxu0 %v7720_v26  ;;  %v5543_v40 = vmul.f32 %v5479_v17, %v5215_v42  ;;  %v5030_v6 = vsub.f32 %v11999_v56, %v8464_v57  ;;  %v5545_v5 = vmul.f32 %v5481_v14, %v5217_v1  ;;  %v5092_v16 = vand.u32 2147483647, %v5028_v0 }
 0x560   : > { %v5890_v2 = vmax.f32 %v5826_v24, 0.0  ;;  %v5292_v9 = vsub.f32 %v12000_v32, %v12007_v36  ;;  %v6088_v51 = vsub.f32 1.0, %v6024_v60  ;;  %v6090_v30 = vsub.f32 1.0, %v6026_v25 }
 0x561   : > { %v5094_v12 = vand.u32 2147483647, %v5030_v6  ;;  %v5294_v33 = vsub.f32 %v12000_v32, %v12008_v61  ;;  %v7658_v15 = vpack.c.bf16 %v5545_v5, %v5543_v40  ;;  %v5156_v22 = vsub.f32 1.0, %v5092_v16 }
 0x562   : > { %v5356_v42 = vand.u32 2147483647, %v5292_v9  ;;  %v5701_v43 = vsub.f32 %v12001_v53, %v8455_v49  ;;  %v6152_v26 = vmax.f32 %v6088_v51, 0.0  ;;  %v6154_v17 = vmax.f32 %v6090_v30, 0.0 }
 0x563   : > { %v5158_v1 = vsub.f32 1.0, %v5094_v12  ;;  %v5358_v45 = vand.u32 2147483647, %v5294_v33  ;;  %7659 = vmatpush1.bf16.msra.mxu1 %v7658_v15  ;;  %v5220_v41 = vmax.f32 %v5156_v22, 0.0  ;;  %v5703_v24 = vsub.f32 %v12001_v53, %v8464_v57 }
 0x564   : > { %v5420_v14 = vsub.f32 1.0, %v5356_v42  ;;  %v5765_v0 = vand.u32 2147483647, %v5701_v43  ;;  %v6216_v60 = vmul.f32 %v6152_v26, %v5888_v28  ;;  %v6218_v25 = vmul.f32 %v6154_v17, %v5890_v2 }
 0x565   : > { %v5222_v6 = vmax.f32 %v5158_v1, 0.0  ;;  %v5422_v40 = vsub.f32 1.0, %v5358_v45  ;;  %v5767_v16 = vand.u32 2147483647, %v5703_v24  ;;  %v5965_v51 = vsub.f32 %v12002_v21, %v12007_v36 }
 0x566   : > { %v5484_v5 = vmax.f32 %v5420_v14, 0.0  ;;  %v5829_v9 = vsub.f32 1.0, %v5765_v0  ;;  %v7722_v30 = vpack.c.bf16 %v6218_v25, %v6216_v60  ;;  %v5967_v33 = vsub.f32 %v12002_v21, %v12008_v61 }
 0x567   : > { %v5486_v12 = vmax.f32 %v5422_v40, 0.0  ;;  %v5027_v15 = vsub.f32 %v12003_v62, %v8455_v49  ;;  %v5831_v42 = vsub.f32 1.0, %v5767_v16  ;;  %v6029_v2 = vand.u32 2147483647, %v5965_v51 }
 0x568   : > { %v5548_v22 = vmul.f32 %v5484_v5, %v5220_v41  ;;  %v5893_v28 = vmax.f32 %v5829_v9, 0.0  ;;  %7723 = vmatpush1.bf16.msra.mxu0 %v7722_v30  ;;  %v6031_v26 = vand.u32 2147483647, %v5967_v33  ;;  %v5029_v17 = vsub.f32 %v12003_v62, %v8464_v57 }
 0x569   : > { %v5550_v43 = vmul.f32 %v5486_v12, %v5222_v6  ;;  %v5091_v1 = vand.u32 2147483647, %v5027_v15  ;;  %v5895_v45 = vmax.f32 %v5831_v42, 0.0  ;;  %v6093_v14 = vsub.f32 1.0, %v6029_v2 }
 0x56a   : > { %v5291_v24 = vsub.f32 %v12004_v35, %v12007_v36  ;;  %v5293_v0 = vsub.f32 %v12004_v35, %v12008_v61  ;;  %v6095_v41 = vsub.f32 1.0, %v6031_v26  ;;  %v5093_v25 = vand.u32 2147483647, %v5029_v17 }
 0x56b   : > { %v7660_v60 = vpack.c.bf16 %v5550_v43, %v5548_v22  ;;  %v5155_v40 = vsub.f32 1.0, %v5091_v1  ;;  %v6157_v5 = vmax.f32 %v6093_v14, 0.0  ;;  %v5700_v9 = vsub.f32 %v12005_v23, %v8455_v49 }
 0x56c   : > { %v5355_v16 = vand.u32 2147483647, %v5291_v24  ;;  %v5357_v6 = vand.u32 2147483647, %v5293_v0  ;;  %v6159_v51 = vmax.f32 %v6095_v41, 0.0  ;;  %v5157_v30 = vsub.f32 1.0, %v5093_v25 }
 0x56d   : > { %7661 = vmatprep.subr.bf16.mxu1 %v7660_v60  ;;  %v5219_v12 = vmax.f32 %v5155_v40, 0.0  ;;  %v5702_v33 = vsub.f32 %v12005_v23, %v8464_v57  ;;  %v6221_v15 = vmul.f32 %v6157_v5, %v5893_v28  ;;  %v5764_v22 = vand.u32 2147483647, %v5700_v9 }
 0x56e   : > { %v5419_v42 = vsub.f32 1.0, %v5355_v16  ;;  %v5421_v2 = vsub.f32 1.0, %v5357_v6  ;;  %v6223_v43 = vmul.f32 %v6159_v51, %v5895_v45  ;;  %v5221_v26 = vmax.f32 %v5157_v30, 0.0 }
 0x56f   : > { %v5766_v17 = vand.u32 2147483647, %v5702_v33  ;;  %v5964_v1 = vsub.f32 %v12006_v3, %v12007_v36  ;;  %v5828_v0 = vsub.f32 1.0, %v5764_v22  ;;  %v5966_v60 = vsub.f32 %v12006_v3, %v12008_v61 }
 0x570   : > { %v5483_v14 = vmax.f32 %v5419_v42, 0.0  ;;  %v5485_v24 = vmax.f32 %v5421_v2, 0.0  ;;  %v7724_v41 = vpack.c.bf16 %v6223_v43, %v6221_v15  ;;  %v5032_v28 = vsub.f32 %v11999_v56, %v11845_v19 }
 0x571   : > { %v5830_v25 = vsub.f32 1.0, %v5766_v17  ;;  %v6028_v40 = vand.u32 2147483647, %v5964_v1  ;;  %v5892_v45 = vmax.f32 %v5828_v0, 0.0  ;;  %v6030_v6 = vand.u32 2147483647, %v5966_v60 }
 0x572   : > { %v5547_v5 = vmul.f32 %v5483_v14, %v5219_v12  ;;  %v5549_v16 = vmul.f32 %v5485_v24, %v5221_v26  ;;  %7725 = vmatprep.subr.bf16.mxu0 %v7724_v41  ;;  %v5034_v30 = vsub.f32 %v11999_v56, %v11846_v52  ;;  %v5096_v33 = vand.u32 2147483647, %v5032_v28 }
 0x573   : > { %v5894_v9 = vmax.f32 %v5830_v25, 0.0  ;;  %v6092_v51 = vsub.f32 1.0, %v6028_v40  ;;  %v6094_v2 = vsub.f32 1.0, %v6030_v6  ;;  %v5296_v15 = vsub.f32 %v12000_v32, %v8526_v58 }
 0x574   : > { %v7662_v42 = vpack.c.bf16 %v5549_v16, %v5547_v5  ;;  %v5298_v22 = vsub.f32 %v12000_v32, %v8530_v20  ;;  %v5098_v12 = vand.u32 2147483647, %v5034_v30  ;;  %v5160_v26 = vsub.f32 1.0, %v5096_v33 }
 0x575   : > { %v6156_v43 = vmax.f32 %v6092_v51, 0.0  ;;  %v5705_v17 = vsub.f32 %v12001_v53, %v11845_v19  ;;  %v6158_v1 = vmax.f32 %v6094_v2, 0.0  ;;  %v5360_v14 = vand.u32 2147483647, %v5296_v15 }
 0x576   : > { %7663 = vmatpush1.bf16.msra.mxu1 %v7662_v42  ;;  %v5362_v24 = vand.u32 2147483647, %v5298_v22  ;;  %v5707_v0 = vsub.f32 %v12001_v53, %v11846_v52  ;;  %v5162_v41 = vsub.f32 1.0, %v5098_v12  ;;  %v5224_v25 = vmax.f32 %v5160_v26, 0.0 }
 0x577   : > { %v6220_v60 = vmul.f32 %v6156_v43, %v5892_v45  ;;  %v5769_v40 = vand.u32 2147483647, %v5705_v17  ;;  %v6222_v28 = vmul.f32 %v6158_v1, %v5894_v9  ;;  %v5424_v5 = vsub.f32 1.0, %v5360_v14 }
 0x578   : > { %v5426_v16 = vsub.f32 1.0, %v5362_v24  ;;  %v5771_v6 = vand.u32 2147483647, %v5707_v0  ;;  %v5226_v51 = vmax.f32 %v5162_v41, 0.0  ;;  %v5969_v33 = vsub.f32 %v12002_v21, %v8526_v58 }
 0x579   : > { %v5833_v30 = vsub.f32 1.0, %v5769_v40  ;;  %v5971_v42 = vsub.f32 %v12002_v21, %v8530_v20  ;;  %v7726_v2 = vpack.c.bf16 %v6222_v28, %v6220_v60  ;;  %v5488_v15 = vmax.f32 %v5424_v5, 0.0 }
 0x57a   : > { %v5490_v22 = vmax.f32 %v5426_v16, 0.0  ;;  %v5835_v61 = vsub.f32 1.0, %v5771_v6  ;;  %v6033_v43 = vand.u32 2147483647, %v5969_v33  ;;  %v5031_v9 = vsub.f32 %v12003_v62, %v11845_v19 }
 0x57b   : > { %v5897_v45 = vmax.f32 %v5833_v30, 0.0  ;;  %v6035_v12 = vand.u32 2147483647, %v5971_v42  ;;  %7727 = vmatpush1.bf16.msra.mxu0 %v7726_v2  ;;  %v5552_v26 = vmul.f32 %v5488_v15, %v5224_v25  ;;  %v5033_v14 = vsub.f32 %v12003_v62, %v11846_v52 }
 0x57c   : > { %v5554_v17 = vmul.f32 %v5490_v22, %v5226_v51  ;;  %v5899_v1 = vmax.f32 %v5835_v61, 0.0  ;;  %v6097_v24 = vsub.f32 1.0, %v6033_v43  ;;  %v5095_v41 = vand.u32 2147483647, %v5031_v9 }
 0x57d   : > { %v6099_v0 = vsub.f32 1.0, %v6035_v12  ;;  %v5295_v60 = vsub.f32 %v12004_v35, %v8526_v58  ;;  %v5097_v28 = vand.u32 2147483647, %v5033_v14  ;;  %v5297_v5 = vsub.f32 %v12004_v35, %v8530_v20 }
 0x57e   : > { %v7664_v40 = vpack.c.bf16 %v5554_v17, %v5552_v26  ;;  %v5704_v16 = vsub.f32 %v12005_v23, %v11845_v19  ;;  %v6161_v25 = vmax.f32 %v6097_v24, 0.0  ;;  %v5159_v61 = vsub.f32 1.0, %v5095_v41 }
 0x57f   : > { %v6163_v6 = vmax.f32 %v6099_v0, 0.0  ;;  %v5359_v51 = vand.u32 2147483647, %v5295_v60  ;;  %v5161_v30 = vsub.f32 1.0, %v5097_v28  ;;  %v5361_v33 = vand.u32 2147483647, %v5297_v5 }
 0x580   : > { %7665 = vmatprep.subr.bf16.mxu1 %v7664_v40  ;;  %v5706_v42 = vsub.f32 %v12005_v23, %v11846_v52  ;;  %v5768_v2 = vand.u32 2147483647, %v5704_v16  ;;  %v6225_v15 = vmul.f32 %v6161_v25, %v5897_v45  ;;  %v5223_v43 = vmax.f32 %v5159_v61, 0.0  ;;  %v12009_v25 = vld [vmem:[#allocation16_spill] sm:$0xff] }
 0x581   : > { %v6227_v22 = vmul.f32 %v6163_v6, %v5899_v1  ;;  %v5423_v12 = vsub.f32 1.0, %v5359_v51  ;;  %v5225_v9 = vmax.f32 %v5161_v30, 0.0  ;;  %v5425_v26 = vsub.f32 1.0, %v5361_v33  ;;  %v12010_v33 = vld [vmem:[#allocation24_spill] sm:$0xff] }
 0x582   : > { %v5770_v17 = vand.u32 2147483647, %v5706_v42  ;;  %v5832_v14 = vsub.f32 1.0, %v5768_v2  ;;  %v5968_v0 = vsub.f32 %v12006_v3, %v8526_v58  ;;  %v5970_v41 = vsub.f32 %v12006_v3, %v8530_v20 }
 0x583   : > { %v7728_v19 = vpack.c.bf16 %v6227_v22, %v6225_v15  ;;  %v5487_v24 = vmax.f32 %v5423_v12, 0.0  ;;  %v5489_v60 = vmax.f32 %v5425_v26, 0.0  ;;  %v5036_v45 = vsub.f32 %v11999_v56, %v11847_v7  ;;  %v12011_v12 = vld [vmem:[#allocation25_spill] sm:$0xff] }
 0x584   : > { %v5834_v40 = vsub.f32 1.0, %v5770_v17  ;;  %v5896_v28 = vmax.f32 %v5832_v14, 0.0  ;;  %v6032_v5 = vand.u32 2147483647, %v5968_v0  ;;  %v6034_v16 = vand.u32 2147483647, %v5970_v41 }
 0x585   : > { %7729 = vmatprep.subr.bf16.mxu0 %v7728_v19  ;;  %v5551_v1 = vmul.f32 %v5487_v24, %v5223_v43  ;;  %v5038_v6 = vsub.f32 %v11999_v56, %v12009_v25  ;;  %v5553_v61 = vmul.f32 %v5489_v60, %v5225_v9  ;;  %v5100_v30 = vand.u32 2147483647, %v5036_v45 }
 0x586   : > { %v5898_v51 = vmax.f32 %v5834_v40, 0.0  ;;  %v5300_v42 = vsub.f32 %v12000_v32, %v12010_v33  ;;  %v6096_v2 = vsub.f32 1.0, %v6032_v5  ;;  %v6098_v15 = vsub.f32 1.0, %v6034_v16 }
 0x587   : > { %v5102_v22 = vand.u32 2147483647, %v5038_v6  ;;  %v5302_v26 = vsub.f32 %v12000_v32, %v12011_v12  ;;  %v7666_v17 = vpack.c.bf16 %v5553_v61, %v5551_v1  ;;  %v5164_v19 = vsub.f32 1.0, %v5100_v30 }
 0x588   : > { %v5364_v43 = vand.u32 2147483647, %v5300_v42  ;;  %v5709_v14 = vsub.f32 %v12001_v53, %v11847_v7  ;;  %v6160_v24 = vmax.f32 %v6096_v2, 0.0  ;;  %v6162_v0 = vmax.f32 %v6098_v15, 0.0 }
 0x589   : > { %v5166_v9 = vsub.f32 1.0, %v5102_v22  ;;  %v5366_v41 = vand.u32 2147483647, %v5302_v26  ;;  %7667 = vmatpush1.bf16.msra.mxu1 %v7666_v17  ;;  %v5228_v60 = vmax.f32 %v5164_v19, 0.0  ;;  %v5711_v45 = vsub.f32 %v12001_v53, %v12009_v25 }
 0x58a   : > { %v5428_v40 = vsub.f32 1.0, %v5364_v43  ;;  %v5773_v5 = vand.u32 2147483647, %v5709_v14  ;;  %v6224_v16 = vmul.f32 %v6160_v24, %v5896_v28  ;;  %v6226_v6 = vmul.f32 %v6162_v0, %v5898_v51 }
 0x58b   : > { %v5230_v20 = vmax.f32 %v5166_v9, 0.0  ;;  %v5430_v1 = vsub.f32 1.0, %v5366_v41  ;;  %v5775_v30 = vand.u32 2147483647, %v5711_v45  ;;  %v5973_v2 = vsub.f32 %v12002_v21, %v12010_v33 }
 0x58c   : > { %v5492_v61 = vmax.f32 %v5428_v40, 0.0  ;;  %v5837_v42 = vsub.f32 1.0, %v5773_v5  ;;  %v7730_v15 = vpack.c.bf16 %v6226_v6, %v6224_v16  ;;  %v5975_v26 = vsub.f32 %v12002_v21, %v12011_v12 }
 0x58d   : > { %v5494_v22 = vmax.f32 %v5430_v1, 0.0  ;;  %v5035_v17 = vsub.f32 %v12003_v62, %v11847_v7  ;;  %v5839_v43 = vsub.f32 1.0, %v5775_v30  ;;  %v6037_v51 = vand.u32 2147483647, %v5973_v2 }
 0x58e   : > { %v5556_v19 = vmul.f32 %v5492_v61, %v5228_v60  ;;  %v5901_v28 = vmax.f32 %v5837_v42, 0.0  ;;  %7731 = vmatpush1.bf16.msra.mxu0 %v7730_v15  ;;  %v6039_v24 = vand.u32 2147483647, %v5975_v26  ;;  %v5037_v0 = vsub.f32 %v12003_v62, %v12009_v25 }
 0x58f   : > { %v5558_v14 = vmul.f32 %v5494_v22, %v5230_v20  ;;  %v5099_v9 = vand.u32 2147483647, %v5035_v17  ;;  %v5903_v41 = vmax.f32 %v5839_v43, 0.0  ;;  %v6101_v40 = vsub.f32 1.0, %v6037_v51 }
 0x590   : > { %v5299_v45 = vsub.f32 %v12004_v35, %v12010_v33  ;;  %v5301_v5 = vsub.f32 %v12004_v35, %v12011_v12  ;;  %v6103_v60 = vsub.f32 1.0, %v6039_v24  ;;  %v5101_v6 = vand.u32 2147483647, %v5037_v0 }
 0x591   : > { %v7668_v16 = vpack.c.bf16 %v5558_v14, %v5556_v19  ;;  %v5163_v1 = vsub.f32 1.0, %v5099_v9  ;;  %v6165_v61 = vmax.f32 %v6101_v40, 0.0  ;;  %v5708_v42 = vsub.f32 %v12005_v23, %v11847_v7 }
 0x592   : > { %v5363_v30 = vand.u32 2147483647, %v5299_v45  ;;  %v5365_v20 = vand.u32 2147483647, %v5301_v5  ;;  %v6167_v2 = vmax.f32 %v6103_v60, 0.0  ;;  %v5165_v15 = vsub.f32 1.0, %v5101_v6 }
 0x593   : > { %7669 = vmatprep.subr.bf16.mxu1 %v7668_v16  ;;  %v5227_v22 = vmax.f32 %v5163_v1, 0.0  ;;  %v5710_v26 = vsub.f32 %v12005_v23, %v12009_v25  ;;  %v6229_v17 = vmul.f32 %v6165_v61, %v5901_v28  ;;  %v5772_v19 = vand.u32 2147483647, %v5708_v42 }
 0x594   : > { %v5427_v43 = vsub.f32 1.0, %v5363_v30  ;;  %v5429_v51 = vsub.f32 1.0, %v5365_v20  ;;  %v6231_v14 = vmul.f32 %v6167_v2, %v5903_v41  ;;  %v5229_v24 = vmax.f32 %v5165_v15, 0.0 }
 0x595   : > { %v5774_v0 = vand.u32 2147483647, %v5710_v26  ;;  %v5972_v9 = vsub.f32 %v12006_v3, %v12010_v33  ;;  %v5836_v5 = vsub.f32 1.0, %v5772_v19  ;;  %v5974_v16 = vsub.f32 %v12006_v3, %v12011_v12  ;;  %v12012_v19 = vld [vmem:[#allocation26_spill] sm:$0xff] }
 0x596   : > { %v5491_v40 = vmax.f32 %v5427_v43, 0.0  ;;  %v5493_v45 = vmax.f32 %v5429_v51, 0.0  ;;  %v7732_v60 = vpack.c.bf16 %v6231_v14, %v6229_v17  ;;  %v5040_v28 = vsub.f32 %v11999_v56, %v11964_v48  ;;  %v12013_v14 = vld [vmem:[#allocation27_spill] sm:$0xff] }
 0x597   : > { %v5838_v6 = vsub.f32 1.0, %v5774_v0  ;;  %v6036_v1 = vand.u32 2147483647, %v5972_v9  ;;  %v5900_v41 = vmax.f32 %v5836_v5, 0.0  ;;  %v6038_v20 = vand.u32 2147483647, %v5974_v16 }
 0x598   : > { %v5555_v61 = vmul.f32 %v5491_v40, %v5227_v22  ;;  %v5557_v30 = vmul.f32 %v5493_v45, %v5229_v24  ;;  %7733 = vmatprep.subr.bf16.mxu0 %v7732_v60  ;;  %v5042_v15 = vsub.f32 %v11999_v56, %v11965_v39  ;;  %v5104_v26 = vand.u32 2147483647, %v5040_v28 }
 0x599   : > { %v5902_v42 = vmax.f32 %v5838_v6, 0.0  ;;  %v6100_v2 = vsub.f32 1.0, %v6036_v1  ;;  %v6102_v51 = vsub.f32 1.0, %v6038_v20  ;;  %v5304_v17 = vsub.f32 %v12000_v32, %v12012_v19 }
 0x59a   : > { %v7670_v43 = vpack.c.bf16 %v5557_v30, %v5555_v61  ;;  %v5306_v0 = vsub.f32 %v12000_v32, %v12013_v14  ;;  %v5106_v22 = vand.u32 2147483647, %v5042_v15  ;;  %v5168_v24 = vsub.f32 1.0, %v5104_v26 }
 0x59b   : > { %v6164_v9 = vmax.f32 %v6100_v2, 0.0  ;;  %v5713_v40 = vsub.f32 %v12001_v53, %v11964_v48  ;;  %v6166_v45 = vmax.f32 %v6102_v51, 0.0  ;;  %v5368_v5 = vand.u32 2147483647, %v5304_v17 }
 0x59c   : > { %7671 = vmatpush1.bf16.msra.mxu1 %v7670_v43  ;;  %v5370_v16 = vand.u32 2147483647, %v5306_v0  ;;  %v5715_v60 = vsub.f32 %v12001_v53, %v11965_v39  ;;  %v5170_v1 = vsub.f32 1.0, %v5106_v22  ;;  %v5232_v28 = vmax.f32 %v5168_v24, 0.0 }
 0x59d   : > { %v6228_v6 = vmul.f32 %v6164_v9, %v5900_v41  ;;  %v5777_v61 = vand.u32 2147483647, %v5713_v40  ;;  %v6230_v30 = vmul.f32 %v6166_v45, %v5902_v42  ;;  %v5432_v20 = vsub.f32 1.0, %v5368_v5 }
 0x59e   : > { %v5434_v12 = vsub.f32 1.0, %v5370_v16  ;;  %v5779_v2 = vand.u32 2147483647, %v5715_v60  ;;  %v5234_v15 = vmax.f32 %v5170_v1, 0.0  ;;  %v5977_v33 = vsub.f32 %v12002_v21, %v12012_v19 }
 0x59f   : > { %v5841_v26 = vsub.f32 1.0, %v5777_v61  ;;  %v5979_v43 = vsub.f32 %v12002_v21, %v12013_v14  ;;  %v7734_v51 = vpack.c.bf16 %v6230_v30, %v6228_v6  ;;  %v5496_v17 = vmax.f32 %v5432_v20, 0.0 }
 0x5a0   : > { %v5498_v0 = vmax.f32 %v5434_v12, 0.0  ;;  %v5843_v25 = vsub.f32 1.0, %v5779_v2  ;;  %v6041_v9 = vand.u32 2147483647, %v5977_v33  ;;  %v5039_v42 = vsub.f32 %v12003_v62, %v11964_v48 }
 0x5a1   : > { %v5905_v41 = vmax.f32 %v5841_v26, 0.0  ;;  %v6043_v22 = vand.u32 2147483647, %v5979_v43  ;;  %7735 = vmatpush1.bf16.msra.mxu0 %v7734_v51  ;;  %v5560_v24 = vmul.f32 %v5496_v17, %v5232_v28  ;;  %v5041_v5 = vsub.f32 %v12003_v62, %v11965_v39 }
 0x5a2   : > { %v5562_v40 = vmul.f32 %v5498_v0, %v5234_v15  ;;  %v5907_v45 = vmax.f32 %v5843_v25, 0.0  ;;  %v6105_v16 = vsub.f32 1.0, %v6041_v9  ;;  %v5103_v1 = vand.u32 2147483647, %v5039_v42 }
 0x5a3   : > { %v6107_v60 = vsub.f32 1.0, %v6043_v22  ;;  %v5303_v12 = vsub.f32 %v12004_v35, %v12012_v19  ;;  %v5105_v61 = vand.u32 2147483647, %v5041_v5  ;;  %v5305_v33 = vsub.f32 %v12004_v35, %v12013_v14 }
 0x5a4   : > { %v7672_v6 = vpack.c.bf16 %v5562_v40, %v5560_v24  ;;  %v5712_v30 = vsub.f32 %v12005_v23, %v11964_v48  ;;  %v6169_v28 = vmax.f32 %v6105_v16, 0.0  ;;  %v5167_v25 = vsub.f32 1.0, %v5103_v1 }
 0x5a5   : > { %v6171_v20 = vmax.f32 %v6107_v60, 0.0  ;;  %v5367_v2 = vand.u32 2147483647, %v5303_v12  ;;  %v5169_v15 = vsub.f32 1.0, %v5105_v61  ;;  %v5369_v26 = vand.u32 2147483647, %v5305_v33 }
 0x5a6   : > { %7673 = vmatprep.subr.bf16.mxu1 %v7672_v6  ;;  %v5714_v43 = vsub.f32 %v12005_v23, %v11965_v39  ;;  %v5776_v51 = vand.u32 2147483647, %v5712_v30  ;;  %v6233_v17 = vmul.f32 %v6169_v28, %v5905_v41  ;;  %v5231_v9 = vmax.f32 %v5167_v25, 0.0  ;;  %v12014_v33 = vld [vmem:[#allocation19_spill] sm:$0xff] }
 0x5a7   : > { %v6235_v0 = vmul.f32 %v6171_v20, %v5907_v45  ;;  %v5431_v22 = vsub.f32 1.0, %v5367_v2  ;;  %v5233_v42 = vmax.f32 %v5169_v15, 0.0  ;;  %v5433_v24 = vsub.f32 1.0, %v5369_v26  ;;  %v12015_v20 = vld [vmem:[#allocation20_spill] sm:$0xff] }
 0x5a8   : > { %v5778_v40 = vand.u32 2147483647, %v5714_v43  ;;  %v5840_v5 = vsub.f32 1.0, %v5776_v51  ;;  %v5976_v60 = vsub.f32 %v12006_v3, %v12012_v19  ;;  %v5978_v1 = vsub.f32 %v12006_v3, %v12013_v14  ;;  %v12016_v43 = vld [vmem:[#allocation28_spill] sm:$0xff] }
 0x5a9   : > { %v7736_v48 = vpack.c.bf16 %v6235_v0, %v6233_v17  ;;  %v5495_v16 = vmax.f32 %v5431_v22, 0.0  ;;  %v5497_v12 = vmax.f32 %v5433_v24, 0.0  ;;  %v5044_v41 = vsub.f32 %v11999_v56, %v12014_v33  ;;  %v12017_v24 = vld [vmem:[#allocation29_spill] sm:$0xff] }
 0x5aa   : > { %v5842_v6 = vsub.f32 1.0, %v5778_v40  ;;  %v5904_v61 = vmax.f32 %v5840_v5, 0.0  ;;  %v6040_v30 = vand.u32 2147483647, %v5976_v60  ;;  %v6042_v28 = vand.u32 2147483647, %v5978_v1 }
 0x5ab   : > { %7737 = vmatprep.subr.bf16.mxu0 %v7736_v48  ;;  %v5559_v45 = vmul.f32 %v5495_v16, %v5231_v9  ;;  %v5046_v25 = vsub.f32 %v11999_v56, %v12015_v20  ;;  %v5561_v2 = vmul.f32 %v5497_v12, %v5233_v42  ;;  %v5108_v26 = vand.u32 2147483647, %v5044_v41 }
 0x5ac   : > { %v5906_v15 = vmax.f32 %v5842_v6, 0.0  ;;  %v5308_v51 = vsub.f32 %v12000_v32, %v12016_v43  ;;  %v6104_v17 = vsub.f32 1.0, %v6040_v30  ;;  %v6106_v0 = vsub.f32 1.0, %v6042_v28 }
 0x5ad   : > { %v5110_v22 = vand.u32 2147483647, %v5046_v25  ;;  %v5310_v40 = vsub.f32 %v12000_v32, %v12017_v24  ;;  %v7674_v5 = vpack.c.bf16 %v5561_v2, %v5559_v45  ;;  %v5172_v48 = vsub.f32 1.0, %v5108_v26 }
 0x5ae   : > { %v5372_v9 = vand.u32 2147483647, %v5308_v51  ;;  %v5717_v16 = vsub.f32 %v12001_v53, %v12014_v33  ;;  %v6168_v60 = vmax.f32 %v6104_v17, 0.0  ;;  %v6170_v1 = vmax.f32 %v6106_v0, 0.0 }
 0x5af   : > { %v5174_v42 = vsub.f32 1.0, %v5110_v22  ;;  %v5374_v12 = vand.u32 2147483647, %v5310_v40  ;;  %7675 = vmatpush1.bf16.msra.mxu1 %v7674_v5  ;;  %v5236_v6 = vmax.f32 %v5172_v48, 0.0  ;;  %v5719_v30 = vsub.f32 %v12001_v53, %v12015_v20 }
 0x5b0   : > { %v5436_v41 = vsub.f32 1.0, %v5372_v9  ;;  %v5781_v28 = vand.u32 2147483647, %v5717_v16  ;;  %v6232_v25 = vmul.f32 %v6168_v60, %v5904_v61  ;;  %v6234_v14 = vmul.f32 %v6170_v1, %v5906_v15 }
 0x5b1   : > { %v5238_v19 = vmax.f32 %v5174_v42, 0.0  ;;  %v5438_v45 = vsub.f32 1.0, %v5374_v12  ;;  %v5783_v26 = vand.u32 2147483647, %v5719_v30  ;;  %v5981_v17 = vsub.f32 %v12002_v21, %v12016_v43 }
 0x5b2   : > { %v5500_v2 = vmax.f32 %v5436_v41, 0.0  ;;  %v5845_v51 = vsub.f32 1.0, %v5781_v28  ;;  %v7738_v0 = vpack.c.bf16 %v6234_v14, %v6232_v25  ;;  %v5983_v40 = vsub.f32 %v12002_v21, %v12017_v24 }
 0x5b3   : > { %v5502_v22 = vmax.f32 %v5438_v45, 0.0  ;;  %v5043_v5 = vsub.f32 %v12003_v62, %v12014_v33  ;;  %v5847_v9 = vsub.f32 1.0, %v5783_v26  ;;  %v6045_v15 = vand.u32 2147483647, %v5981_v17 }
 0x5b4   : > { %v5564_v48 = vmul.f32 %v5500_v2, %v5236_v6  ;;  %v5909_v61 = vmax.f32 %v5845_v51, 0.0  ;;  %7739 = vmatpush1.bf16.msra.mxu0 %v7738_v0  ;;  %v6047_v60 = vand.u32 2147483647, %v5983_v40  ;;  %v5045_v1 = vsub.f32 %v12003_v62, %v12015_v20 }
 0x5b5   : > { %v5566_v16 = vmul.f32 %v5502_v22, %v5238_v19  ;;  %v5107_v42 = vand.u32 2147483647, %v5043_v5  ;;  %v5911_v12 = vmax.f32 %v5847_v9, 0.0  ;;  %v6109_v14 = vsub.f32 1.0, %v6045_v15 }
 0x5b6   : > { %v5307_v41 = vsub.f32 %v12004_v35, %v12016_v43  ;;  %v5309_v30 = vsub.f32 %v12004_v35, %v12017_v24  ;;  %v6111_v6 = vsub.f32 1.0, %v6047_v60  ;;  %v5109_v25 = vand.u32 2147483647, %v5045_v1 }
 0x5b7   : > { %v7676_v28 = vpack.c.bf16 %v5566_v16, %v5564_v48  ;;  %v5171_v45 = vsub.f32 1.0, %v5107_v42  ;;  %v6173_v2 = vmax.f32 %v6109_v14, 0.0  ;;  %v5716_v51 = vsub.f32 %v12005_v23, %v12014_v33 }
 0x5b8   : > { %v5371_v26 = vand.u32 2147483647, %v5307_v41  ;;  %v5373_v19 = vand.u32 2147483647, %v5309_v30  ;;  %v6175_v17 = vmax.f32 %v6111_v6, 0.0  ;;  %v5173_v0 = vsub.f32 1.0, %v5109_v25 }
 0x5b9   : > { %7677 = vmatprep.subr.bf16.mxu1 %v7676_v28  ;;  %v5235_v22 = vmax.f32 %v5171_v45, 0.0  ;;  %v5718_v40 = vsub.f32 %v12005_v23, %v12015_v20  ;;  %v6237_v5 = vmul.f32 %v6173_v2, %v5909_v61  ;;  %v5780_v48 = vand.u32 2147483647, %v5716_v51  ;;  %v12018_v20 = vld [vmem:[#allocation30_spill] sm:$0xff] }
 0x5ba   : > { %v5435_v9 = vsub.f32 1.0, %v5371_v26  ;;  %v5437_v15 = vsub.f32 1.0, %v5373_v19  ;;  %v6239_v16 = vmul.f32 %v6175_v17, %v5911_v12  ;;  %v5237_v60 = vmax.f32 %v5173_v0, 0.0  ;;  %v12019_v0 = vld [vmem:[#allocation31_spill] sm:$0xff] }
 0x5bb   : > { %v5782_v1 = vand.u32 2147483647, %v5718_v40  ;;  %v5980_v42 = vsub.f32 %v12006_v3, %v12016_v43  ;;  %v5844_v30 = vsub.f32 1.0, %v5780_v48  ;;  %v5982_v28 = vsub.f32 %v12006_v3, %v12017_v24  ;;  %v12020_v24 = vld [vmem:[#allocation14_spill] sm:$0xff] }
 0x5bc   : > { %v5499_v14 = vmax.f32 %v5435_v9, 0.0  ;;  %v5501_v41 = vmax.f32 %v5437_v15, 0.0  ;;  %v7740_v6 = vpack.c.bf16 %v6239_v16, %v6237_v5  ;;  %v5048_v61 = vsub.f32 %v11999_v56, %v12018_v20  ;;  %v12021_v16 = vld [vmem:[#allocation15_spill] sm:$0xff] }
 0x5bd   : > { %v5846_v25 = vsub.f32 1.0, %v5782_v1  ;;  %v6044_v45 = vand.u32 2147483647, %v5980_v42  ;;  %v5908_v12 = vmax.f32 %v5844_v30, 0.0  ;;  %v6046_v19 = vand.u32 2147483647, %v5982_v28 }
 0x5be   : > { %v5563_v2 = vmul.f32 %v5499_v14, %v5235_v22  ;;  %v5565_v26 = vmul.f32 %v5501_v41, %v5237_v60  ;;  %7741 = vmatprep.subr.bf16.mxu0 %v7740_v6  ;;  %v5050_v40 = vsub.f32 %v11999_v56, %v12019_v0  ;;  %v5112_v9 = vand.u32 2147483647, %v5048_v61 }
 0x5bf   : > { %v5910_v51 = vmax.f32 %v5846_v25, 0.0  ;;  %v6108_v17 = vsub.f32 1.0, %v6044_v45  ;;  %v6110_v48 = vsub.f32 1.0, %v6046_v19  ;;  %v5312_v5 = vsub.f32 %v12000_v32, %v12020_v24 }
 0x5c0   : > { %v7678_v15 = vpack.c.bf16 %v5565_v26, %v5563_v2  ;;  %v5314_v1 = vsub.f32 %v12000_v32, %v12021_v16  ;;  %v5114_v22 = vand.u32 2147483647, %v5050_v40  ;;  %v5176_v60 = vsub.f32 1.0, %v5112_v9 }
 0x5c1   : > { %v6172_v42 = vmax.f32 %v6108_v17, 0.0  ;;  %v5721_v14 = vsub.f32 %v12001_v53, %v12018_v20  ;;  %v6174_v41 = vmax.f32 %v6110_v48, 0.0  ;;  %v5376_v30 = vand.u32 2147483647, %v5312_v5 }
 0x5c2   : > { %7679 = vmatpush1.bf16.msra.mxu1 %v7678_v15  ;;  %v5378_v28 = vand.u32 2147483647, %v5314_v1  ;;  %v5723_v6 = vsub.f32 %v12001_v53, %v12019_v0  ;;  %v5178_v45 = vsub.f32 1.0, %v5114_v22  ;;  %v5240_v61 = vmax.f32 %v5176_v60, 0.0 }
 0x5c3   : > { %v6236_v25 = vmul.f32 %v6172_v42, %v5908_v12  ;;  %v5785_v2 = vand.u32 2147483647, %v5721_v14  ;;  %v6238_v26 = vmul.f32 %v6174_v41, %v5910_v51  ;;  %v5440_v19 = vsub.f32 1.0, %v5376_v30 }
 0x5c4   : > { %v5442_v43 = vsub.f32 1.0, %v5378_v28  ;;  %v5787_v17 = vand.u32 2147483647, %v5723_v6  ;;  %v5242_v40 = vmax.f32 %v5178_v45, 0.0  ;;  %v5985_v33 = vsub.f32 %v12002_v21, %v12020_v24 }
 0x5c5   : > { %v5849_v9 = vsub.f32 1.0, %v5785_v2  ;;  %v5987_v15 = vsub.f32 %v12002_v21, %v12021_v16  ;;  %v7742_v48 = vpack.c.bf16 %v6238_v26, %v6236_v25  ;;  %v5504_v5 = vmax.f32 %v5440_v19, 0.0 }
 0x5c6   : > { %v5506_v1 = vmax.f32 %v5442_v43, 0.0  ;;  %v5851_v39 = vsub.f32 1.0, %v5787_v17  ;;  %v6049_v42 = vand.u32 2147483647, %v5985_v33  ;;  %v5047_v51 = vsub.f32 %v12003_v62, %v12018_v20 }
 0x5c7   : > { %v5913_v12 = vmax.f32 %v5849_v9, 0.0  ;;  %v6051_v22 = vand.u32 2147483647, %v5987_v15  ;;  %7743 = vmatpush1.bf16.msra.mxu0 %v7742_v48  ;;  %v5568_v60 = vmul.f32 %v5504_v5, %v5240_v61  ;;  %v5049_v30 = vsub.f32 %v12003_v62, %v12019_v0 }
 0x5c8   : > { %v5570_v14 = vmul.f32 %v5506_v1, %v5242_v40  ;;  %v5915_v41 = vmax.f32 %v5851_v39, 0.0  ;;  %v6113_v28 = vsub.f32 1.0, %v6049_v42  ;;  %v5111_v45 = vand.u32 2147483647, %v5047_v51 }
 0x5c9   : > { %v6115_v6 = vsub.f32 1.0, %v6051_v22  ;;  %v5311_v43 = vsub.f32 %v12004_v35, %v12020_v24  ;;  %v5113_v2 = vand.u32 2147483647, %v5049_v30  ;;  %v5313_v33 = vsub.f32 %v12004_v35, %v12021_v16 }
 0x5ca   : > { %v7680_v25 = vpack.c.bf16 %v5570_v14, %v5568_v60  ;;  %v5720_v26 = vsub.f32 %v12005_v23, %v12018_v20  ;;  %v6177_v61 = vmax.f32 %v6113_v28, 0.0  ;;  %v5175_v39 = vsub.f32 1.0, %v5111_v45 }
 0x5cb   : > { %v6179_v19 = vmax.f32 %v6115_v6, 0.0  ;;  %v5375_v17 = vand.u32 2147483647, %v5311_v43  ;;  %v5177_v40 = vsub.f32 1.0, %v5113_v2  ;;  %v5377_v9 = vand.u32 2147483647, %v5313_v33 }
 0x5cc   : > { %7681 = vmatprep.subr.bf16.mxu1 %v7680_v25  ;;  %v5722_v15 = vsub.f32 %v12005_v23, %v12019_v0  ;;  %v5784_v48 = vand.u32 2147483647, %v5720_v26  ;;  %v6241_v5 = vmul.f32 %v6177_v61, %v5913_v12  ;;  %v5239_v42 = vmax.f32 %v5175_v39, 0.0  ;;  %v12022_v33 = vld [vmem:[#allocation11_spill] sm:$0xff] }
 0x5cd   : > { %v6243_v1 = vmul.f32 %v6179_v19, %v5915_v41  ;;  %v5439_v22 = vsub.f32 1.0, %v5375_v17  ;;  %v5241_v51 = vmax.f32 %v5177_v40, 0.0  ;;  %v5441_v60 = vsub.f32 1.0, %v5377_v9  ;;  %v12023_v19 = vld [vmem:[#allocation12_spill] sm:$0xff] }
 0x5ce   : > { %v5786_v14 = vand.u32 2147483647, %v5722_v15  ;;  %v5848_v30 = vsub.f32 1.0, %v5784_v48  ;;  %v5984_v6 = vsub.f32 %v12006_v3, %v12020_v24  ;;  %v5986_v45 = vsub.f32 %v12006_v3, %v12021_v16  ;;  %v12024_v15 = vld [vmem:[#allocation62_spill] sm:$0xff] }
 0x5cf   : > { %v7744_v20 = vpack.c.bf16 %v6243_v1, %v6241_v5  ;;  %v5503_v28 = vmax.f32 %v5439_v22, 0.0  ;;  %v5505_v43 = vmax.f32 %v5441_v60, 0.0  ;;  %v5052_v12 = vsub.f32 %v11999_v56, %v12022_v33  ;;  %v12025_v60 = vld [vmem:[#allocation63_spill] sm:$0xff] }
 0x5d0   : > { %v5850_v25 = vsub.f32 1.0, %v5786_v14  ;;  %v5912_v2 = vmax.f32 %v5848_v30, 0.0  ;;  %v6048_v26 = vand.u32 2147483647, %v5984_v6  ;;  %v6050_v61 = vand.u32 2147483647, %v5986_v45 }
 0x5d1   : > { %7745 = vmatprep.subr.bf16.mxu0 %v7744_v20  ;;  %v5567_v41 = vmul.f32 %v5503_v28, %v5239_v42  ;;  %v5054_v39 = vsub.f32 %v11999_v56, %v12023_v19  ;;  %v5569_v17 = vmul.f32 %v5505_v43, %v5241_v51  ;;  %v5116_v9 = vand.u32 2147483647, %v5052_v12 }
 0x5d2   : > { %v5914_v40 = vmax.f32 %v5850_v25, 0.0  ;;  %v5316_v48 = vsub.f32 %v12000_v32, %v12024_v15  ;;  %v6112_v5 = vsub.f32 1.0, %v6048_v26  ;;  %v6114_v1 = vsub.f32 1.0, %v6050_v61 }
 0x5d3   : > { %v5118_v22 = vand.u32 2147483647, %v5054_v39  ;;  %v5318_v14 = vsub.f32 %v12000_v32, %v12025_v60  ;;  %v7682_v30 = vpack.c.bf16 %v5569_v17, %v5567_v41  ;;  %v5180_v20 = vsub.f32 1.0, %v5116_v9 }
 0x5d4   : > { %v5380_v42 = vand.u32 2147483647, %v5316_v48  ;;  %v5725_v28 = vsub.f32 %v12001_v53, %v12022_v33  ;;  %v6176_v6 = vmax.f32 %v6112_v5, 0.0  ;;  %v6178_v45 = vmax.f32 %v6114_v1, 0.0 }
 0x5d5   : > { %v5182_v51 = vsub.f32 1.0, %v5118_v22  ;;  %v5382_v43 = vand.u32 2147483647, %v5318_v14  ;;  %7683 = vmatpush1.bf16.msra.mxu1 %v7682_v30  ;;  %v5244_v25 = vmax.f32 %v5180_v20, 0.0  ;;  %v5727_v26 = vsub.f32 %v12001_v53, %v12023_v19 }
 0x5d6   : > { %v5444_v12 = vsub.f32 1.0, %v5380_v42  ;;  %v5789_v61 = vand.u32 2147483647, %v5725_v28  ;;  %v6240_v39 = vmul.f32 %v6176_v6, %v5912_v2  ;;  %v6242_v16 = vmul.f32 %v6178_v45, %v5914_v40 }
 0x5d7   : > { %v5246_v24 = vmax.f32 %v5182_v51, 0.0  ;;  %v5446_v41 = vsub.f32 1.0, %v5382_v43  ;;  %v5791_v9 = vand.u32 2147483647, %v5727_v26  ;;  %v5989_v5 = vsub.f32 %v12002_v21, %v12024_v15 }
 0x5d8   : > { %v5508_v17 = vmax.f32 %v5444_v12, 0.0  ;;  %v5853_v48 = vsub.f32 1.0, %v5789_v61  ;;  %v7746_v1 = vpack.c.bf16 %v6242_v16, %v6240_v39  ;;  %v5991_v14 = vsub.f32 %v12002_v21, %v12025_v60 }
 0x5d9   : > { %v5510_v22 = vmax.f32 %v5446_v41, 0.0  ;;  %v5051_v30 = vsub.f32 %v12003_v62, %v12022_v33  ;;  %v5855_v42 = vsub.f32 1.0, %v5791_v9  ;;  %v6053_v40 = vand.u32 2147483647, %v5989_v5 }
 0x5da   : > { %v5572_v20 = vmul.f32 %v5508_v17, %v5244_v25  ;;  %v5917_v2 = vmax.f32 %v5853_v48, 0.0  ;;  %7747 = vmatpush1.bf16.msra.mxu0 %v7746_v1  ;;  %v6055_v6 = vand.u32 2147483647, %v5991_v14  ;;  %v5053_v45 = vsub.f32 %v12003_v62, %v12023_v19 }
 0x5db   : > { %v5574_v28 = vmul.f32 %v5510_v22, %v5246_v24  ;;  %v5115_v51 = vand.u32 2147483647, %v5051_v30  ;;  %v5919_v43 = vmax.f32 %v5855_v42, 0.0  ;;  %v6117_v16 = vsub.f32 1.0, %v6053_v40 }
 0x5dc   : > { %v5315_v12 = vsub.f32 %v12004_v35, %v12024_v15  ;;  %v5317_v26 = vsub.f32 %v12004_v35, %v12025_v60  ;;  %v6119_v25 = vsub.f32 1.0, %v6055_v6  ;;  %v5117_v39 = vand.u32 2147483647, %v5053_v45 }
 0x5dd   : > { %v7684_v61 = vpack.c.bf16 %v5574_v28, %v5572_v20  ;;  %v5179_v41 = vsub.f32 1.0, %v5115_v51  ;;  %v6181_v17 = vmax.f32 %v6117_v16, 0.0  ;;  %v5724_v48 = vsub.f32 %v12005_v23, %v12022_v33 }
 0x5de   : > { %v5379_v9 = vand.u32 2147483647, %v5315_v12  ;;  %v5381_v24 = vand.u32 2147483647, %v5317_v26  ;;  %v6183_v5 = vmax.f32 %v6119_v25, 0.0  ;;  %v5181_v1 = vsub.f32 1.0, %v5117_v39 }
 0x5df   : > { %7685 = vmatprep.subr.bf16.mxu1 %v7684_v61  ;;  %v5243_v22 = vmax.f32 %v5179_v41, 0.0  ;;  %v5726_v14 = vsub.f32 %v12005_v23, %v12023_v19  ;;  %v6245_v30 = vmul.f32 %v6181_v17, %v5917_v2  ;;  %v5788_v20 = vand.u32 2147483647, %v5724_v48  ;;  %v12026_v19 = vld [vmem:[#allocation2_spill] sm:$0xff] }
 0x5e0   : > { %v5443_v42 = vsub.f32 1.0, %v5379_v9  ;;  %v5445_v40 = vsub.f32 1.0, %v5381_v24  ;;  %v6247_v28 = vmul.f32 %v6183_v5, %v5919_v43  ;;  %v5245_v6 = vmax.f32 %v5181_v1, 0.0 }
 0x5e1   : > { %v5790_v45 = vand.u32 2147483647, %v5726_v14  ;;  %v5988_v51 = vsub.f32 %v12006_v3, %v12024_v15  ;;  %v5852_v26 = vsub.f32 1.0, %v5788_v20  ;;  %v5990_v61 = vsub.f32 %v12006_v3, %v12025_v60  ;;  %v12027_v20 = vld [vmem:[#allocation64_spill] sm:$0xff] }
 0x5e2   : > { %v5507_v16 = vmax.f32 %v5443_v42, 0.0  ;;  %v5509_v12 = vmax.f32 %v5445_v40, 0.0  ;;  %v7748_v25 = vpack.c.bf16 %v6247_v28, %v6245_v30  ;;  %v5056_v2 = vsub.f32 %v11999_v56, %v12026_v19  ;;  %v12028_v28 = vld [vmem:[#allocation65_spill] sm:$0xff] }
 0x5e3   : > { %v5854_v39 = vsub.f32 1.0, %v5790_v45  ;;  %v6052_v41 = vand.u32 2147483647, %v5988_v51  ;;  %v5916_v43 = vmax.f32 %v5852_v26, 0.0  ;;  %v6054_v24 = vand.u32 2147483647, %v5990_v61 }
 0x5e4   : > { %v5571_v17 = vmul.f32 %v5507_v16, %v5243_v22  ;;  %v5573_v9 = vmul.f32 %v5509_v12, %v5245_v6  ;;  %7749 = vmatprep.subr.bf16.mxu0 %v7748_v25  ;;  %v5058_v1 = vsub.f32 %v11999_v56, %v11981_v34  ;;  %v5120_v14 = vand.u32 2147483647, %v5056_v2 }
 0x5e5   : > { %v5918_v48 = vmax.f32 %v5854_v39, 0.0  ;;  %v6116_v5 = vsub.f32 1.0, %v6052_v41  ;;  %v6118_v40 = vsub.f32 1.0, %v6054_v24  ;;  %v5320_v30 = vsub.f32 %v12000_v32, %v12027_v20 }
 0x5e6   : > { %v7686_v42 = vpack.c.bf16 %v5573_v9, %v5571_v17  ;;  %v5322_v45 = vsub.f32 %v12000_v32, %v12028_v28  ;;  %v5122_v22 = vand.u32 2147483647, %v5058_v1  ;;  %v5184_v6 = vsub.f32 1.0, %v5120_v14 }
 0x5e7   : > { %v6180_v51 = vmax.f32 %v6116_v5, 0.0  ;;  %v5729_v16 = vsub.f32 %v12001_v53, %v12026_v19  ;;  %v6182_v12 = vmax.f32 %v6118_v40, 0.0  ;;  %v5384_v26 = vand.u32 2147483647, %v5320_v30 }
 0x5e8   : > { %7687 = vmatpush1.bf16.msra.mxu1 %v7686_v42  ;;  %v5386_v61 = vand.u32 2147483647, %v5322_v45  ;;  %v5731_v25 = vsub.f32 %v12001_v53, %v11981_v34  ;;  %v5186_v41 = vsub.f32 1.0, %v5122_v22  ;;  %v5248_v2 = vmax.f32 %v5184_v6, 0.0 }
 0x5e9   : > { %v6244_v39 = vmul.f32 %v6180_v51, %v5916_v43  ;;  %v5793_v17 = vand.u32 2147483647, %v5729_v16  ;;  %v6246_v9 = vmul.f32 %v6182_v12, %v5918_v48  ;;  %v5448_v24 = vsub.f32 1.0, %v5384_v26 }
 0x5ea   : > { %v5450_v60 = vsub.f32 1.0, %v5386_v61  ;;  %v5795_v5 = vand.u32 2147483647, %v5731_v25  ;;  %v5250_v1 = vmax.f32 %v5186_v41, 0.0  ;;  %v5993_v15 = vsub.f32 %v12002_v21, %v12027_v20 }
 0x5eb   : > { %v5857_v14 = vsub.f32 1.0, %v5793_v17  ;;  %v5995_v42 = vsub.f32 %v12002_v21, %v12028_v28  ;;  %v7750_v40 = vpack.c.bf16 %v6246_v9, %v6244_v39  ;;  %v5512_v30 = vmax.f32 %v5448_v24, 0.0 }
 0x5ec   : > { %v5514_v45 = vmax.f32 %v5450_v60, 0.0  ;;  %v5859_v33 = vsub.f32 1.0, %v5795_v5  ;;  %v6057_v51 = vand.u32 2147483647, %v5993_v15  ;;  %v5055_v48 = vsub.f32 %v12003_v62, %v12026_v19 }
 0x5ed   : > { %v5921_v43 = vmax.f32 %v5857_v14, 0.0  ;;  %v6059_v22 = vand.u32 2147483647, %v5995_v42  ;;  %7751 = vmatpush1.bf16.msra.mxu0 %v7750_v40  ;;  %v5576_v6 = vmul.f32 %v5512_v30, %v5248_v2  ;;  %v5057_v26 = vsub.f32 %v12003_v62, %v11981_v34 }
 0x5ee   : > { %v5578_v16 = vmul.f32 %v5514_v45, %v5250_v1  ;;  %v5923_v12 = vmax.f32 %v5859_v33, 0.0  ;;  %v6121_v61 = vsub.f32 1.0, %v6057_v51  ;;  %v5119_v41 = vand.u32 2147483647, %v5055_v48 }
 0x5ef   : > { %v6123_v25 = vsub.f32 1.0, %v6059_v22  ;;  %v5319_v60 = vsub.f32 %v12004_v35, %v12027_v20  ;;  %v5121_v17 = vand.u32 2147483647, %v5057_v26  ;;  %v5321_v15 = vsub.f32 %v12004_v35, %v12028_v28 }
 0x5f0   : > { %v7688_v39 = vpack.c.bf16 %v5578_v16, %v5576_v6  ;;  %v5728_v9 = vsub.f32 %v12005_v23, %v12026_v19  ;;  %v6185_v2 = vmax.f32 %v6121_v61, 0.0  ;;  %v5183_v33 = vsub.f32 1.0, %v5119_v41 }
 0x5f1   : > { %v6187_v24 = vmax.f32 %v6123_v25, 0.0  ;;  %v5383_v5 = vand.u32 2147483647, %v5319_v60  ;;  %v5185_v1 = vsub.f32 1.0, %v5121_v17  ;;  %v5385_v14 = vand.u32 2147483647, %v5321_v15 }
 0x5f2   : > { %7689 = vmatprep.subr.bf16.mxu1 %v7688_v39  ;;  %v5730_v42 = vsub.f32 %v12005_v23, %v11981_v34  ;;  %v5792_v40 = vand.u32 2147483647, %v5728_v9  ;;  %v6249_v30 = vmul.f32 %v6185_v2, %v5921_v43  ;;  %v5247_v51 = vmax.f32 %v5183_v33, 0.0  ;;  %v12029_v15 = vld [vmem:[#allocation66_spill] sm:$0xff] }
 0x5f3   : > { %v6251_v45 = vmul.f32 %v6187_v24, %v5923_v12  ;;  %v5447_v22 = vsub.f32 1.0, %v5383_v5  ;;  %v5249_v48 = vmax.f32 %v5185_v1, 0.0  ;;  %v5449_v6 = vsub.f32 1.0, %v5385_v14  ;;  %v12030_v24 = vld [vmem:[#allocation67_spill] sm:$0xff] }
 0x5f4   : > { %v5794_v16 = vand.u32 2147483647, %v5730_v42  ;;  %v5856_v26 = vsub.f32 1.0, %v5792_v40  ;;  %v5992_v25 = vsub.f32 %v12006_v3, %v12027_v20  ;;  %v5994_v41 = vsub.f32 %v12006_v3, %v12028_v28  ;;  %v12031_v42 = vld [vmem:[#allocation68_spill] sm:$0xff] }
 0x5f5   : > { %v7752_v19 = vpack.c.bf16 %v6251_v45, %v6249_v30  ;;  %v5511_v61 = vmax.f32 %v5447_v22, 0.0  ;;  %v5513_v60 = vmax.f32 %v5449_v6, 0.0  ;;  %v5060_v43 = vsub.f32 %v11999_v56, %v12029_v15  ;;  %v12032_v6 = vld [vmem:[#allocation69_spill] sm:$0xff] }
 0x5f6   : > { %v5858_v39 = vsub.f32 1.0, %v5794_v16  ;;  %v5920_v17 = vmax.f32 %v5856_v26, 0.0  ;;  %v6056_v9 = vand.u32 2147483647, %v5992_v25  ;;  %v6058_v2 = vand.u32 2147483647, %v5994_v41 }
 0x5f7   : > { %7753 = vmatprep.subr.bf16.mxu0 %v7752_v19  ;;  %v5575_v12 = vmul.f32 %v5511_v61, %v5247_v51  ;;  %v5062_v33 = vsub.f32 %v11999_v56, %v12030_v24  ;;  %v5577_v5 = vmul.f32 %v5513_v60, %v5249_v48  ;;  %v5124_v14 = vand.u32 2147483647, %v5060_v43 }
 0x5f8   : > { %v5922_v1 = vmax.f32 %v5858_v39, 0.0  ;;  %v5324_v40 = vsub.f32 %v12000_v32, %v12031_v42  ;;  %v6120_v30 = vsub.f32 1.0, %v6056_v9  ;;  %v6122_v45 = vsub.f32 1.0, %v6058_v2 }
 0x5f9   : > { %v5126_v22 = vand.u32 2147483647, %v5062_v33  ;;  %v5326_v16 = vsub.f32 %v12000_v32, %v12032_v6  ;;  %v7690_v26 = vpack.c.bf16 %v5577_v5, %v5575_v12  ;;  %v5188_v19 = vsub.f32 1.0, %v5124_v14 }
 0x5fa   : > { %v5388_v51 = vand.u32 2147483647, %v5324_v40  ;;  %v5733_v61 = vsub.f32 %v12001_v53, %v12029_v15  ;;  %v6184_v25 = vmax.f32 %v6120_v30, 0.0  ;;  %v6186_v41 = vmax.f32 %v6122_v45, 0.0 }
 0x5fb   : > { %v5190_v48 = vsub.f32 1.0, %v5126_v22  ;;  %v5390_v60 = vand.u32 2147483647, %v5326_v16  ;;  %7691 = vmatpush1.bf16.msra.mxu1 %v7690_v26  ;;  %v5252_v39 = vmax.f32 %v5188_v19, 0.0  ;;  %v5735_v9 = vsub.f32 %v12001_v53, %v12030_v24 }
 0x5fc   : > { %v5452_v43 = vsub.f32 1.0, %v5388_v51  ;;  %v5797_v2 = vand.u32 2147483647, %v5733_v61  ;;  %v6248_v33 = vmul.f32 %v6184_v25, %v5920_v17  ;;  %v6250_v28 = vmul.f32 %v6186_v41, %v5922_v1 }
 0x5fd   : > { %v5254_v20 = vmax.f32 %v5190_v48, 0.0  ;;  %v5454_v12 = vsub.f32 1.0, %v5390_v60  ;;  %v5799_v14 = vand.u32 2147483647, %v5735_v9  ;;  %v5997_v30 = vsub.f32 %v12002_v21, %v12031_v42 }
 0x5fe   : > { %v5516_v5 = vmax.f32 %v5452_v43, 0.0  ;;  %v5861_v40 = vsub.f32 1.0, %v5797_v2  ;;  %v7754_v45 = vpack.c.bf16 %v6250_v28, %v6248_v33  ;;  %v5999_v16 = vsub.f32 %v12002_v21, %v12032_v6 }
 0x5ff   : > { %v5518_v22 = vmax.f32 %v5454_v12, 0.0  ;;  %v5059_v26 = vsub.f32 %v12003_v62, %v12029_v15  ;;  %v5863_v51 = vsub.f32 1.0, %v5799_v14  ;;  %v6061_v1 = vand.u32 2147483647, %v5997_v30 }
 0x600   : > { %v5580_v19 = vmul.f32 %v5516_v5, %v5252_v39  ;;  %v5925_v17 = vmax.f32 %v5861_v40, 0.0  ;;  %7755 = vmatpush1.bf16.msra.mxu0 %v7754_v45  ;;  %v6063_v25 = vand.u32 2147483647, %v5999_v16  ;;  %v5061_v41 = vsub.f32 %v12003_v62, %v12030_v24 }
 0x601   : > { %v5582_v61 = vmul.f32 %v5518_v22, %v5254_v20  ;;  %v5123_v48 = vand.u32 2147483647, %v5059_v26  ;;  %v5927_v60 = vmax.f32 %v5863_v51, 0.0  ;;  %v6125_v28 = vsub.f32 1.0, %v6061_v1 }
 0x602   : > { %v5323_v43 = vsub.f32 %v12004_v35, %v12031_v42  ;;  %v5325_v9 = vsub.f32 %v12004_v35, %v12032_v6  ;;  %v6127_v39 = vsub.f32 1.0, %v6063_v25  ;;  %v5125_v33 = vand.u32 2147483647, %v5061_v41 }
 0x603   : > { %v7692_v2 = vpack.c.bf16 %v5582_v61, %v5580_v19  ;;  %v5187_v12 = vsub.f32 1.0, %v5123_v48  ;;  %v6189_v5 = vmax.f32 %v6125_v28, 0.0  ;;  %v5732_v40 = vsub.f32 %v12005_v23, %v12029_v15 }
 0x604   : > { %v5387_v14 = vand.u32 2147483647, %v5323_v43  ;;  %v5389_v20 = vand.u32 2147483647, %v5325_v9  ;;  %v6191_v30 = vmax.f32 %v6127_v39, 0.0  ;;  %v5189_v45 = vsub.f32 1.0, %v5125_v33 }
 0x605   : > { %7693 = vmatprep.subr.bf16.mxu1 %v7692_v2  ;;  %v5251_v22 = vmax.f32 %v5187_v12, 0.0  ;;  %v5734_v16 = vsub.f32 %v12005_v23, %v12030_v24  ;;  %v6253_v26 = vmul.f32 %v6189_v5, %v5925_v17  ;;  %v5796_v19 = vand.u32 2147483647, %v5732_v40  ;;  %v12033_v24 = vld [vmem:[#allocation70_spill] sm:$0xff] }
 0x606   : > { %v5451_v51 = vsub.f32 1.0, %v5387_v14  ;;  %v5453_v1 = vsub.f32 1.0, %v5389_v20  ;;  %v6255_v61 = vmul.f32 %v6191_v30, %v5927_v60  ;;  %v5253_v25 = vmax.f32 %v5189_v45, 0.0 }
 0x607   : > { %v5798_v41 = vand.u32 2147483647, %v5734_v16  ;;  %v5996_v48 = vsub.f32 %v12006_v3, %v12031_v42  ;;  %v5860_v9 = vsub.f32 1.0, %v5796_v19  ;;  %v5998_v2 = vsub.f32 %v12006_v3, %v12032_v6  ;;  %v12034_v19 = vld [vmem:[#allocation72_spill] sm:$0xff] }
 0x608   : > { %v5515_v28 = vmax.f32 %v5451_v51, 0.0  ;;  %v5517_v43 = vmax.f32 %v5453_v1, 0.0  ;;  %v7756_v39 = vpack.c.bf16 %v6255_v61, %v6253_v26  ;;  %v5064_v17 = vsub.f32 %v11999_v56, %v12033_v24  ;;  %v12035_v61 = vld [vmem:[#allocation73_spill] sm:$0xff] }
 0x609   : > { %v5862_v33 = vsub.f32 1.0, %v5798_v41  ;;  %v6060_v12 = vand.u32 2147483647, %v5996_v48  ;;  %v5924_v60 = vmax.f32 %v5860_v9, 0.0  ;;  %v6062_v20 = vand.u32 2147483647, %v5998_v2 }
 0x60a   : > { %v5579_v5 = vmul.f32 %v5515_v28, %v5251_v22  ;;  %v5581_v14 = vmul.f32 %v5517_v43, %v5253_v25  ;;  %7757 = vmatprep.subr.bf16.mxu0 %v7756_v39  ;;  %v5066_v45 = vsub.f32 %v11999_v56, %v11988_v55  ;;  %v5128_v16 = vand.u32 2147483647, %v5064_v17 }
 0x60b   : > { %v5926_v40 = vmax.f32 %v5862_v33, 0.0  ;;  %v6124_v30 = vsub.f32 1.0, %v6060_v12  ;;  %v6126_v1 = vsub.f32 1.0, %v6062_v20  ;;  %v5328_v26 = vsub.f32 %v12000_v32, %v12034_v19 }
 0x60c   : > { %v7694_v51 = vpack.c.bf16 %v5581_v14, %v5579_v5  ;;  %v5330_v41 = vsub.f32 %v12000_v32, %v12035_v61  ;;  %v5130_v22 = vand.u32 2147483647, %v5066_v45  ;;  %v5192_v25 = vsub.f32 1.0, %v5128_v16 }
 0x60d   : > { %v6188_v48 = vmax.f32 %v6124_v30, 0.0  ;;  %v5737_v28 = vsub.f32 %v12001_v53, %v12033_v24  ;;  %v6190_v43 = vmax.f32 %v6126_v1, 0.0  ;;  %v5392_v9 = vand.u32 2147483647, %v5328_v26 }
 0x60e   : > { %7695 = vmatpush1.bf16.msra.mxu1 %v7694_v51  ;;  %v5394_v2 = vand.u32 2147483647, %v5330_v41  ;;  %v5739_v39 = vsub.f32 %v12001_v53, %v11988_v55  ;;  %v5194_v12 = vsub.f32 1.0, %v5130_v22  ;;  %v5256_v17 = vmax.f32 %v5192_v25, 0.0 }
 0x60f   : > { %v6252_v33 = vmul.f32 %v6188_v48, %v5924_v60  ;;  %v5801_v5 = vand.u32 2147483647, %v5737_v28  ;;  %v6254_v14 = vmul.f32 %v6190_v43, %v5926_v40  ;;  %v5456_v20 = vsub.f32 1.0, %v5392_v9 }
 0x610   : > { %v5458_v6 = vsub.f32 1.0, %v5394_v2  ;;  %v5803_v30 = vand.u32 2147483647, %v5739_v39  ;;  %v5258_v45 = vmax.f32 %v5194_v12, 0.0  ;;  %v6001_v42 = vsub.f32 %v12002_v21, %v12034_v19 }
 0x611   : > { %v5865_v16 = vsub.f32 1.0, %v5801_v5  ;;  %v6003_v51 = vsub.f32 %v12002_v21, %v12035_v61  ;;  %v7758_v1 = vpack.c.bf16 %v6254_v14, %v6252_v33  ;;  %v5520_v26 = vmax.f32 %v5456_v20, 0.0 }
 0x612   : > { %v5522_v41 = vmax.f32 %v5458_v6, 0.0  ;;  %v5867_v15 = vsub.f32 1.0, %v5803_v30  ;;  %v6065_v48 = vand.u32 2147483647, %v6001_v42  ;;  %v5063_v40 = vsub.f32 %v12003_v62, %v12033_v24 }
 0x613   : > { %v5929_v60 = vmax.f32 %v5865_v16, 0.0  ;;  %v6067_v22 = vand.u32 2147483647, %v6003_v51  ;;  %7759 = vmatpush1.bf16.msra.mxu0 %v7758_v1  ;;  %v5584_v25 = vmul.f32 %v5520_v26, %v5256_v17  ;;  %v5065_v9 = vsub.f32 %v12003_v62, %v11988_v55 }
 0x614   : > { %v5586_v28 = vmul.f32 %v5522_v41, %v5258_v45  ;;  %v5931_v43 = vmax.f32 %v5867_v15, 0.0  ;;  %v6129_v2 = vsub.f32 1.0, %v6065_v48  ;;  %v5127_v12 = vand.u32 2147483647, %v5063_v40 }
 0x615   : > { %v6131_v39 = vsub.f32 1.0, %v6067_v22  ;;  %v5327_v6 = vsub.f32 %v12004_v35, %v12034_v19  ;;  %v5129_v5 = vand.u32 2147483647, %v5065_v9  ;;  %v5329_v42 = vsub.f32 %v12004_v35, %v12035_v61 }
 0x616   : > { %v7696_v33 = vpack.c.bf16 %v5586_v28, %v5584_v25  ;;  %v5736_v14 = vsub.f32 %v12005_v23, %v12033_v24  ;;  %v6193_v17 = vmax.f32 %v6129_v2, 0.0  ;;  %v5191_v15 = vsub.f32 1.0, %v5127_v12 }
 0x617   : > { %v6195_v20 = vmax.f32 %v6131_v39, 0.0  ;;  %v5391_v30 = vand.u32 2147483647, %v5327_v6  ;;  %v5193_v45 = vsub.f32 1.0, %v5129_v5  ;;  %v5393_v16 = vand.u32 2147483647, %v5329_v42 }
 0x618   : > { %7697 = vmatprep.subr.bf16.mxu1 %v7696_v33  ;;  %v5738_v51 = vsub.f32 %v12005_v23, %v11988_v55  ;;  %v5800_v1 = vand.u32 2147483647, %v5736_v14  ;;  %v6257_v26 = vmul.f32 %v6193_v17, %v5929_v60  ;;  %v5255_v48 = vmax.f32 %v5191_v15, 0.0  ;;  %v12036_v17 = vld [vmem:[#allocation75_spill] sm:$0xff] }
 0x619   : > { %v6259_v41 = vmul.f32 %v6195_v20, %v5931_v43  ;;  %v5455_v22 = vsub.f32 1.0, %v5391_v30  ;;  %v5257_v40 = vmax.f32 %v5193_v45, 0.0  ;;  %v5457_v25 = vsub.f32 1.0, %v5393_v16  ;;  %v12037_v16 = vld [vmem:[#allocation76_spill] sm:$0xff] }
 0x61a   : > { %v5802_v28 = vand.u32 2147483647, %v5738_v51  ;;  %v5864_v9 = vsub.f32 1.0, %v5800_v1  ;;  %v6000_v39 = vsub.f32 %v12006_v3, %v12034_v19  ;;  %v6002_v12 = vsub.f32 %v12006_v3, %v12035_v61 }
 0x61b   : > { %v7760_v24 = vpack.c.bf16 %v6259_v41, %v6257_v26  ;;  %v5519_v2 = vmax.f32 %v5455_v22, 0.0  ;;  %v5521_v6 = vmax.f32 %v5457_v25, 0.0  ;;  %v5068_v60 = vsub.f32 %v11999_v56, %v11991_v18  ;;  %v12038_v22 = vld [vmem:[#allocation77_spill] sm:$0xff] }
 0x61c   : > { %v5866_v33 = vsub.f32 1.0, %v5802_v28  ;;  %v5928_v5 = vmax.f32 %v5864_v9, 0.0  ;;  %v6064_v42 = vand.u32 2147483647, %v6000_v39  ;;  %v6066_v14 = vand.u32 2147483647, %v6002_v12 }
 0x61d   : > { %7761 = vmatprep.subr.bf16.mxu0 %v7760_v24  ;;  %v5583_v43 = vmul.f32 %v5519_v2, %v5255_v48  ;;  %v5070_v20 = vsub.f32 %v11999_v56, %v12036_v17  ;;  %v5585_v15 = vmul.f32 %v5521_v6, %v5257_v40  ;;  %v5132_v45 = vand.u32 2147483647, %v5068_v60 }
 0x61e   : > { %v5930_v30 = vmax.f32 %v5866_v33, 0.0  ;;  %v5332_v51 = vsub.f32 %v12000_v32, %v12037_v16  ;;  %v6128_v1 = vsub.f32 1.0, %v6064_v42  ;;  %v6130_v26 = vsub.f32 1.0, %v6066_v14 }
 0x61f   : > { %v5134_v41 = vand.u32 2147483647, %v5070_v20  ;;  %v5334_v25 = vsub.f32 %v12000_v32, %v12038_v22  ;;  %v7698_v28 = vpack.c.bf16 %v5585_v15, %v5583_v43  ;;  %v5196_v24 = vsub.f32 1.0, %v5132_v45 }
 0x620   : > { %v5396_v48 = vand.u32 2147483647, %v5332_v51  ;;  %v5741_v9 = vsub.f32 %v12001_v53, %v11991_v18  ;;  %v6192_v2 = vmax.f32 %v6128_v1, 0.0  ;;  %v6194_v39 = vmax.f32 %v6130_v26, 0.0 }
 0x621   : > { %v5198_v40 = vsub.f32 1.0, %v5134_v41  ;;  %v5398_v12 = vand.u32 2147483647, %v5334_v25  ;;  %7699 = vmatpush1.bf16.msra.mxu1 %v7698_v28  ;;  %v5260_v6 = vmax.f32 %v5196_v24, 0.0  ;;  %v5743_v60 = vsub.f32 %v12001_v53, %v12036_v17 }
 0x622   : > { %v5460_v33 = vsub.f32 1.0, %v5396_v48  ;;  %v5805_v42 = vand.u32 2147483647, %v5741_v9  ;;  %v6256_v14 = vmul.f32 %v6192_v2, %v5928_v5  ;;  %v6258_v20 = vmul.f32 %v6194_v39, %v5930_v30 }
 0x623   : > { %v5262_v61 = vmax.f32 %v5198_v40, 0.0  ;;  %v5462_v43 = vsub.f32 1.0, %v5398_v12  ;;  %v5807_v45 = vand.u32 2147483647, %v5743_v60  ;;  %v6005_v1 = vsub.f32 %v12002_v21, %v12037_v16 }
 0x624   : > { %v5524_v15 = vmax.f32 %v5460_v33, 0.0  ;;  %v5869_v51 = vsub.f32 1.0, %v5805_v42  ;;  %v7762_v26 = vpack.c.bf16 %v6258_v20, %v6256_v14  ;;  %v6007_v25 = vsub.f32 %v12002_v21, %v12038_v22 }
 0x625   : > { %v5526_v41 = vmax.f32 %v5462_v43, 0.0  ;;  %v5067_v28 = vsub.f32 %v12003_v62, %v11991_v18  ;;  %v5871_v48 = vsub.f32 1.0, %v5807_v45  ;;  %v6069_v30 = vand.u32 2147483647, %v6005_v1 }
 0x626   : > { %v5588_v24 = vmul.f32 %v5524_v15, %v5260_v6  ;;  %v5933_v5 = vmax.f32 %v5869_v51, 0.0  ;;  %7763 = vmatpush1.bf16.msra.mxu0 %v7762_v26  ;;  %v6071_v2 = vand.u32 2147483647, %v6007_v25  ;;  %v5069_v39 = vsub.f32 %v12003_v62, %v12036_v17 }
 0x627   : > { %v5590_v9 = vmul.f32 %v5526_v41, %v5262_v61  ;;  %v5131_v40 = vand.u32 2147483647, %v5067_v28  ;;  %v5935_v12 = vmax.f32 %v5871_v48, 0.0  ;;  %v6133_v33 = vsub.f32 1.0, %v6069_v30 }
 0x628   : > { %v5331_v60 = vsub.f32 %v12004_v35, %v12037_v16  ;;  %v5333_v42 = vsub.f32 %v12004_v35, %v12038_v22  ;;  %v6135_v6 = vsub.f32 1.0, %v6071_v2  ;;  %v5133_v20 = vand.u32 2147483647, %v5069_v39 }
 0x629   : > { %v7700_v14 = vpack.c.bf16 %v5590_v9, %v5588_v24  ;;  %v5195_v43 = vsub.f32 1.0, %v5131_v40  ;;  %v6197_v15 = vmax.f32 %v6133_v33, 0.0  ;;  %v5740_v51 = vsub.f32 %v12005_v23, %v11991_v18 }
 0x62a   : > { %v5395_v45 = vand.u32 2147483647, %v5331_v60  ;;  %v5397_v61 = vand.u32 2147483647, %v5333_v42  ;;  %v6199_v1 = vmax.f32 %v6135_v6, 0.0  ;;  %v5197_v26 = vsub.f32 1.0, %v5133_v20 }
 0x62b   : > { %7701 = vmatprep.subr.bf16.mxu1 %v7700_v14  ;;  %v5259_v41 = vmax.f32 %v5195_v43, 0.0  ;;  %v5742_v25 = vsub.f32 %v12005_v23, %v12036_v17  ;;  %v6261_v28 = vmul.f32 %v6197_v15, %v5933_v5  ;;  %v5804_v24 = vand.u32 2147483647, %v5740_v51  ;;  %v12039_v17 = vld [vmem:[#allocation78_spill] sm:$0xff] }
 0x62c   : > { %v5459_v48 = vsub.f32 1.0, %v5395_v45  ;;  %v5461_v30 = vsub.f32 1.0, %v5397_v61  ;;  %v6263_v9 = vmul.f32 %v6199_v1, %v5935_v12  ;;  %v5261_v2 = vmax.f32 %v5197_v26, 0.0 }
 0x62d   : > { %v5806_v39 = vand.u32 2147483647, %v5742_v25  ;;  %v6004_v40 = vsub.f32 %v12006_v3, %v12037_v16  ;;  %v5868_v42 = vsub.f32 1.0, %v5804_v24  ;;  %v6006_v14 = vsub.f32 %v12006_v3, %v12038_v22 }
 0x62e   : > { %v5523_v33 = vmax.f32 %v5459_v48, 0.0  ;;  %v5525_v60 = vmax.f32 %v5461_v30, 0.0  ;;  %v7764_v6 = vpack.c.bf16 %v6263_v9, %v6261_v28  ;;  %v5072_v5 = vsub.f32 %v11999_v56, %v12039_v17 }
 0x62f   : > { %v5870_v20 = vsub.f32 1.0, %v5806_v39  ;;  %v6068_v43 = vand.u32 2147483647, %v6004_v40  ;;  %v5932_v12 = vmax.f32 %v5868_v42, 0.0  ;;  %v6070_v61 = vand.u32 2147483647, %v6006_v14 }
 0x630   : > { %v5587_v15 = vmul.f32 %v5523_v33, %v5259_v41  ;;  %v5589_v45 = vmul.f32 %v5525_v60, %v5261_v2  ;;  %7765 = vmatprep.subr.bf16.mxu0 %v7764_v6  ;;  %v5074_v26 = vsub.f32 %v11999_v56, %v11948_v63  ;;  %v5136_v25 = vand.u32 2147483647, %v5072_v5 }
 0x631   : > { %v5934_v51 = vmax.f32 %v5870_v20, 0.0  ;;  %v6132_v1 = vsub.f32 1.0, %v6068_v43  ;;  %v6134_v30 = vsub.f32 1.0, %v6070_v61  ;;  %v5336_v28 = vsub.f32 %v12000_v32, %v11995_v11 }
 0x632   : > { %v7702_v48 = vpack.c.bf16 %v5589_v45, %v5587_v15  ;;  %v5338_v24 = vsub.f32 %v12000_v32, %v11996_v54  ;;  %v5138_v41 = vand.u32 2147483647, %v5074_v26  ;;  %v5200_v2 = vsub.f32 1.0, %v5136_v25 }
 0x633   : > { %v6196_v9 = vmax.f32 %v6132_v1, 0.0  ;;  %v5745_v39 = vsub.f32 %v12001_v53, %v12039_v17  ;;  %v6198_v40 = vmax.f32 %v6134_v30, 0.0  ;;  %v5400_v33 = vand.u32 2147483647, %v5336_v28 }
 0x634   : > { %7703 = vmatpush1.bf16.msra.mxu1 %v7702_v48  ;;  %v5402_v60 = vand.u32 2147483647, %v5338_v24  ;;  %v5747_v42 = vsub.f32 %v12001_v53, %v11948_v63  ;;  %v5202_v6 = vsub.f32 1.0, %v5138_v41  ;;  %v5264_v20 = vmax.f32 %v5200_v2, 0.0 }
 0x635   : > { %v6260_v14 = vmul.f32 %v6196_v9, %v5932_v12  ;;  %v5809_v43 = vand.u32 2147483647, %v5745_v39  ;;  %v6262_v5 = vmul.f32 %v6198_v40, %v5934_v51  ;;  %v5464_v15 = vsub.f32 1.0, %v5400_v33 }
 0x636   : > { %v5466_v45 = vsub.f32 1.0, %v5402_v60  ;;  %v5811_v61 = vand.u32 2147483647, %v5747_v42  ;;  %v5266_v1 = vmax.f32 %v5202_v6, 0.0  ;;  %v6009_v25 = vsub.f32 %v12002_v21, %v11995_v11  ;;  %v10955_v60 = vpop.f32.mrb[0].mxu1  ;;  %v10957_v42 = vpop.f32.mrb[8].mxu0 }
 0x637   : > { %v5873_v26 = vsub.f32 1.0, %v5809_v43  ;;  %v6011_v48 = vsub.f32 %v12002_v21, %v11996_v54  ;;  %v7766_v30 = vpack.c.bf16 %v6262_v5, %v6260_v14  ;;  %v5528_v28 = vmax.f32 %v5464_v15, 0.0  ;;  %v10961_v15 = vpop.f32.mrb[1].mxu1 }
 0x638   : > { %v5530_v24 = vmax.f32 %v5466_v45, 0.0  ;;  %v5875_v22 = vsub.f32 1.0, %v5811_v61  ;;  %v6073_v9 = vand.u32 2147483647, %v6009_v25  ;;  %v5071_v51 = vsub.f32 %v12003_v62, %v12039_v17  ;;  %v10963_v45 = vpop.f32.mrb[9].mxu0 }
 0x639   : > { %v5937_v12 = vmax.f32 %v5873_v26, 0.0  ;;  %v6075_v41 = vand.u32 2147483647, %v6011_v48  ;;  %7767 = vmatpush1.bf16.msra.mxu0 %v7766_v30  ;;  %v5592_v2 = vmul.f32 %v5528_v28, %v5264_v20  ;;  %v5073_v33 = vsub.f32 %v12003_v62, %v11948_v63 }
 0x63a   : > { %v5594_v39 = vmul.f32 %v5530_v24, %v5266_v1  ;;  %v5939_v40 = vmax.f32 %v5875_v22, 0.0  ;;  %v6137_v14 = vsub.f32 1.0, %v6073_v9  ;;  %v5135_v43 = vand.u32 2147483647, %v5071_v51 }
 0x63b   : > { %v6139_v6 = vsub.f32 1.0, %v6075_v41  ;;  %v5335_v5 = vsub.f32 %v12004_v35, %v11995_v11  ;;  %v5137_v61 = vand.u32 2147483647, %v5073_v33  ;;  %v5337_v22 = vsub.f32 %v12004_v35, %v11996_v54 }
 0x63c   : > { %v7704_v20 = vpack.c.bf16 %v5594_v39, %v5592_v2  ;;  %v5744_v1 = vsub.f32 %v12005_v23, %v12039_v17  ;;  %v6201_v26 = vmax.f32 %v6137_v14, 0.0  ;;  %v5199_v48 = vsub.f32 1.0, %v5135_v43 }
 0x63d   : > { %v6203_v25 = vmax.f32 %v6139_v6, 0.0  ;;  %v5399_v30 = vand.u32 2147483647, %v5335_v5  ;;  %v5201_v28 = vsub.f32 1.0, %v5137_v61  ;;  %v5401_v24 = vand.u32 2147483647, %v5337_v22 }
 0x63e   : > { %7705 = vmatprep.subr.bf16.mxu1 %v7704_v20  ;;  %v5746_v9 = vsub.f32 %v12005_v23, %v11948_v63  ;;  %v5808_v41 = vand.u32 2147483647, %v5744_v1  ;;  %v6265_v51 = vmul.f32 %v6201_v26, %v5937_v12  ;;  %v5263_v39 = vmax.f32 %v5199_v48, 0.0 }
 0x63f   : > { %v6267_v2 = vmul.f32 %v6203_v25, %v5939_v40  ;;  %v5463_v33 = vsub.f32 1.0, %v5399_v30  ;;  %v5265_v16 = vmax.f32 %v5201_v28, 0.0  ;;  %v5465_v18 = vsub.f32 1.0, %v5401_v24 }
 0x640   : > { %v5810_v19 = vand.u32 2147483647, %v5746_v9  ;;  %v5872_v55 = vsub.f32 1.0, %v5808_v41  ;;  %v6008_v6 = vsub.f32 %v12006_v3, %v11995_v11  ;;  %v6010_v43 = vsub.f32 %v12006_v3, %v11996_v54 }
 0x641   : > { %v7768_v17 = vpack.c.bf16 %v6267_v2, %v6265_v51  ;;  %v5527_v14 = vmax.f32 %v5463_v33, 0.0  ;;  %v5529_v5 = vmax.f32 %v5465_v18, 0.0  ;;  %v5076_v12 = vsub.f32 %v11999_v56, %v11951_v8 }
 0x642   : > { %v5874_v20 = vsub.f32 1.0, %v5810_v19  ;;  %v5936_v61 = vmax.f32 %v5872_v55, 0.0  ;;  %v6072_v22 = vand.u32 2147483647, %v6008_v6  ;;  %v6074_v1 = vand.u32 2147483647, %v6010_v43 }
 0x643   : > { %7769 = vmatprep.subr.bf16.mxu0 %v7768_v17  ;;  %v5591_v40 = vmul.f32 %v5527_v14, %v5263_v39  ;;  %v5078_v26 = vsub.f32 %v11999_v56, %v11952_v50  ;;  %v5593_v25 = vmul.f32 %v5529_v5, %v5265_v16  ;;  %v5140_v30 = vand.u32 2147483647, %v5076_v12  ;;  %v12040_v55 = vld [vmem:[#allocation85_spill] sm:$0xff] }
 0x644   : > { %v5938_v48 = vmax.f32 %v5874_v20, 0.0  ;;  %v5340_v28 = vsub.f32 %v12000_v32, %v11997_v38  ;;  %v6136_v24 = vsub.f32 1.0, %v6072_v22  ;;  %v6138_v18 = vsub.f32 1.0, %v6074_v1 }
 0x645   : > { %v5142_v19 = vand.u32 2147483647, %v5078_v26  ;;  %v5342_v9 = vsub.f32 %v12000_v32, %v12040_v55  ;;  %v7706_v41 = vpack.c.bf16 %v5593_v25, %v5591_v40  ;;  %v5204_v17 = vsub.f32 1.0, %v5140_v30 }
 0x646   : > { %v5404_v51 = vand.u32 2147483647, %v5340_v28  ;;  %v5749_v2 = vsub.f32 %v12001_v53, %v11951_v8  ;;  %v6200_v39 = vmax.f32 %v6136_v24, 0.0  ;;  %v6202_v33 = vmax.f32 %v6138_v18, 0.0 }
 0x647   : > { %v5206_v16 = vsub.f32 1.0, %v5142_v19  ;;  %v5406_v14 = vand.u32 2147483647, %v5342_v9  ;;  %7707 = vmatpush1.bf16.msra.mxu1 %v7706_v41  ;;  %v5268_v6 = vmax.f32 %v5204_v17, 0.0  ;;  %v5751_v5 = vsub.f32 %v12001_v53, %v11952_v50 }
 0x648   : > { %v5468_v43 = vsub.f32 1.0, %v5404_v51  ;;  %v5813_v20 = vand.u32 2147483647, %v5749_v2  ;;  %v6264_v12 = vmul.f32 %v6200_v39, %v5936_v61  ;;  %v6266_v22 = vmul.f32 %v6202_v33, %v5938_v48 }
 0x649   : > { %v5270_v1 = vmax.f32 %v5206_v16, 0.0  ;;  %v5470_v40 = vsub.f32 1.0, %v5406_v14  ;;  %v5815_v25 = vand.u32 2147483647, %v5751_v5  ;;  %v6013_v28 = vsub.f32 %v12002_v21, %v11997_v38 }
 0x64a   : > { %v5532_v26 = vmax.f32 %v5468_v43, 0.0  ;;  %v5877_v30 = vsub.f32 1.0, %v5813_v20  ;;  %v7770_v24 = vpack.c.bf16 %v6266_v22, %v6264_v12  ;;  %v6015_v19 = vsub.f32 %v12002_v21, %v12040_v55 }
 0x64b   : > { %v5534_v18 = vmax.f32 %v5470_v40, 0.0  ;;  %v5075_v9 = vsub.f32 %v12003_v62, %v11951_v8  ;;  %v5879_v17 = vsub.f32 1.0, %v5815_v25  ;;  %v6077_v48 = vand.u32 2147483647, %v6013_v28 }
 0x64c   : > { %v5596_v41 = vmul.f32 %v5532_v26, %v5268_v6  ;;  %v5941_v61 = vmax.f32 %v5877_v30, 0.0  ;;  %7771 = vmatpush1.bf16.msra.mxu0 %v7770_v24  ;;  %v6079_v2 = vand.u32 2147483647, %v6015_v19  ;;  %v5077_v39 = vsub.f32 %v12003_v62, %v11952_v50 }
 0x64d   : > { %v5598_v51 = vmul.f32 %v5534_v18, %v5270_v1  ;;  %v5139_v33 = vand.u32 2147483647, %v5075_v9  ;;  %v5943_v16 = vmax.f32 %v5879_v17, 0.0  ;;  %v6141_v14 = vsub.f32 1.0, %v6077_v48 }
 0x64e   : > { %v5339_v43 = vsub.f32 %v12004_v35, %v11997_v38  ;;  %v5341_v5 = vsub.f32 %v12004_v35, %v12040_v55  ;;  %v6143_v6 = vsub.f32 1.0, %v6079_v2  ;;  %v5141_v12 = vand.u32 2147483647, %v5077_v39 }
 0x64f   : > { %v7708_v20 = vpack.c.bf16 %v5598_v51, %v5596_v41  ;;  %v5203_v22 = vsub.f32 1.0, %v5139_v33  ;;  %v6205_v40 = vmax.f32 %v6141_v14, 0.0  ;;  %v5748_v25 = vsub.f32 %v12005_v23, %v11951_v8 }
 0x650   : > { %v5403_v26 = vand.u32 2147483647, %v5339_v43  ;;  %v5405_v1 = vand.u32 2147483647, %v5341_v5  ;;  %v6207_v30 = vmax.f32 %v6143_v6, 0.0  ;;  %v5205_v28 = vsub.f32 1.0, %v5141_v12 }
 0x651   : > { %7709 = vmatprep.subr.bf16.mxu1 %v7708_v20  ;;  %v5267_v24 = vmax.f32 %v5203_v22, 0.0  ;;  %v5750_v18 = vsub.f32 %v12005_v23, %v11952_v50  ;;  %v6269_v19 = vmul.f32 %v6205_v40, %v5941_v61  ;;  %v5812_v41 = vand.u32 2147483647, %v5748_v25  ;;  %v12041_v22 = vld [vmem:[#allocation86_spill] sm:$0xff] }
 0x652   : > { %v5467_v9 = vsub.f32 1.0, %v5403_v26  ;;  %v5469_v17 = vsub.f32 1.0, %v5405_v1  ;;  %v6271_v48 = vmul.f32 %v6207_v30, %v5943_v16  ;;  %v5269_v51 = vmax.f32 %v5205_v28, 0.0 }
 0x653   : > { %v5814_v2 = vand.u32 2147483647, %v5750_v18  ;;  %v6012_v39 = vsub.f32 %v12006_v3, %v11997_v38  ;;  %v5876_v43 = vsub.f32 1.0, %v5812_v41  ;;  %v6014_v5 = vsub.f32 %v12006_v3, %v12040_v55 }
 0x654   : > { %v5531_v33 = vmax.f32 %v5467_v9, 0.0  ;;  %v5533_v14 = vmax.f32 %v5469_v17, 0.0  ;;  %v7772_v20 = vpack.c.bf16 %v6271_v48, %v6269_v19  ;;  %v5080_v61 = vsub.f32 %v11999_v56, %v12041_v22 }
 0x655   : > { %v5878_v6 = vsub.f32 1.0, %v5814_v2  ;;  %v6076_v12 = vand.u32 2147483647, %v6012_v39  ;;  %v5940_v16 = vmax.f32 %v5876_v43, 0.0  ;;  %v6078_v1 = vand.u32 2147483647, %v6014_v5 }
 0x656   : > { %v5595_v40 = vmul.f32 %v5531_v33, %v5267_v24  ;;  %v5597_v26 = vmul.f32 %v5533_v14, %v5269_v51  ;;  %7773 = vmatprep.subr.bf16.mxu0 %v7772_v20  ;;  %v5082_v28 = vsub.f32 %v11999_v56, %v9415_v27  ;;  %v5144_v18 = vand.u32 2147483647, %v5080_v61 }
 0x657   : > { %v5942_v25 = vmax.f32 %v5878_v6, 0.0  ;;  %v6140_v30 = vsub.f32 1.0, %v6076_v12  ;;  %v6142_v17 = vsub.f32 1.0, %v6078_v1  ;;  %v5344_v19 = vsub.f32 %v12000_v32, %v9437_v29 }
 0x658   : > { %v7710_v9 = vpack.c.bf16 %v5597_v26, %v5595_v40  ;;  %v5346_v41 = vsub.f32 %v12000_v32, %v9441_v46  ;;  %v5146_v24 = vand.u32 2147483647, %v5082_v28  ;;  %v5208_v51 = vsub.f32 1.0, %v5144_v18 }
 0x659   : > { %v6204_v48 = vmax.f32 %v6140_v30, 0.0  ;;  %v5753_v2 = vsub.f32 %v12001_v53, %v12041_v22  ;;  %v6206_v39 = vmax.f32 %v6142_v17, 0.0  ;;  %v5408_v33 = vand.u32 2147483647, %v5344_v19 }
 0x65a   : > { %7711 = vmatpush1.bf16.msra.mxu1 %v7710_v9  ;;  %v5410_v14 = vand.u32 2147483647, %v5346_v41  ;;  %v5755_v43 = vsub.f32 %v12001_v53, %v9415_v27  ;;  %v5210_v20 = vsub.f32 1.0, %v5146_v24  ;;  %v5272_v6 = vmax.f32 %v5208_v51, 0.0 }
 0x65b   : > { %v6268_v5 = vmul.f32 %v6204_v48, %v5940_v16  ;;  %v5817_v12 = vand.u32 2147483647, %v5753_v2  ;;  %v6270_v61 = vmul.f32 %v6206_v39, %v5942_v25  ;;  %v5472_v40 = vsub.f32 1.0, %v5408_v33 }
 0x65c   : > { %v5474_v26 = vsub.f32 1.0, %v5410_v14  ;;  %v5819_v1 = vand.u32 2147483647, %v5755_v43  ;;  %v5274_v30 = vmax.f32 %v5210_v20, 0.0  ;;  %v6017_v18 = vsub.f32 %v12002_v21, %v9437_v29 }
 0x65d   : > { %v5881_v28 = vsub.f32 1.0, %v5817_v12  ;;  %v6019_v9 = vsub.f32 %v12002_v21, %v9441_v46  ;;  %v7774_v17 = vpack.c.bf16 %v6270_v61, %v6268_v5  ;;  %v5536_v19 = vmax.f32 %v5472_v40, 0.0 }
 0x65e   : > { %v5538_v41 = vmax.f32 %v5474_v26, 0.0  ;;  %v5883_v55 = vsub.f32 1.0, %v5819_v1  ;;  %v6081_v48 = vand.u32 2147483647, %v6017_v18  ;;  %v5079_v25 = vsub.f32 %v12003_v62, %v12041_v22 }
 0x65f   : > { %v5945_v16 = vmax.f32 %v5881_v28, 0.0  ;;  %v6083_v24 = vand.u32 2147483647, %v6019_v9  ;;  %7775 = vmatpush1.bf16.msra.mxu0 %v7774_v17  ;;  %v5600_v51 = vmul.f32 %v5536_v19, %v5272_v6  ;;  %v5081_v33 = vsub.f32 %v12003_v62, %v9415_v27 }
 0x660   : > { %v5602_v2 = vmul.f32 %v5538_v41, %v5274_v30  ;;  %v5947_v39 = vmax.f32 %v5883_v55, 0.0  ;;  %v6145_v14 = vsub.f32 1.0, %v6081_v48  ;;  %v5143_v20 = vand.u32 2147483647, %v5079_v25 }
 0x661   : > { %v6147_v43 = vsub.f32 1.0, %v6083_v24  ;;  %v5343_v5 = vsub.f32 %v12004_v35, %v9437_v29  ;;  %v5145_v61 = vand.u32 2147483647, %v5081_v33  ;;  %v5345_v40 = vsub.f32 %v12004_v35, %v9441_v46 }
 0x662   : > { %v7712_v12 = vpack.c.bf16 %v5602_v2, %v5600_v51  ;;  %v5752_v26 = vsub.f32 %v12005_v23, %v12041_v22  ;;  %v6209_v6 = vmax.f32 %v6145_v14, 0.0  ;;  %v5207_v55 = vsub.f32 1.0, %v5143_v20 }
 0x663   : > { %v6211_v1 = vmax.f32 %v6147_v43, 0.0  ;;  %v5407_v30 = vand.u32 2147483647, %v5343_v5  ;;  %v5209_v28 = vsub.f32 1.0, %v5145_v61  ;;  %v5409_v18 = vand.u32 2147483647, %v5345_v40 }
 0x664   : > { %7713 = vmatprep.subr.bf16.mxu1 %v7712_v12  ;;  %v5754_v9 = vsub.f32 %v12005_v23, %v9415_v27  ;;  %v5816_v17 = vand.u32 2147483647, %v5752_v26  ;;  %v6273_v19 = vmul.f32 %v6209_v6, %v5945_v16  ;;  %v5271_v48 = vmax.f32 %v5207_v55, 0.0 }
 0x665   : > { %v6275_v41 = vmul.f32 %v6211_v1, %v5947_v39  ;;  %v5471_v24 = vsub.f32 1.0, %v5407_v30  ;;  %v5273_v25 = vmax.f32 %v5209_v28, 0.0  ;;  %v5473_v51 = vsub.f32 1.0, %v5409_v18 }
 0x666   : > { %v5818_v2 = vand.u32 2147483647, %v5754_v9  ;;  %v5880_v33 = vsub.f32 1.0, %v5816_v17  ;;  %v6016_v43 = vsub.f32 %v12006_v3, %v9437_v29  ;;  %v6018_v20 = vsub.f32 %v12006_v3, %v9441_v46 }
 0x667   : > { %v7776_v22 = vpack.c.bf16 %v6275_v41, %v6273_v19  ;;  %v5535_v14 = vmax.f32 %v5471_v24, 0.0  ;;  %v5537_v5 = vmax.f32 %v5473_v51, 0.0  ;;  %v5084_v16 = vsub.f32 %v11999_v56, %v9464_v44 }
 0x668   : > { %v5882_v12 = vsub.f32 1.0, %v5818_v2  ;;  %v5944_v61 = vmax.f32 %v5880_v33, 0.0  ;;  %v6080_v40 = vand.u32 2147483647, %v6016_v43  ;;  %v6082_v26 = vand.u32 2147483647, %v6018_v20 }
 0x669   : > { %7777 = vmatprep.subr.bf16.mxu0 %v7776_v22  ;;  %v5599_v39 = vmul.f32 %v5535_v14, %v5271_v48  ;;  %v5086_v6 = vsub.f32 %v11999_v56, %v9468_v31  ;;  %v5601_v1 = vmul.f32 %v5537_v5, %v5273_v25  ;;  %v5148_v30 = vand.u32 2147483647, %v5084_v16 }
 0x66a   : > { %v5946_v55 = vmax.f32 %v5882_v12, 0.0  ;;  %v5348_v28 = vsub.f32 %v12000_v32, %v9474_v37  ;;  %v6144_v18 = vsub.f32 1.0, %v6080_v40  ;;  %v6146_v9 = vsub.f32 1.0, %v6082_v26 }
 0x66b   : > { %v5150_v17 = vand.u32 2147483647, %v5086_v6  ;;  %v5350_v19 = vsub.f32 %v12000_v32, %v9487_v13  ;;  %v7714_v41 = vpack.c.bf16 %v5601_v1, %v5599_v39  ;;  %v5212_v22 = vsub.f32 1.0, %v5148_v30 }
 0x66c   : > { %v5412_v48 = vand.u32 2147483647, %v5348_v28  ;;  %v5757_v24 = vsub.f32 %v12001_v53, %v9464_v44  ;;  %v6208_v51 = vmax.f32 %v6144_v18, 0.0  ;;  %v6210_v56 = vmax.f32 %v6146_v9, 0.0 }
 0x66d   : > { %v5214_v25 = vsub.f32 1.0, %v5150_v17  ;;  %v5414_v2 = vand.u32 2147483647, %v5350_v19  ;;  %7715 = vmatpush1.bf16.msra.mxu1 %v7714_v41  ;;  %v5276_v33 = vmax.f32 %v5212_v22, 0.0  ;;  %v5759_v43 = vsub.f32 %v12001_v53, %v9468_v31 }
 0x66e   : > { %v5476_v14 = vsub.f32 1.0, %v5412_v48  ;;  %v5821_v20 = vand.u32 2147483647, %v5757_v24  ;;  %v6272_v5 = vmul.f32 %v6208_v51, %v5944_v61  ;;  %v6274_v12 = vmul.f32 %v6210_v56, %v5946_v55 }
 0x66f   : > { %v5278_v32 = vmax.f32 %v5214_v25, 0.0  ;;  %v5478_v16 = vsub.f32 1.0, %v5414_v2  ;;  %v5823_v40 = vand.u32 2147483647, %v5759_v43  ;;  %v6021_v6 = vsub.f32 %v12002_v21, %v9474_v37 }
 0x670   : > { %v5540_v39 = vmax.f32 %v5476_v14, 0.0  ;;  %v5885_v26 = vsub.f32 1.0, %v5821_v20  ;;  %v7778_v1 = vpack.c.bf16 %v6274_v12, %v6272_v5  ;;  %v6023_v28 = vsub.f32 %v12002_v21, %v9487_v13 }
 0x671   : > { %v5542_v30 = vmax.f32 %v5478_v16, 0.0  ;;  %v5083_v18 = vsub.f32 %v12003_v62, %v9464_v44  ;;  %v5887_v9 = vsub.f32 1.0, %v5823_v40  ;;  %v6085_v55 = vand.u32 2147483647, %v6021_v6 }
 0x672   : > { %v5604_v53 = vmul.f32 %v5540_v39, %v5276_v33  ;;  %v5949_v61 = vmax.f32 %v5885_v26, 0.0  ;;  %7779 = vmatpush1.bf16.msra.mxu0 %v7778_v1  ;;  %v6087_v19 = vand.u32 2147483647, %v6023_v28  ;;  %v5085_v41 = vsub.f32 %v12003_v62, %v9468_v31 }
 0x673   : > { %v5606_v17 = vmul.f32 %v5542_v30, %v5278_v32  ;;  %v5147_v22 = vand.u32 2147483647, %v5083_v18  ;;  %v5951_v48 = vmax.f32 %v5887_v9, 0.0  ;;  %v6149_v24 = vsub.f32 1.0, %v6085_v55 }
 0x674   : > { %v5347_v51 = vsub.f32 %v12004_v35, %v9474_v37  ;;  %v5349_v21 = vsub.f32 %v12004_v35, %v9487_v13  ;;  %v6151_v25 = vsub.f32 1.0, %v6087_v19  ;;  %v5149_v2 = vand.u32 2147483647, %v5085_v41 }
 0x675   : > { %v7716_v56 = vpack.c.bf16 %v5606_v17, %v5604_v53  ;;  %v5211_v33 = vsub.f32 1.0, %v5147_v22  ;;  %v6213_v14 = vmax.f32 %v6149_v24, 0.0  ;;  %v5756_v5 = vsub.f32 %v12005_v23, %v9464_v44 }
 0x676   : > { %v5411_v43 = vand.u32 2147483647, %v5347_v51  ;;  %v5413_v20 = vand.u32 2147483647, %v5349_v21  ;;  %v6215_v62 = vmax.f32 %v6151_v25, 0.0  ;;  %v5213_v12 = vsub.f32 1.0, %v5149_v2 }
 0x677   : > { %7717 = vmatprep.subr.bf16.mxu1 %v7716_v56  ;;  %v5275_v32 = vmax.f32 %v5211_v33, 0.0  ;;  %v5758_v16 = vsub.f32 %v12005_v23, %v9468_v31  ;;  %v6277_v39 = vmul.f32 %v6213_v14, %v5949_v61  ;;  %v5820_v26 = vand.u32 2147483647, %v5756_v5  ;;  %v12042_v23 = vld [vmem:[#allocation57_spill] sm:$0xff] }
 0x678   : > { %v5475_v40 = vsub.f32 1.0, %v5411_v43  ;;  %v5477_v35 = vsub.f32 1.0, %v5413_v20  ;;  %v6279_v6 = vmul.f32 %v6215_v62, %v5951_v48  ;;  %v5277_v1 = vmax.f32 %v5213_v12, 0.0 }
 0x679   : > { %v5822_v30 = vand.u32 2147483647, %v5758_v16  ;;  %v6020_v28 = vsub.f32 %v12006_v3, %v9474_v37  ;;  %v5884_v9 = vsub.f32 1.0, %v5820_v26  ;;  %v6022_v55 = vsub.f32 %v12006_v3, %v9487_v13  ;;  %v12043_v3 = vld [vmem:[#allocation58_spill] sm:$0xff] }
 0x67a   : > { %v5539_v18 = vmax.f32 %v5475_v40, 0.0  ;;  %v5541_v53 = vmax.f32 %v5477_v35, 0.0  ;;  %v7780_v17 = vpack.c.bf16 %v6279_v6, %v6277_v39  ;;  %v6374_v61 = vsub.f32 %v12042_v23, %v8426_v59 }
 0x67b   : > { %v5886_v19 = vsub.f32 1.0, %v5822_v30  ;;  %v6084_v41 = vand.u32 2147483647, %v6020_v28  ;;  %v5948_v48 = vmax.f32 %v5884_v9, 0.0  ;;  %v6086_v51 = vand.u32 2147483647, %v6022_v55 }
 0x67c   : > { %v5603_v22 = vmul.f32 %v5539_v18, %v5275_v32  ;;  %v5605_v24 = vmul.f32 %v5541_v53, %v5277_v1  ;;  %7781 = vmatprep.subr.bf16.mxu0 %v7780_v17  ;;  %v6376_v25 = vsub.f32 %v12042_v23, %v8449_v10  ;;  %v6438_v2 = vand.u32 2147483647, %v6374_v61  ;;  %v12044_v32 = vld [vmem:[#allocation52_spill] sm:$0xff] }
 0x67d   : > { %v5950_v21 = vmax.f32 %v5886_v19, 0.0  ;;  %v6148_v56 = vsub.f32 1.0, %v6084_v41  ;;  %v6150_v14 = vsub.f32 1.0, %v6086_v51  ;;  %v6638_v43 = vsub.f32 %v12043_v3, %v8494_v47  ;;  %v7905_v19 = vld [vmem:[%s9217_s15] sm:$0xff]  ;;  %v12045_v41 = vld [vmem:[#allocation53_spill] sm:$0xff] }
 0x67e   : > { %v7718_v33 = vpack.c.bf16 %v5605_v24, %v5603_v22  ;;  %v6640_v20 = vsub.f32 %v12043_v3, %v8504_v4  ;;  %v6440_v62 = vand.u32 2147483647, %v6376_v25  ;;  %v6502_v12 = vsub.f32 1.0, %v6438_v2 }
 0x67f   : > { %v6212_v5 = vmax.f32 %v6148_v56, 0.0  ;;  %v6373_v16 = vsub.f32 %v12044_v32, %v8426_v59  ;;  %v6214_v39 = vmax.f32 %v6150_v14, 0.0  ;;  %v6702_v40 = vand.u32 2147483647, %v6638_v43  ;;  %v7906_v56 = vld [vmem:[%s9217_s15 + $0x8] sm:$0xff] }
 0x680   : > { %7719 = vmatpush1.bf16.msra.mxu1 %v7718_v33  ;;  %v6704_v35 = vand.u32 2147483647, %v6640_v20  ;;  %v6375_v26 = vsub.f32 %v12044_v32, %v8449_v10  ;;  %v6504_v1 = vsub.f32 1.0, %v6440_v62  ;;  %v6566_v30 = vmax.f32 %v6502_v12, 0.0 }
 0x681   : > { %v6276_v6 = vmul.f32 %v6212_v5, %v5948_v48  ;;  %v6437_v28 = vand.u32 2147483647, %v6373_v16  ;;  %v6278_v18 = vmul.f32 %v6214_v39, %v5950_v21  ;;  %v6766_v53 = vsub.f32 1.0, %v6702_v40  ;;  %v12046_v40 = vld [vmem:[#allocation22_spill] sm:$0xff] }
 0x682   : > { %v6768_v9 = vsub.f32 1.0, %v6704_v35  ;;  %v6439_v55 = vand.u32 2147483647, %v6375_v26  ;;  %v6568_v17 = vmax.f32 %v6504_v1, 0.0  ;;  %v6637_v61 = vsub.f32 %v12045_v41, %v8494_v47 }
 0x683   : > { %5672 = vmatmul.mubr.f32.vlgmr.msra.gmra.mrb[6].mxu1 %v7905_v19  ;;  %v6501_v59 = vsub.f32 1.0, %v6437_v28  ;;  %v6639_v22 = vsub.f32 %v12045_v41, %v8504_v4  ;;  %v7782_v10 = vpack.c.bf16 %v6278_v18, %v6276_v6  ;;  %v6830_v24 = vmax.f32 %v6766_v53, 0.0 }
 0x684   : > { %v6832_v48 = vmax.f32 %v6768_v9, 0.0  ;;  %v6503_v51 = vsub.f32 1.0, %v6439_v55  ;;  %7021 = vmatprep.mubr.f32.mxu1 %v7906_v56  ;;  %v6701_v25 = vand.u32 2147483647, %v6637_v61  ;;  %v6378_v33 = vsub.f32 %v12042_v23, %v8455_v49 }
 0x685   : > { %v6565_v21 = vmax.f32 %v6501_v59, 0.0  ;;  %v6703_v2 = vand.u32 2147483647, %v6639_v22  ;;  %7783 = vmatpush1.bf16.msra.mxu0 %v7782_v10  ;;  %v6894_v14 = vmul.f32 %v6830_v24, %v6566_v30  ;;  %v6380_v47 = vsub.f32 %v12042_v23, %v8464_v57 }
 0x686   : > { %v6896_v43 = vmul.f32 %v6832_v48, %v6568_v17  ;;  %v6567_v20 = vmax.f32 %v6503_v51, 0.0  ;;  %v6765_v4 = vsub.f32 1.0, %v6701_v25  ;;  %v6442_v62 = vand.u32 2147483647, %v6378_v33 }
 0x687   : > { %v6767_v5 = vsub.f32 1.0, %v6703_v2  ;;  %v6642_v12 = vsub.f32 %v12043_v3, %v12007_v36  ;;  %v6444_v39 = vand.u32 2147483647, %v6380_v47  ;;  %v6644_v35 = vsub.f32 %v12043_v3, %v12046_v40 }
 0x688   : > { %v7784_v16 = vpack.c.bf16 %v6896_v43, %v6894_v14  ;;  %v6377_v26 = vsub.f32 %v12044_v32, %v8455_v49  ;;  %6345 = vmatmul.mubr.f32.vlgmr.msra.gmra.mrb[14].mxu0 %v7905_v19  ;;  %v6829_v6 = vmax.f32 %v6765_v4, 0.0  ;;  %v6506_v30 = vsub.f32 1.0, %v6442_v62  ;;  %v12048_v43 = vld [vmem:[#allocation13_spill] sm:$0xff] }
 0x689   : > { %v6831_v1 = vmax.f32 %v6767_v5, 0.0  ;;  %v6706_v28 = vand.u32 2147483647, %v6642_v12  ;;  %v6508_v18 = vsub.f32 1.0, %v6444_v39  ;;  %v6708_v53 = vand.u32 2147483647, %v6644_v35 }
 0x68a   : > { %7785 = vmatprep.subr.bf16.mxu1 %v7784_v16  ;;  %v6379_v9 = vsub.f32 %v12044_v32, %v8464_v57  ;;  %v6441_v55 = vand.u32 2147483647, %v6377_v26  ;;  %v12047_v17 = vmov 0.0   ;;  %v6893_v59 = vmul.f32 %v6829_v6, %v6565_v21  ;;  %v12049_v26 = vld [vmem:[#allocation23_spill] sm:$0xff] }
 0x68b   : > { %7112 = vmatprep.mubr.f32.mxu0 %v12047_v17  ;;  %v6895_v61 = vmul.f32 %v6831_v1, %v6567_v20  ;;  %v6570_v22 = vmax.f32 %v6506_v30, 0.0  ;;  %v6770_v10 = vsub.f32 1.0, %v6706_v28  ;;  %v6572_v24 = vmax.f32 %v6508_v18, 0.0 }
 0x68c   : > { %v6772_v49 = vsub.f32 1.0, %v6708_v53  ;;  %v6443_v19 = vand.u32 2147483647, %v6379_v9  ;;  %v6505_v48 = vsub.f32 1.0, %v6441_v55  ;;  %v6641_v25 = vsub.f32 %v12045_v41, %v12007_v36 }
 0x68d   : > { %v7786_v51 = vpack.c.bf16 %v6895_v61, %v6893_v59  ;;  %v6834_v56 = vmax.f32 %v6770_v10, 0.0  ;;  %v6643_v2 = vsub.f32 %v12045_v41, %v12046_v40  ;;  %v6382_v21 = vsub.f32 %v12042_v23, %v12048_v43 }
 0x68e   : > { %v6836_v57 = vmax.f32 %v6772_v49, 0.0  ;;  %v6507_v33 = vsub.f32 1.0, %v6443_v19  ;;  %v6569_v14 = vmax.f32 %v6505_v48, 0.0  ;;  %v6705_v47 = vand.u32 2147483647, %v6641_v25 }
 0x68f   : > { %7787 = vmatpush1.bf16.msra.mxu1 %v7786_v51  ;;  %v6898_v20 = vmul.f32 %v6834_v56, %v6570_v22  ;;  %v6707_v4 = vand.u32 2147483647, %v6643_v2  ;;  %v6384_v5 = vsub.f32 %v12042_v23, %v11846_v52  ;;  %v6446_v16 = vand.u32 2147483647, %v6382_v21 }
 0x690   : > { %v6900_v62 = vmul.f32 %v6836_v57, %v6572_v24  ;;  %v6571_v12 = vmax.f32 %v6507_v33, 0.0  ;;  %v6646_v36 = vsub.f32 %v12043_v3, %v8526_v58  ;;  %v6769_v39 = vsub.f32 1.0, %v6705_v47 }
 0x691   : > { %v6771_v40 = vsub.f32 1.0, %v6707_v4  ;;  %v6448_v35 = vand.u32 2147483647, %v6384_v5  ;;  %v6648_v6 = vsub.f32 %v12043_v3, %v12049_v26  ;;  %v6510_v30 = vsub.f32 1.0, %v6446_v16 }
 0x692   : > { %v7788_v1 = vpack.c.bf16 %v6900_v62, %v6898_v20  ;;  %v6710_v28 = vand.u32 2147483647, %v6646_v36  ;;  %v6381_v18 = vsub.f32 %v12044_v32, %v12048_v43  ;;  %v6833_v53 = vmax.f32 %v6769_v39, 0.0  ;;  %v12050_v62 = vld [vmem:[#allocation16_spill] sm:$0xff] }
 0x693   : > { %v6835_v9 = vmax.f32 %v6771_v40, 0.0  ;;  %v6512_v55 = vsub.f32 1.0, %v6448_v35  ;;  %v6712_v17 = vand.u32 2147483647, %v6648_v6  ;;  %v6574_v59 = vmax.f32 %v6510_v30, 0.0  ;;  %v12051_v39 = vld [vmem:[#allocation24_spill] sm:$0xff] }
 0x694   : > { %7789 = vmatprep.subr.bf16.mxu1 %v7788_v1  ;;  %v6774_v61 = vsub.f32 1.0, %v6710_v28  ;;  %v6383_v22 = vsub.f32 %v12044_v32, %v11846_v52  ;;  %v6445_v10 = vand.u32 2147483647, %v6381_v18  ;;  %v6897_v24 = vmul.f32 %v6833_v53, %v6569_v14  ;;  %v12052_v35 = vld [vmem:[#allocation25_spill] sm:$0xff] }
 0x695   : > { %v6899_v49 = vmul.f32 %v6835_v9, %v6571_v12  ;;  %v6576_v19 = vmax.f32 %v6512_v55, 0.0  ;;  %v6776_v48 = vsub.f32 1.0, %v6712_v17  ;;  %v6645_v2 = vsub.f32 %v12045_v41, %v8526_v58 }
 0x696   : > { %v6838_v51 = vmax.f32 %v6774_v61, 0.0  ;;  %v6447_v56 = vand.u32 2147483647, %v6383_v22  ;;  %v6509_v25 = vsub.f32 1.0, %v6445_v10  ;;  %v6647_v43 = vsub.f32 %v12045_v41, %v12049_v26 }
 0x697   : > { %v7790_v57 = vpack.c.bf16 %v6899_v49, %v6897_v24  ;;  %v6840_v33 = vmax.f32 %v6776_v48, 0.0  ;;  %v6386_v21 = vsub.f32 %v12042_v23, %v11847_v7  ;;  %v6709_v47 = vand.u32 2147483647, %v6645_v2 }
 0x698   : > { %v6902_v52 = vmul.f32 %v6838_v51, %v6574_v59  ;;  %v6511_v20 = vsub.f32 1.0, %v6447_v56  ;;  %v6573_v14 = vmax.f32 %v6509_v25, 0.0  ;;  %v6711_v5 = vand.u32 2147483647, %v6647_v43 }
 0x699   : > { %7791 = vmatpush1.bf16.msra.mxu1 %v7790_v57  ;;  %v6904_v4 = vmul.f32 %v6840_v33, %v6576_v19  ;;  %v6388_v12 = vsub.f32 %v12042_v23, %v12050_v62  ;;  %v6450_v16 = vand.u32 2147483647, %v6386_v21  ;;  %v6773_v36 = vsub.f32 1.0, %v6709_v47 }
 0x69a   : > { %v6575_v58 = vmax.f32 %v6511_v20, 0.0  ;;  %v6650_v40 = vsub.f32 %v12043_v3, %v12051_v39  ;;  %v6652_v26 = vsub.f32 %v12043_v3, %v12052_v35  ;;  %v6775_v1 = vsub.f32 1.0, %v6711_v5  ;;  %v12053_v20 = vld [vmem:[#allocation17_spill] sm:$0xff] }
 0x69b   : > { %v7792_v6 = vpack.c.bf16 %v6904_v4, %v6902_v52  ;;  %v6452_v30 = vand.u32 2147483647, %v6388_v12  ;;  %v6514_v28 = vsub.f32 1.0, %v6450_v16  ;;  %v6837_v18 = vmax.f32 %v6773_v36, 0.0 }
 0x69c   : > { %v6714_v53 = vand.u32 2147483647, %v6650_v40  ;;  %v6716_v9 = vand.u32 2147483647, %v6652_v26  ;;  %v6385_v55 = vsub.f32 %v12044_v32, %v11847_v7  ;;  %v6839_v17 = vmax.f32 %v6775_v1, 0.0  ;;  %v11142_v40 = vpop.f32.mrb[2].mxu1 }
 0x69d   : > { %7793 = vmatprep.subr.bf16.mxu1 %v7792_v6  ;;  %v6516_v59 = vsub.f32 1.0, %v6452_v30  ;;  %v6578_v61 = vmax.f32 %v6514_v28, 0.0  ;;  %v6387_v22 = vsub.f32 %v12044_v32, %v12050_v62  ;;  %v6901_v10 = vmul.f32 %v6837_v18, %v6573_v14  ;;  %v12055_v1 = vld [vmem:[#allocation26_spill] sm:$0xff]  ;;  %v12056_v28 = vld [vmem:[#allocation27_spill] sm:$0xff] }
 0x69e   : > { %v6778_v24 = vsub.f32 1.0, %v6714_v53  ;;  %v6780_v49 = vsub.f32 1.0, %v6716_v9  ;;  %v6449_v19 = vand.u32 2147483647, %v6385_v55  ;;  %v6903_v48 = vmul.f32 %v6839_v17, %v6575_v58  ;;  %v12054_v58 = vld [vmem:[#allocation18_spill] sm:$0xff]  ;;  %v11150_v53 = vpop.f32.mrb[3].mxu1 }
 0x69f   : > { %v6580_v51 = vmax.f32 %v6516_v59, 0.0  ;;  %v6451_v56 = vand.u32 2147483647, %v6387_v22  ;;  %v6649_v25 = vsub.f32 %v12045_v41, %v12051_v39  ;;  %v6651_v33 = vsub.f32 %v12045_v41, %v12052_v35  ;;  %v11144_v35 = vpop.f32.mrb[10].mxu0  ;;  %v11156_v22 = vpop.f32.mrb[4].mxu1 }
 0x6a0   : > { %v6842_v2 = vmax.f32 %v6778_v24, 0.0  ;;  %v6844_v57 = vmax.f32 %v6780_v49, 0.0  ;;  %v6513_v7 = vsub.f32 1.0, %v6449_v19  ;;  %v7794_v43 = vpack.c.bf16 %v6903_v48, %v6901_v10  ;;  %v11152_v9 = vpop.f32.mrb[11].mxu0 }
 0x6a1   : > { %v6515_v21 = vsub.f32 1.0, %v6451_v56  ;;  %v6713_v52 = vand.u32 2147483647, %v6649_v25  ;;  %v6390_v14 = vsub.f32 %v12042_v23, %v12053_v20  ;;  %v6715_v62 = vand.u32 2147483647, %v6651_v33  ;;  %v11158_v10 = vpop.f32.mrb[12].mxu0 }
 0x6a2   : > { %v6906_v47 = vmul.f32 %v6842_v2, %v6578_v61  ;;  %v6908_v4 = vmul.f32 %v6844_v57, %v6580_v51  ;;  %v6577_v5 = vmax.f32 %v6513_v7, 0.0  ;;  %7795 = vmatpush1.bf16.msra.mxu1 %v7794_v43  ;;  %v6392_v36 = vsub.f32 %v12042_v23, %v12054_v58  ;;  %v11162_v51 = vpop.f32.mrb[5].mxu1  ;;  %v11164_v7 = vpop.f32.mrb[13].mxu0 }
 0x6a3   : > { %v6579_v12 = vmax.f32 %v6515_v21, 0.0  ;;  %v6777_v16 = vsub.f32 1.0, %v6713_v52  ;;  %v6454_v39 = vand.u32 2147483647, %v6390_v14  ;;  %v6779_v6 = vsub.f32 1.0, %v6715_v62 }
 0x6a4   : > { %v7796_v26 = vpack.c.bf16 %v6908_v4, %v6906_v47  ;;  %v6654_v30 = vsub.f32 %v12043_v3, %v12055_v1  ;;  %v6656_v18 = vsub.f32 %v12043_v3, %v12056_v28  ;;  %v6456_v17 = vand.u32 2147483647, %v6392_v36 }
 0x6a5   : > { %v6841_v55 = vmax.f32 %v6777_v16, 0.0  ;;  %v6518_v59 = vsub.f32 1.0, %v6454_v39  ;;  %v6389_v61 = vsub.f32 %v12044_v32, %v12053_v20  ;;  %v6843_v24 = vmax.f32 %v6779_v6, 0.0  ;;  %v12057_v6 = vld [vmem:[#allocation19_spill] sm:$0xff] }
 0x6a6   : > { %7797 = vmatprep.subr.bf16.mxu1 %v7796_v26  ;;  %v6718_v49 = vand.u32 2147483647, %v6654_v30  ;;  %v6720_v19 = vand.u32 2147483647, %v6656_v18  ;;  %v6391_v48 = vsub.f32 %v12044_v32, %v12054_v58  ;;  %v6520_v25 = vsub.f32 1.0, %v6456_v17  ;;  %v12058_v17 = vld [vmem:[#allocation20_spill] sm:$0xff] }
 0x6a7   : > { %v6905_v56 = vmul.f32 %v6841_v55, %v6577_v5  ;;  %v6582_v2 = vmax.f32 %v6518_v59, 0.0  ;;  %v6453_v57 = vand.u32 2147483647, %v6389_v61  ;;  %v6907_v33 = vmul.f32 %v6843_v24, %v6579_v12  ;;  %v12059_v24 = vld [vmem:[#allocation28_spill] sm:$0xff] }
 0x6a8   : > { %v6782_v43 = vsub.f32 1.0, %v6718_v49  ;;  %v6784_v21 = vsub.f32 1.0, %v6720_v19  ;;  %v6455_v52 = vand.u32 2147483647, %v6391_v48  ;;  %v6584_v20 = vmax.f32 %v6520_v25, 0.0 }
 0x6a9   : > { %v6517_v14 = vsub.f32 1.0, %v6453_v57  ;;  %v6653_v47 = vsub.f32 %v12045_v41, %v12055_v1  ;;  %v6655_v4 = vsub.f32 %v12045_v41, %v12056_v28  ;;  %v7798_v62 = vpack.c.bf16 %v6907_v33, %v6905_v56  ;;  %v12060_v56 = vld [vmem:[#allocation29_spill] sm:$0xff]  ;;  %v12062_v33 = vld [vmem:[#allocation59_spill] sm:$0xff] }
 0x6aa   : > { %v6846_v16 = vmax.f32 %v6782_v43, 0.0  ;;  %v6848_v5 = vmax.f32 %v6784_v21, 0.0  ;;  %v6519_v58 = vsub.f32 1.0, %v6455_v52  ;;  %v6394_v12 = vsub.f32 %v12042_v23, %v12057_v6  ;;  %v12061_v57 = vld [vmem:[#allocation5_spill] sm:$0xff] }
 0x6ab   : > { %v6581_v36 = vmax.f32 %v6517_v14, 0.0  ;;  %v6717_v39 = vand.u32 2147483647, %v6653_v47  ;;  %v6719_v26 = vand.u32 2147483647, %v6655_v4  ;;  %7799 = vmatpush1.bf16.msra.mxu1 %v7798_v62  ;;  %v6396_v1 = vsub.f32 %v12042_v23, %v12058_v17  ;;  %v12063_v62 = vld [vmem:[#allocation6_spill] sm:$0xff] }
 0x6ac   : > { %v6910_v30 = vmul.f32 %v6846_v16, %v6582_v2  ;;  %v6912_v18 = vmul.f32 %v6848_v5, %v6584_v20  ;;  %v6583_v55 = vmax.f32 %v6519_v58, 0.0  ;;  %v6458_v28 = vand.u32 2147483647, %v6394_v12 }
 0x6ad   : > { %v6781_v59 = vsub.f32 1.0, %v6717_v39  ;;  %v6783_v61 = vsub.f32 1.0, %v6719_v26  ;;  %v6658_v49 = vsub.f32 %v12043_v3, %v12059_v24  ;;  %v6460_v48 = vand.u32 2147483647, %v6396_v1  ;;  %v12064_v1 = vld [vmem:[#allocation60_spill] sm:$0xff] }
 0x6ae   : > { %v7800_v19 = vpack.c.bf16 %v6912_v18, %v6910_v30  ;;  %v6660_v25 = vsub.f32 %v12043_v3, %v12060_v56  ;;  %v1619_v43 = vrot.slane %v12062_v33, %v12061_v57  ;;  %v6522_v52 = vsub.f32 1.0, %v6458_v28 }
 0x6af   : > { %v6845_v2 = vmax.f32 %v6781_v59, 0.0  ;;  %v6847_v21 = vmax.f32 %v6783_v61, 0.0  ;;  %v6722_v20 = vand.u32 2147483647, %v6658_v49  ;;  %v6524_v14 = vsub.f32 1.0, %v6460_v48 }
 0x6b0   : > { %7801 = vmatprep.subr.bf16.mxu1 %v7800_v19  ;;  %v6724_v47 = vand.u32 2147483647, %v6660_v25  ;;  %v1624_v4 = vmul.f32 %v1619_v43, %v10955_v60  ;;  %v2296_v16 = vrot.slane %v12062_v33, %v12063_v62  ;;  %v6586_v39 = vmax.f32 %v6522_v52, 0.0 }
 0x6b1   : > { %v6909_v5 = vmul.f32 %v6845_v2, %v6581_v36  ;;  %v6911_v58 = vmul.f32 %v6847_v21, %v6583_v55  ;;  %v6786_v26 = vsub.f32 1.0, %v6722_v20  ;;  %v6588_v12 = vmax.f32 %v6524_v14, 0.0  ;;  %v12065_v20 = vld [vmem:[#allocation30_spill] sm:$0xff] }
 0x6b2   : > { %v6788_v30 = vsub.f32 1.0, %v6724_v47  ;;  %v2301_v18 = vmul.f32 %v2296_v16, %v10957_v42  ;;  %v1623_v59 = vrot.slane %v12064_v1, %v12061_v57  ;;  %v2300_v49 = vrot.slane %v12064_v1, %v12063_v62 }
 0x6b3   : > { %v7802_v61 = vpack.c.bf16 %v6911_v58, %v6909_v5  ;;  %v6850_v28 = vmax.f32 %v6786_v26, 0.0  ;;  %v6393_v60 = vsub.f32 %v12044_v32, %v12057_v6  ;;  %v6395_v48 = vsub.f32 %v12044_v32, %v12058_v17  ;;  %v12066_v26 = vld [vmem:[#allocation14_spill] sm:$0xff] }
 0x6b4   : > { %v6852_v19 = vmax.f32 %v6788_v30, 0.0  ;;  %v7850_v36 = vpack.c.bf16 %v2301_v18, %v1624_v4  ;;  %v1625_v55 = vmul.f32 %v1623_v59, %v10961_v15  ;;  %v2302_v25 = vmul.f32 %v2300_v49, %v10963_v45  ;;  %v12067_v59 = vld [vmem:[#allocation15_spill] sm:$0xff] }
 0x6b5   : > { %7803 = vmatpush1.bf16.msra.mxu1 %v7802_v61  ;;  %v6914_v42 = vmul.f32 %v6850_v28, %v6586_v39  ;;  %v6457_v43 = vand.u32 2147483647, %v6393_v60  ;;  %v6657_v2 = vsub.f32 %v12045_v41, %v12059_v24  ;;  %v6459_v52 = vand.u32 2147483647, %v6395_v48 }
 0x6b6   : > { %v6916_v21 = vmul.f32 %v6852_v19, %v6588_v12  ;;  %v6659_v6 = vsub.f32 %v12045_v41, %v12060_v56  ;;  %v6398_v14 = vsub.f32 %v12042_v23, %v12065_v20  ;;  %v7848_v15 = vpack.c.bf16 %v2302_v25, %v1625_v55 }
 0x6b7   : > { %v6521_v47 = vsub.f32 1.0, %v6457_v43  ;;  %v6721_v4 = vand.u32 2147483647, %v6657_v2  ;;  %v6400_v17 = vsub.f32 %v12042_v23, %v12019_v0  ;;  %v6523_v45 = vsub.f32 1.0, %v6459_v52 }
 0x6b8   : > { %v7804_v62 = vpack.c.bf16 %v6916_v21, %v6914_v42  ;;  %v6723_v16 = vand.u32 2147483647, %v6659_v6  ;;  %v6462_v5 = vand.u32 2147483647, %v6398_v14  ;;  %v6662_v12 = vsub.f32 %v12043_v3, %v12066_v26  ;;  %7849 = vmatprep.subr.bf16.mxu0 %v7848_v15 }
 0x6b9   : > { %v6585_v58 = vmax.f32 %v6521_v47, 0.0  ;;  %v6785_v24 = vsub.f32 1.0, %v6721_v4  ;;  %v6464_v39 = vand.u32 2147483647, %v6400_v17  ;;  %v6587_v56 = vmax.f32 %v6523_v45, 0.0  ;;  %7851 = vmatpush1.bf16.msra.mxu0 %v7850_v36  ;;  %v12068_v17 = vld [vmem:[#allocation11_spill] sm:$0xff] }
 0x6ba   : > { %7805 = vmatprep.subr.bf16.mxu1 %v7804_v62  ;;  %v6787_v30 = vsub.f32 1.0, %v6723_v16  ;;  %v6526_v18 = vsub.f32 1.0, %v6462_v5  ;;  %v6664_v61 = vsub.f32 %v12043_v3, %v12067_v59  ;;  %v6726_v60 = vand.u32 2147483647, %v6662_v12  ;;  %v12069_v12 = vld [vmem:[#allocation12_spill] sm:$0xff] }
 0x6bb   : > { %v6849_v28 = vmax.f32 %v6785_v24, 0.0  ;;  %v6528_v49 = vsub.f32 1.0, %v6464_v39  ;;  %v6397_v19 = vsub.f32 %v12044_v32, %v12065_v20  ;;  %v6399_v25 = vsub.f32 %v12044_v32, %v12019_v0 }
 0x6bc   : > { %v6851_v55 = vmax.f32 %v6787_v30, 0.0  ;;  %v6590_v48 = vmax.f32 %v6526_v18, 0.0  ;;  %v6728_v42 = vand.u32 2147483647, %v6664_v61  ;;  %v6790_v21 = vsub.f32 1.0, %v6726_v60 }
 0x6bd   : > { %v6913_v43 = vmul.f32 %v6849_v28, %v6585_v58  ;;  %v6592_v2 = vmax.f32 %v6528_v49, 0.0  ;;  %v6461_v52 = vand.u32 2147483647, %v6397_v19  ;;  %v6463_v15 = vand.u32 2147483647, %v6399_v25  ;;  %v12070_v49 = vld [vmem:[#allocation62_spill] sm:$0xff] }
 0x6be   : > { %v6915_v6 = vmul.f32 %v6851_v55, %v6587_v56  ;;  %v6792_v14 = vsub.f32 1.0, %v6728_v42  ;;  %v6661_v36 = vsub.f32 %v12045_v41, %v12066_v26  ;;  %v6854_v47 = vmax.f32 %v6790_v21, 0.0  ;;  %v12071_v19 = vld [vmem:[#allocation63_spill] sm:$0xff] }
 0x6bf   : > { %v6525_v4 = vsub.f32 1.0, %v6461_v52  ;;  %v6663_v20 = vsub.f32 %v12045_v41, %v12067_v59  ;;  %v6402_v62 = vsub.f32 %v12042_v23, %v12068_v17  ;;  %v6527_v16 = vsub.f32 1.0, %v6463_v15 }
 0x6c0   : > { %v7806_v45 = vpack.c.bf16 %v6915_v6, %v6913_v43  ;;  %v6856_v0 = vmax.f32 %v6792_v14, 0.0  ;;  %v6725_v5 = vand.u32 2147483647, %v6661_v36  ;;  %v6918_v58 = vmul.f32 %v6854_v47, %v6590_v48 }
 0x6c1   : > { %v6589_v24 = vmax.f32 %v6525_v4, 0.0  ;;  %v6727_v39 = vand.u32 2147483647, %v6663_v20  ;;  %v6404_v56 = vsub.f32 %v12042_v23, %v12069_v12  ;;  %v6591_v30 = vmax.f32 %v6527_v16, 0.0 }
 0x6c2   : > { %7807 = vmatpush1.bf16.msra.mxu1 %v7806_v45  ;;  %v6920_v26 = vmul.f32 %v6856_v0, %v6592_v2  ;;  %v6789_v18 = vsub.f32 1.0, %v6725_v5  ;;  %v6466_v61 = vand.u32 2147483647, %v6402_v62  ;;  %v6666_v60 = vsub.f32 %v12043_v3, %v12070_v49 }
 0x6c3   : > { %v6791_v28 = vsub.f32 1.0, %v6727_v39  ;;  %v6468_v59 = vand.u32 2147483647, %v6404_v56  ;;  %v6668_v55 = vsub.f32 %v12043_v3, %v12071_v19  ;;  %v6401_v43 = vsub.f32 %v12044_v32, %v12068_v17  ;;  %v12072_v56 = vld [vmem:[#allocation2_spill] sm:$0xff] }
 0x6c4   : > { %v7808_v42 = vpack.c.bf16 %v6920_v26, %v6918_v58  ;;  %v6853_v48 = vmax.f32 %v6789_v18, 0.0  ;;  %v6530_v25 = vsub.f32 1.0, %v6466_v61  ;;  %v6730_v2 = vand.u32 2147483647, %v6666_v60 }
 0x6c5   : > { %v6855_v21 = vmax.f32 %v6791_v28, 0.0  ;;  %v6532_v52 = vsub.f32 1.0, %v6468_v59  ;;  %v6732_v6 = vand.u32 2147483647, %v6668_v55  ;;  %v6403_v36 = vsub.f32 %v12044_v32, %v12069_v12 }
 0x6c6   : > { %7809 = vmatprep.subr.bf16.mxu1 %v7808_v42  ;;  %v6917_v14 = vmul.f32 %v6853_v48, %v6589_v24  ;;  %v6594_v15 = vmax.f32 %v6530_v25, 0.0  ;;  %v6465_v47 = vand.u32 2147483647, %v6401_v43  ;;  %v6794_v62 = vsub.f32 1.0, %v6730_v2  ;;  %v12073_v48 = vld [vmem:[#allocation64_spill] sm:$0xff]  ;;  %v12074_v2 = vld [vmem:[#allocation65_spill] sm:$0xff] }
 0x6c7   : > { %v6919_v4 = vmul.f32 %v6855_v21, %v6591_v30  ;;  %v6596_v20 = vmax.f32 %v6532_v52, 0.0  ;;  %v6796_v45 = vsub.f32 1.0, %v6732_v6  ;;  %v6467_v0 = vand.u32 2147483647, %v6403_v36 }
 0x6c8   : > { %v6529_v16 = vsub.f32 1.0, %v6465_v47  ;;  %v6665_v17 = vsub.f32 %v12045_v41, %v12070_v49  ;;  %v6667_v5 = vsub.f32 %v12045_v41, %v12071_v19  ;;  %v6858_v39 = vmax.f32 %v6794_v62, 0.0 }
 0x6c9   : > { %v7810_v58 = vpack.c.bf16 %v6919_v4, %v6917_v14  ;;  %v6860_v24 = vmax.f32 %v6796_v45, 0.0  ;;  %v6406_v26 = vsub.f32 %v12042_v23, %v12072_v56  ;;  %v6531_v12 = vsub.f32 1.0, %v6467_v0 }
 0x6ca   : > { %v6593_v18 = vmax.f32 %v6529_v16, 0.0  ;;  %v6729_v30 = vand.u32 2147483647, %v6665_v17  ;;  %v6731_v61 = vand.u32 2147483647, %v6667_v5  ;;  %v6922_v28 = vmul.f32 %v6858_v39, %v6594_v15 }
 0x6cb   : > { %7811 = vmatpush1.bf16.msra.mxu1 %v7810_v58  ;;  %v6924_v59 = vmul.f32 %v6860_v24, %v6596_v20  ;;  %v6408_v60 = vsub.f32 %v12042_v23, %v11981_v34  ;;  %v6470_v49 = vand.u32 2147483647, %v6406_v26  ;;  %v6595_v55 = vmax.f32 %v6531_v12, 0.0 }
 0x6cc   : > { %v6793_v42 = vsub.f32 1.0, %v6729_v30  ;;  %v6795_v19 = vsub.f32 1.0, %v6731_v61  ;;  %v6670_v25 = vsub.f32 %v12043_v3, %v12073_v48  ;;  %v6672_v6 = vsub.f32 %v12043_v3, %v12074_v2 }
 0x6cd   : > { %v7812_v43 = vpack.c.bf16 %v6924_v59, %v6922_v28  ;;  %v6472_v21 = vand.u32 2147483647, %v6408_v60  ;;  %v6534_v52 = vsub.f32 1.0, %v6470_v49  ;;  %v6405_v47 = vsub.f32 %v12044_v32, %v12072_v56 }
 0x6ce   : > { %v6857_v14 = vmax.f32 %v6793_v42, 0.0  ;;  %v6859_v36 = vmax.f32 %v6795_v19, 0.0  ;;  %v6734_v15 = vand.u32 2147483647, %v6670_v25  ;;  %v6736_v62 = vand.u32 2147483647, %v6672_v6 }
 0x6cf   : > { %7813 = vmatprep.subr.bf16.mxu1 %v7812_v43  ;;  %v6536_v4 = vsub.f32 1.0, %v6472_v21  ;;  %v6598_v20 = vmax.f32 %v6534_v52, 0.0  ;;  %v6407_v45 = vsub.f32 %v12044_v32, %v11981_v34  ;;  %v6469_v5 = vand.u32 2147483647, %v6405_v47  ;;  %v12075_v34 = vld [vmem:[#allocation66_spill] sm:$0xff]  ;;  %v12076_v19 = vld [vmem:[#allocation67_spill] sm:$0xff] }
 0x6d0   : > { %v6921_v0 = vmul.f32 %v6857_v14, %v6593_v18  ;;  %v6923_v16 = vmul.f32 %v6859_v36, %v6595_v55  ;;  %v6798_v17 = vsub.f32 1.0, %v6734_v15  ;;  %v6800_v39 = vsub.f32 1.0, %v6736_v62  ;;  %v12078_v15 = vld [vmem:[#allocation69_spill] sm:$0xff] }
 0x6d1   : > { %v6600_v58 = vmax.f32 %v6536_v4, 0.0  ;;  %v6471_v24 = vand.u32 2147483647, %v6407_v45  ;;  %v6669_v26 = vsub.f32 %v12045_v41, %v12073_v48  ;;  %v6533_v56 = vsub.f32 1.0, %v6469_v5 }
 0x6d2   : > { %v7814_v12 = vpack.c.bf16 %v6923_v16, %v6921_v0  ;;  %v6862_v30 = vmax.f32 %v6798_v17, 0.0  ;;  %v6671_v61 = vsub.f32 %v12045_v41, %v12074_v2  ;;  %v6864_v28 = vmax.f32 %v6800_v39, 0.0  ;;  %v12077_v2 = vld [vmem:[#allocation68_spill] sm:$0xff] }
 0x6d3   : > { %v6535_v59 = vsub.f32 1.0, %v6471_v24  ;;  %v6733_v60 = vand.u32 2147483647, %v6669_v26  ;;  %v6410_v18 = vsub.f32 %v12042_v23, %v12075_v34  ;;  %v6597_v55 = vmax.f32 %v6533_v56, 0.0 }
 0x6d4   : > { %7815 = vmatpush1.bf16.msra.mxu1 %v7814_v12  ;;  %v6926_v49 = vmul.f32 %v6862_v30, %v6598_v20  ;;  %v6735_v42 = vand.u32 2147483647, %v6671_v61  ;;  %v6412_v25 = vsub.f32 %v12042_v23, %v12076_v19  ;;  %v6928_v48 = vmul.f32 %v6864_v28, %v6600_v58 }
 0x6d5   : > { %v6599_v43 = vmax.f32 %v6535_v59, 0.0  ;;  %v6797_v21 = vsub.f32 1.0, %v6733_v60  ;;  %v6474_v52 = vand.u32 2147483647, %v6410_v18  ;;  %v6674_v36 = vsub.f32 %v12043_v3, %v12077_v2 }
 0x6d6   : > { %v6799_v6 = vsub.f32 1.0, %v6735_v42  ;;  %v6476_v14 = vand.u32 2147483647, %v6412_v25  ;;  %v6676_v47 = vsub.f32 %v12043_v3, %v12078_v15  ;;  %v7816_v4 = vpack.c.bf16 %v6928_v48, %v6926_v49  ;;  %v12079_v42 = vld [vmem:[#allocation70_spill] sm:$0xff] }
 0x6d7   : > { %v6861_v62 = vmax.f32 %v6797_v21, 0.0  ;;  %v6538_v20 = vsub.f32 1.0, %v6474_v52  ;;  %v6409_v45 = vsub.f32 %v12044_v32, %v12075_v34  ;;  %v6738_v17 = vand.u32 2147483647, %v6674_v36 }
 0x6d8   : > { %v6863_v0 = vmax.f32 %v6799_v6, 0.0  ;;  %v6540_v16 = vsub.f32 1.0, %v6476_v14  ;;  %v6740_v5 = vand.u32 2147483647, %v6676_v47  ;;  %7817 = vmatprep.subr.bf16.mxu1 %v7816_v4  ;;  %v6411_v24 = vsub.f32 %v12044_v32, %v12076_v19  ;;  %v12080_v14 = vld [vmem:[#allocation71_spill] sm:$0xff] }
 0x6d9   : > { %v6925_v58 = vmul.f32 %v6861_v62, %v6597_v55  ;;  %v6602_v39 = vmax.f32 %v6538_v20, 0.0  ;;  %v6473_v26 = vand.u32 2147483647, %v6409_v45  ;;  %v6802_v56 = vsub.f32 1.0, %v6738_v17  ;;  %v12081_v62 = vld [vmem:[#allocation72_spill] sm:$0xff]  ;;  %v12082_v17 = vld [vmem:[#allocation73_spill] sm:$0xff] }
 0x6da   : > { %v6927_v12 = vmul.f32 %v6863_v0, %v6599_v43  ;;  %v6604_v30 = vmax.f32 %v6540_v16, 0.0  ;;  %v6804_v61 = vsub.f32 1.0, %v6740_v5  ;;  %v6475_v28 = vand.u32 2147483647, %v6411_v24 }
 0x6db   : > { %v6537_v59 = vsub.f32 1.0, %v6473_v26  ;;  %v6673_v60 = vsub.f32 %v12045_v41, %v12077_v2  ;;  %v6675_v34 = vsub.f32 %v12045_v41, %v12078_v15  ;;  %v6866_v49 = vmax.f32 %v6802_v56, 0.0 }
 0x6dc   : > { %v7818_v18 = vpack.c.bf16 %v6927_v12, %v6925_v58  ;;  %v6868_v55 = vmax.f32 %v6804_v61, 0.0  ;;  %v6414_v25 = vsub.f32 %v12042_v23, %v12079_v42  ;;  %v6539_v19 = vsub.f32 1.0, %v6475_v28 }
 0x6dd   : > { %v6601_v48 = vmax.f32 %v6537_v59, 0.0  ;;  %v6737_v43 = vand.u32 2147483647, %v6673_v60  ;;  %v6739_v21 = vand.u32 2147483647, %v6675_v34  ;;  %v6930_v52 = vmul.f32 %v6866_v49, %v6602_v39 }
 0x6de   : > { %7819 = vmatpush1.bf16.msra.mxu1 %v7818_v18  ;;  %v6932_v6 = vmul.f32 %v6868_v55, %v6604_v30  ;;  %v6416_v36 = vsub.f32 %v12042_v23, %v12080_v14  ;;  %v6478_v2 = vand.u32 2147483647, %v6414_v25  ;;  %v6603_v47 = vmax.f32 %v6539_v19, 0.0 }
 0x6df   : > { %v6801_v4 = vsub.f32 1.0, %v6737_v43  ;;  %v6803_v15 = vsub.f32 1.0, %v6739_v21  ;;  %v6678_v20 = vsub.f32 %v12043_v3, %v12081_v62  ;;  %v6680_v5 = vsub.f32 %v12043_v3, %v12082_v17 }
 0x6e0   : > { %v7820_v45 = vpack.c.bf16 %v6932_v6, %v6930_v52  ;;  %v6480_v0 = vand.u32 2147483647, %v6416_v36  ;;  %v6542_v16 = vsub.f32 1.0, %v6478_v2  ;;  %v6413_v26 = vsub.f32 %v12044_v32, %v12079_v42 }
 0x6e1   : > { %v6865_v58 = vmax.f32 %v6801_v4, 0.0  ;;  %v6867_v24 = vmax.f32 %v6803_v15, 0.0  ;;  %v6742_v39 = vand.u32 2147483647, %v6678_v20  ;;  %v6744_v56 = vand.u32 2147483647, %v6680_v5 }
 0x6e2   : > { %7821 = vmatprep.subr.bf16.mxu1 %v7820_v45  ;;  %v6544_v12 = vsub.f32 1.0, %v6480_v0  ;;  %v6606_v30 = vmax.f32 %v6542_v16, 0.0  ;;  %v6415_v61 = vsub.f32 %v12044_v32, %v12080_v14  ;;  %v6477_v34 = vand.u32 2147483647, %v6413_v26  ;;  %v12083_v14 = vld [vmem:[#allocation74_spill] sm:$0xff]  ;;  %v12084_v15 = vld [vmem:[#allocation75_spill] sm:$0xff] }
 0x6e3   : > { %v6929_v28 = vmul.f32 %v6865_v58, %v6601_v48  ;;  %v6931_v59 = vmul.f32 %v6867_v24, %v6603_v47  ;;  %v6806_v60 = vsub.f32 1.0, %v6742_v39  ;;  %v6808_v49 = vsub.f32 1.0, %v6744_v56  ;;  %v12086_v39 = vld [vmem:[#allocation77_spill] sm:$0xff] }
 0x6e4   : > { %v6608_v18 = vmax.f32 %v6544_v12, 0.0  ;;  %v6479_v55 = vand.u32 2147483647, %v6415_v61  ;;  %v6677_v25 = vsub.f32 %v12045_v41, %v12081_v62  ;;  %v6541_v42 = vsub.f32 1.0, %v6477_v34 }
 0x6e5   : > { %v7822_v19 = vpack.c.bf16 %v6931_v59, %v6929_v28  ;;  %v6870_v43 = vmax.f32 %v6806_v60, 0.0  ;;  %v6679_v21 = vsub.f32 %v12045_v41, %v12082_v17  ;;  %v6872_v52 = vmax.f32 %v6808_v49, 0.0  ;;  %v12085_v17 = vld [vmem:[#allocation76_spill] sm:$0xff] }
 0x6e6   : > { %v6543_v6 = vsub.f32 1.0, %v6479_v55  ;;  %v6741_v36 = vand.u32 2147483647, %v6677_v25  ;;  %v6418_v48 = vsub.f32 %v12042_v23, %v12083_v14  ;;  %v6605_v47 = vmax.f32 %v6541_v42, 0.0 }
 0x6e7   : > { %7823 = vmatpush1.bf16.msra.mxu1 %v7822_v19  ;;  %v6934_v2 = vmul.f32 %v6870_v43, %v6606_v30  ;;  %v6743_v4 = vand.u32 2147483647, %v6679_v21  ;;  %v6420_v20 = vsub.f32 %v12042_v23, %v12084_v15  ;;  %v6936_v62 = vmul.f32 %v6872_v52, %v6608_v18 }
 0x6e8   : > { %v6607_v45 = vmax.f32 %v6543_v6, 0.0  ;;  %v6805_v0 = vsub.f32 1.0, %v6741_v36  ;;  %v6482_v16 = vand.u32 2147483647, %v6418_v48  ;;  %v6682_v24 = vsub.f32 %v12043_v3, %v12085_v17 }
 0x6e9   : > { %v6807_v5 = vsub.f32 1.0, %v6743_v4  ;;  %v6484_v58 = vand.u32 2147483647, %v6420_v20  ;;  %v6684_v26 = vsub.f32 %v12043_v3, %v12086_v39  ;;  %v7824_v12 = vpack.c.bf16 %v6936_v62, %v6934_v2  ;;  %v12087_v4 = vld [vmem:[#allocation78_spill] sm:$0xff] }
 0x6ea   : > { %v6869_v56 = vmax.f32 %v6805_v0, 0.0  ;;  %v6546_v30 = vsub.f32 1.0, %v6482_v16  ;;  %v6417_v61 = vsub.f32 %v12044_v32, %v12083_v14  ;;  %v6746_v60 = vand.u32 2147483647, %v6682_v24 }
 0x6eb   : > { %v6871_v28 = vmax.f32 %v6807_v5, 0.0  ;;  %v6548_v59 = vsub.f32 1.0, %v6484_v58  ;;  %v6748_v34 = vand.u32 2147483647, %v6684_v26  ;;  %7825 = vmatprep.subr.bf16.mxu1 %v7824_v12  ;;  %v6419_v55 = vsub.f32 %v12044_v32, %v12084_v15 }
 0x6ec   : > { %v6933_v18 = vmul.f32 %v6869_v56, %v6605_v47  ;;  %v6610_v49 = vmax.f32 %v6546_v30, 0.0  ;;  %v6481_v25 = vand.u32 2147483647, %v6417_v61  ;;  %v6810_v42 = vsub.f32 1.0, %v6746_v60 }
 0x6ed   : > { %v6935_v19 = vmul.f32 %v6871_v28, %v6607_v45  ;;  %v6612_v43 = vmax.f32 %v6548_v59, 0.0  ;;  %v6812_v21 = vsub.f32 1.0, %v6748_v34  ;;  %v6483_v52 = vand.u32 2147483647, %v6419_v55 }
 0x6ee   : > { %v6545_v6 = vsub.f32 1.0, %v6481_v25  ;;  %v6681_v36 = vsub.f32 %v12045_v41, %v12085_v17  ;;  %v6683_v14 = vsub.f32 %v12045_v41, %v12086_v39  ;;  %v6874_v2 = vmax.f32 %v6810_v42, 0.0 }
 0x6ef   : > { %v7826_v48 = vpack.c.bf16 %v6935_v19, %v6933_v18  ;;  %v6876_v47 = vmax.f32 %v6812_v21, 0.0  ;;  %v6422_v20 = vsub.f32 %v12042_v23, %v12087_v4  ;;  %v6547_v15 = vsub.f32 1.0, %v6483_v52 }
 0x6f0   : > { %v6609_v62 = vmax.f32 %v6545_v6, 0.0  ;;  %v6745_v45 = vand.u32 2147483647, %v6681_v36  ;;  %v6747_v0 = vand.u32 2147483647, %v6683_v14  ;;  %v6938_v16 = vmul.f32 %v6874_v2, %v6610_v49 }
 0x6f1   : > { %7827 = vmatpush1.bf16.msra.mxu1 %v7826_v48  ;;  %v6940_v5 = vmul.f32 %v6876_v47, %v6612_v43  ;;  %v6424_v58 = vsub.f32 %v12042_v23, %v11948_v63  ;;  %v6486_v17 = vand.u32 2147483647, %v6422_v20  ;;  %v6611_v24 = vmax.f32 %v6547_v15, 0.0 }
 0x6f2   : > { %v6809_v26 = vsub.f32 1.0, %v6745_v45  ;;  %v6811_v39 = vsub.f32 1.0, %v6747_v0  ;;  %v6686_v12 = vsub.f32 %v12043_v3, %v11995_v11  ;;  %v6688_v28 = vsub.f32 %v12043_v3, %v11996_v54 }
 0x6f3   : > { %v7828_v56 = vpack.c.bf16 %v6940_v5, %v6938_v16  ;;  %v6488_v30 = vand.u32 2147483647, %v6424_v58  ;;  %v6550_v61 = vsub.f32 1.0, %v6486_v17  ;;  %v6421_v18 = vsub.f32 %v12044_v32, %v12087_v4 }
 0x6f4   : > { %v6873_v59 = vmax.f32 %v6809_v26, 0.0  ;;  %v6875_v60 = vmax.f32 %v6811_v39, 0.0  ;;  %v6750_v34 = vand.u32 2147483647, %v6686_v12  ;;  %v6752_v25 = vand.u32 2147483647, %v6688_v28 }
 0x6f5   : > { %7829 = vmatprep.subr.bf16.mxu1 %v7828_v56  ;;  %v6552_v49 = vsub.f32 1.0, %v6488_v30  ;;  %v6614_v55 = vmax.f32 %v6550_v61, 0.0  ;;  %v6423_v19 = vsub.f32 %v12044_v32, %v11948_v63  ;;  %v6485_v52 = vand.u32 2147483647, %v6421_v18  ;;  %v12088_v56 = vld [vmem:[#allocation85_spill] sm:$0xff] }
 0x6f6   : > { %v6937_v43 = vmul.f32 %v6873_v59, %v6609_v62  ;;  %v6939_v42 = vmul.f32 %v6875_v60, %v6611_v24  ;;  %v6814_v21 = vsub.f32 1.0, %v6750_v34  ;;  %v6816_v36 = vsub.f32 1.0, %v6752_v25 }
 0x6f7   : > { %v6616_v6 = vmax.f32 %v6552_v49, 0.0  ;;  %v6487_v14 = vand.u32 2147483647, %v6423_v19  ;;  %v6685_v48 = vsub.f32 %v12045_v41, %v11995_v11  ;;  %v6549_v4 = vsub.f32 1.0, %v6485_v52 }
 0x6f8   : > { %v7830_v2 = vpack.c.bf16 %v6939_v42, %v6937_v43  ;;  %v6878_v47 = vmax.f32 %v6814_v21, 0.0  ;;  %v6687_v20 = vsub.f32 %v12045_v41, %v11996_v54  ;;  %v6880_v15 = vmax.f32 %v6816_v36, 0.0 }
 0x6f9   : > { %v6551_v45 = vsub.f32 1.0, %v6487_v14  ;;  %v6749_v0 = vand.u32 2147483647, %v6685_v48  ;;  %v6426_v63 = vsub.f32 %v12042_v23, %v11951_v8  ;;  %v6613_v16 = vmax.f32 %v6549_v4, 0.0 }
 0x6fa   : > { %7831 = vmatpush1.bf16.msra.mxu1 %v7830_v2  ;;  %v6942_v62 = vmul.f32 %v6878_v47, %v6614_v55  ;;  %v6751_v5 = vand.u32 2147483647, %v6687_v20  ;;  %v6428_v58 = vsub.f32 %v12042_v23, %v11952_v50  ;;  %v6944_v11 = vmul.f32 %v6880_v15, %v6616_v6  ;;  %v12089_v15 = vld [vmem:[#allocation86_spill] sm:$0xff] }
 0x6fb   : > { %v6615_v17 = vmax.f32 %v6551_v45, 0.0  ;;  %v6813_v24 = vsub.f32 1.0, %v6749_v0  ;;  %v6490_v26 = vand.u32 2147483647, %v6426_v63  ;;  %v6690_v54 = vsub.f32 %v12043_v3, %v11997_v38 }
 0x6fc   : > { %v6815_v39 = vsub.f32 1.0, %v6751_v5  ;;  %v6492_v12 = vand.u32 2147483647, %v6428_v58  ;;  %v6692_v30 = vsub.f32 %v12043_v3, %v12088_v56  ;;  %v7832_v61 = vpack.c.bf16 %v6944_v11, %v6942_v62 }
 0x6fd   : > { %v6877_v28 = vmax.f32 %v6813_v24, 0.0  ;;  %v6554_v59 = vsub.f32 1.0, %v6490_v26  ;;  %v6425_v60 = vsub.f32 %v12044_v32, %v11951_v8  ;;  %v6754_v49 = vand.u32 2147483647, %v6690_v54 }
 0x6fe   : > { %v6879_v34 = vmax.f32 %v6815_v39, 0.0  ;;  %v6556_v18 = vsub.f32 1.0, %v6492_v12  ;;  %v6756_v55 = vand.u32 2147483647, %v6692_v30  ;;  %7833 = vmatprep.subr.bf16.mxu1 %v7832_v61  ;;  %v6427_v43 = vsub.f32 %v12044_v32, %v11952_v50 }
 0x6ff   : > { %v6941_v25 = vmul.f32 %v6877_v28, %v6613_v16  ;;  %v6618_v19 = vmax.f32 %v6554_v59, 0.0  ;;  %v6489_v42 = vand.u32 2147483647, %v6425_v60  ;;  %v6818_v6 = vsub.f32 1.0, %v6754_v49 }
 0x700   : > { %v6943_v21 = vmul.f32 %v6879_v34, %v6615_v17  ;;  %v6620_v52 = vmax.f32 %v6556_v18, 0.0  ;;  %v6820_v36 = vsub.f32 1.0, %v6756_v55  ;;  %v6491_v14 = vand.u32 2147483647, %v6427_v43 }
 0x701   : > { %v6553_v48 = vsub.f32 1.0, %v6489_v42  ;;  %v6689_v8 = vsub.f32 %v12045_v41, %v11997_v38  ;;  %v6691_v2 = vsub.f32 %v12045_v41, %v12088_v56  ;;  %v6882_v4 = vmax.f32 %v6818_v6, 0.0 }
 0x702   : > { %v7834_v47 = vpack.c.bf16 %v6943_v21, %v6941_v25  ;;  %v6884_v20 = vmax.f32 %v6820_v36, 0.0  ;;  %v6430_v45 = vsub.f32 %v12042_v23, %v12089_v15  ;;  %v6555_v50 = vsub.f32 1.0, %v6491_v14 }
 0x703   : > { %v6617_v0 = vmax.f32 %v6553_v48, 0.0  ;;  %v6753_v63 = vand.u32 2147483647, %v6689_v8  ;;  %v6755_v62 = vand.u32 2147483647, %v6691_v2  ;;  %v6946_v16 = vmul.f32 %v6882_v4, %v6618_v19 }
 0x704   : > { %7835 = vmatpush1.bf16.msra.mxu1 %v7834_v47  ;;  %v6948_v5 = vmul.f32 %v6884_v20, %v6620_v52  ;;  %v6432_v58 = vsub.f32 %v12042_v23, %v9415_v27  ;;  %v6494_v38 = vand.u32 2147483647, %v6430_v45  ;;  %v6619_v11 = vmax.f32 %v6555_v50, 0.0 }
 0x705   : > { %v6817_v17 = vsub.f32 1.0, %v6753_v63  ;;  %v6819_v24 = vsub.f32 1.0, %v6755_v62  ;;  %v6694_v26 = vsub.f32 %v12043_v3, %v9437_v29  ;;  %v6696_v56 = vsub.f32 %v12043_v3, %v9441_v46 }
 0x706   : > { %v7836_v39 = vpack.c.bf16 %v6948_v5, %v6946_v16  ;;  %v6496_v12 = vand.u32 2147483647, %v6432_v58  ;;  %v6558_v54 = vsub.f32 1.0, %v6494_v38  ;;  %v6429_v59 = vsub.f32 %v12044_v32, %v12089_v15 }
 0x707   : > { %v6881_v30 = vmax.f32 %v6817_v17, 0.0  ;;  %v6883_v61 = vmax.f32 %v6819_v24, 0.0  ;;  %v6758_v28 = vand.u32 2147483647, %v6694_v26  ;;  %v6760_v18 = vand.u32 2147483647, %v6696_v56 }
 0x708   : > { %7837 = vmatprep.subr.bf16.mxu1 %v7836_v39  ;;  %v6560_v60 = vsub.f32 1.0, %v6496_v12  ;;  %v6622_v34 = vmax.f32 %v6558_v54, 0.0  ;;  %v6431_v49 = vsub.f32 %v12044_v32, %v9415_v27  ;;  %v6493_v43 = vand.u32 2147483647, %v6429_v59 }
 0x709   : > { %v6945_v55 = vmul.f32 %v6881_v30, %v6617_v0  ;;  %v6947_v25 = vmul.f32 %v6883_v61, %v6619_v11  ;;  %v6822_v19 = vsub.f32 1.0, %v6758_v28  ;;  %v6824_v21 = vsub.f32 1.0, %v6760_v18 }
 0x70a   : > { %v6624_v42 = vmax.f32 %v6560_v60, 0.0  ;;  %v6495_v52 = vand.u32 2147483647, %v6431_v49  ;;  %v6693_v6 = vsub.f32 %v12045_v41, %v9437_v29  ;;  %v6557_v48 = vsub.f32 1.0, %v6493_v43  ;;  %v12090_v43 = vld [vmem:[#allocation7_spill] sm:$0xff] }
 0x70b   : > { %v7838_v36 = vpack.c.bf16 %v6947_v25, %v6945_v55  ;;  %v6886_v14 = vmax.f32 %v6822_v19, 0.0  ;;  %v6695_v8 = vsub.f32 %v12045_v41, %v9441_v46  ;;  %v6888_v2 = vmax.f32 %v6824_v21, 0.0 }
 0x70c   : > { %v6559_v47 = vsub.f32 1.0, %v6495_v52  ;;  %v6757_v4 = vand.u32 2147483647, %v6693_v6  ;;  %v6434_v27 = vsub.f32 %v12042_v23, %v9464_v44  ;;  %v6621_v15 = vmax.f32 %v6557_v48, 0.0  ;;  %v12091_v48 = vld [vmem:[#allocation10_spill] sm:$0xff] }
 0x70d   : > { %7839 = vmatpush1.bf16.msra.mxu1 %v7838_v36  ;;  %v6950_v20 = vmul.f32 %v6886_v14, %v6622_v34  ;;  %v6759_v45 = vand.u32 2147483647, %v6695_v8  ;;  %v6436_v50 = vsub.f32 %v12042_v23, %v9468_v31  ;;  %v6952_v29 = vmul.f32 %v6888_v2, %v6624_v42 }
 0x70e   : > { %v6623_v0 = vmax.f32 %v6559_v47, 0.0  ;;  %v6821_v63 = vsub.f32 1.0, %v6757_v4  ;;  %v6498_v62 = vand.u32 2147483647, %v6434_v27  ;;  %v6698_v46 = vsub.f32 %v12043_v3, %v9474_v37 }
 0x70f   : > { %v6823_v16 = vsub.f32 1.0, %v6759_v45  ;;  %v6500_v5 = vand.u32 2147483647, %v6436_v50  ;;  %v6700_v58 = vsub.f32 %v12043_v3, %v9487_v13  ;;  %v7840_v38 = vpack.c.bf16 %v6952_v29, %v6950_v20  ;;  %v12092_v20 = vld [vmem:[#allocation8_spill] sm:$0xff]  ;;  %v12093_v29 = vld [vmem:[#allocation9_spill] sm:$0xff] }
 0x710   : > { %v6885_v11 = vmax.f32 %v6821_v63, 0.0  ;;  %v6562_v17 = vsub.f32 1.0, %v6498_v62  ;;  %v6433_v24 = vsub.f32 %v12044_v32, %v9464_v44  ;;  %v6762_v39 = vand.u32 2147483647, %v6698_v46 }
 0x711   : > { %v6887_v26 = vmax.f32 %v6823_v16, 0.0  ;;  %v6564_v23 = vsub.f32 1.0, %v6500_v5  ;;  %v6764_v12 = vand.u32 2147483647, %v6700_v58  ;;  %7841 = vmatprep.subr.bf16.mxu1 %v7840_v38  ;;  %v6435_v30 = vsub.f32 %v12044_v32, %v9468_v31 }
 0x712   : > { %v6949_v54 = vmul.f32 %v6885_v11, %v6621_v15  ;;  %v6626_v56 = vmax.f32 %v6562_v17, 0.0  ;;  %v6497_v61 = vand.u32 2147483647, %v6433_v24  ;;  %v6826_v3 = vsub.f32 1.0, %v6762_v39  ;;  %v7907_v24 = vld [vmem:[%s9217_s15] sm:$0xff] }
 0x713   : > { %v6951_v28 = vmul.f32 %v6887_v26, %v6623_v0  ;;  %v6628_v59 = vmax.f32 %v6564_v23, 0.0  ;;  %v6828_v60 = vsub.f32 1.0, %v6764_v12  ;;  %v6499_v34 = vand.u32 2147483647, %v6435_v30  ;;  %v12094_v26 = vld [vmem:[#allocation37_spill] sm:$0xff] }
 0x714   : > { %v6561_v18 = vsub.f32 1.0, %v6497_v61  ;;  %v6697_v44 = vsub.f32 %v12045_v41, %v9474_v37  ;;  %v6699_v49 = vsub.f32 %v12045_v41, %v9487_v13  ;;  %v6890_v25 = vmax.f32 %v6826_v3, 0.0 }
 0x715   : > { %v7842_v55 = vpack.c.bf16 %v6951_v28, %v6949_v54  ;;  %v6892_v19 = vmax.f32 %v6828_v60, 0.0  ;;  %v2973_v42 = vrot.slane %v12062_v33, %v12090_v43  ;;  %v6563_v31 = vsub.f32 1.0, %v6499_v34  ;;  %v12097_v60 = vld [vmem:[#allocation3_spill] sm:$0xff] }
 0x716   : > { %v6625_v32 = vmax.f32 %v6561_v18, 0.0  ;;  %v6761_v21 = vand.u32 2147483647, %v6697_v44  ;;  %v6763_v52 = vand.u32 2147483647, %v6699_v49  ;;  %v6954_v6 = vmul.f32 %v6890_v25, %v6626_v56 }
 0x717   : > { %7843 = vmatpush1.bf16.msra.mxu1 %v7842_v55  ;;  %v6956_v36 = vmul.f32 %v6892_v19, %v6628_v59  ;;  %v2978_v14 = vmul.f32 %v2973_v42, %v11142_v40  ;;  %v3650_v37 = vrot.slane %v12062_v33, %v12091_v48  ;;  %v6627_v8 = vmax.f32 %v6563_v31, 0.0  ;;  %v12098_v19 = vld [vmem:[#allocation4_spill] sm:$0xff] }
 0x718   : > { %v6825_v13 = vsub.f32 1.0, %v6761_v21  ;;  %v6827_v41 = vsub.f32 1.0, %v6763_v52  ;;  %v2977_v2 = vrot.slane %v12064_v1, %v12090_v43  ;;  %v3654_v27 = vrot.slane %v12064_v1, %v12091_v48 }
 0x719   : > { %v7844_v47 = vpack.c.bf16 %v6956_v36, %v6954_v6  ;;  %v3655_v4 = vmul.f32 %v3650_v37, %v11144_v35  ;;  %v4327_v15 = vrot.slane %v12062_v33, %v12092_v20  ;;  %v5002_v0 = vrot.slane %v12062_v33, %v12093_v29 }
 0x71a   : > { %v6889_v45 = vmax.f32 %v6825_v13, 0.0  ;;  %v6891_v40 = vmax.f32 %v6827_v41, 0.0  ;;  %v2979_v50 = vmul.f32 %v2977_v2, %v11150_v53  ;;  %v3656_v62 = vmul.f32 %v3654_v27, %v11152_v9  ;;  %v7038_v2 = vld [vmem:[%s11408_s4] sm:$0xff] }
 0x71b   : > { %7845 = vmatprep.subr.bf16.mxu1 %v7844_v47  ;;  %v7854_v63 = vpack.c.bf16 %v3655_v4, %v2978_v14  ;;  %v4332_v16 = vmul.f32 %v4327_v15, %v11156_v22  ;;  %v4331_v35 = vrot.slane %v12064_v1, %v12092_v20  ;;  %v5007_v58 = vmul.f32 %v5002_v0, %v11158_v10  ;;  %v12095_v10 = vld [vmem:[#allocation35_spill] sm:$0xff]  ;;  %v7043_v47 = vpop.permute.xlu1 %7042 }
 0x71c   : > { %v6953_v5 = vmul.f32 %v6889_v45, %v6625_v32  ;;  %v6955_v46 = vmul.f32 %v6891_v40, %v6627_v8  ;;  %v5006_v53 = vrot.slane %v12064_v1, %v12093_v29  ;;  %v7852_v38 = vpack.c.bf16 %v3656_v62, %v2979_v50  ;;  %v12096_v1 = vld [vmem:[#allocation36_spill] sm:$0xff] }
 0x71d   : > { %v4333_v33 = vmul.f32 %v4331_v35, %v11162_v51  ;;  %v7858_v17 = vpack.c.bf16 %v5007_v58, %v4332_v16  ;;  %v660_v23 = vadd.f32 %v12095_v10, %v12094_v26  ;;  %v662_v39 = vadd.f32 %v12096_v1, %v12094_v26 }
 0x71e   : > { %v7846_v11 = vpack.c.bf16 %v6955_v46, %v6953_v5  ;;  %v5008_v9 = vmul.f32 %v5006_v53, %v11164_v7  ;;  %7853 = vmatprep.subr.bf16.mxu0 %v7852_v38 }
 0x71f   : > { %7855 = vmatpush1.bf16.msra.mxu0 %v7854_v63  ;;  %v694_v12 = vsub.f32 0.0, %v660_v23  ;;  %v695_v51 = vsub.f32 0.0, %v662_v39 }
 0x720   : > { %7847 = vmatpush1.bf16.msra.mxu1 %v7846_v11  ;;  %v7856_v22 = vpack.c.bf16 %v5008_v9, %v4333_v33 }
 0x721   : > { %v700_v54 = vmul.f32 1.442695, %v694_v12  ;;  %v702_v56 = vmul.f32 1.442695, %v695_v51 }
 0x722   : > { %7857 = vmatprep.subr.bf16.mxu0 %v7856_v22 }
 0x723   : > { %7022 = vmatmul.mubr.f32.vlgmr.msra.gmra.mrb[8].mxu1 %v7907_v24  ;;  %7859 = vmatpush1.bf16.msra.mxu0 %v7858_v17  ;;  %7892 = vpow2.f32 %v700_v54 }
 0x724   : > { %7894 = vpow2.f32 %v702_v56 }
 0x72d   : > { %v7893_v7 = vpop.eup %7892 }
 0x72e   : > { %v7895_v30 = vpop.eup %7894  ;;  %v706_v61 = vadd.f32 1.0, %v7893_v7 }
 0x72f   : > { %v707_v28 = vadd.f32 1.0, %v7895_v30 }
 0x730   : > { %7896 = vrcp.f32 %v706_v61 }
 0x731   : > { %7898 = vrcp.f32 %v707_v28 }
 0x73a   : > { %v7897_v59 = vpop.eup %7896 }
 0x73b   : > { %v7899_v3 = vpop.eup %7898  ;;  %v5681_v34 = vrot.slane %v7897_v59, %v12097_v60  ;;  %v6354_v43 = vrot.slane %v7897_v59, %v12098_v19  ;;  %v7031_v14 = vrot.slane %v7897_v59, %v12061_v57 }
 0x73c   : > { %v5685_v44 = vrot.slane %v7899_v3, %v12097_v60  ;;  %v6358_v31 = vrot.slane %v7899_v3, %v12098_v19  ;;  %v7035_v37 = vrot.slane %v7899_v3, %v12061_v57 }
 0x756   : > { %v5673_v18 = vpop.f32.mrb[6].mxu1 }
 0x757   : > { %v5686_v49 = vmul.f32 %v5681_v34, %v5673_v18  ;;  %v5675_v55 = vpop.f32.mrb[7].mxu1 }
 0x758   : > { %v5687_v25 = vmul.f32 %v5685_v44, %v5675_v55 }
 0x75b   : > { %v6346_v42 = vpop.f32.mrb[14].mxu0 }
 0x75c   : > { %v6359_v32 = vmul.f32 %v6354_v43, %v6346_v42  ;;  %v6348_v21 = vpop.f32.mrb[15].mxu0 }
 0x75d   : > { %v6360_v52 = vmul.f32 %v6358_v31, %v6348_v21 }
 0x75e   : > { %v7862_v6 = vpack.c.bf16 %v6359_v32, %v5686_v49 }
 0x75f   : > { %v7860_v36 = vpack.c.bf16 %v6360_v52, %v5687_v25 }
 0x761   : > { %7861 = vmatprep.subr.bf16.mxu0 %v7860_v36 }
 0x762   : > { %7863 = vmatpush1.bf16.msra.mxu0 %v7862_v6 }
 0x7f6   : > { %v7023_v48 = vpop.f32.mrb[8].mxu1 }
 0x7f7   : > { %v7036_v8 = vmul.f32 %v7031_v14, %v7023_v48  ;;  %v7025_v13 = vpop.f32.mrb[9].mxu1 }
 0x7f8   : > { %v7037_v41 = vmul.f32 %v7035_v37, %v7025_v13 }
 0x7fa   : > { %7064 = vmatprep.subr.mxu0 %v7037_v41 }
 0x7fb   : > { %7065 = vmatpush1.msra.mxu0 %v7036_v8 }
 0x7fc   : > { %7250 = vmatmul.mubr.msk.f32.vlgmr.msra.gmra.mrb[16].mxu0 %vm562_vm3, %v7038_v2 }
 0x8cf   : > { %v7114_v4 = vpop.f32.mrb[16].mxu0 }
 0x8d0   : > { %v7115_v27 = vadd.f32 %v7114_v4, %v7043_v47  ;;  %v7116_v20 = vpop.f32.mrb[17].mxu0 }
 0x8d1   : > { %v7117_v57 = vadd.f32 %v7116_v20, %v7043_v47 }
 0x8d2   : > { %7119 = vst [vmem:[%s304_s22] sm:$0xff] %v7115_v27 }
 0x8d3   : > { %7120 = vst [vmem:[%s304_s22 + $0x8] sm:$0xff] %v7117_v57 }
 0x8d4 PF: > { %s18_s24 = sadd.s32 1, %s7914_s24  }
 0x8d5   : > { %p15_p4 = scmp.ge.s32.totalorder %s18_s24, 4  }
 0x8d7   :  { %17 = sbr.rel (!%p15_p4) target bundleno = 1 (0x1), region = 89 }

</bundles_post_ra>
